<compile_context>
chip_gen: v5e
topology: v5e:2x2
jax: 0.10.0
libtpu: 0.0.40
codegen_flags: <defaults>
</compile_context>

<pallas_src>
import functools
import math

import jax
import jax.numpy as jnp
from jax.experimental import pallas as pl
from jax.experimental.pallas import tpu as pltpu

# ---------------- configuration (small, consistent with the module) ----------------
SRC_VOCAB = 50
TGT_VOCAB = 50
D_MODEL = 32
N_LAYERS = 2
N_HEADS = 4
D_HEAD = D_MODEL // N_HEADS
D_FF = 64
MAX_SEQ = 64
PAD_IDX = 0
LN_EPS = 1e-5
LOGITS_PAD = 128          # lane-dense padding for the final projection
VEC_PAD = 128             # lane padding for the per-layer bias/LN row slabs

_VMEM = pl.BlockSpec(memory_space=pltpu.MemorySpace.VMEM)


# ------------------------------ in-kernel helpers ------------------------------
def _layernorm(x, g, b, eps):
    mu = jnp.mean(x, axis=-1, keepdims=True)
    var = jnp.mean(jnp.square(x - mu), axis=-1, keepdims=True)
    return (x - mu) * jax.lax.rsqrt(var + eps) * g + b


def _mha(q2d, k2d, v2d, bias, *, B, Sq, Sk, H, dk):
    """q2d:[B*Sq,D] k2d,v2d:[B*Sk,D] bias:[B,Sq,Sk] additive (0 keep / -1e9 masked).

    Returns (ctx [B*Sq, D], probs [B*Sq, H*Sk]) where probs packs all heads along
    the lane dimension (one lane-dense store per layer by the caller)."""
    D = H * dk
    q = q2d.reshape(B, Sq, D)
    k = k2d.reshape(B, Sk, D)
    v = v2d.reshape(B, Sk, D)
    scale = jnp.float32(1.0 / math.sqrt(dk))

    ctx_heads, prob_heads = [], []
    for h in range(H):
        lo, hi = h * dk, (h + 1) * dk
        # batched over B, contracting dk directly (no transpose through the XLU)
        s = jnp.einsum("bqd,bkd->bqk", q[:, :, lo:hi], k[:, :, lo:hi],
                       preferred_element_type=jnp.float32) * scale + bias
        s = s - jnp.max(s, axis=-1, keepdims=True)
        e = jnp.exp(s)
        p = e * pl.reciprocal(jnp.sum(e, axis=-1, keepdims=True), approx=True)
        prob_heads.append(p)
        ctx_heads.append(jnp.einsum("bqk,bkd->bqd", p, v[:, :, lo:hi],
                                    preferred_element_type=jnp.float32))
    ctx = jnp.concatenate(ctx_heads, axis=-1).reshape(B * Sq, D)
    probs = jnp.concatenate(prob_heads, axis=-1).reshape(B * Sq, H * Sk)
    return ctx, probs


# ----------------------------- fully fused forward kernel -----------------------------
def _transformer_kernel(x_ref, y_ref, enc_bias_ref, self_bias_ref, cross_bias_ref,
                        enc_w_ref, enc_w2_ref, enc_v_ref,
                        dec_w_ref, dec_w2_ref, dec_v_ref,
                        fin_w_ref, fin_b_ref,
                        logits_ref, enc_attn_ref, self_attn_ref, cross_attn_ref,
                        *, B, Ss, T, H, dk, n_layers, d_ff, eps):
    D = H * dk
    enc_bias = enc_bias_ref[...]       # [B, Ss, Ss]
    self_bias = self_bias_ref[...]     # [B, T, T]
    cross_bias = cross_bias_ref[...]   # [B, T, Ss]

    # ------------------------------- encoder stack -------------------------------
    # Weight slab layout (per layer):  w: [wqkv(0:3D) | wo(3D:4D) | ff_w1(4D:4D+dff)]
    # Vector slab rows: 0 bqkv, 1 bo, 2 ln1g, 3 ln1b, 4 ff_b1, 5 ff_b2, 6 ln2g, 7 ln2b
    x = x_ref[...]                     # [B*Ss, D]
    for l in range(n_layers):
        w = enc_w_ref[l]               # [D, 4D + d_ff]
        w2 = enc_w2_ref[l]             # [d_ff, D]
        vec = enc_v_ref[l]             # [8, 128]

        qkv = (jnp.dot(x, w[:, 0:3 * D], preferred_element_type=jnp.float32)
               + vec[0:1, 0:3 * D])
        ctx, probs = _mha(qkv[:, 0:D], qkv[:, D:2 * D], qkv[:, 2 * D:3 * D],
                          enc_bias, B=B, Sq=Ss, Sk=Ss, H=H, dk=dk)
        enc_attn_ref[l] = probs        # one lane-dense store per layer

        a = (jnp.dot(ctx, w[:, 3 * D:4 * D], preferred_element_type=jnp.float32)
             + vec[1:2, 0:D])
        x = _layernorm(x + a, vec[2:3, 0:D], vec[3:4, 0:D], eps)

        f = jnp.maximum(jnp.dot(x, w[:, 4 * D:4 * D + d_ff],
                                preferred_element_type=jnp.float32)
                        + vec[4:5, 0:d_ff], 0.0)
        f = jnp.dot(f, w2, preferred_element_type=jnp.float32) + vec[5:6, 0:D]
        x = _layernorm(x + f, vec[6:7, 0:D], vec[7:8, 0:D], eps)
    enc_out = x                        # stays resident in vregs/VMEM

    # ------------------------------- decoder stack -------------------------------
    # w: [s_wqkv(0:3D) | s_wo(3D:4D) | c_wq(4D:5D) | c_wkv(5D:7D) | c_wo(7D:8D) | ff_w1(8D:8D+dff)]
    # vec rows: 0 s_bqkv, 1 s_bo, 2 ln1g, 3 ln1b, 4 c_bq, 5 c_bkv, 6 c_bo,
    #           7 ln2g, 8 ln2b, 9 ff_b1, 10 ff_b2, 11 ln3g, 12 ln3b
    y = y_ref[...]                     # [B*T, D]
    for l in range(n_layers):
        w = dec_w_ref[l]               # [D, 8D + d_ff]
        w2 = dec_w2_ref[l]             # [d_ff, D]
        vec = dec_v_ref[l]             # [16, 128]

        # masked self-attention
        qkv = (jnp.dot(y, w[:, 0:3 * D], preferred_element_type=jnp.float32)
               + vec[0:1, 0:3 * D])
        ctx, probs = _mha(qkv[:, 0:D], qkv[:, D:2 * D], qkv[:, 2 * D:3 * D],
                          self_bias, B=B, Sq=T, Sk=T, H=H, dk=dk)
        self_attn_ref[l] = probs
        a = (jnp.dot(ctx, w[:, 3 * D:4 * D], preferred_element_type=jnp.float32)
             + vec[1:2, 0:D])
        y = _layernorm(y + a, vec[2:3, 0:D], vec[3:4, 0:D], eps)

        # cross-attention (Q from decoder, fused K/V from encoder output)
        q = (jnp.dot(y, w[:, 4 * D:5 * D], preferred_element_type=jnp.float32)
             + vec[4:5, 0:D])
        kv = (jnp.dot(enc_out, w[:, 5 * D:7 * D], preferred_element_type=jnp.float32)
              + vec[5:6, 0:2 * D])
        ctx, probs = _mha(q, kv[:, 0:D], kv[:, D:2 * D],
                          cross_bias, B=B, Sq=T, Sk=Ss, H=H, dk=dk)
        cross_attn_ref[l] = probs
        a = (jnp.dot(ctx, w[:, 7 * D:8 * D], preferred_element_type=jnp.float32)
             + vec[6:7, 0:D])
        y = _layernorm(y + a, vec[7:8, 0:D], vec[8:9, 0:D], eps)

        # feed-forward
        f = jnp.maximum(jnp.dot(y, w[:, 8 * D:8 * D + d_ff],
                                preferred_element_type=jnp.float32)
                        + vec[9:10, 0:d_ff], 0.0)
        f = jnp.dot(f, w2, preferred_element_type=jnp.float32) + vec[10:11, 0:D]
        y = _layernorm(y + f, vec[11:12, 0:D], vec[12:13, 0:D], eps)

    # ---------------- final projection (lane-padded to 128, sliced back in JAX) ---------
    logits_ref[...] = (jnp.dot(y, fin_w_ref[...], preferred_element_type=jnp.float32)
                       + fin_b_ref[...])


# --------------------------------- kernel wrapper ---------------------------------
def run_transformer_kernel(kp, x0, y0, enc_bias, self_bias, cross_bias, B, Ss, T):
    kernel = functools.partial(
        _transformer_kernel, B=B, Ss=Ss, T=T, H=N_HEADS, dk=D_HEAD,
        n_layers=N_LAYERS, d_ff=D_FF, eps=LN_EPS)
    out_shape = [
        jax.ShapeDtypeStruct((B * T, LOGITS_PAD), jnp.float32),
        jax.ShapeDtypeStruct((N_LAYERS, B * Ss, N_HEADS * Ss), jnp.float32),
        jax.ShapeDtypeStruct((N_LAYERS, B * T, N_HEADS * T), jnp.float32),
        jax.ShapeDtypeStruct((N_LAYERS, B * T, N_HEADS * Ss), jnp.float32),
    ]
    return pl.pallas_call(
        kernel,
        in_specs=[_VMEM] * 13,
        out_specs=[_VMEM] * 4,
        out_shape=out_shape,
    )(x0, y0, enc_bias, self_bias, cross_bias,
      kp["enc_w"], kp["enc_w2"], kp["enc_v"],
      kp["dec_w"], kp["dec_w2"], kp["dec_v"],
      kp["fin_w"], kp["fin_b"])


# ---------------------------------- model pieces ----------------------------------
def positional_encoding(max_len, d_model):
    pos = jnp.arange(max_len, dtype=jnp.float32)[:, None]
    i = jnp.arange(0, d_model, 2, dtype=jnp.float32)
    div = jnp.exp(-i * (math.log(10000.0) / d_model))
    pe = jnp.zeros((max_len, d_model), dtype=jnp.float32)
    pe = pe.at[:, 0::2].set(jnp.sin(pos * div))
    pe = pe.at[:, 1::2].set(jnp.cos(pos * div))
    return pe


def embed(emb_table, pe, tokens):
    # token embedding * sqrt(d_model) + positional encoding; dropout = identity (eval)
    S = tokens.shape[1]
    x = emb_table[tokens] * math.sqrt(D_MODEL)
    return x + pe[:S][None, :, :]


def create_padding_mask(seq, pad_idx=PAD_IDX):
    return (seq != pad_idx)[:, None, None, :]                     # [B,1,1,S] bool


def create_look_ahead_mask(size):
    return jnp.tril(jnp.ones((size, size), dtype=bool))           # [T,T] bool


def create_masks(src, tgt, pad_idx=PAD_IDX):
    src_mask = create_padding_mask(src, pad_idx)                  # [B,1,1,Ss]
    T = tgt.shape[1]
    tgt_pad = jnp.broadcast_to(create_padding_mask(tgt, pad_idx), (tgt.shape[0], 1, T, T))
    tgt_mask = tgt_pad & create_look_ahead_mask(T)[None, None]    # [B,1,T,T]
    return src_mask, tgt_mask


def transformer_forward(kp, src, tgt):
    B, Ss = src.shape
    T = tgt.shape[1]

    # Additive mask biases precomputed ONCE in JAX (0 keep / -1e9 masked), shared
    # across heads inside the kernel -> in-kernel it's a single fused add.
    src_mask, tgt_mask = create_masks(src, tgt)
    enc_bias = jnp.where(jnp.broadcast_to(src_mask[:, 0], (B, Ss, Ss)),
                         0.0, -1e9).astype(jnp.float32)
    self_bias = jnp.where(tgt_mask[:, 0], 0.0, -1e9).astype(jnp.float32)
    cross_bias = jnp.where(jnp.broadcast_to(src_mask[:, 0], (B, T, Ss)),
                           0.0, -1e9).astype(jnp.float32)

    x0 = embed(kp["src_emb"], kp["pe"], src).reshape(B * Ss, D_MODEL)
    y0 = embed(kp["tgt_emb"], kp["pe"], tgt).reshape(B * T, D_MODEL)

    logits_pad, enc_attn, self_attn, cross_attn = run_transformer_kernel(
        kp, x0, y0, enc_bias, self_bias, cross_bias, B, Ss, T)

    logits = logits_pad[:, :TGT_VOCAB].reshape(B, T, TGT_VOCAB)
    # un-pack the lane-dense attention slabs once, on the stacked results
    enc_attn = enc_attn.reshape(N_LAYERS, B, Ss, N_HEADS, Ss).transpose(0, 1, 3, 2, 4)
    self_attn = self_attn.reshape(N_LAYERS, B, T, N_HEADS, T).transpose(0, 1, 3, 2, 4)
    cross_attn = cross_attn.reshape(N_LAYERS, B, T, N_HEADS, Ss).transpose(0, 1, 3, 2, 4)
    return logits, enc_attn, self_attn, cross_attn


# ------------------------------- deterministic init -------------------------------
def xavier_uniform(key, shape):
    fan_in, fan_out = shape[0], shape[1]
    bound = math.sqrt(6.0 / (fan_in + fan_out))
    return jax.random.uniform(key, shape, jnp.float32, -bound, bound)


def init_mha_params(key):
    ks = jax.random.split(key, 4)
    z = lambda: jnp.zeros((D_MODEL,), jnp.float32)
    return {
        "wq": xavier_uniform(ks[0], (D_MODEL, D_MODEL)), "bq": z(),
        "wk": xavier_uniform(ks[1], (D_MODEL, D_MODEL)), "bk": z(),
        "wv": xavier_uniform(ks[2], (D_MODEL, D_MODEL)), "bv": z(),
        "wo": xavier_uniform(ks[3], (D_MODEL, D_MODEL)), "bo": z(),
    }


def init_ffn_params(key):
    k1, k2 = jax.random.split(key)
    return {
        "ff_w1": xavier_uniform(k1, (D_MODEL, D_FF)), "ff_b1": jnp.zeros((D_FF,), jnp.float32),
        "ff_w2": xavier_uniform(k2, (D_FF, D_MODEL)), "ff_b2": jnp.zeros((D_MODEL,), jnp.float32),
    }


def init_params(key):
    keys = jax.random.split(key, 4 + 2 * N_LAYERS)
    ones = lambda: jnp.ones((D_MODEL,), jnp.float32)
    zeros = lambda: jnp.zeros((D_MODEL,), jnp.float32)
    params = {
        "src_emb": xavier_uniform(keys[0], (SRC_VOCAB, D_MODEL)),
        "tgt_emb": xavier_uniform(keys[1], (TGT_VOCAB, D_MODEL)),
        "pe": positional_encoding(MAX_SEQ, D_MODEL),
        "final_w": xavier_uniform(keys[2], (D_MODEL, TGT_VOCAB)),
        "final_b": jnp.zeros((TGT_VOCAB,), jnp.float32),
        "enc_layers": [],
        "dec_layers": [],
    }
    for l in range(N_LAYERS):
        k_mha, k_ff = jax.random.split(keys[4 + l])
        params["enc_layers"].append({
            "mha": init_mha_params(k_mha), **init_ffn_params(k_ff),
            "ln1_g": ones(), "ln1_b": zeros(), "ln2_g": ones(), "ln2_b": zeros(),
        })
    for l in range(N_LAYERS):
        k_s, k_c, k_ff = jax.random.split(keys[4 + N_LAYERS + l], 3)
        params["dec_layers"].append({
            "self_mha": init_mha_params(k_s), "cross_mha": init_mha_params(k_c),
            **init_ffn_params(k_ff),
            "ln1_g": ones(), "ln1_b": zeros(), "ln2_g": ones(), "ln2_b": zeros(),
            "ln3_g": ones(), "ln3_b": zeros(),
        })
    return params


def prepare_kernel_params(p):
    """One-time repack: per layer-stack, weights go into one [L, D, *] lane-concatenated
    slab (+ one [L, D_FF, D] slab for ff_w2) and all bias/LN vectors into one
    [L, rows, 128] row slab; the final projection is lane-padded to 128 columns."""
    def vec_slab(vectors, n_rows):
        slab = jnp.zeros((n_rows, VEC_PAD), jnp.float32)
        for r, v in enumerate(vectors):
            slab = slab.at[r, :v.shape[0]].set(v)
        return slab

    enc_w, enc_w2, enc_v = [], [], []
    for lp in p["enc_layers"]:
        m = lp["mha"]
        enc_w.append(jnp.concatenate(
            [m["wq"], m["wk"], m["wv"], m["wo"], lp["ff_w1"]], axis=1))
        enc_w2.append(lp["ff_w2"])
        enc_v.append(vec_slab(
            [jnp.concatenate([m["bq"], m["bk"], m["bv"]]), m["bo"],
             lp["ln1_g"], lp["ln1_b"], lp["ff_b1"], lp["ff_b2"],
             lp["ln2_g"], lp["ln2_b"]], 8))

    dec_w, dec_w2, dec_v = [], [], []
    for lp in p["dec_layers"]:
        s, c = lp["self_mha"], lp["cross_mha"]
        dec_w.append(jnp.concatenate(
            [s["wq"], s["wk"], s["wv"], s["wo"],
             c["wq"], c["wk"], c["wv"], c["wo"], lp["ff_w1"]], axis=1))
        dec_w2.append(lp["ff_w2"])
        dec_v.append(vec_slab(
            [jnp.concatenate([s["bq"], s["bk"], s["bv"]]), s["bo"],
             lp["ln1_g"], lp["ln1_b"],
             c["bq"], jnp.concatenate([c["bk"], c["bv"]]), c["bo"],
             lp["ln2_g"], lp["ln2_b"],
             lp["ff_b1"], lp["ff_b2"], lp["ln3_g"], lp["ln3_b"]], 16))

    fin_w = jnp.zeros((D_MODEL, LOGITS_PAD), jnp.float32).at[:, :TGT_VOCAB].set(p["final_w"])
    fin_b = jnp.zeros((1, LOGITS_PAD), jnp.float32).at[:, :TGT_VOCAB].set(p["final_b"][None, :])

    return {
        "src_emb": p["src_emb"], "tgt_emb": p["tgt_emb"], "pe": p["pe"],
        "enc_w": jnp.stack(enc_w), "enc_w2": jnp.stack(enc_w2), "enc_v": jnp.stack(enc_v),
        "dec_w": jnp.stack(dec_w), "dec_w2": jnp.stack(dec_w2), "dec_v": jnp.stack(dec_v),
        "fin_w": fin_w, "fin_b": fin_b,
    }


# ------------------------------------- main -------------------------------------
if __name__ == "__main__":
    B, S_SRC, S_TGT = 2, 8, 8
    root = jax.random.PRNGKey(0)
    k_params, k_src, k_tgt = jax.random.split(root, 3)

    params = init_params(k_params)
    kparams = prepare_kernel_params(params)   # one-time weight fusion / packing / padding

    src = jax.random.randint(k_src, (B, S_SRC), 1, SRC_VOCAB, dtype=jnp.int32)
    tgt = jax.random.randint(k_tgt, (B, S_TGT), 1, TGT_VOCAB, dtype=jnp.int32)
    # introduce some padding to exercise the padding masks
    src = src.at[1, -2:].set(PAD_IDX)
    tgt = tgt.at[1, -1].set(PAD_IDX)

    forward = jax.jit(transformer_forward)
    logits, enc_attn, dec_self_attn, dec_cross_attn = forward(kparams, src, tgt)
    jax.block_until_ready((logits, enc_attn, dec_self_attn, dec_cross_attn))

    assert logits.shape == (B, S_TGT, TGT_VOCAB)
    assert enc_attn.shape == (N_LAYERS, B, N_HEADS, S_SRC, S_SRC)
    assert dec_self_attn.shape == (N_LAYERS, B, N_HEADS, S_TGT, S_TGT)
    assert dec_cross_attn.shape == (N_LAYERS, B, N_HEADS, S_TGT, S_SRC)
    assert bool(jnp.all(jnp.isfinite(logits)))
    assert bool(jnp.all(jnp.isfinite(enc_attn)))
    assert bool(jnp.all(jnp.isfinite(dec_self_attn)))
    assert bool(jnp.all(jnp.isfinite(dec_cross_attn)))
    print("KERNEL_OK")
</pallas_src>

<mosaic_0001>
module attributes {stable_mosaic.version = 11 : i64} {
  func.func @_transformer_kernel(%arg0: memref<16x32xf32, #tpu.memory_space<vmem>>, %arg1: memref<16x32xf32, #tpu.memory_space<vmem>>, %arg2: memref<2x8x8xf32, #tpu.memory_space<vmem>>, %arg3: memref<2x8x8xf32, #tpu.memory_space<vmem>>, %arg4: memref<2x8x8xf32, #tpu.memory_space<vmem>>, %arg5: memref<2x32x192xf32, #tpu.memory_space<vmem>>, %arg6: memref<2x64x32xf32, #tpu.memory_space<vmem>>, %arg7: memref<2x8x128xf32, #tpu.memory_space<vmem>>, %arg8: memref<2x32x320xf32, #tpu.memory_space<vmem>>, %arg9: memref<2x64x32xf32, #tpu.memory_space<vmem>>, %arg10: memref<2x16x128xf32, #tpu.memory_space<vmem>>, %arg11: memref<32x128xf32, #tpu.memory_space<vmem>>, %arg12: memref<1x128xf32, #tpu.memory_space<vmem>>, %arg13: memref<16x128xf32, #tpu.memory_space<vmem>>, %arg14: memref<2x16x32xf32, #tpu.memory_space<vmem>>, %arg15: memref<2x16x32xf32, #tpu.memory_space<vmem>>, %arg16: memref<2x16x32xf32, #tpu.memory_space<vmem>>) attributes {dimension_semantics = [], scalar_prefetch = 0 : i64, scratch_operands = 0 : i64, tpu.core_type = #tpu.core_type<tc>} {
    %c0 = arith.constant 0 : index
    %c0_0 = arith.constant 0 : index
    %c0_1 = arith.constant 0 : index
    %0 = vector.load %arg2[%c0, %c0_0, %c0_1] : memref<2x8x8xf32, #tpu.memory_space<vmem>>, vector<2x8x8xf32>
    %c0_2 = arith.constant 0 : index
    %c0_3 = arith.constant 0 : index
    %c0_4 = arith.constant 0 : index
    %1 = vector.load %arg3[%c0_2, %c0_3, %c0_4] : memref<2x8x8xf32, #tpu.memory_space<vmem>>, vector<2x8x8xf32>
    %c0_5 = arith.constant 0 : index
    %c0_6 = arith.constant 0 : index
    %c0_7 = arith.constant 0 : index
    %2 = vector.load %arg4[%c0_5, %c0_6, %c0_7] : memref<2x8x8xf32, #tpu.memory_space<vmem>>, vector<2x8x8xf32>
    %c0_8 = arith.constant 0 : index
    %c0_9 = arith.constant 0 : index
    %3 = vector.load %arg0[%c0_8, %c0_9] : memref<16x32xf32, #tpu.memory_space<vmem>>, vector<16x32xf32>
    %c0_10 = arith.constant 0 : index
    %c0_11 = arith.constant 0 : index
    %c0_12 = arith.constant 0 : index
    %4 = vector.load %arg5[%c0_10, %c0_11, %c0_12] : memref<2x32x192xf32, #tpu.memory_space<vmem>>, vector<1x32x192xf32>
    %5 = vector.shape_cast %4 : vector<1x32x192xf32> to vector<32x192xf32>
    %c0_13 = arith.constant 0 : index
    %c0_14 = arith.constant 0 : index
    %c0_15 = arith.constant 0 : index
    %6 = vector.load %arg6[%c0_13, %c0_14, %c0_15] : memref<2x64x32xf32, #tpu.memory_space<vmem>>, vector<1x64x32xf32>
    %7 = vector.shape_cast %6 : vector<1x64x32xf32> to vector<64x32xf32>
    %c0_16 = arith.constant 0 : index
    %c0_17 = arith.constant 0 : index
    %c0_18 = arith.constant 0 : index
    %8 = vector.load %arg7[%c0_16, %c0_17, %c0_18] : memref<2x8x128xf32, #tpu.memory_space<vmem>>, vector<1x8x128xf32>
    %9 = vector.shape_cast %8 : vector<1x8x128xf32> to vector<8x128xf32>
    %10 = vector.extract_strided_slice %5 {offsets = [0, 0], sizes = [32, 96], strides = [1, 1]} : vector<32x192xf32> to vector<32x96xf32>
    %cst = arith.constant dense<0.000000e+00> : vector<16x96xf32>
    %11 = tpu.matmul %3, %10, %cst {dimension_numbers = #tpu.dot_dimension_numbers<[1], [0], [0], [1], [0, 0, 1, 1], [], []>} : vector<16x32xf32>, vector<32x96xf32>, vector<16x96xf32> -> vector<16x96xf32>
    %12 = vector.extract_strided_slice %9 {offsets = [0, 0], sizes = [1, 96], strides = [1, 1]} : vector<8x128xf32> to vector<1x96xf32>
    %13 = vector.broadcast %12 : vector<1x96xf32> to vector<16x96xf32>
    %14 = arith.addf %11, %13 : vector<16x96xf32>
    %15 = vector.extract_strided_slice %14 {offsets = [0, 0], sizes = [16, 32], strides = [1, 1]} : vector<16x96xf32> to vector<16x32xf32>
    %16 = vector.extract_strided_slice %14 {offsets = [0, 32], sizes = [16, 32], strides = [1, 1]} : vector<16x96xf32> to vector<16x32xf32>
    %17 = vector.extract_strided_slice %14 {offsets = [0, 64], sizes = [16, 32], strides = [1, 1]} : vector<16x96xf32> to vector<16x32xf32>
    %18 = vector.shape_cast %15 : vector<16x32xf32> to vector<2x8x32xf32>
    %19 = vector.shape_cast %16 : vector<16x32xf32> to vector<2x8x32xf32>
    %20 = vector.shape_cast %17 : vector<16x32xf32> to vector<2x8x32xf32>
    %21 = vector.extract_strided_slice %18 {offsets = [0, 0, 0], sizes = [2, 8, 8], strides = [1, 1, 1]} : vector<2x8x32xf32> to vector<2x8x8xf32>
    %22 = vector.extract_strided_slice %19 {offsets = [0, 0, 0], sizes = [2, 8, 8], strides = [1, 1, 1]} : vector<2x8x32xf32> to vector<2x8x8xf32>
    "tpu.trace_start"() <{level = 10 : i32, message = "bqd,bkd->bqk"}> : () -> ()
    %cst_19 = arith.constant dense<0.000000e+00> : vector<2x8x8xf32>
    %23 = tpu.matmul %21, %22, %cst_19 {dimension_numbers = #tpu.dot_dimension_numbers<[2], [2], [1], [1], [0, 0, 0, 1, 1, 1], [0], [0]>} : vector<2x8x8xf32>, vector<2x8x8xf32>, vector<2x8x8xf32> -> vector<2x8x8xf32>
    "tpu.trace_stop"() : () -> ()
    %cst_20 = arith.constant 0.353553385 : f32
    %24 = vector.broadcast %cst_20 : f32 to vector<2x8x8xf32>
    %25 = arith.mulf %23, %24 : vector<2x8x8xf32>
    %26 = arith.addf %25, %0 : vector<2x8x8xf32>
    %cst_21 = arith.constant dense<0xFF800000> : vector<2x8xf32>
    %27 = vector.multi_reduction <maximumf>, %26, %cst_21 [2] : vector<2x8x8xf32> to vector<2x8xf32>
    %28 = vector.shape_cast %27 : vector<2x8xf32> to vector<2x8x1xf32>
    %29 = vector.broadcast %28 : vector<2x8x1xf32> to vector<2x8x8xf32>
    %30 = arith.subf %26, %29 : vector<2x8x8xf32>
    %31 = math.exp %30 : vector<2x8x8xf32>
    %cst_22 = arith.constant dense<0.000000e+00> : vector<2x8xf32>
    %32 = vector.multi_reduction <add>, %31, %cst_22 [2] : vector<2x8x8xf32> to vector<2x8xf32>
    %33 = vector.shape_cast %32 : vector<2x8xf32> to vector<2x8x1xf32>
    %34 = tpu.reciprocal %33 {approx = true} : vector<2x8x1xf32> -> vector<2x8x1xf32>
    %35 = vector.broadcast %34 : vector<2x8x1xf32> to vector<2x8x8xf32>
    %36 = arith.mulf %31, %35 : vector<2x8x8xf32>
    %37 = vector.extract_strided_slice %20 {offsets = [0, 0, 0], sizes = [2, 8, 8], strides = [1, 1, 1]} : vector<2x8x32xf32> to vector<2x8x8xf32>
    "tpu.trace_start"() <{level = 10 : i32, message = "bqk,bkd->bqd"}> : () -> ()
    %cst_23 = arith.constant dense<0.000000e+00> : vector<2x8x8xf32>
    %38 = tpu.matmul %36, %37, %cst_23 {dimension_numbers = #tpu.dot_dimension_numbers<[2], [1], [1], [2], [0, 0, 0, 1, 1, 2], [0], [0]>} : vector<2x8x8xf32>, vector<2x8x8xf32>, vector<2x8x8xf32> -> vector<2x8x8xf32>
    "tpu.trace_stop"() : () -> ()
    %39 = vector.extract_strided_slice %18 {offsets = [0, 0, 8], sizes = [2, 8, 8], strides = [1, 1, 1]} : vector<2x8x32xf32> to vector<2x8x8xf32>
    %40 = vector.extract_strided_slice %19 {offsets = [0, 0, 8], sizes = [2, 8, 8], strides = [1, 1, 1]} : vector<2x8x32xf32> to vector<2x8x8xf32>
    "tpu.trace_start"() <{level = 10 : i32, message = "bqd,bkd->bqk"}> : () -> ()
    %cst_24 = arith.constant dense<0.000000e+00> : vector<2x8x8xf32>
    %41 = tpu.matmul %39, %40, %cst_24 {dimension_numbers = #tpu.dot_dimension_numbers<[2], [2], [1], [1], [0, 0, 0, 1, 1, 1], [0], [0]>} : vector<2x8x8xf32>, vector<2x8x8xf32>, vector<2x8x8xf32> -> vector<2x8x8xf32>
    "tpu.trace_stop"() : () -> ()
    %cst_25 = arith.constant 0.353553385 : f32
    %42 = vector.broadcast %cst_25 : f32 to vector<2x8x8xf32>
    %43 = arith.mulf %41, %42 : vector<2x8x8xf32>
    %44 = arith.addf %43, %0 : vector<2x8x8xf32>
    %cst_26 = arith.constant dense<0xFF800000> : vector<2x8xf32>
    %45 = vector.multi_reduction <maximumf>, %44, %cst_26 [2] : vector<2x8x8xf32> to vector<2x8xf32>
    %46 = vector.shape_cast %45 : vector<2x8xf32> to vector<2x8x1xf32>
    %47 = vector.broadcast %46 : vector<2x8x1xf32> to vector<2x8x8xf32>
    %48 = arith.subf %44, %47 : vector<2x8x8xf32>
    %49 = math.exp %48 : vector<2x8x8xf32>
    %cst_27 = arith.constant dense<0.000000e+00> : vector<2x8xf32>
    %50 = vector.multi_reduction <add>, %49, %cst_27 [2] : vector<2x8x8xf32> to vector<2x8xf32>
    %51 = vector.shape_cast %50 : vector<2x8xf32> to vector<2x8x1xf32>
    %52 = tpu.reciprocal %51 {approx = true} : vector<2x8x1xf32> -> vector<2x8x1xf32>
    %53 = vector.broadcast %52 : vector<2x8x1xf32> to vector<2x8x8xf32>
    %54 = arith.mulf %49, %53 : vector<2x8x8xf32>
    %55 = vector.extract_strided_slice %20 {offsets = [0, 0, 8], sizes = [2, 8, 8], strides = [1, 1, 1]} : vector<2x8x32xf32> to vector<2x8x8xf32>
    "tpu.trace_start"() <{level = 10 : i32, message = "bqk,bkd->bqd"}> : () -> ()
    %cst_28 = arith.constant dense<0.000000e+00> : vector<2x8x8xf32>
    %56 = tpu.matmul %54, %55, %cst_28 {dimension_numbers = #tpu.dot_dimension_numbers<[2], [1], [1], [2], [0, 0, 0, 1, 1, 2], [0], [0]>} : vector<2x8x8xf32>, vector<2x8x8xf32>, vector<2x8x8xf32> -> vector<2x8x8xf32>
    "tpu.trace_stop"() : () -> ()
    %57 = vector.extract_strided_slice %18 {offsets = [0, 0, 16], sizes = [2, 8, 8], strides = [1, 1, 1]} : vector<2x8x32xf32> to vector<2x8x8xf32>
    %58 = vector.extract_strided_slice %19 {offsets = [0, 0, 16], sizes = [2, 8, 8], strides = [1, 1, 1]} : vector<2x8x32xf32> to vector<2x8x8xf32>
    "tpu.trace_start"() <{level = 10 : i32, message = "bqd,bkd->bqk"}> : () -> ()
    %cst_29 = arith.constant dense<0.000000e+00> : vector<2x8x8xf32>
    %59 = tpu.matmul %57, %58, %cst_29 {dimension_numbers = #tpu.dot_dimension_numbers<[2], [2], [1], [1], [0, 0, 0, 1, 1, 1], [0], [0]>} : vector<2x8x8xf32>, vector<2x8x8xf32>, vector<2x8x8xf32> -> vector<2x8x8xf32>
    "tpu.trace_stop"() : () -> ()
    %cst_30 = arith.constant 0.353553385 : f32
    %60 = vector.broadcast %cst_30 : f32 to vector<2x8x8xf32>
    %61 = arith.mulf %59, %60 : vector<2x8x8xf32>
    %62 = arith.addf %61, %0 : vector<2x8x8xf32>
    %cst_31 = arith.constant dense<0xFF800000> : vector<2x8xf32>
    %63 = vector.multi_reduction <maximumf>, %62, %cst_31 [2] : vector<2x8x8xf32> to vector<2x8xf32>
    %64 = vector.shape_cast %63 : vector<2x8xf32> to vector<2x8x1xf32>
    %65 = vector.broadcast %64 : vector<2x8x1xf32> to vector<2x8x8xf32>
    %66 = arith.subf %62, %65 : vector<2x8x8xf32>
    %67 = math.exp %66 : vector<2x8x8xf32>
    %cst_32 = arith.constant dense<0.000000e+00> : vector<2x8xf32>
    %68 = vector.multi_reduction <add>, %67, %cst_32 [2] : vector<2x8x8xf32> to vector<2x8xf32>
    %69 = vector.shape_cast %68 : vector<2x8xf32> to vector<2x8x1xf32>
    %70 = tpu.reciprocal %69 {approx = true} : vector<2x8x1xf32> -> vector<2x8x1xf32>
    %71 = vector.broadcast %70 : vector<2x8x1xf32> to vector<2x8x8xf32>
    %72 = arith.mulf %67, %71 : vector<2x8x8xf32>
    %73 = vector.extract_strided_slice %20 {offsets = [0, 0, 16], sizes = [2, 8, 8], strides = [1, 1, 1]} : vector<2x8x32xf32> to vector<2x8x8xf32>
    "tpu.trace_start"() <{level = 10 : i32, message = "bqk,bkd->bqd"}> : () -> ()
    %cst_33 = arith.constant dense<0.000000e+00> : vector<2x8x8xf32>
    %74 = tpu.matmul %72, %73, %cst_33 {dimension_numbers = #tpu.dot_dimension_numbers<[2], [1], [1], [2], [0, 0, 0, 1, 1, 2], [0], [0]>} : vector<2x8x8xf32>, vector<2x8x8xf32>, vector<2x8x8xf32> -> vector<2x8x8xf32>
    "tpu.trace_stop"() : () -> ()
    %75 = vector.extract_strided_slice %18 {offsets = [0, 0, 24], sizes = [2, 8, 8], strides = [1, 1, 1]} : vector<2x8x32xf32> to vector<2x8x8xf32>
    %76 = vector.extract_strided_slice %19 {offsets = [0, 0, 24], sizes = [2, 8, 8], strides = [1, 1, 1]} : vector<2x8x32xf32> to vector<2x8x8xf32>
    "tpu.trace_start"() <{level = 10 : i32, message = "bqd,bkd->bqk"}> : () -> ()
    %cst_34 = arith.constant dense<0.000000e+00> : vector<2x8x8xf32>
    %77 = tpu.matmul %75, %76, %cst_34 {dimension_numbers = #tpu.dot_dimension_numbers<[2], [2], [1], [1], [0, 0, 0, 1, 1, 1], [0], [0]>} : vector<2x8x8xf32>, vector<2x8x8xf32>, vector<2x8x8xf32> -> vector<2x8x8xf32>
    "tpu.trace_stop"() : () -> ()
    %cst_35 = arith.constant 0.353553385 : f32
    %78 = vector.broadcast %cst_35 : f32 to vector<2x8x8xf32>
    %79 = arith.mulf %77, %78 : vector<2x8x8xf32>
    %80 = arith.addf %79, %0 : vector<2x8x8xf32>
    %cst_36 = arith.constant dense<0xFF800000> : vector<2x8xf32>
    %81 = vector.multi_reduction <maximumf>, %80, %cst_36 [2] : vector<2x8x8xf32> to vector<2x8xf32>
    %82 = vector.shape_cast %81 : vector<2x8xf32> to vector<2x8x1xf32>
    %83 = vector.broadcast %82 : vector<2x8x1xf32> to vector<2x8x8xf32>
    %84 = arith.subf %80, %83 : vector<2x8x8xf32>
    %85 = math.exp %84 : vector<2x8x8xf32>
    %cst_37 = arith.constant dense<0.000000e+00> : vector<2x8xf32>
    %86 = vector.multi_reduction <add>, %85, %cst_37 [2] : vector<2x8x8xf32> to vector<2x8xf32>
    %87 = vector.shape_cast %86 : vector<2x8xf32> to vector<2x8x1xf32>
    %88 = tpu.reciprocal %87 {approx = true} : vector<2x8x1xf32> -> vector<2x8x1xf32>
    %89 = vector.broadcast %88 : vector<2x8x1xf32> to vector<2x8x8xf32>
    %90 = arith.mulf %85, %89 : vector<2x8x8xf32>
    %91 = vector.extract_strided_slice %20 {offsets = [0, 0, 24], sizes = [2, 8, 8], strides = [1, 1, 1]} : vector<2x8x32xf32> to vector<2x8x8xf32>
    "tpu.trace_start"() <{level = 10 : i32, message = "bqk,bkd->bqd"}> : () -> ()
    %cst_38 = arith.constant dense<0.000000e+00> : vector<2x8x8xf32>
    %92 = tpu.matmul %90, %91, %cst_38 {dimension_numbers = #tpu.dot_dimension_numbers<[2], [1], [1], [2], [0, 0, 0, 1, 1, 2], [0], [0]>} : vector<2x8x8xf32>, vector<2x8x8xf32>, vector<2x8x8xf32> -> vector<2x8x8xf32>
    "tpu.trace_stop"() : () -> ()
    %93 = tpu.concatenate %38, %56, %74, %92 in 2 : vector<2x8x8xf32>, vector<2x8x8xf32>, vector<2x8x8xf32>, vector<2x8x8xf32> -> vector<2x8x32xf32>
    %94 = vector.shape_cast %93 : vector<2x8x32xf32> to vector<16x32xf32>
    %95 = tpu.concatenate %36, %54, %72, %90 in 2 : vector<2x8x8xf32>, vector<2x8x8xf32>, vector<2x8x8xf32>, vector<2x8x8xf32> -> vector<2x8x32xf32>
    %96 = vector.shape_cast %95 : vector<2x8x32xf32> to vector<16x32xf32>
    %c0_39 = arith.constant 0 : index
    %c0_40 = arith.constant 0 : index
    %c0_41 = arith.constant 0 : index
    %97 = vector.load %arg14[%c0_39, %c0_40, %c0_41] : memref<2x16x32xf32, #tpu.memory_space<vmem>>, vector<1x16x32xf32>
    %98 = vector.shape_cast %97 : vector<1x16x32xf32> to vector<16x32xf32>
    %99 = vector.shape_cast %96 : vector<16x32xf32> to vector<1x16x32xf32>
    tpu.vector_store %arg14[%c0_39, %c0_40, %c0_41], %99 {strides = array<i32>} : memref<2x16x32xf32, #tpu.memory_space<vmem>>, vector<1x16x32xf32>,
    %100 = vector.extract_strided_slice %5 {offsets = [0, 96], sizes = [32, 32], strides = [1, 1]} : vector<32x192xf32> to vector<32x32xf32>
    %cst_42 = arith.constant dense<0.000000e+00> : vector<16x32xf32>
    %101 = tpu.matmul %94, %100, %cst_42 {dimension_numbers = #tpu.dot_dimension_numbers<[1], [0], [0], [1], [0, 0, 1, 1], [], []>} : vector<16x32xf32>, vector<32x32xf32>, vector<16x32xf32> -> vector<16x32xf32>
    %102 = vector.extract_strided_slice %9 {offsets = [1, 0], sizes = [1, 32], strides = [1, 1]} : vector<8x128xf32> to vector<1x32xf32>
    %103 = vector.broadcast %102 : vector<1x32xf32> to vector<16x32xf32>
    %104 = arith.addf %101, %103 : vector<16x32xf32>
    %105 = arith.addf %3, %104 : vector<16x32xf32>
    %106 = vector.extract_strided_slice %9 {offsets = [2, 0], sizes = [1, 32], strides = [1, 1]} : vector<8x128xf32> to vector<1x32xf32>
    %107 = vector.extract_strided_slice %9 {offsets = [3, 0], sizes = [1, 32], strides = [1, 1]} : vector<8x128xf32> to vector<1x32xf32>
    %cst_43 = arith.constant dense<0.000000e+00> : vector<16xf32>
    %108 = vector.multi_reduction <add>, %105, %cst_43 [1] : vector<16x32xf32> to vector<16xf32>
    %109 = vector.shape_cast %108 : vector<16xf32> to vector<16x1xf32>
    %cst_44 = arith.constant 3.200000e+01 : f32
    %110 = vector.broadcast %cst_44 : f32 to vector<16x1xf32>
    %111 = arith.divf %109, %110 : vector<16x1xf32>
    %112 = vector.broadcast %111 : vector<16x1xf32> to vector<16x32xf32>
    %113 = arith.subf %105, %112 : vector<16x32xf32>
    %114 = arith.mulf %113, %113 : vector<16x32xf32>
    %cst_45 = arith.constant dense<0.000000e+00> : vector<16xf32>
    %115 = vector.multi_reduction <add>, %114, %cst_45 [1] : vector<16x32xf32> to vector<16xf32>
    %116 = vector.shape_cast %115 : vector<16xf32> to vector<16x1xf32>
    %cst_46 = arith.constant 3.200000e+01 : f32
    %117 = vector.broadcast %cst_46 : f32 to vector<16x1xf32>
    %118 = arith.divf %116, %117 : vector<16x1xf32>
    %119 = vector.broadcast %111 : vector<16x1xf32> to vector<16x32xf32>
    %120 = arith.subf %105, %119 : vector<16x32xf32>
    %cst_47 = arith.constant 9.99999974E-6 : f32
    %121 = vector.broadcast %cst_47 : f32 to vector<16x1xf32>
    %122 = arith.addf %118, %121 : vector<16x1xf32>
    %123 = math.rsqrt %122 : vector<16x1xf32>
    %124 = vector.broadcast %123 : vector<16x1xf32> to vector<16x32xf32>
    %125 = arith.mulf %120, %124 : vector<16x32xf32>
    %126 = vector.broadcast %106 : vector<1x32xf32> to vector<16x32xf32>
    %127 = arith.mulf %125, %126 : vector<16x32xf32>
    %128 = vector.broadcast %107 : vector<1x32xf32> to vector<16x32xf32>
    %129 = arith.addf %127, %128 : vector<16x32xf32>
    %130 = vector.extract_strided_slice %5 {offsets = [0, 128], sizes = [32, 64], strides = [1, 1]} : vector<32x192xf32> to vector<32x64xf32>
    %cst_48 = arith.constant dense<0.000000e+00> : vector<16x64xf32>
    %131 = tpu.matmul %129, %130, %cst_48 {dimension_numbers = #tpu.dot_dimension_numbers<[1], [0], [0], [1], [0, 0, 1, 1], [], []>} : vector<16x32xf32>, vector<32x64xf32>, vector<16x64xf32> -> vector<16x64xf32>
    %132 = vector.extract_strided_slice %9 {offsets = [4, 0], sizes = [1, 64], strides = [1, 1]} : vector<8x128xf32> to vector<1x64xf32>
    %133 = vector.broadcast %132 : vector<1x64xf32> to vector<16x64xf32>
    %134 = arith.addf %131, %133 : vector<16x64xf32>
    %cst_49 = arith.constant 0.000000e+00 : f32
    %135 = vector.broadcast %cst_49 : f32 to vector<16x64xf32>
    %136 = arith.maximumf %134, %135 : vector<16x64xf32>
    %cst_50 = arith.constant dense<0.000000e+00> : vector<16x32xf32>
    %137 = tpu.matmul %136, %7, %cst_50 {dimension_numbers = #tpu.dot_dimension_numbers<[1], [0], [0], [1], [0, 0, 1, 1], [], []>} : vector<16x64xf32>, vector<64x32xf32>, vector<16x32xf32> -> vector<16x32xf32>
    %138 = vector.extract_strided_slice %9 {offsets = [5, 0], sizes = [1, 32], strides = [1, 1]} : vector<8x128xf32> to vector<1x32xf32>
    %139 = vector.broadcast %138 : vector<1x32xf32> to vector<16x32xf32>
    %140 = arith.addf %137, %139 : vector<16x32xf32>
    %141 = arith.addf %129, %140 : vector<16x32xf32>
    %142 = vector.extract_strided_slice %9 {offsets = [6, 0], sizes = [1, 32], strides = [1, 1]} : vector<8x128xf32> to vector<1x32xf32>
    %143 = vector.extract_strided_slice %9 {offsets = [7, 0], sizes = [1, 32], strides = [1, 1]} : vector<8x128xf32> to vector<1x32xf32>
    %cst_51 = arith.constant dense<0.000000e+00> : vector<16xf32>
    %144 = vector.multi_reduction <add>, %141, %cst_51 [1] : vector<16x32xf32> to vector<16xf32>
    %145 = vector.shape_cast %144 : vector<16xf32> to vector<16x1xf32>
    %cst_52 = arith.constant 3.200000e+01 : f32
    %146 = vector.broadcast %cst_52 : f32 to vector<16x1xf32>
    %147 = arith.divf %145, %146 : vector<16x1xf32>
    %148 = vector.broadcast %147 : vector<16x1xf32> to vector<16x32xf32>
    %149 = arith.subf %141, %148 : vector<16x32xf32>
    %150 = arith.mulf %149, %149 : vector<16x32xf32>
    %cst_53 = arith.constant dense<0.000000e+00> : vector<16xf32>
    %151 = vector.multi_reduction <add>, %150, %cst_53 [1] : vector<16x32xf32> to vector<16xf32>
    %152 = vector.shape_cast %151 : vector<16xf32> to vector<16x1xf32>
    %cst_54 = arith.constant 3.200000e+01 : f32
    %153 = vector.broadcast %cst_54 : f32 to vector<16x1xf32>
    %154 = arith.divf %152, %153 : vector<16x1xf32>
    %155 = vector.broadcast %147 : vector<16x1xf32> to vector<16x32xf32>
    %156 = arith.subf %141, %155 : vector<16x32xf32>
    %cst_55 = arith.constant 9.99999974E-6 : f32
    %157 = vector.broadcast %cst_55 : f32 to vector<16x1xf32>
    %158 = arith.addf %154, %157 : vector<16x1xf32>
    %159 = math.rsqrt %158 : vector<16x1xf32>
    %160 = vector.broadcast %159 : vector<16x1xf32> to vector<16x32xf32>
    %161 = arith.mulf %156, %160 : vector<16x32xf32>
    %162 = vector.broadcast %142 : vector<1x32xf32> to vector<16x32xf32>
    %163 = arith.mulf %161, %162 : vector<16x32xf32>
    %164 = vector.broadcast %143 : vector<1x32xf32> to vector<16x32xf32>
    %165 = arith.addf %163, %164 : vector<16x32xf32>
    %c1 = arith.constant 1 : index
    %c0_56 = arith.constant 0 : index
    %c0_57 = arith.constant 0 : index
    %166 = vector.load %arg5[%c1, %c0_56, %c0_57] : memref<2x32x192xf32, #tpu.memory_space<vmem>>, vector<1x32x192xf32>
    %167 = vector.shape_cast %166 : vector<1x32x192xf32> to vector<32x192xf32>
    %c1_58 = arith.constant 1 : index
    %c0_59 = arith.constant 0 : index
    %c0_60 = arith.constant 0 : index
    %168 = vector.load %arg6[%c1_58, %c0_59, %c0_60] : memref<2x64x32xf32, #tpu.memory_space<vmem>>, vector<1x64x32xf32>
    %169 = vector.shape_cast %168 : vector<1x64x32xf32> to vector<64x32xf32>
    %c1_61 = arith.constant 1 : index
    %c0_62 = arith.constant 0 : index
    %c0_63 = arith.constant 0 : index
    %170 = vector.load %arg7[%c1_61, %c0_62, %c0_63] : memref<2x8x128xf32, #tpu.memory_space<vmem>>, vector<1x8x128xf32>
    %171 = vector.shape_cast %170 : vector<1x8x128xf32> to vector<8x128xf32>
    %172 = vector.extract_strided_slice %167 {offsets = [0, 0], sizes = [32, 96], strides = [1, 1]} : vector<32x192xf32> to vector<32x96xf32>
    %cst_64 = arith.constant dense<0.000000e+00> : vector<16x96xf32>
    %173 = tpu.matmul %165, %172, %cst_64 {dimension_numbers = #tpu.dot_dimension_numbers<[1], [0], [0], [1], [0, 0, 1, 1], [], []>} : vector<16x32xf32>, vector<32x96xf32>, vector<16x96xf32> -> vector<16x96xf32>
    %174 = vector.extract_strided_slice %171 {offsets = [0, 0], sizes = [1, 96], strides = [1, 1]} : vector<8x128xf32> to vector<1x96xf32>
    %175 = vector.broadcast %174 : vector<1x96xf32> to vector<16x96xf32>
    %176 = arith.addf %173, %175 : vector<16x96xf32>
    %177 = vector.extract_strided_slice %176 {offsets = [0, 0], sizes = [16, 32], strides = [1, 1]} : vector<16x96xf32> to vector<16x32xf32>
    %178 = vector.extract_strided_slice %176 {offsets = [0, 32], sizes = [16, 32], strides = [1, 1]} : vector<16x96xf32> to vector<16x32xf32>
    %179 = vector.extract_strided_slice %176 {offsets = [0, 64], sizes = [16, 32], strides = [1, 1]} : vector<16x96xf32> to vector<16x32xf32>
    %180 = vector.shape_cast %177 : vector<16x32xf32> to vector<2x8x32xf32>
    %181 = vector.shape_cast %178 : vector<16x32xf32> to vector<2x8x32xf32>
    %182 = vector.shape_cast %179 : vector<16x32xf32> to vector<2x8x32xf32>
    %183 = vector.extract_strided_slice %180 {offsets = [0, 0, 0], sizes = [2, 8, 8], strides = [1, 1, 1]} : vector<2x8x32xf32> to vector<2x8x8xf32>
    %184 = vector.extract_strided_slice %181 {offsets = [0, 0, 0], sizes = [2, 8, 8], strides = [1, 1, 1]} : vector<2x8x32xf32> to vector<2x8x8xf32>
    "tpu.trace_start"() <{level = 10 : i32, message = "bqd,bkd->bqk"}> : () -> ()
    %cst_65 = arith.constant dense<0.000000e+00> : vector<2x8x8xf32>
    %185 = tpu.matmul %183, %184, %cst_65 {dimension_numbers = #tpu.dot_dimension_numbers<[2], [2], [1], [1], [0, 0, 0, 1, 1, 1], [0], [0]>} : vector<2x8x8xf32>, vector<2x8x8xf32>, vector<2x8x8xf32> -> vector<2x8x8xf32>
    "tpu.trace_stop"() : () -> ()
    %cst_66 = arith.constant 0.353553385 : f32
    %186 = vector.broadcast %cst_66 : f32 to vector<2x8x8xf32>
    %187 = arith.mulf %185, %186 : vector<2x8x8xf32>
    %188 = arith.addf %187, %0 : vector<2x8x8xf32>
    %cst_67 = arith.constant dense<0xFF800000> : vector<2x8xf32>
    %189 = vector.multi_reduction <maximumf>, %188, %cst_67 [2] : vector<2x8x8xf32> to vector<2x8xf32>
    %190 = vector.shape_cast %189 : vector<2x8xf32> to vector<2x8x1xf32>
    %191 = vector.broadcast %190 : vector<2x8x1xf32> to vector<2x8x8xf32>
    %192 = arith.subf %188, %191 : vector<2x8x8xf32>
    %193 = math.exp %192 : vector<2x8x8xf32>
    %cst_68 = arith.constant dense<0.000000e+00> : vector<2x8xf32>
    %194 = vector.multi_reduction <add>, %193, %cst_68 [2] : vector<2x8x8xf32> to vector<2x8xf32>
    %195 = vector.shape_cast %194 : vector<2x8xf32> to vector<2x8x1xf32>
    %196 = tpu.reciprocal %195 {approx = true} : vector<2x8x1xf32> -> vector<2x8x1xf32>
    %197 = vector.broadcast %196 : vector<2x8x1xf32> to vector<2x8x8xf32>
    %198 = arith.mulf %193, %197 : vector<2x8x8xf32>
    %199 = vector.extract_strided_slice %182 {offsets = [0, 0, 0], sizes = [2, 8, 8], strides = [1, 1, 1]} : vector<2x8x32xf32> to vector<2x8x8xf32>
    "tpu.trace_start"() <{level = 10 : i32, message = "bqk,bkd->bqd"}> : () -> ()
    %cst_69 = arith.constant dense<0.000000e+00> : vector<2x8x8xf32>
    %200 = tpu.matmul %198, %199, %cst_69 {dimension_numbers = #tpu.dot_dimension_numbers<[2], [1], [1], [2], [0, 0, 0, 1, 1, 2], [0], [0]>} : vector<2x8x8xf32>, vector<2x8x8xf32>, vector<2x8x8xf32> -> vector<2x8x8xf32>
    "tpu.trace_stop"() : () -> ()
    %201 = vector.extract_strided_slice %180 {offsets = [0, 0, 8], sizes = [2, 8, 8], strides = [1, 1, 1]} : vector<2x8x32xf32> to vector<2x8x8xf32>
    %202 = vector.extract_strided_slice %181 {offsets = [0, 0, 8], sizes = [2, 8, 8], strides = [1, 1, 1]} : vector<2x8x32xf32> to vector<2x8x8xf32>
    "tpu.trace_start"() <{level = 10 : i32, message = "bqd,bkd->bqk"}> : () -> ()
    %cst_70 = arith.constant dense<0.000000e+00> : vector<2x8x8xf32>
    %203 = tpu.matmul %201, %202, %cst_70 {dimension_numbers = #tpu.dot_dimension_numbers<[2], [2], [1], [1], [0, 0, 0, 1, 1, 1], [0], [0]>} : vector<2x8x8xf32>, vector<2x8x8xf32>, vector<2x8x8xf32> -> vector<2x8x8xf32>
    "tpu.trace_stop"() : () -> ()
    %cst_71 = arith.constant 0.353553385 : f32
    %204 = vector.broadcast %cst_71 : f32 to vector<2x8x8xf32>
    %205 = arith.mulf %203, %204 : vector<2x8x8xf32>
    %206 = arith.addf %205, %0 : vector<2x8x8xf32>
    %cst_72 = arith.constant dense<0xFF800000> : vector<2x8xf32>
    %207 = vector.multi_reduction <maximumf>, %206, %cst_72 [2] : vector<2x8x8xf32> to vector<2x8xf32>
    %208 = vector.shape_cast %207 : vector<2x8xf32> to vector<2x8x1xf32>
    %209 = vector.broadcast %208 : vector<2x8x1xf32> to vector<2x8x8xf32>
    %210 = arith.subf %206, %209 : vector<2x8x8xf32>
    %211 = math.exp %210 : vector<2x8x8xf32>
    %cst_73 = arith.constant dense<0.000000e+00> : vector<2x8xf32>
    %212 = vector.multi_reduction <add>, %211, %cst_73 [2] : vector<2x8x8xf32> to vector<2x8xf32>
    %213 = vector.shape_cast %212 : vector<2x8xf32> to vector<2x8x1xf32>
    %214 = tpu.reciprocal %213 {approx = true} : vector<2x8x1xf32> -> vector<2x8x1xf32>
    %215 = vector.broadcast %214 : vector<2x8x1xf32> to vector<2x8x8xf32>
    %216 = arith.mulf %211, %215 : vector<2x8x8xf32>
    %217 = vector.extract_strided_slice %182 {offsets = [0, 0, 8], sizes = [2, 8, 8], strides = [1, 1, 1]} : vector<2x8x32xf32> to vector<2x8x8xf32>
    "tpu.trace_start"() <{level = 10 : i32, message = "bqk,bkd->bqd"}> : () -> ()
    %cst_74 = arith.constant dense<0.000000e+00> : vector<2x8x8xf32>
    %218 = tpu.matmul %216, %217, %cst_74 {dimension_numbers = #tpu.dot_dimension_numbers<[2], [1], [1], [2], [0, 0, 0, 1, 1, 2], [0], [0]>} : vector<2x8x8xf32>, vector<2x8x8xf32>, vector<2x8x8xf32> -> vector<2x8x8xf32>
    "tpu.trace_stop"() : () -> ()
    %219 = vector.extract_strided_slice %180 {offsets = [0, 0, 16], sizes = [2, 8, 8], strides = [1, 1, 1]} : vector<2x8x32xf32> to vector<2x8x8xf32>
    %220 = vector.extract_strided_slice %181 {offsets = [0, 0, 16], sizes = [2, 8, 8], strides = [1, 1, 1]} : vector<2x8x32xf32> to vector<2x8x8xf32>
    "tpu.trace_start"() <{level = 10 : i32, message = "bqd,bkd->bqk"}> : () -> ()
    %cst_75 = arith.constant dense<0.000000e+00> : vector<2x8x8xf32>
    %221 = tpu.matmul %219, %220, %cst_75 {dimension_numbers = #tpu.dot_dimension_numbers<[2], [2], [1], [1], [0, 0, 0, 1, 1, 1], [0], [0]>} : vector<2x8x8xf32>, vector<2x8x8xf32>, vector<2x8x8xf32> -> vector<2x8x8xf32>
    "tpu.trace_stop"() : () -> ()
    %cst_76 = arith.constant 0.353553385 : f32
    %222 = vector.broadcast %cst_76 : f32 to vector<2x8x8xf32>
    %223 = arith.mulf %221, %222 : vector<2x8x8xf32>
    %224 = arith.addf %223, %0 : vector<2x8x8xf32>
    %cst_77 = arith.constant dense<0xFF800000> : vector<2x8xf32>
    %225 = vector.multi_reduction <maximumf>, %224, %cst_77 [2] : vector<2x8x8xf32> to vector<2x8xf32>
    %226 = vector.shape_cast %225 : vector<2x8xf32> to vector<2x8x1xf32>
    %227 = vector.broadcast %226 : vector<2x8x1xf32> to vector<2x8x8xf32>
    %228 = arith.subf %224, %227 : vector<2x8x8xf32>
    %229 = math.exp %228 : vector<2x8x8xf32>
    %cst_78 = arith.constant dense<0.000000e+00> : vector<2x8xf32>
    %230 = vector.multi_reduction <add>, %229, %cst_78 [2] : vector<2x8x8xf32> to vector<2x8xf32>
    %231 = vector.shape_cast %230 : vector<2x8xf32> to vector<2x8x1xf32>
    %232 = tpu.reciprocal %231 {approx = true} : vector<2x8x1xf32> -> vector<2x8x1xf32>
    %233 = vector.broadcast %232 : vector<2x8x1xf32> to vector<2x8x8xf32>
    %234 = arith.mulf %229, %233 : vector<2x8x8xf32>
    %235 = vector.extract_strided_slice %182 {offsets = [0, 0, 16], sizes = [2, 8, 8], strides = [1, 1, 1]} : vector<2x8x32xf32> to vector<2x8x8xf32>
    "tpu.trace_start"() <{level = 10 : i32, message = "bqk,bkd->bqd"}> : () -> ()
    %cst_79 = arith.constant dense<0.000000e+00> : vector<2x8x8xf32>
    %236 = tpu.matmul %234, %235, %cst_79 {dimension_numbers = #tpu.dot_dimension_numbers<[2], [1], [1], [2], [0, 0, 0, 1, 1, 2], [0], [0]>} : vector<2x8x8xf32>, vector<2x8x8xf32>, vector<2x8x8xf32> -> vector<2x8x8xf32>
    "tpu.trace_stop"() : () -> ()
    %237 = vector.extract_strided_slice %180 {offsets = [0, 0, 24], sizes = [2, 8, 8], strides = [1, 1, 1]} : vector<2x8x32xf32> to vector<2x8x8xf32>
    %238 = vector.extract_strided_slice %181 {offsets = [0, 0, 24], sizes = [2, 8, 8], strides = [1, 1, 1]} : vector<2x8x32xf32> to vector<2x8x8xf32>
    "tpu.trace_start"() <{level = 10 : i32, message = "bqd,bkd->bqk"}> : () -> ()
    %cst_80 = arith.constant dense<0.000000e+00> : vector<2x8x8xf32>
    %239 = tpu.matmul %237, %238, %cst_80 {dimension_numbers = #tpu.dot_dimension_numbers<[2], [2], [1], [1], [0, 0, 0, 1, 1, 1], [0], [0]>} : vector<2x8x8xf32>, vector<2x8x8xf32>, vector<2x8x8xf32> -> vector<2x8x8xf32>
    "tpu.trace_stop"() : () -> ()
    %cst_81 = arith.constant 0.353553385 : f32
    %240 = vector.broadcast %cst_81 : f32 to vector<2x8x8xf32>
    %241 = arith.mulf %239, %240 : vector<2x8x8xf32>
    %242 = arith.addf %241, %0 : vector<2x8x8xf32>
    %cst_82 = arith.constant dense<0xFF800000> : vector<2x8xf32>
    %243 = vector.multi_reduction <maximumf>, %242, %cst_82 [2] : vector<2x8x8xf32> to vector<2x8xf32>
    %244 = vector.shape_cast %243 : vector<2x8xf32> to vector<2x8x1xf32>
    %245 = vector.broadcast %244 : vector<2x8x1xf32> to vector<2x8x8xf32>
    %246 = arith.subf %242, %245 : vector<2x8x8xf32>
    %247 = math.exp %246 : vector<2x8x8xf32>
    %cst_83 = arith.constant dense<0.000000e+00> : vector<2x8xf32>
    %248 = vector.multi_reduction <add>, %247, %cst_83 [2] : vector<2x8x8xf32> to vector<2x8xf32>
    %249 = vector.shape_cast %248 : vector<2x8xf32> to vector<2x8x1xf32>
    %250 = tpu.reciprocal %249 {approx = true} : vector<2x8x1xf32> -> vector<2x8x1xf32>
    %251 = vector.broadcast %250 : vector<2x8x1xf32> to vector<2x8x8xf32>
    %252 = arith.mulf %247, %251 : vector<2x8x8xf32>
    %253 = vector.extract_strided_slice %182 {offsets = [0, 0, 24], sizes = [2, 8, 8], strides = [1, 1, 1]} : vector<2x8x32xf32> to vector<2x8x8xf32>
    "tpu.trace_start"() <{level = 10 : i32, message = "bqk,bkd->bqd"}> : () -> ()
    %cst_84 = arith.constant dense<0.000000e+00> : vector<2x8x8xf32>
    %254 = tpu.matmul %252, %253, %cst_84 {dimension_numbers = #tpu.dot_dimension_numbers<[2], [1], [1], [2], [0, 0, 0, 1, 1, 2], [0], [0]>} : vector<2x8x8xf32>, vector<2x8x8xf32>, vector<2x8x8xf32> -> vector<2x8x8xf32>
    "tpu.trace_stop"() : () -> ()
    %255 = tpu.concatenate %200, %218, %236, %254 in 2 : vector<2x8x8xf32>, vector<2x8x8xf32>, vector<2x8x8xf32>, vector<2x8x8xf32> -> vector<2x8x32xf32>
    %256 = vector.shape_cast %255 : vector<2x8x32xf32> to vector<16x32xf32>
    %257 = tpu.concatenate %198, %216, %234, %252 in 2 : vector<2x8x8xf32>, vector<2x8x8xf32>, vector<2x8x8xf32>, vector<2x8x8xf32> -> vector<2x8x32xf32>
    %258 = vector.shape_cast %257 : vector<2x8x32xf32> to vector<16x32xf32>
    %c1_85 = arith.constant 1 : index
    %c0_86 = arith.constant 0 : index
    %c0_87 = arith.constant 0 : index
    %259 = vector.load %arg14[%c1_85, %c0_86, %c0_87] : memref<2x16x32xf32, #tpu.memory_space<vmem>>, vector<1x16x32xf32>
    %260 = vector.shape_cast %259 : vector<1x16x32xf32> to vector<16x32xf32>
    %261 = vector.shape_cast %258 : vector<16x32xf32> to vector<1x16x32xf32>
    tpu.vector_store %arg14[%c1_85, %c0_86, %c0_87], %261 {strides = array<i32>} : memref<2x16x32xf32, #tpu.memory_space<vmem>>, vector<1x16x32xf32>,
    %262 = vector.extract_strided_slice %167 {offsets = [0, 96], sizes = [32, 32], strides = [1, 1]} : vector<32x192xf32> to vector<32x32xf32>
    %cst_88 = arith.constant dense<0.000000e+00> : vector<16x32xf32>
    %263 = tpu.matmul %256, %262, %cst_88 {dimension_numbers = #tpu.dot_dimension_numbers<[1], [0], [0], [1], [0, 0, 1, 1], [], []>} : vector<16x32xf32>, vector<32x32xf32>, vector<16x32xf32> -> vector<16x32xf32>
    %264 = vector.extract_strided_slice %171 {offsets = [1, 0], sizes = [1, 32], strides = [1, 1]} : vector<8x128xf32> to vector<1x32xf32>
    %265 = vector.broadcast %264 : vector<1x32xf32> to vector<16x32xf32>
    %266 = arith.addf %263, %265 : vector<16x32xf32>
    %267 = arith.addf %165, %266 : vector<16x32xf32>
    %268 = vector.extract_strided_slice %171 {offsets = [2, 0], sizes = [1, 32], strides = [1, 1]} : vector<8x128xf32> to vector<1x32xf32>
    %269 = vector.extract_strided_slice %171 {offsets = [3, 0], sizes = [1, 32], strides = [1, 1]} : vector<8x128xf32> to vector<1x32xf32>
    %cst_89 = arith.constant dense<0.000000e+00> : vector<16xf32>
    %270 = vector.multi_reduction <add>, %267, %cst_89 [1] : vector<16x32xf32> to vector<16xf32>
    %271 = vector.shape_cast %270 : vector<16xf32> to vector<16x1xf32>
    %cst_90 = arith.constant 3.200000e+01 : f32
    %272 = vector.broadcast %cst_90 : f32 to vector<16x1xf32>
    %273 = arith.divf %271, %272 : vector<16x1xf32>
    %274 = vector.broadcast %273 : vector<16x1xf32> to vector<16x32xf32>
    %275 = arith.subf %267, %274 : vector<16x32xf32>
    %276 = arith.mulf %275, %275 : vector<16x32xf32>
    %cst_91 = arith.constant dense<0.000000e+00> : vector<16xf32>
    %277 = vector.multi_reduction <add>, %276, %cst_91 [1] : vector<16x32xf32> to vector<16xf32>
    %278 = vector.shape_cast %277 : vector<16xf32> to vector<16x1xf32>
    %cst_92 = arith.constant 3.200000e+01 : f32
    %279 = vector.broadcast %cst_92 : f32 to vector<16x1xf32>
    %280 = arith.divf %278, %279 : vector<16x1xf32>
    %281 = vector.broadcast %273 : vector<16x1xf32> to vector<16x32xf32>
    %282 = arith.subf %267, %281 : vector<16x32xf32>
    %cst_93 = arith.constant 9.99999974E-6 : f32
    %283 = vector.broadcast %cst_93 : f32 to vector<16x1xf32>
    %284 = arith.addf %280, %283 : vector<16x1xf32>
    %285 = math.rsqrt %284 : vector<16x1xf32>
    %286 = vector.broadcast %285 : vector<16x1xf32> to vector<16x32xf32>
    %287 = arith.mulf %282, %286 : vector<16x32xf32>
    %288 = vector.broadcast %268 : vector<1x32xf32> to vector<16x32xf32>
    %289 = arith.mulf %287, %288 : vector<16x32xf32>
    %290 = vector.broadcast %269 : vector<1x32xf32> to vector<16x32xf32>
    %291 = arith.addf %289, %290 : vector<16x32xf32>
    %292 = vector.extract_strided_slice %167 {offsets = [0, 128], sizes = [32, 64], strides = [1, 1]} : vector<32x192xf32> to vector<32x64xf32>
    %cst_94 = arith.constant dense<0.000000e+00> : vector<16x64xf32>
    %293 = tpu.matmul %291, %292, %cst_94 {dimension_numbers = #tpu.dot_dimension_numbers<[1], [0], [0], [1], [0, 0, 1, 1], [], []>} : vector<16x32xf32>, vector<32x64xf32>, vector<16x64xf32> -> vector<16x64xf32>
    %294 = vector.extract_strided_slice %171 {offsets = [4, 0], sizes = [1, 64], strides = [1, 1]} : vector<8x128xf32> to vector<1x64xf32>
    %295 = vector.broadcast %294 : vector<1x64xf32> to vector<16x64xf32>
    %296 = arith.addf %293, %295 : vector<16x64xf32>
    %cst_95 = arith.constant 0.000000e+00 : f32
    %297 = vector.broadcast %cst_95 : f32 to vector<16x64xf32>
    %298 = arith.maximumf %296, %297 : vector<16x64xf32>
    %cst_96 = arith.constant dense<0.000000e+00> : vector<16x32xf32>
    %299 = tpu.matmul %298, %169, %cst_96 {dimension_numbers = #tpu.dot_dimension_numbers<[1], [0], [0], [1], [0, 0, 1, 1], [], []>} : vector<16x64xf32>, vector<64x32xf32>, vector<16x32xf32> -> vector<16x32xf32>
    %300 = vector.extract_strided_slice %171 {offsets = [5, 0], sizes = [1, 32], strides = [1, 1]} : vector<8x128xf32> to vector<1x32xf32>
    %301 = vector.broadcast %300 : vector<1x32xf32> to vector<16x32xf32>
    %302 = arith.addf %299, %301 : vector<16x32xf32>
    %303 = arith.addf %291, %302 : vector<16x32xf32>
    %304 = vector.extract_strided_slice %171 {offsets = [6, 0], sizes = [1, 32], strides = [1, 1]} : vector<8x128xf32> to vector<1x32xf32>
    %305 = vector.extract_strided_slice %171 {offsets = [7, 0], sizes = [1, 32], strides = [1, 1]} : vector<8x128xf32> to vector<1x32xf32>
    %cst_97 = arith.constant dense<0.000000e+00> : vector<16xf32>
    %306 = vector.multi_reduction <add>, %303, %cst_97 [1] : vector<16x32xf32> to vector<16xf32>
    %307 = vector.shape_cast %306 : vector<16xf32> to vector<16x1xf32>
    %cst_98 = arith.constant 3.200000e+01 : f32
    %308 = vector.broadcast %cst_98 : f32 to vector<16x1xf32>
    %309 = arith.divf %307, %308 : vector<16x1xf32>
    %310 = vector.broadcast %309 : vector<16x1xf32> to vector<16x32xf32>
    %311 = arith.subf %303, %310 : vector<16x32xf32>
    %312 = arith.mulf %311, %311 : vector<16x32xf32>
    %cst_99 = arith.constant dense<0.000000e+00> : vector<16xf32>
    %313 = vector.multi_reduction <add>, %312, %cst_99 [1] : vector<16x32xf32> to vector<16xf32>
    %314 = vector.shape_cast %313 : vector<16xf32> to vector<16x1xf32>
    %cst_100 = arith.constant 3.200000e+01 : f32
    %315 = vector.broadcast %cst_100 : f32 to vector<16x1xf32>
    %316 = arith.divf %314, %315 : vector<16x1xf32>
    %317 = vector.broadcast %309 : vector<16x1xf32> to vector<16x32xf32>
    %318 = arith.subf %303, %317 : vector<16x32xf32>
    %cst_101 = arith.constant 9.99999974E-6 : f32
    %319 = vector.broadcast %cst_101 : f32 to vector<16x1xf32>
    %320 = arith.addf %316, %319 : vector<16x1xf32>
    %321 = math.rsqrt %320 : vector<16x1xf32>
    %322 = vector.broadcast %321 : vector<16x1xf32> to vector<16x32xf32>
    %323 = arith.mulf %318, %322 : vector<16x32xf32>
    %324 = vector.broadcast %304 : vector<1x32xf32> to vector<16x32xf32>
    %325 = arith.mulf %323, %324 : vector<16x32xf32>
    %326 = vector.broadcast %305 : vector<1x32xf32> to vector<16x32xf32>
    %327 = arith.addf %325, %326 : vector<16x32xf32>
    %c0_102 = arith.constant 0 : index
    %c0_103 = arith.constant 0 : index
    %328 = vector.load %arg1[%c0_102, %c0_103] : memref<16x32xf32, #tpu.memory_space<vmem>>, vector<16x32xf32>
    %c0_104 = arith.constant 0 : index
    %c0_105 = arith.constant 0 : index
    %c0_106 = arith.constant 0 : index
    %329 = vector.load %arg8[%c0_104, %c0_105, %c0_106] : memref<2x32x320xf32, #tpu.memory_space<vmem>>, vector<1x32x320xf32>
    %330 = vector.shape_cast %329 : vector<1x32x320xf32> to vector<32x320xf32>
    %c0_107 = arith.constant 0 : index
    %c0_108 = arith.constant 0 : index
    %c0_109 = arith.constant 0 : index
    %331 = vector.load %arg9[%c0_107, %c0_108, %c0_109] : memref<2x64x32xf32, #tpu.memory_space<vmem>>, vector<1x64x32xf32>
    %332 = vector.shape_cast %331 : vector<1x64x32xf32> to vector<64x32xf32>
    %c0_110 = arith.constant 0 : index
    %c0_111 = arith.constant 0 : index
    %c0_112 = arith.constant 0 : index
    %333 = vector.load %arg10[%c0_110, %c0_111, %c0_112] : memref<2x16x128xf32, #tpu.memory_space<vmem>>, vector<1x16x128xf32>
    %334 = vector.shape_cast %333 : vector<1x16x128xf32> to vector<16x128xf32>
    %335 = vector.extract_strided_slice %330 {offsets = [0, 0], sizes = [32, 96], strides = [1, 1]} : vector<32x320xf32> to vector<32x96xf32>
    %cst_113 = arith.constant dense<0.000000e+00> : vector<16x96xf32>
    %336 = tpu.matmul %328, %335, %cst_113 {dimension_numbers = #tpu.dot_dimension_numbers<[1], [0], [0], [1], [0, 0, 1, 1], [], []>} : vector<16x32xf32>, vector<32x96xf32>, vector<16x96xf32> -> vector<16x96xf32>
    %337 = vector.extract_strided_slice %334 {offsets = [0, 0], sizes = [1, 96], strides = [1, 1]} : vector<16x128xf32> to vector<1x96xf32>
    %338 = vector.broadcast %337 : vector<1x96xf32> to vector<16x96xf32>
    %339 = arith.addf %336, %338 : vector<16x96xf32>
    %340 = vector.extract_strided_slice %339 {offsets = [0, 0], sizes = [16, 32], strides = [1, 1]} : vector<16x96xf32> to vector<16x32xf32>
    %341 = vector.extract_strided_slice %339 {offsets = [0, 32], sizes = [16, 32], strides = [1, 1]} : vector<16x96xf32> to vector<16x32xf32>
    %342 = vector.extract_strided_slice %339 {offsets = [0, 64], sizes = [16, 32], strides = [1, 1]} : vector<16x96xf32> to vector<16x32xf32>
    %343 = vector.shape_cast %340 : vector<16x32xf32> to vector<2x8x32xf32>
    %344 = vector.shape_cast %341 : vector<16x32xf32> to vector<2x8x32xf32>
    %345 = vector.shape_cast %342 : vector<16x32xf32> to vector<2x8x32xf32>
    %346 = vector.extract_strided_slice %343 {offsets = [0, 0, 0], sizes = [2, 8, 8], strides = [1, 1, 1]} : vector<2x8x32xf32> to vector<2x8x8xf32>
    %347 = vector.extract_strided_slice %344 {offsets = [0, 0, 0], sizes = [2, 8, 8], strides = [1, 1, 1]} : vector<2x8x32xf32> to vector<2x8x8xf32>
    "tpu.trace_start"() <{level = 10 : i32, message = "bqd,bkd->bqk"}> : () -> ()
    %cst_114 = arith.constant dense<0.000000e+00> : vector<2x8x8xf32>
    %348 = tpu.matmul %346, %347, %cst_114 {dimension_numbers = #tpu.dot_dimension_numbers<[2], [2], [1], [1], [0, 0, 0, 1, 1, 1], [0], [0]>} : vector<2x8x8xf32>, vector<2x8x8xf32>, vector<2x8x8xf32> -> vector<2x8x8xf32>
    "tpu.trace_stop"() : () -> ()
    %cst_115 = arith.constant 0.353553385 : f32
    %349 = vector.broadcast %cst_115 : f32 to vector<2x8x8xf32>
    %350 = arith.mulf %348, %349 : vector<2x8x8xf32>
    %351 = arith.addf %350, %1 : vector<2x8x8xf32>
    %cst_116 = arith.constant dense<0xFF800000> : vector<2x8xf32>
    %352 = vector.multi_reduction <maximumf>, %351, %cst_116 [2] : vector<2x8x8xf32> to vector<2x8xf32>
    %353 = vector.shape_cast %352 : vector<2x8xf32> to vector<2x8x1xf32>
    %354 = vector.broadcast %353 : vector<2x8x1xf32> to vector<2x8x8xf32>
    %355 = arith.subf %351, %354 : vector<2x8x8xf32>
    %356 = math.exp %355 : vector<2x8x8xf32>
    %cst_117 = arith.constant dense<0.000000e+00> : vector<2x8xf32>
    %357 = vector.multi_reduction <add>, %356, %cst_117 [2] : vector<2x8x8xf32> to vector<2x8xf32>
    %358 = vector.shape_cast %357 : vector<2x8xf32> to vector<2x8x1xf32>
    %359 = tpu.reciprocal %358 {approx = true} : vector<2x8x1xf32> -> vector<2x8x1xf32>
    %360 = vector.broadcast %359 : vector<2x8x1xf32> to vector<2x8x8xf32>
    %361 = arith.mulf %356, %360 : vector<2x8x8xf32>
    %362 = vector.extract_strided_slice %345 {offsets = [0, 0, 0], sizes = [2, 8, 8], strides = [1, 1, 1]} : vector<2x8x32xf32> to vector<2x8x8xf32>
    "tpu.trace_start"() <{level = 10 : i32, message = "bqk,bkd->bqd"}> : () -> ()
    %cst_118 = arith.constant dense<0.000000e+00> : vector<2x8x8xf32>
    %363 = tpu.matmul %361, %362, %cst_118 {dimension_numbers = #tpu.dot_dimension_numbers<[2], [1], [1], [2], [0, 0, 0, 1, 1, 2], [0], [0]>} : vector<2x8x8xf32>, vector<2x8x8xf32>, vector<2x8x8xf32> -> vector<2x8x8xf32>
    "tpu.trace_stop"() : () -> ()
    %364 = vector.extract_strided_slice %343 {offsets = [0, 0, 8], sizes = [2, 8, 8], strides = [1, 1, 1]} : vector<2x8x32xf32> to vector<2x8x8xf32>
    %365 = vector.extract_strided_slice %344 {offsets = [0, 0, 8], sizes = [2, 8, 8], strides = [1, 1, 1]} : vector<2x8x32xf32> to vector<2x8x8xf32>
    "tpu.trace_start"() <{level = 10 : i32, message = "bqd,bkd->bqk"}> : () -> ()
    %cst_119 = arith.constant dense<0.000000e+00> : vector<2x8x8xf32>
    %366 = tpu.matmul %364, %365, %cst_119 {dimension_numbers = #tpu.dot_dimension_numbers<[2], [2], [1], [1], [0, 0, 0, 1, 1, 1], [0], [0]>} : vector<2x8x8xf32>, vector<2x8x8xf32>, vector<2x8x8xf32> -> vector<2x8x8xf32>
    "tpu.trace_stop"() : () -> ()
    %cst_120 = arith.constant 0.353553385 : f32
    %367 = vector.broadcast %cst_120 : f32 to vector<2x8x8xf32>
    %368 = arith.mulf %366, %367 : vector<2x8x8xf32>
    %369 = arith.addf %368, %1 : vector<2x8x8xf32>
    %cst_121 = arith.constant dense<0xFF800000> : vector<2x8xf32>
    %370 = vector.multi_reduction <maximumf>, %369, %cst_121 [2] : vector<2x8x8xf32> to vector<2x8xf32>
    %371 = vector.shape_cast %370 : vector<2x8xf32> to vector<2x8x1xf32>
    %372 = vector.broadcast %371 : vector<2x8x1xf32> to vector<2x8x8xf32>
    %373 = arith.subf %369, %372 : vector<2x8x8xf32>
    %374 = math.exp %373 : vector<2x8x8xf32>
    %cst_122 = arith.constant dense<0.000000e+00> : vector<2x8xf32>
    %375 = vector.multi_reduction <add>, %374, %cst_122 [2] : vector<2x8x8xf32> to vector<2x8xf32>
    %376 = vector.shape_cast %375 : vector<2x8xf32> to vector<2x8x1xf32>
    %377 = tpu.reciprocal %376 {approx = true} : vector<2x8x1xf32> -> vector<2x8x1xf32>
    %378 = vector.broadcast %377 : vector<2x8x1xf32> to vector<2x8x8xf32>
    %379 = arith.mulf %374, %378 : vector<2x8x8xf32>
    %380 = vector.extract_strided_slice %345 {offsets = [0, 0, 8], sizes = [2, 8, 8], strides = [1, 1, 1]} : vector<2x8x32xf32> to vector<2x8x8xf32>
    "tpu.trace_start"() <{level = 10 : i32, message = "bqk,bkd->bqd"}> : () -> ()
    %cst_123 = arith.constant dense<0.000000e+00> : vector<2x8x8xf32>
    %381 = tpu.matmul %379, %380, %cst_123 {dimension_numbers = #tpu.dot_dimension_numbers<[2], [1], [1], [2], [0, 0, 0, 1, 1, 2], [0], [0]>} : vector<2x8x8xf32>, vector<2x8x8xf32>, vector<2x8x8xf32> -> vector<2x8x8xf32>
    "tpu.trace_stop"() : () -> ()
    %382 = vector.extract_strided_slice %343 {offsets = [0, 0, 16], sizes = [2, 8, 8], strides = [1, 1, 1]} : vector<2x8x32xf32> to vector<2x8x8xf32>
    %383 = vector.extract_strided_slice %344 {offsets = [0, 0, 16], sizes = [2, 8, 8], strides = [1, 1, 1]} : vector<2x8x32xf32> to vector<2x8x8xf32>
    "tpu.trace_start"() <{level = 10 : i32, message = "bqd,bkd->bqk"}> : () -> ()
    %cst_124 = arith.constant dense<0.000000e+00> : vector<2x8x8xf32>
    %384 = tpu.matmul %382, %383, %cst_124 {dimension_numbers = #tpu.dot_dimension_numbers<[2], [2], [1], [1], [0, 0, 0, 1, 1, 1], [0], [0]>} : vector<2x8x8xf32>, vector<2x8x8xf32>, vector<2x8x8xf32> -> vector<2x8x8xf32>
    "tpu.trace_stop"() : () -> ()
    %cst_125 = arith.constant 0.353553385 : f32
    %385 = vector.broadcast %cst_125 : f32 to vector<2x8x8xf32>
    %386 = arith.mulf %384, %385 : vector<2x8x8xf32>
    %387 = arith.addf %386, %1 : vector<2x8x8xf32>
    %cst_126 = arith.constant dense<0xFF800000> : vector<2x8xf32>
    %388 = vector.multi_reduction <maximumf>, %387, %cst_126 [2] : vector<2x8x8xf32> to vector<2x8xf32>
    %389 = vector.shape_cast %388 : vector<2x8xf32> to vector<2x8x1xf32>
    %390 = vector.broadcast %389 : vector<2x8x1xf32> to vector<2x8x8xf32>
    %391 = arith.subf %387, %390 : vector<2x8x8xf32>
    %392 = math.exp %391 : vector<2x8x8xf32>
    %cst_127 = arith.constant dense<0.000000e+00> : vector<2x8xf32>
    %393 = vector.multi_reduction <add>, %392, %cst_127 [2] : vector<2x8x8xf32> to vector<2x8xf32>
    %394 = vector.shape_cast %393 : vector<2x8xf32> to vector<2x8x1xf32>
    %395 = tpu.reciprocal %394 {approx = true} : vector<2x8x1xf32> -> vector<2x8x1xf32>
    %396 = vector.broadcast %395 : vector<2x8x1xf32> to vector<2x8x8xf32>
    %397 = arith.mulf %392, %396 : vector<2x8x8xf32>
    %398 = vector.extract_strided_slice %345 {offsets = [0, 0, 16], sizes = [2, 8, 8], strides = [1, 1, 1]} : vector<2x8x32xf32> to vector<2x8x8xf32>
    "tpu.trace_start"() <{level = 10 : i32, message = "bqk,bkd->bqd"}> : () -> ()
    %cst_128 = arith.constant dense<0.000000e+00> : vector<2x8x8xf32>
    %399 = tpu.matmul %397, %398, %cst_128 {dimension_numbers = #tpu.dot_dimension_numbers<[2], [1], [1], [2], [0, 0, 0, 1, 1, 2], [0], [0]>} : vector<2x8x8xf32>, vector<2x8x8xf32>, vector<2x8x8xf32> -> vector<2x8x8xf32>
    "tpu.trace_stop"() : () -> ()
    %400 = vector.extract_strided_slice %343 {offsets = [0, 0, 24], sizes = [2, 8, 8], strides = [1, 1, 1]} : vector<2x8x32xf32> to vector<2x8x8xf32>
    %401 = vector.extract_strided_slice %344 {offsets = [0, 0, 24], sizes = [2, 8, 8], strides = [1, 1, 1]} : vector<2x8x32xf32> to vector<2x8x8xf32>
    "tpu.trace_start"() <{level = 10 : i32, message = "bqd,bkd->bqk"}> : () -> ()
    %cst_129 = arith.constant dense<0.000000e+00> : vector<2x8x8xf32>
    %402 = tpu.matmul %400, %401, %cst_129 {dimension_numbers = #tpu.dot_dimension_numbers<[2], [2], [1], [1], [0, 0, 0, 1, 1, 1], [0], [0]>} : vector<2x8x8xf32>, vector<2x8x8xf32>, vector<2x8x8xf32> -> vector<2x8x8xf32>
    "tpu.trace_stop"() : () -> ()
    %cst_130 = arith.constant 0.353553385 : f32
    %403 = vector.broadcast %cst_130 : f32 to vector<2x8x8xf32>
    %404 = arith.mulf %402, %403 : vector<2x8x8xf32>
    %405 = arith.addf %404, %1 : vector<2x8x8xf32>
    %cst_131 = arith.constant dense<0xFF800000> : vector<2x8xf32>
    %406 = vector.multi_reduction <maximumf>, %405, %cst_131 [2] : vector<2x8x8xf32> to vector<2x8xf32>
    %407 = vector.shape_cast %406 : vector<2x8xf32> to vector<2x8x1xf32>
    %408 = vector.broadcast %407 : vector<2x8x1xf32> to vector<2x8x8xf32>
    %409 = arith.subf %405, %408 : vector<2x8x8xf32>
    %410 = math.exp %409 : vector<2x8x8xf32>
    %cst_132 = arith.constant dense<0.000000e+00> : vector<2x8xf32>
    %411 = vector.multi_reduction <add>, %410, %cst_132 [2] : vector<2x8x8xf32> to vector<2x8xf32>
    %412 = vector.shape_cast %411 : vector<2x8xf32> to vector<2x8x1xf32>
    %413 = tpu.reciprocal %412 {approx = true} : vector<2x8x1xf32> -> vector<2x8x1xf32>
    %414 = vector.broadcast %413 : vector<2x8x1xf32> to vector<2x8x8xf32>
    %415 = arith.mulf %410, %414 : vector<2x8x8xf32>
    %416 = vector.extract_strided_slice %345 {offsets = [0, 0, 24], sizes = [2, 8, 8], strides = [1, 1, 1]} : vector<2x8x32xf32> to vector<2x8x8xf32>
    "tpu.trace_start"() <{level = 10 : i32, message = "bqk,bkd->bqd"}> : () -> ()
    %cst_133 = arith.constant dense<0.000000e+00> : vector<2x8x8xf32>
    %417 = tpu.matmul %415, %416, %cst_133 {dimension_numbers = #tpu.dot_dimension_numbers<[2], [1], [1], [2], [0, 0, 0, 1, 1, 2], [0], [0]>} : vector<2x8x8xf32>, vector<2x8x8xf32>, vector<2x8x8xf32> -> vector<2x8x8xf32>
    "tpu.trace_stop"() : () -> ()
    %418 = tpu.concatenate %363, %381, %399, %417 in 2 : vector<2x8x8xf32>, vector<2x8x8xf32>, vector<2x8x8xf32>, vector<2x8x8xf32> -> vector<2x8x32xf32>
    %419 = vector.shape_cast %418 : vector<2x8x32xf32> to vector<16x32xf32>
    %420 = tpu.concatenate %361, %379, %397, %415 in 2 : vector<2x8x8xf32>, vector<2x8x8xf32>, vector<2x8x8xf32>, vector<2x8x8xf32> -> vector<2x8x32xf32>
    %421 = vector.shape_cast %420 : vector<2x8x32xf32> to vector<16x32xf32>
    %c0_134 = arith.constant 0 : index
    %c0_135 = arith.constant 0 : index
    %c0_136 = arith.constant 0 : index
    %422 = vector.load %arg15[%c0_134, %c0_135, %c0_136] : memref<2x16x32xf32, #tpu.memory_space<vmem>>, vector<1x16x32xf32>
    %423 = vector.shape_cast %422 : vector<1x16x32xf32> to vector<16x32xf32>
    %424 = vector.shape_cast %421 : vector<16x32xf32> to vector<1x16x32xf32>
    tpu.vector_store %arg15[%c0_134, %c0_135, %c0_136], %424 {strides = array<i32>} : memref<2x16x32xf32, #tpu.memory_space<vmem>>, vector<1x16x32xf32>,
    %425 = vector.extract_strided_slice %330 {offsets = [0, 96], sizes = [32, 32], strides = [1, 1]} : vector<32x320xf32> to vector<32x32xf32>
    %cst_137 = arith.constant dense<0.000000e+00> : vector<16x32xf32>
    %426 = tpu.matmul %419, %425, %cst_137 {dimension_numbers = #tpu.dot_dimension_numbers<[1], [0], [0], [1], [0, 0, 1, 1], [], []>} : vector<16x32xf32>, vector<32x32xf32>, vector<16x32xf32> -> vector<16x32xf32>
    %427 = vector.extract_strided_slice %334 {offsets = [1, 0], sizes = [1, 32], strides = [1, 1]} : vector<16x128xf32> to vector<1x32xf32>
    %428 = vector.broadcast %427 : vector<1x32xf32> to vector<16x32xf32>
    %429 = arith.addf %426, %428 : vector<16x32xf32>
    %430 = arith.addf %328, %429 : vector<16x32xf32>
    %431 = vector.extract_strided_slice %334 {offsets = [2, 0], sizes = [1, 32], strides = [1, 1]} : vector<16x128xf32> to vector<1x32xf32>
    %432 = vector.extract_strided_slice %334 {offsets = [3, 0], sizes = [1, 32], strides = [1, 1]} : vector<16x128xf32> to vector<1x32xf32>
    %cst_138 = arith.constant dense<0.000000e+00> : vector<16xf32>
    %433 = vector.multi_reduction <add>, %430, %cst_138 [1] : vector<16x32xf32> to vector<16xf32>
    %434 = vector.shape_cast %433 : vector<16xf32> to vector<16x1xf32>
    %cst_139 = arith.constant 3.200000e+01 : f32
    %435 = vector.broadcast %cst_139 : f32 to vector<16x1xf32>
    %436 = arith.divf %434, %435 : vector<16x1xf32>
    %437 = vector.broadcast %436 : vector<16x1xf32> to vector<16x32xf32>
    %438 = arith.subf %430, %437 : vector<16x32xf32>
    %439 = arith.mulf %438, %438 : vector<16x32xf32>
    %cst_140 = arith.constant dense<0.000000e+00> : vector<16xf32>
    %440 = vector.multi_reduction <add>, %439, %cst_140 [1] : vector<16x32xf32> to vector<16xf32>
    %441 = vector.shape_cast %440 : vector<16xf32> to vector<16x1xf32>
    %cst_141 = arith.constant 3.200000e+01 : f32
    %442 = vector.broadcast %cst_141 : f32 to vector<16x1xf32>
    %443 = arith.divf %441, %442 : vector<16x1xf32>
    %444 = vector.broadcast %436 : vector<16x1xf32> to vector<16x32xf32>
    %445 = arith.subf %430, %444 : vector<16x32xf32>
    %cst_142 = arith.constant 9.99999974E-6 : f32
    %446 = vector.broadcast %cst_142 : f32 to vector<16x1xf32>
    %447 = arith.addf %443, %446 : vector<16x1xf32>
    %448 = math.rsqrt %447 : vector<16x1xf32>
    %449 = vector.broadcast %448 : vector<16x1xf32> to vector<16x32xf32>
    %450 = arith.mulf %445, %449 : vector<16x32xf32>
    %451 = vector.broadcast %431 : vector<1x32xf32> to vector<16x32xf32>
    %452 = arith.mulf %450, %451 : vector<16x32xf32>
    %453 = vector.broadcast %432 : vector<1x32xf32> to vector<16x32xf32>
    %454 = arith.addf %452, %453 : vector<16x32xf32>
    %455 = vector.extract_strided_slice %330 {offsets = [0, 128], sizes = [32, 32], strides = [1, 1]} : vector<32x320xf32> to vector<32x32xf32>
    %cst_143 = arith.constant dense<0.000000e+00> : vector<16x32xf32>
    %456 = tpu.matmul %454, %455, %cst_143 {dimension_numbers = #tpu.dot_dimension_numbers<[1], [0], [0], [1], [0, 0, 1, 1], [], []>} : vector<16x32xf32>, vector<32x32xf32>, vector<16x32xf32> -> vector<16x32xf32>
    %457 = vector.extract_strided_slice %334 {offsets = [4, 0], sizes = [1, 32], strides = [1, 1]} : vector<16x128xf32> to vector<1x32xf32>
    %458 = vector.broadcast %457 : vector<1x32xf32> to vector<16x32xf32>
    %459 = arith.addf %456, %458 : vector<16x32xf32>
    %460 = vector.extract_strided_slice %330 {offsets = [0, 160], sizes = [32, 64], strides = [1, 1]} : vector<32x320xf32> to vector<32x64xf32>
    %cst_144 = arith.constant dense<0.000000e+00> : vector<16x64xf32>
    %461 = tpu.matmul %327, %460, %cst_144 {dimension_numbers = #tpu.dot_dimension_numbers<[1], [0], [0], [1], [0, 0, 1, 1], [], []>} : vector<16x32xf32>, vector<32x64xf32>, vector<16x64xf32> -> vector<16x64xf32>
    %462 = vector.extract_strided_slice %334 {offsets = [5, 0], sizes = [1, 64], strides = [1, 1]} : vector<16x128xf32> to vector<1x64xf32>
    %463 = vector.broadcast %462 : vector<1x64xf32> to vector<16x64xf32>
    %464 = arith.addf %461, %463 : vector<16x64xf32>
    %465 = vector.extract_strided_slice %464 {offsets = [0, 0], sizes = [16, 32], strides = [1, 1]} : vector<16x64xf32> to vector<16x32xf32>
    %466 = vector.extract_strided_slice %464 {offsets = [0, 32], sizes = [16, 32], strides = [1, 1]} : vector<16x64xf32> to vector<16x32xf32>
    %467 = vector.shape_cast %459 : vector<16x32xf32> to vector<2x8x32xf32>
    %468 = vector.shape_cast %465 : vector<16x32xf32> to vector<2x8x32xf32>
    %469 = vector.shape_cast %466 : vector<16x32xf32> to vector<2x8x32xf32>
    %470 = vector.extract_strided_slice %467 {offsets = [0, 0, 0], sizes = [2, 8, 8], strides = [1, 1, 1]} : vector<2x8x32xf32> to vector<2x8x8xf32>
    %471 = vector.extract_strided_slice %468 {offsets = [0, 0, 0], sizes = [2, 8, 8], strides = [1, 1, 1]} : vector<2x8x32xf32> to vector<2x8x8xf32>
    "tpu.trace_start"() <{level = 10 : i32, message = "bqd,bkd->bqk"}> : () -> ()
    %cst_145 = arith.constant dense<0.000000e+00> : vector<2x8x8xf32>
    %472 = tpu.matmul %470, %471, %cst_145 {dimension_numbers = #tpu.dot_dimension_numbers<[2], [2], [1], [1], [0, 0, 0, 1, 1, 1], [0], [0]>} : vector<2x8x8xf32>, vector<2x8x8xf32>, vector<2x8x8xf32> -> vector<2x8x8xf32>
    "tpu.trace_stop"() : () -> ()
    %cst_146 = arith.constant 0.353553385 : f32
    %473 = vector.broadcast %cst_146 : f32 to vector<2x8x8xf32>
    %474 = arith.mulf %472, %473 : vector<2x8x8xf32>
    %475 = arith.addf %474, %2 : vector<2x8x8xf32>
    %cst_147 = arith.constant dense<0xFF800000> : vector<2x8xf32>
    %476 = vector.multi_reduction <maximumf>, %475, %cst_147 [2] : vector<2x8x8xf32> to vector<2x8xf32>
    %477 = vector.shape_cast %476 : vector<2x8xf32> to vector<2x8x1xf32>
    %478 = vector.broadcast %477 : vector<2x8x1xf32> to vector<2x8x8xf32>
    %479 = arith.subf %475, %478 : vector<2x8x8xf32>
    %480 = math.exp %479 : vector<2x8x8xf32>
    %cst_148 = arith.constant dense<0.000000e+00> : vector<2x8xf32>
    %481 = vector.multi_reduction <add>, %480, %cst_148 [2] : vector<2x8x8xf32> to vector<2x8xf32>
    %482 = vector.shape_cast %481 : vector<2x8xf32> to vector<2x8x1xf32>
    %483 = tpu.reciprocal %482 {approx = true} : vector<2x8x1xf32> -> vector<2x8x1xf32>
    %484 = vector.broadcast %483 : vector<2x8x1xf32> to vector<2x8x8xf32>
    %485 = arith.mulf %480, %484 : vector<2x8x8xf32>
    %486 = vector.extract_strided_slice %469 {offsets = [0, 0, 0], sizes = [2, 8, 8], strides = [1, 1, 1]} : vector<2x8x32xf32> to vector<2x8x8xf32>
    "tpu.trace_start"() <{level = 10 : i32, message = "bqk,bkd->bqd"}> : () -> ()
    %cst_149 = arith.constant dense<0.000000e+00> : vector<2x8x8xf32>
    %487 = tpu.matmul %485, %486, %cst_149 {dimension_numbers = #tpu.dot_dimension_numbers<[2], [1], [1], [2], [0, 0, 0, 1, 1, 2], [0], [0]>} : vector<2x8x8xf32>, vector<2x8x8xf32>, vector<2x8x8xf32> -> vector<2x8x8xf32>
    "tpu.trace_stop"() : () -> ()
    %488 = vector.extract_strided_slice %467 {offsets = [0, 0, 8], sizes = [2, 8, 8], strides = [1, 1, 1]} : vector<2x8x32xf32> to vector<2x8x8xf32>
    %489 = vector.extract_strided_slice %468 {offsets = [0, 0, 8], sizes = [2, 8, 8], strides = [1, 1, 1]} : vector<2x8x32xf32> to vector<2x8x8xf32>
    "tpu.trace_start"() <{level = 10 : i32, message = "bqd,bkd->bqk"}> : () -> ()
    %cst_150 = arith.constant dense<0.000000e+00> : vector<2x8x8xf32>
    %490 = tpu.matmul %488, %489, %cst_150 {dimension_numbers = #tpu.dot_dimension_numbers<[2], [2], [1], [1], [0, 0, 0, 1, 1, 1], [0], [0]>} : vector<2x8x8xf32>, vector<2x8x8xf32>, vector<2x8x8xf32> -> vector<2x8x8xf32>
    "tpu.trace_stop"() : () -> ()
    %cst_151 = arith.constant 0.353553385 : f32
    %491 = vector.broadcast %cst_151 : f32 to vector<2x8x8xf32>
    %492 = arith.mulf %490, %491 : vector<2x8x8xf32>
    %493 = arith.addf %492, %2 : vector<2x8x8xf32>
    %cst_152 = arith.constant dense<0xFF800000> : vector<2x8xf32>
    %494 = vector.multi_reduction <maximumf>, %493, %cst_152 [2] : vector<2x8x8xf32> to vector<2x8xf32>
    %495 = vector.shape_cast %494 : vector<2x8xf32> to vector<2x8x1xf32>
    %496 = vector.broadcast %495 : vector<2x8x1xf32> to vector<2x8x8xf32>
    %497 = arith.subf %493, %496 : vector<2x8x8xf32>
    %498 = math.exp %497 : vector<2x8x8xf32>
    %cst_153 = arith.constant dense<0.000000e+00> : vector<2x8xf32>
    %499 = vector.multi_reduction <add>, %498, %cst_153 [2] : vector<2x8x8xf32> to vector<2x8xf32>
    %500 = vector.shape_cast %499 : vector<2x8xf32> to vector<2x8x1xf32>
    %501 = tpu.reciprocal %500 {approx = true} : vector<2x8x1xf32> -> vector<2x8x1xf32>
    %502 = vector.broadcast %501 : vector<2x8x1xf32> to vector<2x8x8xf32>
    %503 = arith.mulf %498, %502 : vector<2x8x8xf32>
    %504 = vector.extract_strided_slice %469 {offsets = [0, 0, 8], sizes = [2, 8, 8], strides = [1, 1, 1]} : vector<2x8x32xf32> to vector<2x8x8xf32>
    "tpu.trace_start"() <{level = 10 : i32, message = "bqk,bkd->bqd"}> : () -> ()
    %cst_154 = arith.constant dense<0.000000e+00> : vector<2x8x8xf32>
    %505 = tpu.matmul %503, %504, %cst_154 {dimension_numbers = #tpu.dot_dimension_numbers<[2], [1], [1], [2], [0, 0, 0, 1, 1, 2], [0], [0]>} : vector<2x8x8xf32>, vector<2x8x8xf32>, vector<2x8x8xf32> -> vector<2x8x8xf32>
    "tpu.trace_stop"() : () -> ()
    %506 = vector.extract_strided_slice %467 {offsets = [0, 0, 16], sizes = [2, 8, 8], strides = [1, 1, 1]} : vector<2x8x32xf32> to vector<2x8x8xf32>
    %507 = vector.extract_strided_slice %468 {offsets = [0, 0, 16], sizes = [2, 8, 8], strides = [1, 1, 1]} : vector<2x8x32xf32> to vector<2x8x8xf32>
    "tpu.trace_start"() <{level = 10 : i32, message = "bqd,bkd->bqk"}> : () -> ()
    %cst_155 = arith.constant dense<0.000000e+00> : vector<2x8x8xf32>
    %508 = tpu.matmul %506, %507, %cst_155 {dimension_numbers = #tpu.dot_dimension_numbers<[2], [2], [1], [1], [0, 0, 0, 1, 1, 1], [0], [0]>} : vector<2x8x8xf32>, vector<2x8x8xf32>, vector<2x8x8xf32> -> vector<2x8x8xf32>
    "tpu.trace_stop"() : () -> ()
    %cst_156 = arith.constant 0.353553385 : f32
    %509 = vector.broadcast %cst_156 : f32 to vector<2x8x8xf32>
    %510 = arith.mulf %508, %509 : vector<2x8x8xf32>
    %511 = arith.addf %510, %2 : vector<2x8x8xf32>
    %cst_157 = arith.constant dense<0xFF800000> : vector<2x8xf32>
    %512 = vector.multi_reduction <maximumf>, %511, %cst_157 [2] : vector<2x8x8xf32> to vector<2x8xf32>
    %513 = vector.shape_cast %512 : vector<2x8xf32> to vector<2x8x1xf32>
    %514 = vector.broadcast %513 : vector<2x8x1xf32> to vector<2x8x8xf32>
    %515 = arith.subf %511, %514 : vector<2x8x8xf32>
    %516 = math.exp %515 : vector<2x8x8xf32>
    %cst_158 = arith.constant dense<0.000000e+00> : vector<2x8xf32>
    %517 = vector.multi_reduction <add>, %516, %cst_158 [2] : vector<2x8x8xf32> to vector<2x8xf32>
    %518 = vector.shape_cast %517 : vector<2x8xf32> to vector<2x8x1xf32>
    %519 = tpu.reciprocal %518 {approx = true} : vector<2x8x1xf32> -> vector<2x8x1xf32>
    %520 = vector.broadcast %519 : vector<2x8x1xf32> to vector<2x8x8xf32>
    %521 = arith.mulf %516, %520 : vector<2x8x8xf32>
    %522 = vector.extract_strided_slice %469 {offsets = [0, 0, 16], sizes = [2, 8, 8], strides = [1, 1, 1]} : vector<2x8x32xf32> to vector<2x8x8xf32>
    "tpu.trace_start"() <{level = 10 : i32, message = "bqk,bkd->bqd"}> : () -> ()
    %cst_159 = arith.constant dense<0.000000e+00> : vector<2x8x8xf32>
    %523 = tpu.matmul %521, %522, %cst_159 {dimension_numbers = #tpu.dot_dimension_numbers<[2], [1], [1], [2], [0, 0, 0, 1, 1, 2], [0], [0]>} : vector<2x8x8xf32>, vector<2x8x8xf32>, vector<2x8x8xf32> -> vector<2x8x8xf32>
    "tpu.trace_stop"() : () -> ()
    %524 = vector.extract_strided_slice %467 {offsets = [0, 0, 24], sizes = [2, 8, 8], strides = [1, 1, 1]} : vector<2x8x32xf32> to vector<2x8x8xf32>
    %525 = vector.extract_strided_slice %468 {offsets = [0, 0, 24], sizes = [2, 8, 8], strides = [1, 1, 1]} : vector<2x8x32xf32> to vector<2x8x8xf32>
    "tpu.trace_start"() <{level = 10 : i32, message = "bqd,bkd->bqk"}> : () -> ()
    %cst_160 = arith.constant dense<0.000000e+00> : vector<2x8x8xf32>
    %526 = tpu.matmul %524, %525, %cst_160 {dimension_numbers = #tpu.dot_dimension_numbers<[2], [2], [1], [1], [0, 0, 0, 1, 1, 1], [0], [0]>} : vector<2x8x8xf32>, vector<2x8x8xf32>, vector<2x8x8xf32> -> vector<2x8x8xf32>
    "tpu.trace_stop"() : () -> ()
    %cst_161 = arith.constant 0.353553385 : f32
    %527 = vector.broadcast %cst_161 : f32 to vector<2x8x8xf32>
    %528 = arith.mulf %526, %527 : vector<2x8x8xf32>
    %529 = arith.addf %528, %2 : vector<2x8x8xf32>
    %cst_162 = arith.constant dense<0xFF800000> : vector<2x8xf32>
    %530 = vector.multi_reduction <maximumf>, %529, %cst_162 [2] : vector<2x8x8xf32> to vector<2x8xf32>
    %531 = vector.shape_cast %530 : vector<2x8xf32> to vector<2x8x1xf32>
    %532 = vector.broadcast %531 : vector<2x8x1xf32> to vector<2x8x8xf32>
    %533 = arith.subf %529, %532 : vector<2x8x8xf32>
    %534 = math.exp %533 : vector<2x8x8xf32>
    %cst_163 = arith.constant dense<0.000000e+00> : vector<2x8xf32>
    %535 = vector.multi_reduction <add>, %534, %cst_163 [2] : vector<2x8x8xf32> to vector<2x8xf32>
    %536 = vector.shape_cast %535 : vector<2x8xf32> to vector<2x8x1xf32>
    %537 = tpu.reciprocal %536 {approx = true} : vector<2x8x1xf32> -> vector<2x8x1xf32>
    %538 = vector.broadcast %537 : vector<2x8x1xf32> to vector<2x8x8xf32>
    %539 = arith.mulf %534, %538 : vector<2x8x8xf32>
    %540 = vector.extract_strided_slice %469 {offsets = [0, 0, 24], sizes = [2, 8, 8], strides = [1, 1, 1]} : vector<2x8x32xf32> to vector<2x8x8xf32>
    "tpu.trace_start"() <{level = 10 : i32, message = "bqk,bkd->bqd"}> : () -> ()
    %cst_164 = arith.constant dense<0.000000e+00> : vector<2x8x8xf32>
    %541 = tpu.matmul %539, %540, %cst_164 {dimension_numbers = #tpu.dot_dimension_numbers<[2], [1], [1], [2], [0, 0, 0, 1, 1, 2], [0], [0]>} : vector<2x8x8xf32>, vector<2x8x8xf32>, vector<2x8x8xf32> -> vector<2x8x8xf32>
    "tpu.trace_stop"() : () -> ()
    %542 = tpu.concatenate %487, %505, %523, %541 in 2 : vector<2x8x8xf32>, vector<2x8x8xf32>, vector<2x8x8xf32>, vector<2x8x8xf32> -> vector<2x8x32xf32>
    %543 = vector.shape_cast %542 : vector<2x8x32xf32> to vector<16x32xf32>
    %544 = tpu.concatenate %485, %503, %521, %539 in 2 : vector<2x8x8xf32>, vector<2x8x8xf32>, vector<2x8x8xf32>, vector<2x8x8xf32> -> vector<2x8x32xf32>
    %545 = vector.shape_cast %544 : vector<2x8x32xf32> to vector<16x32xf32>
    %c0_165 = arith.constant 0 : index
    %c0_166 = arith.constant 0 : index
    %c0_167 = arith.constant 0 : index
    %546 = vector.load %arg16[%c0_165, %c0_166, %c0_167] : memref<2x16x32xf32, #tpu.memory_space<vmem>>, vector<1x16x32xf32>
    %547 = vector.shape_cast %546 : vector<1x16x32xf32> to vector<16x32xf32>
    %548 = vector.shape_cast %545 : vector<16x32xf32> to vector<1x16x32xf32>
    tpu.vector_store %arg16[%c0_165, %c0_166, %c0_167], %548 {strides = array<i32>} : memref<2x16x32xf32, #tpu.memory_space<vmem>>, vector<1x16x32xf32>,
    %549 = vector.extract_strided_slice %330 {offsets = [0, 224], sizes = [32, 32], strides = [1, 1]} : vector<32x320xf32> to vector<32x32xf32>
    %cst_168 = arith.constant dense<0.000000e+00> : vector<16x32xf32>
    %550 = tpu.matmul %543, %549, %cst_168 {dimension_numbers = #tpu.dot_dimension_numbers<[1], [0], [0], [1], [0, 0, 1, 1], [], []>} : vector<16x32xf32>, vector<32x32xf32>, vector<16x32xf32> -> vector<16x32xf32>
    %551 = vector.extract_strided_slice %334 {offsets = [6, 0], sizes = [1, 32], strides = [1, 1]} : vector<16x128xf32> to vector<1x32xf32>
    %552 = vector.broadcast %551 : vector<1x32xf32> to vector<16x32xf32>
    %553 = arith.addf %550, %552 : vector<16x32xf32>
    %554 = arith.addf %454, %553 : vector<16x32xf32>
    %555 = vector.extract_strided_slice %334 {offsets = [7, 0], sizes = [1, 32], strides = [1, 1]} : vector<16x128xf32> to vector<1x32xf32>
    %556 = vector.extract_strided_slice %334 {offsets = [8, 0], sizes = [1, 32], strides = [1, 1]} : vector<16x128xf32> to vector<1x32xf32>
    %cst_169 = arith.constant dense<0.000000e+00> : vector<16xf32>
    %557 = vector.multi_reduction <add>, %554, %cst_169 [1] : vector<16x32xf32> to vector<16xf32>
    %558 = vector.shape_cast %557 : vector<16xf32> to vector<16x1xf32>
    %cst_170 = arith.constant 3.200000e+01 : f32
    %559 = vector.broadcast %cst_170 : f32 to vector<16x1xf32>
    %560 = arith.divf %558, %559 : vector<16x1xf32>
    %561 = vector.broadcast %560 : vector<16x1xf32> to vector<16x32xf32>
    %562 = arith.subf %554, %561 : vector<16x32xf32>
    %563 = arith.mulf %562, %562 : vector<16x32xf32>
    %cst_171 = arith.constant dense<0.000000e+00> : vector<16xf32>
    %564 = vector.multi_reduction <add>, %563, %cst_171 [1] : vector<16x32xf32> to vector<16xf32>
    %565 = vector.shape_cast %564 : vector<16xf32> to vector<16x1xf32>
    %cst_172 = arith.constant 3.200000e+01 : f32
    %566 = vector.broadcast %cst_172 : f32 to vector<16x1xf32>
    %567 = arith.divf %565, %566 : vector<16x1xf32>
    %568 = vector.broadcast %560 : vector<16x1xf32> to vector<16x32xf32>
    %569 = arith.subf %554, %568 : vector<16x32xf32>
    %cst_173 = arith.constant 9.99999974E-6 : f32
    %570 = vector.broadcast %cst_173 : f32 to vector<16x1xf32>
    %571 = arith.addf %567, %570 : vector<16x1xf32>
    %572 = math.rsqrt %571 : vector<16x1xf32>
    %573 = vector.broadcast %572 : vector<16x1xf32> to vector<16x32xf32>
    %574 = arith.mulf %569, %573 : vector<16x32xf32>
    %575 = vector.broadcast %555 : vector<1x32xf32> to vector<16x32xf32>
    %576 = arith.mulf %574, %575 : vector<16x32xf32>
    %577 = vector.broadcast %556 : vector<1x32xf32> to vector<16x32xf32>
    %578 = arith.addf %576, %577 : vector<16x32xf32>
    %579 = vector.extract_strided_slice %330 {offsets = [0, 256], sizes = [32, 64], strides = [1, 1]} : vector<32x320xf32> to vector<32x64xf32>
    %cst_174 = arith.constant dense<0.000000e+00> : vector<16x64xf32>
    %580 = tpu.matmul %578, %579, %cst_174 {dimension_numbers = #tpu.dot_dimension_numbers<[1], [0], [0], [1], [0, 0, 1, 1], [], []>} : vector<16x32xf32>, vector<32x64xf32>, vector<16x64xf32> -> vector<16x64xf32>
    %581 = vector.extract_strided_slice %334 {offsets = [9, 0], sizes = [1, 64], strides = [1, 1]} : vector<16x128xf32> to vector<1x64xf32>
    %582 = vector.broadcast %581 : vector<1x64xf32> to vector<16x64xf32>
    %583 = arith.addf %580, %582 : vector<16x64xf32>
    %cst_175 = arith.constant 0.000000e+00 : f32
    %584 = vector.broadcast %cst_175 : f32 to vector<16x64xf32>
    %585 = arith.maximumf %583, %584 : vector<16x64xf32>
    %cst_176 = arith.constant dense<0.000000e+00> : vector<16x32xf32>
    %586 = tpu.matmul %585, %332, %cst_176 {dimension_numbers = #tpu.dot_dimension_numbers<[1], [0], [0], [1], [0, 0, 1, 1], [], []>} : vector<16x64xf32>, vector<64x32xf32>, vector<16x32xf32> -> vector<16x32xf32>
    %587 = vector.extract_strided_slice %334 {offsets = [10, 0], sizes = [1, 32], strides = [1, 1]} : vector<16x128xf32> to vector<1x32xf32>
    %588 = vector.broadcast %587 : vector<1x32xf32> to vector<16x32xf32>
    %589 = arith.addf %586, %588 : vector<16x32xf32>
    %590 = arith.addf %578, %589 : vector<16x32xf32>
    %591 = vector.extract_strided_slice %334 {offsets = [11, 0], sizes = [1, 32], strides = [1, 1]} : vector<16x128xf32> to vector<1x32xf32>
    %592 = vector.extract_strided_slice %334 {offsets = [12, 0], sizes = [1, 32], strides = [1, 1]} : vector<16x128xf32> to vector<1x32xf32>
    %cst_177 = arith.constant dense<0.000000e+00> : vector<16xf32>
    %593 = vector.multi_reduction <add>, %590, %cst_177 [1] : vector<16x32xf32> to vector<16xf32>
    %594 = vector.shape_cast %593 : vector<16xf32> to vector<16x1xf32>
    %cst_178 = arith.constant 3.200000e+01 : f32
    %595 = vector.broadcast %cst_178 : f32 to vector<16x1xf32>
    %596 = arith.divf %594, %595 : vector<16x1xf32>
    %597 = vector.broadcast %596 : vector<16x1xf32> to vector<16x32xf32>
    %598 = arith.subf %590, %597 : vector<16x32xf32>
    %599 = arith.mulf %598, %598 : vector<16x32xf32>
    %cst_179 = arith.constant dense<0.000000e+00> : vector<16xf32>
    %600 = vector.multi_reduction <add>, %599, %cst_179 [1] : vector<16x32xf32> to vector<16xf32>
    %601 = vector.shape_cast %600 : vector<16xf32> to vector<16x1xf32>
    %cst_180 = arith.constant 3.200000e+01 : f32
    %602 = vector.broadcast %cst_180 : f32 to vector<16x1xf32>
    %603 = arith.divf %601, %602 : vector<16x1xf32>
    %604 = vector.broadcast %596 : vector<16x1xf32> to vector<16x32xf32>
    %605 = arith.subf %590, %604 : vector<16x32xf32>
    %cst_181 = arith.constant 9.99999974E-6 : f32
    %606 = vector.broadcast %cst_181 : f32 to vector<16x1xf32>
    %607 = arith.addf %603, %606 : vector<16x1xf32>
    %608 = math.rsqrt %607 : vector<16x1xf32>
    %609 = vector.broadcast %608 : vector<16x1xf32> to vector<16x32xf32>
    %610 = arith.mulf %605, %609 : vector<16x32xf32>
    %611 = vector.broadcast %591 : vector<1x32xf32> to vector<16x32xf32>
    %612 = arith.mulf %610, %611 : vector<16x32xf32>
    %613 = vector.broadcast %592 : vector<1x32xf32> to vector<16x32xf32>
    %614 = arith.addf %612, %613 : vector<16x32xf32>
    %c1_182 = arith.constant 1 : index
    %c0_183 = arith.constant 0 : index
    %c0_184 = arith.constant 0 : index
    %615 = vector.load %arg8[%c1_182, %c0_183, %c0_184] : memref<2x32x320xf32, #tpu.memory_space<vmem>>, vector<1x32x320xf32>
    %616 = vector.shape_cast %615 : vector<1x32x320xf32> to vector<32x320xf32>
    %c1_185 = arith.constant 1 : index
    %c0_186 = arith.constant 0 : index
    %c0_187 = arith.constant 0 : index
    %617 = vector.load %arg9[%c1_185, %c0_186, %c0_187] : memref<2x64x32xf32, #tpu.memory_space<vmem>>, vector<1x64x32xf32>
    %618 = vector.shape_cast %617 : vector<1x64x32xf32> to vector<64x32xf32>
    %c1_188 = arith.constant 1 : index
    %c0_189 = arith.constant 0 : index
    %c0_190 = arith.constant 0 : index
    %619 = vector.load %arg10[%c1_188, %c0_189, %c0_190] : memref<2x16x128xf32, #tpu.memory_space<vmem>>, vector<1x16x128xf32>
    %620 = vector.shape_cast %619 : vector<1x16x128xf32> to vector<16x128xf32>
    %621 = vector.extract_strided_slice %616 {offsets = [0, 0], sizes = [32, 96], strides = [1, 1]} : vector<32x320xf32> to vector<32x96xf32>
    %cst_191 = arith.constant dense<0.000000e+00> : vector<16x96xf32>
    %622 = tpu.matmul %614, %621, %cst_191 {dimension_numbers = #tpu.dot_dimension_numbers<[1], [0], [0], [1], [0, 0, 1, 1], [], []>} : vector<16x32xf32>, vector<32x96xf32>, vector<16x96xf32> -> vector<16x96xf32>
    %623 = vector.extract_strided_slice %620 {offsets = [0, 0], sizes = [1, 96], strides = [1, 1]} : vector<16x128xf32> to vector<1x96xf32>
    %624 = vector.broadcast %623 : vector<1x96xf32> to vector<16x96xf32>
    %625 = arith.addf %622, %624 : vector<16x96xf32>
    %626 = vector.extract_strided_slice %625 {offsets = [0, 0], sizes = [16, 32], strides = [1, 1]} : vector<16x96xf32> to vector<16x32xf32>
    %627 = vector.extract_strided_slice %625 {offsets = [0, 32], sizes = [16, 32], strides = [1, 1]} : vector<16x96xf32> to vector<16x32xf32>
    %628 = vector.extract_strided_slice %625 {offsets = [0, 64], sizes = [16, 32], strides = [1, 1]} : vector<16x96xf32> to vector<16x32xf32>
    %629 = vector.shape_cast %626 : vector<16x32xf32> to vector<2x8x32xf32>
    %630 = vector.shape_cast %627 : vector<16x32xf32> to vector<2x8x32xf32>
    %631 = vector.shape_cast %628 : vector<16x32xf32> to vector<2x8x32xf32>
    %632 = vector.extract_strided_slice %629 {offsets = [0, 0, 0], sizes = [2, 8, 8], strides = [1, 1, 1]} : vector<2x8x32xf32> to vector<2x8x8xf32>
    %633 = vector.extract_strided_slice %630 {offsets = [0, 0, 0], sizes = [2, 8, 8], strides = [1, 1, 1]} : vector<2x8x32xf32> to vector<2x8x8xf32>
    "tpu.trace_start"() <{level = 10 : i32, message = "bqd,bkd->bqk"}> : () -> ()
    %cst_192 = arith.constant dense<0.000000e+00> : vector<2x8x8xf32>
    %634 = tpu.matmul %632, %633, %cst_192 {dimension_numbers = #tpu.dot_dimension_numbers<[2], [2], [1], [1], [0, 0, 0, 1, 1, 1], [0], [0]>} : vector<2x8x8xf32>, vector<2x8x8xf32>, vector<2x8x8xf32> -> vector<2x8x8xf32>
    "tpu.trace_stop"() : () -> ()
    %cst_193 = arith.constant 0.353553385 : f32
    %635 = vector.broadcast %cst_193 : f32 to vector<2x8x8xf32>
    %636 = arith.mulf %634, %635 : vector<2x8x8xf32>
    %637 = arith.addf %636, %1 : vector<2x8x8xf32>
    %cst_194 = arith.constant dense<0xFF800000> : vector<2x8xf32>
    %638 = vector.multi_reduction <maximumf>, %637, %cst_194 [2] : vector<2x8x8xf32> to vector<2x8xf32>
    %639 = vector.shape_cast %638 : vector<2x8xf32> to vector<2x8x1xf32>
    %640 = vector.broadcast %639 : vector<2x8x1xf32> to vector<2x8x8xf32>
    %641 = arith.subf %637, %640 : vector<2x8x8xf32>
    %642 = math.exp %641 : vector<2x8x8xf32>
    %cst_195 = arith.constant dense<0.000000e+00> : vector<2x8xf32>
    %643 = vector.multi_reduction <add>, %642, %cst_195 [2] : vector<2x8x8xf32> to vector<2x8xf32>
    %644 = vector.shape_cast %643 : vector<2x8xf32> to vector<2x8x1xf32>
    %645 = tpu.reciprocal %644 {approx = true} : vector<2x8x1xf32> -> vector<2x8x1xf32>
    %646 = vector.broadcast %645 : vector<2x8x1xf32> to vector<2x8x8xf32>
    %647 = arith.mulf %642, %646 : vector<2x8x8xf32>
    %648 = vector.extract_strided_slice %631 {offsets = [0, 0, 0], sizes = [2, 8, 8], strides = [1, 1, 1]} : vector<2x8x32xf32> to vector<2x8x8xf32>
    "tpu.trace_start"() <{level = 10 : i32, message = "bqk,bkd->bqd"}> : () -> ()
    %cst_196 = arith.constant dense<0.000000e+00> : vector<2x8x8xf32>
    %649 = tpu.matmul %647, %648, %cst_196 {dimension_numbers = #tpu.dot_dimension_numbers<[2], [1], [1], [2], [0, 0, 0, 1, 1, 2], [0], [0]>} : vector<2x8x8xf32>, vector<2x8x8xf32>, vector<2x8x8xf32> -> vector<2x8x8xf32>
    "tpu.trace_stop"() : () -> ()
    %650 = vector.extract_strided_slice %629 {offsets = [0, 0, 8], sizes = [2, 8, 8], strides = [1, 1, 1]} : vector<2x8x32xf32> to vector<2x8x8xf32>
    %651 = vector.extract_strided_slice %630 {offsets = [0, 0, 8], sizes = [2, 8, 8], strides = [1, 1, 1]} : vector<2x8x32xf32> to vector<2x8x8xf32>
    "tpu.trace_start"() <{level = 10 : i32, message = "bqd,bkd->bqk"}> : () -> ()
    %cst_197 = arith.constant dense<0.000000e+00> : vector<2x8x8xf32>
    %652 = tpu.matmul %650, %651, %cst_197 {dimension_numbers = #tpu.dot_dimension_numbers<[2], [2], [1], [1], [0, 0, 0, 1, 1, 1], [0], [0]>} : vector<2x8x8xf32>, vector<2x8x8xf32>, vector<2x8x8xf32> -> vector<2x8x8xf32>
    "tpu.trace_stop"() : () -> ()
    %cst_198 = arith.constant 0.353553385 : f32
    %653 = vector.broadcast %cst_198 : f32 to vector<2x8x8xf32>
    %654 = arith.mulf %652, %653 : vector<2x8x8xf32>
    %655 = arith.addf %654, %1 : vector<2x8x8xf32>
    %cst_199 = arith.constant dense<0xFF800000> : vector<2x8xf32>
    %656 = vector.multi_reduction <maximumf>, %655, %cst_199 [2] : vector<2x8x8xf32> to vector<2x8xf32>
    %657 = vector.shape_cast %656 : vector<2x8xf32> to vector<2x8x1xf32>
    %658 = vector.broadcast %657 : vector<2x8x1xf32> to vector<2x8x8xf32>
    %659 = arith.subf %655, %658 : vector<2x8x8xf32>
    %660 = math.exp %659 : vector<2x8x8xf32>
    %cst_200 = arith.constant dense<0.000000e+00> : vector<2x8xf32>
    %661 = vector.multi_reduction <add>, %660, %cst_200 [2] : vector<2x8x8xf32> to vector<2x8xf32>
    %662 = vector.shape_cast %661 : vector<2x8xf32> to vector<2x8x1xf32>
    %663 = tpu.reciprocal %662 {approx = true} : vector<2x8x1xf32> -> vector<2x8x1xf32>
    %664 = vector.broadcast %663 : vector<2x8x1xf32> to vector<2x8x8xf32>
    %665 = arith.mulf %660, %664 : vector<2x8x8xf32>
    %666 = vector.extract_strided_slice %631 {offsets = [0, 0, 8], sizes = [2, 8, 8], strides = [1, 1, 1]} : vector<2x8x32xf32> to vector<2x8x8xf32>
    "tpu.trace_start"() <{level = 10 : i32, message = "bqk,bkd->bqd"}> : () -> ()
    %cst_201 = arith.constant dense<0.000000e+00> : vector<2x8x8xf32>
    %667 = tpu.matmul %665, %666, %cst_201 {dimension_numbers = #tpu.dot_dimension_numbers<[2], [1], [1], [2], [0, 0, 0, 1, 1, 2], [0], [0]>} : vector<2x8x8xf32>, vector<2x8x8xf32>, vector<2x8x8xf32> -> vector<2x8x8xf32>
    "tpu.trace_stop"() : () -> ()
    %668 = vector.extract_strided_slice %629 {offsets = [0, 0, 16], sizes = [2, 8, 8], strides = [1, 1, 1]} : vector<2x8x32xf32> to vector<2x8x8xf32>
    %669 = vector.extract_strided_slice %630 {offsets = [0, 0, 16], sizes = [2, 8, 8], strides = [1, 1, 1]} : vector<2x8x32xf32> to vector<2x8x8xf32>
    "tpu.trace_start"() <{level = 10 : i32, message = "bqd,bkd->bqk"}> : () -> ()
    %cst_202 = arith.constant dense<0.000000e+00> : vector<2x8x8xf32>
    %670 = tpu.matmul %668, %669, %cst_202 {dimension_numbers = #tpu.dot_dimension_numbers<[2], [2], [1], [1], [0, 0, 0, 1, 1, 1], [0], [0]>} : vector<2x8x8xf32>, vector<2x8x8xf32>, vector<2x8x8xf32> -> vector<2x8x8xf32>
    "tpu.trace_stop"() : () -> ()
    %cst_203 = arith.constant 0.353553385 : f32
    %671 = vector.broadcast %cst_203 : f32 to vector<2x8x8xf32>
    %672 = arith.mulf %670, %671 : vector<2x8x8xf32>
    %673 = arith.addf %672, %1 : vector<2x8x8xf32>
    %cst_204 = arith.constant dense<0xFF800000> : vector<2x8xf32>
    %674 = vector.multi_reduction <maximumf>, %673, %cst_204 [2] : vector<2x8x8xf32> to vector<2x8xf32>
    %675 = vector.shape_cast %674 : vector<2x8xf32> to vector<2x8x1xf32>
    %676 = vector.broadcast %675 : vector<2x8x1xf32> to vector<2x8x8xf32>
    %677 = arith.subf %673, %676 : vector<2x8x8xf32>
    %678 = math.exp %677 : vector<2x8x8xf32>
    %cst_205 = arith.constant dense<0.000000e+00> : vector<2x8xf32>
    %679 = vector.multi_reduction <add>, %678, %cst_205 [2] : vector<2x8x8xf32> to vector<2x8xf32>
    %680 = vector.shape_cast %679 : vector<2x8xf32> to vector<2x8x1xf32>
    %681 = tpu.reciprocal %680 {approx = true} : vector<2x8x1xf32> -> vector<2x8x1xf32>
    %682 = vector.broadcast %681 : vector<2x8x1xf32> to vector<2x8x8xf32>
    %683 = arith.mulf %678, %682 : vector<2x8x8xf32>
    %684 = vector.extract_strided_slice %631 {offsets = [0, 0, 16], sizes = [2, 8, 8], strides = [1, 1, 1]} : vector<2x8x32xf32> to vector<2x8x8xf32>
    "tpu.trace_start"() <{level = 10 : i32, message = "bqk,bkd->bqd"}> : () -> ()
    %cst_206 = arith.constant dense<0.000000e+00> : vector<2x8x8xf32>
    %685 = tpu.matmul %683, %684, %cst_206 {dimension_numbers = #tpu.dot_dimension_numbers<[2], [1], [1], [2], [0, 0, 0, 1, 1, 2], [0], [0]>} : vector<2x8x8xf32>, vector<2x8x8xf32>, vector<2x8x8xf32> -> vector<2x8x8xf32>
    "tpu.trace_stop"() : () -> ()
    %686 = vector.extract_strided_slice %629 {offsets = [0, 0, 24], sizes = [2, 8, 8], strides = [1, 1, 1]} : vector<2x8x32xf32> to vector<2x8x8xf32>
    %687 = vector.extract_strided_slice %630 {offsets = [0, 0, 24], sizes = [2, 8, 8], strides = [1, 1, 1]} : vector<2x8x32xf32> to vector<2x8x8xf32>
    "tpu.trace_start"() <{level = 10 : i32, message = "bqd,bkd->bqk"}> : () -> ()
    %cst_207 = arith.constant dense<0.000000e+00> : vector<2x8x8xf32>
    %688 = tpu.matmul %686, %687, %cst_207 {dimension_numbers = #tpu.dot_dimension_numbers<[2], [2], [1], [1], [0, 0, 0, 1, 1, 1], [0], [0]>} : vector<2x8x8xf32>, vector<2x8x8xf32>, vector<2x8x8xf32> -> vector<2x8x8xf32>
    "tpu.trace_stop"() : () -> ()
    %cst_208 = arith.constant 0.353553385 : f32
    %689 = vector.broadcast %cst_208 : f32 to vector<2x8x8xf32>
    %690 = arith.mulf %688, %689 : vector<2x8x8xf32>
    %691 = arith.addf %690, %1 : vector<2x8x8xf32>
    %cst_209 = arith.constant dense<0xFF800000> : vector<2x8xf32>
    %692 = vector.multi_reduction <maximumf>, %691, %cst_209 [2] : vector<2x8x8xf32> to vector<2x8xf32>
    %693 = vector.shape_cast %692 : vector<2x8xf32> to vector<2x8x1xf32>
    %694 = vector.broadcast %693 : vector<2x8x1xf32> to vector<2x8x8xf32>
    %695 = arith.subf %691, %694 : vector<2x8x8xf32>
    %696 = math.exp %695 : vector<2x8x8xf32>
    %cst_210 = arith.constant dense<0.000000e+00> : vector<2x8xf32>
    %697 = vector.multi_reduction <add>, %696, %cst_210 [2] : vector<2x8x8xf32> to vector<2x8xf32>
    %698 = vector.shape_cast %697 : vector<2x8xf32> to vector<2x8x1xf32>
    %699 = tpu.reciprocal %698 {approx = true} : vector<2x8x1xf32> -> vector<2x8x1xf32>
    %700 = vector.broadcast %699 : vector<2x8x1xf32> to vector<2x8x8xf32>
    %701 = arith.mulf %696, %700 : vector<2x8x8xf32>
    %702 = vector.extract_strided_slice %631 {offsets = [0, 0, 24], sizes = [2, 8, 8], strides = [1, 1, 1]} : vector<2x8x32xf32> to vector<2x8x8xf32>
    "tpu.trace_start"() <{level = 10 : i32, message = "bqk,bkd->bqd"}> : () -> ()
    %cst_211 = arith.constant dense<0.000000e+00> : vector<2x8x8xf32>
    %703 = tpu.matmul %701, %702, %cst_211 {dimension_numbers = #tpu.dot_dimension_numbers<[2], [1], [1], [2], [0, 0, 0, 1, 1, 2], [0], [0]>} : vector<2x8x8xf32>, vector<2x8x8xf32>, vector<2x8x8xf32> -> vector<2x8x8xf32>
    "tpu.trace_stop"() : () -> ()
    %704 = tpu.concatenate %649, %667, %685, %703 in 2 : vector<2x8x8xf32>, vector<2x8x8xf32>, vector<2x8x8xf32>, vector<2x8x8xf32> -> vector<2x8x32xf32>
    %705 = vector.shape_cast %704 : vector<2x8x32xf32> to vector<16x32xf32>
    %706 = tpu.concatenate %647, %665, %683, %701 in 2 : vector<2x8x8xf32>, vector<2x8x8xf32>, vector<2x8x8xf32>, vector<2x8x8xf32> -> vector<2x8x32xf32>
    %707 = vector.shape_cast %706 : vector<2x8x32xf32> to vector<16x32xf32>
    %c1_212 = arith.constant 1 : index
    %c0_213 = arith.constant 0 : index
    %c0_214 = arith.constant 0 : index
    %708 = vector.load %arg15[%c1_212, %c0_213, %c0_214] : memref<2x16x32xf32, #tpu.memory_space<vmem>>, vector<1x16x32xf32>
    %709 = vector.shape_cast %708 : vector<1x16x32xf32> to vector<16x32xf32>
    %710 = vector.shape_cast %707 : vector<16x32xf32> to vector<1x16x32xf32>
    tpu.vector_store %arg15[%c1_212, %c0_213, %c0_214], %710 {strides = array<i32>} : memref<2x16x32xf32, #tpu.memory_space<vmem>>, vector<1x16x32xf32>,
    %711 = vector.extract_strided_slice %616 {offsets = [0, 96], sizes = [32, 32], strides = [1, 1]} : vector<32x320xf32> to vector<32x32xf32>
    %cst_215 = arith.constant dense<0.000000e+00> : vector<16x32xf32>
    %712 = tpu.matmul %705, %711, %cst_215 {dimension_numbers = #tpu.dot_dimension_numbers<[1], [0], [0], [1], [0, 0, 1, 1], [], []>} : vector<16x32xf32>, vector<32x32xf32>, vector<16x32xf32> -> vector<16x32xf32>
    %713 = vector.extract_strided_slice %620 {offsets = [1, 0], sizes = [1, 32], strides = [1, 1]} : vector<16x128xf32> to vector<1x32xf32>
    %714 = vector.broadcast %713 : vector<1x32xf32> to vector<16x32xf32>
    %715 = arith.addf %712, %714 : vector<16x32xf32>
    %716 = arith.addf %614, %715 : vector<16x32xf32>
    %717 = vector.extract_strided_slice %620 {offsets = [2, 0], sizes = [1, 32], strides = [1, 1]} : vector<16x128xf32> to vector<1x32xf32>
    %718 = vector.extract_strided_slice %620 {offsets = [3, 0], sizes = [1, 32], strides = [1, 1]} : vector<16x128xf32> to vector<1x32xf32>
    %cst_216 = arith.constant dense<0.000000e+00> : vector<16xf32>
    %719 = vector.multi_reduction <add>, %716, %cst_216 [1] : vector<16x32xf32> to vector<16xf32>
    %720 = vector.shape_cast %719 : vector<16xf32> to vector<16x1xf32>
    %cst_217 = arith.constant 3.200000e+01 : f32
    %721 = vector.broadcast %cst_217 : f32 to vector<16x1xf32>
    %722 = arith.divf %720, %721 : vector<16x1xf32>
    %723 = vector.broadcast %722 : vector<16x1xf32> to vector<16x32xf32>
    %724 = arith.subf %716, %723 : vector<16x32xf32>
    %725 = arith.mulf %724, %724 : vector<16x32xf32>
    %cst_218 = arith.constant dense<0.000000e+00> : vector<16xf32>
    %726 = vector.multi_reduction <add>, %725, %cst_218 [1] : vector<16x32xf32> to vector<16xf32>
    %727 = vector.shape_cast %726 : vector<16xf32> to vector<16x1xf32>
    %cst_219 = arith.constant 3.200000e+01 : f32
    %728 = vector.broadcast %cst_219 : f32 to vector<16x1xf32>
    %729 = arith.divf %727, %728 : vector<16x1xf32>
    %730 = vector.broadcast %722 : vector<16x1xf32> to vector<16x32xf32>
    %731 = arith.subf %716, %730 : vector<16x32xf32>
    %cst_220 = arith.constant 9.99999974E-6 : f32
    %732 = vector.broadcast %cst_220 : f32 to vector<16x1xf32>
    %733 = arith.addf %729, %732 : vector<16x1xf32>
    %734 = math.rsqrt %733 : vector<16x1xf32>
    %735 = vector.broadcast %734 : vector<16x1xf32> to vector<16x32xf32>
    %736 = arith.mulf %731, %735 : vector<16x32xf32>
    %737 = vector.broadcast %717 : vector<1x32xf32> to vector<16x32xf32>
    %738 = arith.mulf %736, %737 : vector<16x32xf32>
    %739 = vector.broadcast %718 : vector<1x32xf32> to vector<16x32xf32>
    %740 = arith.addf %738, %739 : vector<16x32xf32>
    %741 = vector.extract_strided_slice %616 {offsets = [0, 128], sizes = [32, 32], strides = [1, 1]} : vector<32x320xf32> to vector<32x32xf32>
    %cst_221 = arith.constant dense<0.000000e+00> : vector<16x32xf32>
    %742 = tpu.matmul %740, %741, %cst_221 {dimension_numbers = #tpu.dot_dimension_numbers<[1], [0], [0], [1], [0, 0, 1, 1], [], []>} : vector<16x32xf32>, vector<32x32xf32>, vector<16x32xf32> -> vector<16x32xf32>
    %743 = vector.extract_strided_slice %620 {offsets = [4, 0], sizes = [1, 32], strides = [1, 1]} : vector<16x128xf32> to vector<1x32xf32>
    %744 = vector.broadcast %743 : vector<1x32xf32> to vector<16x32xf32>
    %745 = arith.addf %742, %744 : vector<16x32xf32>
    %746 = vector.extract_strided_slice %616 {offsets = [0, 160], sizes = [32, 64], strides = [1, 1]} : vector<32x320xf32> to vector<32x64xf32>
    %cst_222 = arith.constant dense<0.000000e+00> : vector<16x64xf32>
    %747 = tpu.matmul %327, %746, %cst_222 {dimension_numbers = #tpu.dot_dimension_numbers<[1], [0], [0], [1], [0, 0, 1, 1], [], []>} : vector<16x32xf32>, vector<32x64xf32>, vector<16x64xf32> -> vector<16x64xf32>
    %748 = vector.extract_strided_slice %620 {offsets = [5, 0], sizes = [1, 64], strides = [1, 1]} : vector<16x128xf32> to vector<1x64xf32>
    %749 = vector.broadcast %748 : vector<1x64xf32> to vector<16x64xf32>
    %750 = arith.addf %747, %749 : vector<16x64xf32>
    %751 = vector.extract_strided_slice %750 {offsets = [0, 0], sizes = [16, 32], strides = [1, 1]} : vector<16x64xf32> to vector<16x32xf32>
    %752 = vector.extract_strided_slice %750 {offsets = [0, 32], sizes = [16, 32], strides = [1, 1]} : vector<16x64xf32> to vector<16x32xf32>
    %753 = vector.shape_cast %745 : vector<16x32xf32> to vector<2x8x32xf32>
    %754 = vector.shape_cast %751 : vector<16x32xf32> to vector<2x8x32xf32>
    %755 = vector.shape_cast %752 : vector<16x32xf32> to vector<2x8x32xf32>
    %756 = vector.extract_strided_slice %753 {offsets = [0, 0, 0], sizes = [2, 8, 8], strides = [1, 1, 1]} : vector<2x8x32xf32> to vector<2x8x8xf32>
    %757 = vector.extract_strided_slice %754 {offsets = [0, 0, 0], sizes = [2, 8, 8], strides = [1, 1, 1]} : vector<2x8x32xf32> to vector<2x8x8xf32>
    "tpu.trace_start"() <{level = 10 : i32, message = "bqd,bkd->bqk"}> : () -> ()
    %cst_223 = arith.constant dense<0.000000e+00> : vector<2x8x8xf32>
    %758 = tpu.matmul %756, %757, %cst_223 {dimension_numbers = #tpu.dot_dimension_numbers<[2], [2], [1], [1], [0, 0, 0, 1, 1, 1], [0], [0]>} : vector<2x8x8xf32>, vector<2x8x8xf32>, vector<2x8x8xf32> -> vector<2x8x8xf32>
    "tpu.trace_stop"() : () -> ()
    %cst_224 = arith.constant 0.353553385 : f32
    %759 = vector.broadcast %cst_224 : f32 to vector<2x8x8xf32>
    %760 = arith.mulf %758, %759 : vector<2x8x8xf32>
    %761 = arith.addf %760, %2 : vector<2x8x8xf32>
    %cst_225 = arith.constant dense<0xFF800000> : vector<2x8xf32>
    %762 = vector.multi_reduction <maximumf>, %761, %cst_225 [2] : vector<2x8x8xf32> to vector<2x8xf32>
    %763 = vector.shape_cast %762 : vector<2x8xf32> to vector<2x8x1xf32>
    %764 = vector.broadcast %763 : vector<2x8x1xf32> to vector<2x8x8xf32>
    %765 = arith.subf %761, %764 : vector<2x8x8xf32>
    %766 = math.exp %765 : vector<2x8x8xf32>
    %cst_226 = arith.constant dense<0.000000e+00> : vector<2x8xf32>
    %767 = vector.multi_reduction <add>, %766, %cst_226 [2] : vector<2x8x8xf32> to vector<2x8xf32>
    %768 = vector.shape_cast %767 : vector<2x8xf32> to vector<2x8x1xf32>
    %769 = tpu.reciprocal %768 {approx = true} : vector<2x8x1xf32> -> vector<2x8x1xf32>
    %770 = vector.broadcast %769 : vector<2x8x1xf32> to vector<2x8x8xf32>
    %771 = arith.mulf %766, %770 : vector<2x8x8xf32>
    %772 = vector.extract_strided_slice %755 {offsets = [0, 0, 0], sizes = [2, 8, 8], strides = [1, 1, 1]} : vector<2x8x32xf32> to vector<2x8x8xf32>
    "tpu.trace_start"() <{level = 10 : i32, message = "bqk,bkd->bqd"}> : () -> ()
    %cst_227 = arith.constant dense<0.000000e+00> : vector<2x8x8xf32>
    %773 = tpu.matmul %771, %772, %cst_227 {dimension_numbers = #tpu.dot_dimension_numbers<[2], [1], [1], [2], [0, 0, 0, 1, 1, 2], [0], [0]>} : vector<2x8x8xf32>, vector<2x8x8xf32>, vector<2x8x8xf32> -> vector<2x8x8xf32>
    "tpu.trace_stop"() : () -> ()
    %774 = vector.extract_strided_slice %753 {offsets = [0, 0, 8], sizes = [2, 8, 8], strides = [1, 1, 1]} : vector<2x8x32xf32> to vector<2x8x8xf32>
    %775 = vector.extract_strided_slice %754 {offsets = [0, 0, 8], sizes = [2, 8, 8], strides = [1, 1, 1]} : vector<2x8x32xf32> to vector<2x8x8xf32>
    "tpu.trace_start"() <{level = 10 : i32, message = "bqd,bkd->bqk"}> : () -> ()
    %cst_228 = arith.constant dense<0.000000e+00> : vector<2x8x8xf32>
    %776 = tpu.matmul %774, %775, %cst_228 {dimension_numbers = #tpu.dot_dimension_numbers<[2], [2], [1], [1], [0, 0, 0, 1, 1, 1], [0], [0]>} : vector<2x8x8xf32>, vector<2x8x8xf32>, vector<2x8x8xf32> -> vector<2x8x8xf32>
    "tpu.trace_stop"() : () -> ()
    %cst_229 = arith.constant 0.353553385 : f32
    %777 = vector.broadcast %cst_229 : f32 to vector<2x8x8xf32>
    %778 = arith.mulf %776, %777 : vector<2x8x8xf32>
    %779 = arith.addf %778, %2 : vector<2x8x8xf32>
    %cst_230 = arith.constant dense<0xFF800000> : vector<2x8xf32>
    %780 = vector.multi_reduction <maximumf>, %779, %cst_230 [2] : vector<2x8x8xf32> to vector<2x8xf32>
    %781 = vector.shape_cast %780 : vector<2x8xf32> to vector<2x8x1xf32>
    %782 = vector.broadcast %781 : vector<2x8x1xf32> to vector<2x8x8xf32>
    %783 = arith.subf %779, %782 : vector<2x8x8xf32>
    %784 = math.exp %783 : vector<2x8x8xf32>
    %cst_231 = arith.constant dense<0.000000e+00> : vector<2x8xf32>
    %785 = vector.multi_reduction <add>, %784, %cst_231 [2] : vector<2x8x8xf32> to vector<2x8xf32>
    %786 = vector.shape_cast %785 : vector<2x8xf32> to vector<2x8x1xf32>
    %787 = tpu.reciprocal %786 {approx = true} : vector<2x8x1xf32> -> vector<2x8x1xf32>
    %788 = vector.broadcast %787 : vector<2x8x1xf32> to vector<2x8x8xf32>
    %789 = arith.mulf %784, %788 : vector<2x8x8xf32>
    %790 = vector.extract_strided_slice %755 {offsets = [0, 0, 8], sizes = [2, 8, 8], strides = [1, 1, 1]} : vector<2x8x32xf32> to vector<2x8x8xf32>
    "tpu.trace_start"() <{level = 10 : i32, message = "bqk,bkd->bqd"}> : () -> ()
    %cst_232 = arith.constant dense<0.000000e+00> : vector<2x8x8xf32>
    %791 = tpu.matmul %789, %790, %cst_232 {dimension_numbers = #tpu.dot_dimension_numbers<[2], [1], [1], [2], [0, 0, 0, 1, 1, 2], [0], [0]>} : vector<2x8x8xf32>, vector<2x8x8xf32>, vector<2x8x8xf32> -> vector<2x8x8xf32>
    "tpu.trace_stop"() : () -> ()
    %792 = vector.extract_strided_slice %753 {offsets = [0, 0, 16], sizes = [2, 8, 8], strides = [1, 1, 1]} : vector<2x8x32xf32> to vector<2x8x8xf32>
    %793 = vector.extract_strided_slice %754 {offsets = [0, 0, 16], sizes = [2, 8, 8], strides = [1, 1, 1]} : vector<2x8x32xf32> to vector<2x8x8xf32>
    "tpu.trace_start"() <{level = 10 : i32, message = "bqd,bkd->bqk"}> : () -> ()
    %cst_233 = arith.constant dense<0.000000e+00> : vector<2x8x8xf32>
    %794 = tpu.matmul %792, %793, %cst_233 {dimension_numbers = #tpu.dot_dimension_numbers<[2], [2], [1], [1], [0, 0, 0, 1, 1, 1], [0], [0]>} : vector<2x8x8xf32>, vector<2x8x8xf32>, vector<2x8x8xf32> -> vector<2x8x8xf32>
    "tpu.trace_stop"() : () -> ()
    %cst_234 = arith.constant 0.353553385 : f32
    %795 = vector.broadcast %cst_234 : f32 to vector<2x8x8xf32>
    %796 = arith.mulf %794, %795 : vector<2x8x8xf32>
    %797 = arith.addf %796, %2 : vector<2x8x8xf32>
    %cst_235 = arith.constant dense<0xFF800000> : vector<2x8xf32>
    %798 = vector.multi_reduction <maximumf>, %797, %cst_235 [2] : vector<2x8x8xf32> to vector<2x8xf32>
    %799 = vector.shape_cast %798 : vector<2x8xf32> to vector<2x8x1xf32>
    %800 = vector.broadcast %799 : vector<2x8x1xf32> to vector<2x8x8xf32>
    %801 = arith.subf %797, %800 : vector<2x8x8xf32>
    %802 = math.exp %801 : vector<2x8x8xf32>
    %cst_236 = arith.constant dense<0.000000e+00> : vector<2x8xf32>
    %803 = vector.multi_reduction <add>, %802, %cst_236 [2] : vector<2x8x8xf32> to vector<2x8xf32>
    %804 = vector.shape_cast %803 : vector<2x8xf32> to vector<2x8x1xf32>
    %805 = tpu.reciprocal %804 {approx = true} : vector<2x8x1xf32> -> vector<2x8x1xf32>
    %806 = vector.broadcast %805 : vector<2x8x1xf32> to vector<2x8x8xf32>
    %807 = arith.mulf %802, %806 : vector<2x8x8xf32>
    %808 = vector.extract_strided_slice %755 {offsets = [0, 0, 16], sizes = [2, 8, 8], strides = [1, 1, 1]} : vector<2x8x32xf32> to vector<2x8x8xf32>
    "tpu.trace_start"() <{level = 10 : i32, message = "bqk,bkd->bqd"}> : () -> ()
    %cst_237 = arith.constant dense<0.000000e+00> : vector<2x8x8xf32>
    %809 = tpu.matmul %807, %808, %cst_237 {dimension_numbers = #tpu.dot_dimension_numbers<[2], [1], [1], [2], [0, 0, 0, 1, 1, 2], [0], [0]>} : vector<2x8x8xf32>, vector<2x8x8xf32>, vector<2x8x8xf32> -> vector<2x8x8xf32>
    "tpu.trace_stop"() : () -> ()
    %810 = vector.extract_strided_slice %753 {offsets = [0, 0, 24], sizes = [2, 8, 8], strides = [1, 1, 1]} : vector<2x8x32xf32> to vector<2x8x8xf32>
    %811 = vector.extract_strided_slice %754 {offsets = [0, 0, 24], sizes = [2, 8, 8], strides = [1, 1, 1]} : vector<2x8x32xf32> to vector<2x8x8xf32>
    "tpu.trace_start"() <{level = 10 : i32, message = "bqd,bkd->bqk"}> : () -> ()
    %cst_238 = arith.constant dense<0.000000e+00> : vector<2x8x8xf32>
    %812 = tpu.matmul %810, %811, %cst_238 {dimension_numbers = #tpu.dot_dimension_numbers<[2], [2], [1], [1], [0, 0, 0, 1, 1, 1], [0], [0]>} : vector<2x8x8xf32>, vector<2x8x8xf32>, vector<2x8x8xf32> -> vector<2x8x8xf32>
    "tpu.trace_stop"() : () -> ()
    %cst_239 = arith.constant 0.353553385 : f32
    %813 = vector.broadcast %cst_239 : f32 to vector<2x8x8xf32>
    %814 = arith.mulf %812, %813 : vector<2x8x8xf32>
    %815 = arith.addf %814, %2 : vector<2x8x8xf32>
    %cst_240 = arith.constant dense<0xFF800000> : vector<2x8xf32>
    %816 = vector.multi_reduction <maximumf>, %815, %cst_240 [2] : vector<2x8x8xf32> to vector<2x8xf32>
    %817 = vector.shape_cast %816 : vector<2x8xf32> to vector<2x8x1xf32>
    %818 = vector.broadcast %817 : vector<2x8x1xf32> to vector<2x8x8xf32>
    %819 = arith.subf %815, %818 : vector<2x8x8xf32>
    %820 = math.exp %819 : vector<2x8x8xf32>
    %cst_241 = arith.constant dense<0.000000e+00> : vector<2x8xf32>
    %821 = vector.multi_reduction <add>, %820, %cst_241 [2] : vector<2x8x8xf32> to vector<2x8xf32>
    %822 = vector.shape_cast %821 : vector<2x8xf32> to vector<2x8x1xf32>
    %823 = tpu.reciprocal %822 {approx = true} : vector<2x8x1xf32> -> vector<2x8x1xf32>
    %824 = vector.broadcast %823 : vector<2x8x1xf32> to vector<2x8x8xf32>
    %825 = arith.mulf %820, %824 : vector<2x8x8xf32>
    %826 = vector.extract_strided_slice %755 {offsets = [0, 0, 24], sizes = [2, 8, 8], strides = [1, 1, 1]} : vector<2x8x32xf32> to vector<2x8x8xf32>
    "tpu.trace_start"() <{level = 10 : i32, message = "bqk,bkd->bqd"}> : () -> ()
    %cst_242 = arith.constant dense<0.000000e+00> : vector<2x8x8xf32>
    %827 = tpu.matmul %825, %826, %cst_242 {dimension_numbers = #tpu.dot_dimension_numbers<[2], [1], [1], [2], [0, 0, 0, 1, 1, 2], [0], [0]>} : vector<2x8x8xf32>, vector<2x8x8xf32>, vector<2x8x8xf32> -> vector<2x8x8xf32>
    "tpu.trace_stop"() : () -> ()
    %828 = tpu.concatenate %773, %791, %809, %827 in 2 : vector<2x8x8xf32>, vector<2x8x8xf32>, vector<2x8x8xf32>, vector<2x8x8xf32> -> vector<2x8x32xf32>
    %829 = vector.shape_cast %828 : vector<2x8x32xf32> to vector<16x32xf32>
    %830 = tpu.concatenate %771, %789, %807, %825 in 2 : vector<2x8x8xf32>, vector<2x8x8xf32>, vector<2x8x8xf32>, vector<2x8x8xf32> -> vector<2x8x32xf32>
    %831 = vector.shape_cast %830 : vector<2x8x32xf32> to vector<16x32xf32>
    %c1_243 = arith.constant 1 : index
    %c0_244 = arith.constant 0 : index
    %c0_245 = arith.constant 0 : index
    %832 = vector.load %arg16[%c1_243, %c0_244, %c0_245] : memref<2x16x32xf32, #tpu.memory_space<vmem>>, vector<1x16x32xf32>
    %833 = vector.shape_cast %832 : vector<1x16x32xf32> to vector<16x32xf32>
    %834 = vector.shape_cast %831 : vector<16x32xf32> to vector<1x16x32xf32>
    tpu.vector_store %arg16[%c1_243, %c0_244, %c0_245], %834 {strides = array<i32>} : memref<2x16x32xf32, #tpu.memory_space<vmem>>, vector<1x16x32xf32>,
    %835 = vector.extract_strided_slice %616 {offsets = [0, 224], sizes = [32, 32], strides = [1, 1]} : vector<32x320xf32> to vector<32x32xf32>
    %cst_246 = arith.constant dense<0.000000e+00> : vector<16x32xf32>
    %836 = tpu.matmul %829, %835, %cst_246 {dimension_numbers = #tpu.dot_dimension_numbers<[1], [0], [0], [1], [0, 0, 1, 1], [], []>} : vector<16x32xf32>, vector<32x32xf32>, vector<16x32xf32> -> vector<16x32xf32>
    %837 = vector.extract_strided_slice %620 {offsets = [6, 0], sizes = [1, 32], strides = [1, 1]} : vector<16x128xf32> to vector<1x32xf32>
    %838 = vector.broadcast %837 : vector<1x32xf32> to vector<16x32xf32>
    %839 = arith.addf %836, %838 : vector<16x32xf32>
    %840 = arith.addf %740, %839 : vector<16x32xf32>
    %841 = vector.extract_strided_slice %620 {offsets = [7, 0], sizes = [1, 32], strides = [1, 1]} : vector<16x128xf32> to vector<1x32xf32>
    %842 = vector.extract_strided_slice %620 {offsets = [8, 0], sizes = [1, 32], strides = [1, 1]} : vector<16x128xf32> to vector<1x32xf32>
    %cst_247 = arith.constant dense<0.000000e+00> : vector<16xf32>
    %843 = vector.multi_reduction <add>, %840, %cst_247 [1] : vector<16x32xf32> to vector<16xf32>
    %844 = vector.shape_cast %843 : vector<16xf32> to vector<16x1xf32>
    %cst_248 = arith.constant 3.200000e+01 : f32
    %845 = vector.broadcast %cst_248 : f32 to vector<16x1xf32>
    %846 = arith.divf %844, %845 : vector<16x1xf32>
    %847 = vector.broadcast %846 : vector<16x1xf32> to vector<16x32xf32>
    %848 = arith.subf %840, %847 : vector<16x32xf32>
    %849 = arith.mulf %848, %848 : vector<16x32xf32>
    %cst_249 = arith.constant dense<0.000000e+00> : vector<16xf32>
    %850 = vector.multi_reduction <add>, %849, %cst_249 [1] : vector<16x32xf32> to vector<16xf32>
    %851 = vector.shape_cast %850 : vector<16xf32> to vector<16x1xf32>
    %cst_250 = arith.constant 3.200000e+01 : f32
    %852 = vector.broadcast %cst_250 : f32 to vector<16x1xf32>
    %853 = arith.divf %851, %852 : vector<16x1xf32>
    %854 = vector.broadcast %846 : vector<16x1xf32> to vector<16x32xf32>
    %855 = arith.subf %840, %854 : vector<16x32xf32>
    %cst_251 = arith.constant 9.99999974E-6 : f32
    %856 = vector.broadcast %cst_251 : f32 to vector<16x1xf32>
    %857 = arith.addf %853, %856 : vector<16x1xf32>
    %858 = math.rsqrt %857 : vector<16x1xf32>
    %859 = vector.broadcast %858 : vector<16x1xf32> to vector<16x32xf32>
    %860 = arith.mulf %855, %859 : vector<16x32xf32>
    %861 = vector.broadcast %841 : vector<1x32xf32> to vector<16x32xf32>
    %862 = arith.mulf %860, %861 : vector<16x32xf32>
    %863 = vector.broadcast %842 : vector<1x32xf32> to vector<16x32xf32>
    %864 = arith.addf %862, %863 : vector<16x32xf32>
    %865 = vector.extract_strided_slice %616 {offsets = [0, 256], sizes = [32, 64], strides = [1, 1]} : vector<32x320xf32> to vector<32x64xf32>
    %cst_252 = arith.constant dense<0.000000e+00> : vector<16x64xf32>
    %866 = tpu.matmul %864, %865, %cst_252 {dimension_numbers = #tpu.dot_dimension_numbers<[1], [0], [0], [1], [0, 0, 1, 1], [], []>} : vector<16x32xf32>, vector<32x64xf32>, vector<16x64xf32> -> vector<16x64xf32>
    %867 = vector.extract_strided_slice %620 {offsets = [9, 0], sizes = [1, 64], strides = [1, 1]} : vector<16x128xf32> to vector<1x64xf32>
    %868 = vector.broadcast %867 : vector<1x64xf32> to vector<16x64xf32>
    %869 = arith.addf %866, %868 : vector<16x64xf32>
    %cst_253 = arith.constant 0.000000e+00 : f32
    %870 = vector.broadcast %cst_253 : f32 to vector<16x64xf32>
    %871 = arith.maximumf %869, %870 : vector<16x64xf32>
    %cst_254 = arith.constant dense<0.000000e+00> : vector<16x32xf32>
    %872 = tpu.matmul %871, %618, %cst_254 {dimension_numbers = #tpu.dot_dimension_numbers<[1], [0], [0], [1], [0, 0, 1, 1], [], []>} : vector<16x64xf32>, vector<64x32xf32>, vector<16x32xf32> -> vector<16x32xf32>
    %873 = vector.extract_strided_slice %620 {offsets = [10, 0], sizes = [1, 32], strides = [1, 1]} : vector<16x128xf32> to vector<1x32xf32>
    %874 = vector.broadcast %873 : vector<1x32xf32> to vector<16x32xf32>
    %875 = arith.addf %872, %874 : vector<16x32xf32>
    %876 = arith.addf %864, %875 : vector<16x32xf32>
    %877 = vector.extract_strided_slice %620 {offsets = [11, 0], sizes = [1, 32], strides = [1, 1]} : vector<16x128xf32> to vector<1x32xf32>
    %878 = vector.extract_strided_slice %620 {offsets = [12, 0], sizes = [1, 32], strides = [1, 1]} : vector<16x128xf32> to vector<1x32xf32>
    %cst_255 = arith.constant dense<0.000000e+00> : vector<16xf32>
    %879 = vector.multi_reduction <add>, %876, %cst_255 [1] : vector<16x32xf32> to vector<16xf32>
    %880 = vector.shape_cast %879 : vector<16xf32> to vector<16x1xf32>
    %cst_256 = arith.constant 3.200000e+01 : f32
    %881 = vector.broadcast %cst_256 : f32 to vector<16x1xf32>
    %882 = arith.divf %880, %881 : vector<16x1xf32>
    %883 = vector.broadcast %882 : vector<16x1xf32> to vector<16x32xf32>
    %884 = arith.subf %876, %883 : vector<16x32xf32>
    %885 = arith.mulf %884, %884 : vector<16x32xf32>
    %cst_257 = arith.constant dense<0.000000e+00> : vector<16xf32>
    %886 = vector.multi_reduction <add>, %885, %cst_257 [1] : vector<16x32xf32> to vector<16xf32>
    %887 = vector.shape_cast %886 : vector<16xf32> to vector<16x1xf32>
    %cst_258 = arith.constant 3.200000e+01 : f32
    %888 = vector.broadcast %cst_258 : f32 to vector<16x1xf32>
    %889 = arith.divf %887, %888 : vector<16x1xf32>
    %890 = vector.broadcast %882 : vector<16x1xf32> to vector<16x32xf32>
    %891 = arith.subf %876, %890 : vector<16x32xf32>
    %cst_259 = arith.constant 9.99999974E-6 : f32
    %892 = vector.broadcast %cst_259 : f32 to vector<16x1xf32>
    %893 = arith.addf %889, %892 : vector<16x1xf32>
    %894 = math.rsqrt %893 : vector<16x1xf32>
    %895 = vector.broadcast %894 : vector<16x1xf32> to vector<16x32xf32>
    %896 = arith.mulf %891, %895 : vector<16x32xf32>
    %897 = vector.broadcast %877 : vector<1x32xf32> to vector<16x32xf32>
    %898 = arith.mulf %896, %897 : vector<16x32xf32>
    %899 = vector.broadcast %878 : vector<1x32xf32> to vector<16x32xf32>
    %900 = arith.addf %898, %899 : vector<16x32xf32>
    %c0_260 = arith.constant 0 : index
    %c0_261 = arith.constant 0 : index
    %901 = vector.load %arg11[%c0_260, %c0_261] : memref<32x128xf32, #tpu.memory_space<vmem>>, vector<32x128xf32>
    %cst_262 = arith.constant dense<0.000000e+00> : vector<16x128xf32>
    %902 = tpu.matmul %900, %901, %cst_262 {dimension_numbers = #tpu.dot_dimension_numbers<[1], [0], [0], [1], [0, 0, 1, 1], [], []>} : vector<16x32xf32>, vector<32x128xf32>, vector<16x128xf32> -> vector<16x128xf32>
    %c0_263 = arith.constant 0 : index
    %c0_264 = arith.constant 0 : index
    %903 = vector.load %arg12[%c0_263, %c0_264] : memref<1x128xf32, #tpu.memory_space<vmem>>, vector<1x128xf32>
    %904 = vector.broadcast %903 : vector<1x128xf32> to vector<16x128xf32>
    %905 = arith.addf %902, %904 : vector<16x128xf32>
    %c0_265 = arith.constant 0 : index
    %c0_266 = arith.constant 0 : index
    %906 = vector.load %arg13[%c0_265, %c0_266] : memref<16x128xf32, #tpu.memory_space<vmem>>, vector<16x128xf32>
    tpu.vector_store %arg13[%c0_265, %c0_266], %905 {strides = array<i32>} : memref<16x128xf32, #tpu.memory_space<vmem>>, vector<16x128xf32>,
    return
  }
}

</mosaic_0001>

<bundles_post_ra>
// kernel: transformer_forward.1
= control target key start
LH: loop header
LB: loop body
LE: loop exit
PB: predicated region body
PF: predicated region fallthrough
CT: control target
= control target key end

     0   :  { %vm74_vm0 = vcmask 261120   ;;  %s7548_s21 = smov 96   ;;  %s7544_s22 = smov 88   ;;  %vm107_vm1 = vcmask 64512   ;;  %vm665_vm2 = vcmask 130048   ;;  %vm668_vm3 = vcmask 195584   ;;  %s7504_s5 = inlined_call_operand.vmem [shape: f32[2,32,192], index: 5, kind: input, shape index: {}]   ;;  %s7505_s0 = inlined_call_operand.vmem [shape: f32[16,32], index: 0, kind: input, shape index: {}]   ;;  %s7506_s7 = inlined_call_operand.vmem [shape: f32[2,8,128], index: 7, kind: input, shape index: {}]   ;;  %s7507_s2 = inlined_call_operand.vmem [shape: f32[2,8,8], index: 2, kind: input, shape index: {}, may-alias: {2,4}]   ;;  %s7508_s6 = inlined_call_operand.vmem [shape: f32[2,64,32], index: 6, kind: input, shape index: {}]   ;;  %s7509_s8 = inlined_call_operand.vmem [shape: f32[2,32,320], index: 8, kind: input, shape index: {}]   ;;  %s7510_s1 = inlined_call_operand.vmem [shape: f32[16,32], index: 1, kind: input, shape index: {}]   ;;  %s7511_s10 = inlined_call_operand.vmem [shape: f32[2,16,128], index: 10, kind: input, shape index: {}]   ;;  %s7512_s3 = inlined_call_operand.vmem [shape: f32[2,8,8], index: 3, kind: input, shape index: {}]   ;;  %s7513_s4 = inlined_call_operand.vmem [shape: f32[2,8,8], index: 4, kind: input, shape index: {}, may-alias: {2,4}]   ;;  %s7514_s9 = inlined_call_operand.vmem [shape: f32[2,64,32], index: 9, kind: input, shape index: {}]   ;;  %s7515_s15 = inlined_call_operand.vmem [shape: f32[2,16,32], index: 15, kind: output, shape index: {2}]   ;;  %s7516_s14 = inlined_call_operand.vmem [shape: f32[2,16,32], index: 14, kind: output, shape index: {1}]   ;;  %s7517_s16 = inlined_call_operand.vmem [shape: f32[2,16,32], index: 16, kind: output, shape index: {3}]   ;;  %s7518_s11 = inlined_call_operand.vmem [shape: f32[32,128], index: 11, kind: input, shape index: {}]   ;;  %s7519_s12 = inlined_call_operand.vmem [shape: f32[1,128], index: 12, kind: input, shape index: {}]   ;;  %s7520_s13 = inlined_call_operand.vmem [shape: f32[16,128], index: 13, kind: output, shape index: {0}]  }
   0x1   :  { %7559 = sst [smem:[#allocation7_spill]] %s7504_s5  ;;  %v5834_v6 = vld [vmem:[%s7505_s0] sm:$0xff]  ;;  %v5842_v7 = vld [vmem:[%s7505_s0 + $0x8] sm:$0xff]  ;;  %s7550_s0 = smov 120   ;;  %vm835_vm11 = vcmask 523264  }
   0x2   :  { %7560 = sst [smem:[#allocation8_spill]] %s7518_s11  ;;  %v5849_v8 = vld [vmem:[%s7506_s7] sm:$0xff]  ;;  %s7542_s24 = smov 80   ;;  %v5909_v35 = vld [vmem:[%s7507_s2 + $0x8] sm:$0xff] }
   0x3   :  { %7561 = sst [smem:[#allocation9_spill]] %s7519_s12  ;;  %v73_v9 = vperm.slane %v5849_v8, 0  ;;  %s7546_s25 = smov 112   ;;  %v5902_v28 = vld [vmem:[%s7507_s2] sm:$0xff] }
   0x4   :  { %7562 = sst [smem:[#allocation10_spill]] %s7520_s13  ;;  %s7538_s26 = smov 72  }
   0x5   :  { %s7563_s23 = sld [smem:[#allocation7_spill]]  ;;  %s7540_s27 = smov 104  }
   0x6   :  { %s7528_s28 = smov 56   ;;  %s7534_s2 = smov 48  }
   0x7   :  { %s7532_s18 = smov 40   ;;  %s7536_s19 = smov 64  }
   0x8   :  { %s7530_s20 = smov 32   ;;  %s7526_s29 = smov 8  }
   0x9   :  { %s7524_s30 = smov 16   ;;  %s7522_s5 = smov 24  }
   0xa   :  { %s7570_s17 = smov 16   ;;  %s7581_s11 = smov 112  }
   0xb   :  { %v5807_v0 = vld [vmem:[%s7563_s23 + $0x30] sm:$0xff]  ;;  %v5812_v1 = vld [vmem:[%s7563_s23 + $0x20] sm:$0xff] }
   0xc   :  { %93 = vmatpush.msra.mxu0 %v5807_v0  ;;  %v5306_v2 = vpack.i.bf16 %v5812_v1, %v5807_v0  ;;  %v5820_v3 = vld [vmem:[%s7563_s23 + $0x10] sm:$0xff]  ;;  %v5825_v4 = vld [vmem:[%s7563_s23] sm:$0xff] }
   0xd   :  { %v5311_v5 = vpack.i.bf16 %v5825_v4, %v5820_v3 }
   0xe   :  { %94 = vmatpush.msra.mxu0 %v5812_v1 }
  0x10   :  { %95 = vmatpush.msra.mxu0 %v5820_v3 }
  0x12   :  { %96 = vmatpush.msra.mxu0 %v5825_v4 }
  0x13   :  { %5050 = vmatmul.msk.f32.vlgmr.msra.gmra.mxu0 %vm74_vm0, %v5834_v6 }
  0x1b   :  { %5051 = vmatmul.msk.f32.gmra.mxu0 %vm74_vm0, %v5842_v7 }
  0x90   :  { %v98_v10 = vpop.f32.mrf.mxu0 }
  0x91   :  { %v5852_v11 = vadd.f32 %v98_v10, %v73_v9 }
  0x93   :  { %105 = vrot.lane.b32.xlu2 %v5852_v11, %s7548_s21 }
  0x98   :  { %v101_v12 = vpop.f32.mrf.mxu0 }
  0x99   :  { %v5856_v13 = vadd.f32 %v101_v12, %v73_v9 }
  0x9b   :  { %265 = vrot.lane.b32.xlu1 %v5856_v13, %s7550_s0  ;;  %133 = vrot.lane.b32.xlu0 %v5856_v13, %s7548_s21 }
  0x9c   :  { %239 = vrot.lane.b32.xlu2 %v5852_v11, %s7544_s22 }
  0xa3   :  { %267 = vrot.lane.b32.xlu0 %v5856_v13, %s7544_s22 }
  0xa4   :  { %237 = vrot.lane.b32.xlu2 %v5852_v11, %s7550_s0 }
  0xab   :  { %373 = vrot.lane.b32.xlu0 %v5852_v11, %s7542_s24 }
  0xb3   :  { %371 = vrot.lane.b32.xlu0 %v5852_v11, %s7546_s25 }
  0xbb   :  { %507 = vrot.lane.b32.xlu0 %v5852_v11, %s7538_s26 }
  0xc3   :  { %505 = vrot.lane.b32.xlu0 %v5852_v11, %s7540_s27 }
  0xcb   :  { %345 = vrot.lane.b32.xlu0 %v5856_v13, %s7528_s28 }
  0xd3   :  { %399 = vrot.lane.b32.xlu0 %v5856_v13, %s7546_s25 }
  0xdb   :  { %535 = vrot.lane.b32.xlu0 %v5856_v13, %s7538_s26 }
  0xed   :  { %v106_v14 = vpop.permute.xlu2 %105 }
  0xee   :  { %5052 = vmatpush.xpose.msk.msra.mxu1 %vm107_vm1, %v106_v14 }
  0xf1   :  { %5053 = vmatmul.msk.f32.vlgmr.msra.gmra.mxu1 %vm107_vm1, %v5852_v11 }
  0xf6   :  { %v240_v15 = vpop.permute.xlu2 %239 }
  0xf7   :  { %5058 = vmatpush.xpose.msk.msrb.mxu1 %vm107_vm1, %v240_v15 }
  0xfe   :  { %v238_v16 = vpop.permute.xlu2 %237 }
  0xff   :  { %5059 = vmatmul.msk.f32.vlgmr.msrb.gmra.mxu1 %vm107_vm1, %v238_v16 }
 0x10d   :  { %v134_v17 = vpop.permute.xlu0 %133  ;;  %v266_v19 = vpop.permute.xlu1 %265 }
 0x10e   :  { %5054 = vmatpush.xpose.msk.msra.mxu2 %vm107_vm1, %v134_v17 }
 0x111   :  { %5055 = vmatmul.msk.f32.vlgmr.msra.gmra.mxu2 %vm107_vm1, %v5856_v13 }
 0x115   :  { %v268_v18 = vpop.permute.xlu0 %267 }
 0x116   :  { %5060 = vmatpush.xpose.msk.msrb.mxu2 %vm107_vm1, %v268_v18 }
 0x119   :  { %5061 = vmatmul.msk.f32.vlgmr.msrb.gmra.mxu2 %vm107_vm1, %v266_v19 }
 0x11d   :  { %v374_v20 = vpop.permute.xlu0 %373 }
 0x11e   :  { %5064 = vmatpush.xpose.msk.msra.mxu2 %vm107_vm1, %v374_v20 }
 0x125   :  { %v372_v21 = vpop.permute.xlu0 %371 }
 0x126   :  { %5065 = vmatmul.msk.f32.vlgmr.msra.gmra.mxu2 %vm107_vm1, %v372_v21 }
 0x12d   :  { %v508_v22 = vpop.permute.xlu0 %507 }
 0x12e   :  { %5070 = vmatpush.xpose.msk.msrb.mxu2 %vm107_vm1, %v508_v22 }
 0x135   :  { %v506_v23 = vpop.permute.xlu0 %505 }
 0x136   :  { %5071 = vmatmul.msk.f32.vlgmr.msrb.gmra.mxu2 %vm107_vm1, %v506_v23 }
 0x13d   :  { %v346_v24 = vpop.permute.xlu0 %345 }
 0x13e   :  { %366 = vmatpush.msra.mxu1 %v346_v24 }
 0x145   :  { %v5896_v25 = vpop.permute.xlu0 %399 }
 0x14d   :  { %v536_v26 = vpop.permute.xlu0 %535 }
 0x14e   :  { %5072 = vmatpush.xpose.msk.msrb.mxu0 %vm107_vm1, %v536_v26 }
 0x16e   :  { %v129_v27 = vpop.f32.mrf.mxu1 }
 0x16f   :  { %v159_v29 = vmul.f32 0.35355338, %v129_v27 }
 0x171   :  { %v161_v30 = vadd.f32 %v159_v29, %v5902_v28 }
 0x173   :  { %v163_v31 = vsel %vm107_vm1, %v161_v30, -inf }
 0x174   :  { %164 = vmax.xlane.f32.xlu0 %v163_v31 }
 0x17c   :  { %v262_v60 = vpop.f32.mrf.mxu1 }
 0x17d   :  { %v293_v63 = vmul.f32 0.35355338, %v262_v60 }
 0x17f   :  { %v295_v10 = vadd.f32 %v293_v63, %v5902_v28 }
 0x181   :  { %v297_v12 = vsel %vm107_vm1, %v295_v10, -inf }
 0x194   :  { %v156_v32 = vpop.f32.mrf.mxu2 }
 0x195   :  { %v160_v42 = vmul.f32 0.35355338, %v156_v32 }
 0x197   :  { %v162_v43 = vadd.f32 %v160_v42, %v5909_v35 }
 0x199   :  { %v166_v46 = vsel %vm107_vm1, %v162_v43, -inf }
 0x19c   :  { %v290_v33 = vpop.f32.mrf.mxu2 }
 0x19d   :  { %v294_v34 = vmul.f32 0.35355338, %v290_v33 }
 0x19f   :  { %v296_v36 = vadd.f32 %v294_v34, %v5909_v35 }
 0x1a1   :  { %v300_v37 = vsel %vm107_vm1, %v296_v36, -inf }
 0x1a2   :  { %301 = vmax.xlane.f32.xlu1 %v300_v37 }
 0x1a9   :  { %v396_v38 = vpop.f32.mrf.mxu2 }
 0x1aa   :  { %v427_v39 = vmul.f32 0.35355338, %v396_v38 }
 0x1ac   :  { %v429_v40 = vadd.f32 %v427_v39, %v5902_v28 }
 0x1ae   :  { %v431_v41 = vsel %vm107_vm1, %v429_v40, -inf }
 0x1af   :  { %432 = vmax.xlane.f32.xlu0 %v431_v41 }
 0x1b9   :  { %v530_v44 = vpop.f32.mrf.mxu2 }
 0x1ba   :  { %v561_v45 = vmul.f32 0.35355338, %v530_v44 }
 0x1bb   :  { %401 = vrot.lane.b32.xlu1 %v5856_v13, %s7542_s24 }
 0x1bc   :  { %v563_v49 = vadd.f32 %v561_v45, %v5902_v28 }
 0x1be   :  { %v565_v51 = vsel %vm107_vm1, %v563_v49, -inf }
 0x1e5   :  { %167 = vmax.xlane.f32.xlu1 %v166_v46 }
 0x1e7   :  { %v165_v47 = vpop.xlane.xlu0 %164 }
 0x1e8   :  { %v169_v48 = vsub.f32 %v161_v30, %v165_v47 }
 0x1ea   :  { %v171_v50 = vmul.f32 1.442695, %v169_v48 }
 0x1ec   :  { %5462 = vpow2.f32 %v171_v50 }
 0x1ed   :  { %566 = vmax.xlane.f32.xlu1 %v565_v51 }
 0x1f2   :  { %v5921_v52 = vpop.eup %5462 }
 0x1f3   :  { %v175_v53 = vsel %vm107_vm1, %v5921_v52, 0.0 }
 0x1f4   :  { %176 = vadd.xlane.f32.xlu0 %v175_v53  ;;  %v5301_v53 = vpack.i.bf16 %v5856_v13, %v5852_v11 }
 0x215   :  { %v302_v54 = vpop.xlane.xlu1 %301 }
 0x216   :  { %v304_v55 = vsub.f32 %v296_v36, %v302_v54 }
 0x218   :  { %v307_v56 = vmul.f32 1.442695, %v304_v55 }
 0x21a   :  { %5464 = vpow2.f32 %v307_v56 }
 0x220   :  { %v5465_v57 = vpop.eup %5464 }
 0x221   :  { %v312_v58 = vsel %vm107_vm1, %v5465_v57, 0.0 }
 0x222   :  { %313 = vadd.xlane.f32.xlu2 %v312_v58  ;;  %v433_v17 = vpop.xlane.xlu0 %432 }
 0x223   :  { %v437_v18 = vsub.f32 %v429_v40, %v433_v17 }
 0x225   :  { %v439_v22 = vmul.f32 1.442695, %v437_v18 }
 0x22d   :  { %v402_v59 = vpop.permute.xlu1 %401 }
 0x22e   :  { %5066 = vmatpush.xpose.msk.msrb.mxu1 %vm107_vm1, %v402_v59 }
 0x23a   :  { %533 = vrot.lane.b32.xlu2 %v5856_v13, %s7540_s27 }
 0x258   :  { %v168_v61 = vpop.xlane.xlu1 %167 }
 0x259   :  { %v170_v62 = vsub.f32 %v162_v43, %v168_v61 }
 0x25b   :  { %v173_v9 = vmul.f32 1.442695, %v170_v62 }
 0x25d   :  { %5466 = vpow2.f32 %v173_v9 }
 0x260   :  { %v567_v23 = vpop.xlane.xlu1 %566 }
 0x261   :  { %v571_v24 = vsub.f32 %v563_v49, %v567_v23 }
 0x263   :  { %298 = vmax.xlane.f32.xlu2 %v297_v12  ;;  %v5931_v14 = vpop.eup %5466  ;;  %v573_v26 = vmul.f32 1.442695, %v571_v24 }
 0x264   :  { %v178_v15 = vsel %vm107_vm1, %v5931_v14, 0.0 }
 0x267   :  { %v177_v54 = vpop.xlane.xlu0 %176 }
 0x26b   :  { %179 = vadd.xlane.f32.xlu2 %v178_v15 }
 0x283   :  { %453 = vrot.lane.b32.xlu2 %v5852_v11, %s7534_s2 }
 0x295   :  { %v314_v16 = vpop.xlane.xlu2 %313 }
 0x296   :  { %5468 = vrcp.f32 %v314_v16 }
 0x297   :  { %5470 = vpow2.f32 %v439_v22 }
 0x298   :  { %5472 = vpow2.f32 %v573_v26 }
 0x29c   :  { %v5469_v19 = vpop.eup %5468 }
 0x29d   :  { %v5937_v20 = vmul.f32 %v5469_v19, %v5465_v57  ;;  %v534_v21 = vpop.permute.xlu2 %533  ;;  %v5944_v27 = vpop.eup %5470 }
 0x29e   :  { %5073 = vmatmul.msk.f32.vlgmr.msrb.gmra.mxu0 %vm107_vm1, %v534_v21  ;;  %v443_v29 = vsel %vm107_vm1, %v5944_v27, 0.0  ;;  %v5948_v30 = vpop.eup %5472 }
 0x29f   :  { %5063 = vmatmul.msk.f32.vlgmr.msra.gmra.mxu1 %vm107_vm1, %v5937_v20  ;;  %v577_v31 = vsel %vm107_vm1, %v5948_v30, 0.0 }
 0x2a7   :  { %5067 = vmatmul.msk.f32.vlgmr.msrb.gmra.mxu1 %vm107_vm1, %v5896_v25 }
 0x2ac   :  { %444 = vadd.xlane.f32.xlu2 %v443_v29 }
 0x2b4   :  { %578 = vadd.xlane.f32.xlu2 %v577_v31 }
 0x2cc   :  { %479 = vrot.lane.b32.xlu2 %v5856_v13, %s7534_s2  ;;  %s7572_s2 = smov 88  }
 0x2d4   :  { %613 = vrot.lane.b32.xlu2 %v5856_v13, %s7532_s18 }
 0x2d6   :  { %v299_v25 = vpop.xlane.xlu2 %298 }
 0x2d7   :  { %v303_v32 = vsub.f32 %v295_v10, %v299_v25 }
 0x2d9   :  { %v305_v33 = vmul.f32 1.442695, %v303_v32 }
 0x2db   :  { %5474 = vpow2.f32 %v305_v33 }
 0x2dc   :  { %5307 = vrot.lane.b32.xlu2 %v5306_v2, %s7530_s20 }
 0x2de   :  { %v180_v37 = vpop.xlane.xlu2 %179 }
 0x2e1   :  { %v5956_v34 = vpop.eup %5474 }
 0x2e2   :  { %v309_v36 = vsel %vm107_vm1, %v5956_v34, 0.0 }
 0x2e3   :  { %310 = vadd.xlane.f32.xlu0 %v309_v36 }
 0x2e4   :  { %5312 = vrot.lane.b32.xlu2 %v5311_v5, %s7530_s20  ;;  %s7566_s20 = smov 40  }
 0x2e6   :  { %v454_v38 = vpop.permute.xlu2 %453 }
 0x2f7   :  { %319 = vrot.lane.b32.xlu0 %v5852_v11, %s7528_s28  ;;  %s7571_s28 = smov 24  }
 0x31b   :  { %v558_v39 = vpop.f32.mrf.mxu0 }
 0x31c   :  { %v562_v40 = vmul.f32 0.35355338, %v558_v39  ;;  %v5962_v41 = vpop.f32.mrf.mxu1 }
 0x31e   :  { %v564_v42 = vadd.f32 %v562_v40, %v5909_v35 }
 0x31f   :  { %v445_v43 = vpop.xlane.xlu2 %444 }
 0x320   :  { %v568_v44 = vsel %vm107_vm1, %v564_v42, -inf }
 0x321   :  { %569 = vmax.xlane.f32.xlu1 %v568_v44 }
 0x324   :  { %v424_v45 = vpop.f32.mrf.mxu1 }
 0x325   :  { %v428_v46 = vmul.f32 0.35355338, %v424_v45 }
 0x327   :  { %v579_v47 = vpop.xlane.xlu2 %578  ;;  %v430_v48 = vadd.f32 %v428_v46, %v5909_v35 }
 0x329   :  { %v434_v49 = vsel %vm107_vm1, %v430_v48, -inf }
 0x32a   :  { %435 = vmax.xlane.f32.xlu0 %v434_v49 }
 0x32f   :  { %v480_v50 = vpop.permute.xlu2 %479 }
 0x330   :  { %500 = vmatpush.msra.mxu1 %v480_v50 }
 0x337   :  { %v614_v51 = vpop.permute.xlu2 %613 }
 0x338   :  { %634 = vmatpush.msrb.mxu1 %v614_v51 }
 0x33a   :  { %5302 = vrot.lane.b32.xlu1 %v5301_v53, %s7536_s19 }
 0x33e   :  { %587 = vrot.lane.b32.xlu0 %v5852_v11, %s7532_s18  ;;  %s7565_s18 = smov 48  }
 0x33f   :  { %v5308_v29 = vpop.permute.xlu2 %5307 }
 0x340   :  { %v5309_v31 = vunpack.i.l.bf16 %v5308_v29 }
 0x342   :  { %732 = vmatpush.msra.mxu2 %v5309_v31 }
 0x347   :  { %v5313_v32 = vpop.permute.xlu2 %5312 }
 0x348   :  { %v5315_v33 = vunpack.i.h.bf16 %v5313_v32 }
 0x356   :  { %v311_v55 = vpop.xlane.xlu0 %310 }
 0x369   :  { %v320_v57 = vpop.permute.xlu0 %319 }
 0x394   :  { %v570_v56 = vpop.xlane.xlu1 %569 }
 0x395   :  { %v572_v58 = vsub.f32 %v564_v42, %v570_v56 }
 0x397   :  { %v575_v59 = vmul.f32 1.442695, %v572_v58 }
 0x399   :  { %5476 = vpow2.f32 %v575_v59 }
 0x39d   :  { %v436_v60 = vpop.xlane.xlu0 %435 }
 0x39e   :  { %v438_v61 = vsub.f32 %v430_v48, %v436_v60 }
 0x39f   :  { %v5477_v62 = vpop.eup %5476 }
 0x3a0   :  { %v441_v63 = vmul.f32 1.442695, %v438_v61  ;;  %v580_v9 = vsel %vm107_vm1, %v5477_v62, 0.0 }
 0x3a1   :  { %581 = vadd.xlane.f32.xlu0 %v580_v9 }
 0x3a2   :  { %5478 = vpow2.f32 %v441_v63  ;;  %v5718_v63 = vmov 32.0  }
 0x3a3   :  { %5480 = vrcp.f32 %v177_v54  ;;  %v697_v54 = vperm.slane %v5849_v8, 1 }
 0x3a4   :  { %5482 = vrcp.f32 %v180_v37 }
 0x3a5   :  { %5484 = vrcp.f32 %v311_v55 }
 0x3a6   :  { %5486 = vrcp.f32 %v445_v43 }
 0x3a7   :  { %5488 = vrcp.f32 %v579_v47 }
 0x3a8   :  { %v5479_v13 = vpop.eup %5478 }
 0x3a9   :  { %v446_v10 = vsel %vm107_vm1, %v5479_v13, 0.0  ;;  %v5481_v11 = vpop.eup %5480 }
 0x3aa   :  { %447 = vadd.xlane.f32.xlu1 %v446_v10  ;;  %v5976_v17 = vmul.f32 %v5481_v11, %v5921_v52  ;;  %v5483_v18 = vpop.eup %5482 }
 0x3ab   :  { %v5981_v19 = vmul.f32 %v5483_v18, %v5931_v14  ;;  %v5485_v21 = vpop.eup %5484 }
 0x3ac   :  { %v5303_v12 = vpop.permute.xlu1 %5302  ;;  %v5990_v52 = vmul.f32 %v5485_v21, %v5956_v34  ;;  %v5487_v14 = vpop.eup %5486  ;;  %v5314_v34 = vunpack.i.l.bf16 %v5313_v32 }
 0x3ad   :  { %v5304_v15 = vunpack.i.l.bf16 %v5303_v12  ;;  %v5305_v16 = vunpack.i.h.bf16 %v5303_v12  ;;  %7564 = vst [vmem:[#allocation2_spill] sm:$0xff] %v5981_v19  ;;  %v5999_v23 = vmul.f32 %v5487_v14, %v5944_v27  ;;  %v5489_v0 = vpop.eup %5488 }
 0x3ae   :  { %v6004_v1 = vmul.f32 %v5489_v0, %v5948_v30  ;;  %v5310_v30 = vunpack.i.h.bf16 %v5308_v29  ;;  %v57_v29 = vld [vmem:[%s7563_s23 + $0x8] sm:$0xff] }
 0x3af   :  { %206 = vmatpush.msra.mxu3 %v5304_v15 }
 0x3b0   :  { %5056 = vmatmul.msk.f32.vlgmr.msra.gmra.mxu3 %vm107_vm1, %v5976_v17  ;;  %v588_v22 = vpop.permute.xlu0 %587  ;;  %733 = vmatpush.msra.mxu2 %v5310_v30 }
 0x3b1   :  { %232 = vmatpush.msrb.mxu3 %v5305_v16 }
 0x3b2   :  { %734 = vmatpush.msra.mxu2 %v5314_v34 }
 0x3b3   :  { %340 = vmatpush.msra.mxu3 %v320_v57 }
 0x3b4   :  { %735 = vmatpush.msra.mxu2 %v5315_v33 }
 0x3b8   :  { %5057 = vmatmul.msk.f32.vlgmr.msrb.gmra.mxu3 %vm107_vm1, %v5981_v19 }
 0x3b9   :  { %474 = vmatpush.msrb.mxu3 %v454_v38 }
 0x3c0   :  { %5062 = vmatmul.msk.f32.vlgmr.msra.gmra.mxu3 %vm107_vm1, %v5990_v52 }
 0x3c1   :  { %608 = vmatpush.msra.mxu3 %v588_v22 }
 0x3c8   :  { %5068 = vmatmul.msk.f32.vlgmr.msrb.gmra.mxu3 %vm107_vm1, %v5999_v23 }
 0x3d0   :  { %5074 = vmatmul.msk.f32.vlgmr.msra.gmra.mxu3 %vm107_vm1, %v6004_v1 }
 0x414   :  { %v582_v24 = vpop.xlane.xlu0 %581 }
 0x41d   :  { %v448_v2 = vpop.xlane.xlu1 %447 }
 0x41e   :  { %5490 = vrcp.f32 %v448_v2 }
 0x41f   :  { %5492 = vrcp.f32 %v582_v24 }
 0x420   :  { %5494 = vrcp.f32 %v5718_v63 }
 0x424   :  { %v5491_v26 = vpop.eup %5490 }
 0x425   :  { %v6008_v3 = vmul.f32 %v5491_v26, %v5479_v13  ;;  %v5493_v4 = vpop.eup %5492  ;;  %v63_v26 = vld [vmem:[%s7563_s23 + $0x38] sm:$0xff] }
 0x426   :  { %v6012_v5 = vmul.f32 %v5493_v4, %v5477_v62  ;;  %v5495_v9 = vpop.eup %5494  ;;  %821 = vmatpush.msra.mxu0 %v63_v26  ;;  %v61_v4 = vld [vmem:[%s7563_s23 + $0x28] sm:$0xff] }
 0x427   :  { %5069 = vmatmul.msk.f32.vlgmr.msra.gmra.mxu1 %vm107_vm1, %v6008_v3  ;;  %v752_v13 = vmul.f32 32.0, %v5495_v9  ;;  %vm756_vm4 = vweird.f32 %v5495_v9 }
 0x428   :  { %822 = vmatpush.msra.mxu0 %v61_v4 }
 0x429   :  { %v753_v10 = vsub.f32 1.0, %v752_v13  ;;  %v65_v13 = vld [vmem:[%s7508_s6 + $0x8] sm:$0xff] }
 0x42b   :  { %v754_v11 = vmul.f32 %v5495_v9, %v753_v10  ;;  %v64_v10 = vld [vmem:[%s7508_s6] sm:$0xff] }
 0x42d   :  { %v755_v12 = vadd.f32 %v5495_v9, %v754_v11  ;;  %v802_v11 = vperm.slane %v5849_v8, 4 }
 0x42f   :  { %5075 = vmatmul.msk.f32.vlgmr.msrb.gmra.mxu1 %vm107_vm1, %v6012_v5  ;;  %v6036_v15 = vsel %vm756_vm4, %v5495_v9, %v755_v12  ;;  %v66_v9 = vld [vmem:[%s7508_s6 + $0x10] sm:$0xff] }
 0x433   :  { %v208_v27 = vpop.f32.mrf.mxu3 }
 0x43b   :  { %v234_v25 = vpop.f32.mrf.mxu3 }
 0x443   :  { %v342_v36 = vpop.f32.mrf.mxu3 }
 0x444   :  { %641 = vrot.lane.b32.xlu1 %v342_v36, %s7526_s29 }
 0x44b   :  { %v476_v37 = vpop.f32.mrf.mxu3 }
 0x44c   :  { %649 = vrot.lane.b32.xlu2 %v476_v37, %s7524_s30 }
 0x453   :  { %v610_v38 = vpop.f32.mrf.mxu3 }
 0x454   :  { %643 = vrot.lane.b32.xlu2 %v5962_v41, %s7526_s29  ;;  %657 = vrot.lane.b32.xlu0 %v610_v38, %s7522_s5  ;;  %s7567_s29 = smov 32  }
 0x4a4   :  { %v502_v39 = vpop.f32.mrf.mxu1 }
 0x4a5   :  { %651 = vrot.lane.b32.xlu1 %v502_v39, %s7524_s30  ;;  %v796_v39 = vperm.slane %v5849_v8, 2  ;;  %s7568_s30 = smov 56  }
 0x4a6   :  { %v650_v44 = vpop.permute.xlu2 %649 }
 0x4ac   :  { %v636_v40 = vpop.f32.mrf.mxu1 }
 0x4ad   :  { %659 = vrot.lane.b32.xlu2 %v636_v40, %s7522_s5  ;;  %s7569_s5 = smov 8  }
 0x4ae   :  { %v644_v47 = vpop.permute.xlu2 %643 }
 0x4af   :  { %v664_v48 = vsel %vm107_vm1, %v234_v25, %v644_v47  ;;  %v69_v47 = vld [vmem:[%s7508_s6 + $0x28] sm:$0xff] }
 0x4b6   :  { %v642_v42 = vpop.permute.xlu1 %641 }
 0x4b7   :  { %v663_v43 = vsel %vm107_vm1, %v208_v27, %v642_v42  ;;  %v59_v27 = vld [vmem:[%s7563_s23 + $0x18] sm:$0xff] }
 0x4b8   :  { %v666_v46 = vsel %vm665_vm2, %v663_v43, %v650_v44  ;;  %823 = vmatpush.msra.mxu0 %v59_v27  ;;  %v799_v43 = vperm.slane %v5849_v8, 3 }
 0x4ba   :  { %824 = vmatpush.msra.mxu0 %v57_v29 }
 0x4c6   :  { %v658_v45 = vpop.permute.xlu0 %657 }
 0x4c7   :  { %v669_v41 = vsel %vm668_vm3, %v666_v46, %v658_v45  ;;  %v71_v46 = vld [vmem:[%s7508_s6 + $0x38] sm:$0xff] }
 0x4c8   :  { %5076 = vmatmul.msk.f32.vlgmr.msra.gmra.mxu2 %vm74_vm0, %v669_v41  ;;  %v70_v41 = vld [vmem:[%s7508_s6 + $0x30] sm:$0xff]  ;;  %850 = vmatpush.msrb.mxu3 %v71_v46 }
 0x4ca   :  { %851 = vmatpush.msrb.mxu3 %v70_v41 }
 0x4cc   :  { %852 = vmatpush.msrb.mxu3 %v69_v47 }
 0x507   :  { %v660_v50 = vpop.permute.xlu2 %659 }
 0x517   :  { %v652_v49 = vpop.permute.xlu1 %651 }
 0x518   :  { %v667_v51 = vsel %vm665_vm2, %v664_v48, %v652_v49 }
 0x519   :  { %v670_v53 = vsel %vm668_vm3, %v667_v51, %v660_v50  ;;  %v68_v50 = vld [vmem:[%s7508_s6 + $0x20] sm:$0xff] }
 0x51a   :  { %5077 = vmatmul.msk.f32.gmra.mxu2 %vm74_vm0, %v670_v53  ;;  %v67_v53 = vld [vmem:[%s7508_s6 + $0x18] sm:$0xff]  ;;  %853 = vmatpush.msrb.mxu3 %v68_v50 }
 0x51c   :  { %854 = vmatpush.msrb.mxu3 %v67_v53 }
 0x51e   :  { %855 = vmatpush.msrb.mxu3 %v66_v9 }
 0x520   :  { %856 = vmatpush.msrb.mxu3 %v65_v13 }
 0x522   :  { %857 = vmatpush.msrb.mxu3 %v64_v10 }
 0x54b   :  { %v737_v55 = vpop.f32.mrf.mxu2 }
 0x54c   :  { %v738_v56 = vadd.f32 %v737_v55, %v697_v54 }
 0x54e   :  { %v743_v57 = vadd.f32 %v738_v56, %v5834_v6 }
 0x550   :  { %v745_v58 = vsel %vm74_vm0, %v743_v57, 0.0 }
 0x551   :  { %746 = vadd.xlane.f32.xlu1 %v745_v58 }
 0x59d   :  { %v740_v59 = vpop.f32.mrf.mxu2 }
 0x59e   :  { %v741_v60 = vadd.f32 %v740_v59, %v697_v54 }
 0x5a0   :  { %v744_v61 = vadd.f32 %v741_v60, %v5842_v7 }
 0x5a2   :  { %v748_v62 = vsel %vm74_vm0, %v744_v61, 0.0 }
 0x5a3   :  { %749 = vadd.xlane.f32.xlu2 %v748_v62 }
 0x5c4   :  { %v747_v6 = vpop.xlane.xlu1 %746 }
 0x5c5   :  { %v758_v16 = vmul.f32 %v6036_v15, %v747_v6 }
 0x5c7   :  { %v760_v18 = vsub.f32 %v743_v57, %v758_v16 }
 0x5c9   :  { %v762_v21 = vmul.f32 %v760_v18, %v760_v18 }
 0x5cb   :  { %v764_v7 = vsel %vm74_vm0, %v762_v21, 0.0 }
 0x5cc   :  { %765 = vadd.xlane.f32.xlu0 %v764_v7 }
 0x616   :  { %v750_v22 = vpop.xlane.xlu2 %749 }
 0x617   :  { %v759_v14 = vmul.f32 %v6036_v15, %v750_v22  ;;  %v834_v22 = vperm.slane %v5849_v8, 5 }
 0x619   :  { %v761_v0 = vsub.f32 %v744_v61, %v759_v14 }
 0x61b   :  { %v763_v2 = vmul.f32 %v761_v0, %v761_v0 }
 0x61d   :  { %v767_v24 = vsel %vm74_vm0, %v763_v2, 0.0 }
 0x61e   :  { %768 = vadd.xlane.f32.xlu1 %v767_v24 }
 0x63f   :  { %v766_v30 = vpop.xlane.xlu0 %765 }
 0x640   :  { %v770_v31 = vmul.f32 %v766_v30, %v6036_v15 }
 0x642   :  { %v772_v25 = vadd.f32 1e-05, %v770_v31 }
 0x644   :  { %5496 = vrsqrt.f32 %v772_v25  ;;  %vm780_vm6 = vweird.f32 %v772_v25 }
 0x64a   :  { %v5497_v32 = vpop.eup %5496 }
 0x64b   :  { %v775_v33 = vmul.f32 %v5497_v32, %v772_v25  ;;  %vm781_vm5 = vweird.f32 %v5497_v32 }
 0x64c   :  { %vm782_vm7 = vmor %vm780_vm6, %vm781_vm5 }
 0x64d   :  { %v776_v34 = vmul.f32 %v5497_v32, %v775_v33 }
 0x64f   :  { %v777_v36 = vmul.f32 0.5, %v776_v34 }
 0x651   :  { %v778_v37 = vsub.f32 1.5, %v777_v36 }
 0x653   :  { %v779_v38 = vmul.f32 %v5497_v32, %v778_v37 }
 0x655   :  { %v783_v40 = vsel %vm782_vm7, %v5497_v32, %v779_v38 }
 0x656   :  { %v794_v42 = vmul.f32 %v783_v40, %v760_v18  ;;  %v6097_v40 = vld [vmem:[%s7563_s23 + $0x70] sm:$0xff] }
 0x657   :  { %956 = vmatpush.msra.mxu1 %v6097_v40 }
 0x658   :  { %v797_v44 = vmul.f32 %v796_v39, %v794_v42  ;;  %v6103_v42 = vld [vmem:[%s7563_s23 + $0x60] sm:$0xff] }
 0x659   :  { %957 = vmatpush.msra.mxu1 %v6103_v42 }
 0x65a   :  { %v800_v45 = vadd.f32 %v799_v43, %v797_v44  ;;  %v6111_v44 = vld [vmem:[%s7563_s23 + $0x50] sm:$0xff] }
 0x65b   :  { %958 = vmatpush.msra.mxu1 %v6111_v44 }
 0x65c   :  { %5078 = vmatmul.msk.f32.vlgmr.msra.gmra.mxu0 %vm74_vm0, %v800_v45 }
 0x691   :  { %v769_v48 = vpop.xlane.xlu1 %768 }
 0x692   :  { %v771_v49 = vmul.f32 %v769_v48, %v6036_v15 }
 0x694   :  { %v773_v51 = vadd.f32 1e-05, %v771_v49 }
 0x696   :  { %5498 = vrsqrt.f32 %v773_v51  ;;  %vm790_vm9 = vweird.f32 %v773_v51 }
 0x69c   :  { %v5499_v54 = vpop.eup %5498 }
 0x69d   :  { %v785_v55 = vmul.f32 %v5499_v54, %v773_v51  ;;  %vm791_vm8 = vweird.f32 %v5499_v54 }
 0x69e   :  { %vm792_vm10 = vmor %vm790_vm9, %vm791_vm8 }
 0x69f   :  { %v786_v56 = vmul.f32 %v5499_v54, %v785_v55 }
 0x6a1   :  { %v787_v57 = vmul.f32 0.5, %v786_v56  ;;  %v911_v56 = vperm.slane %v5849_v8, 6 }
 0x6a3   :  { %v788_v58 = vsub.f32 1.5, %v787_v57 }
 0x6a5   :  { %v789_v59 = vmul.f32 %v5499_v54, %v788_v58 }
 0x6a7   :  { %v793_v60 = vsel %vm792_vm10, %v5499_v54, %v789_v59  ;;  %v914_v59 = vperm.slane %v5849_v8, 7 }
 0x6a8   :  { %v795_v61 = vmul.f32 %v793_v60, %v761_v0 }
 0x6aa   :  { %v798_v62 = vmul.f32 %v796_v39, %v795_v61 }
 0x6ac   :  { %v801_v63 = vadd.f32 %v799_v43, %v798_v62  ;;  %v5336_v43 = vpack.i.bf16 %v6103_v42, %v6097_v40 }
 0x6ae   :  { %5079 = vmatmul.msk.f32.gmra.mxu0 %vm74_vm0, %v801_v63 }
 0x6d9   :  { %v826_v12 = vpop.f32.mrf.mxu0 }
 0x6da   :  { %v827_v6 = vadd.f32 %v826_v12, %v802_v11 }
 0x6dc   :  { %v832_v16 = vmax.f32 %v827_v6, 0.0 }
 0x6de   :  { %5080 = vmatmul.msk.f32.vlgmr.msrb.gmra.mxu3 %vm835_vm11, %v832_v16 }
 0x72b   :  { %v829_v18 = vpop.f32.mrf.mxu0 }
 0x72c   :  { %v830_v21 = vadd.f32 %v829_v18, %v802_v11 }
 0x72e   :  { %v833_v7 = vmax.f32 %v830_v21, 0.0 }
 0x730   :  { %5081 = vmatmul.msk.f32.gmra.mxu3 %vm835_vm11, %v833_v7 }
 0x761   :  { %v859_v14 = vpop.f32.mrf.mxu3 }
 0x762   :  { %v860_v0 = vadd.f32 %v859_v14, %v834_v22 }
 0x764   :  { %v865_v2 = vadd.f32 %v860_v0, %v800_v45  ;;  %v6116_v45 = vld [vmem:[%s7563_s23 + $0x40] sm:$0xff] }
 0x765   :  { %v5341_v46 = vpack.i.bf16 %v6116_v45, %v6111_v44  ;;  %959 = vmatpush.msra.mxu1 %v6116_v45 }
 0x766   :  { %v867_v24 = vsel %vm74_vm0, %v865_v2, 0.0 }
 0x767   :  { %868 = vadd.xlane.f32.xlu2 %v867_v24 }
 0x7b3   :  { %v862_v26 = vpop.f32.mrf.mxu3 }
 0x7b4   :  { %v863_v4 = vadd.f32 %v862_v26, %v834_v22  ;;  %v6137_v22 = vld [vmem:[%s7506_s7 + $0x8] sm:$0xff] }
 0x7b5   :  { %v937_v14 = vperm.slane %v6137_v22, 0 }
 0x7b6   :  { %v866_v27 = vadd.f32 %v863_v4, %v801_v63 }
 0x7b8   :  { %v870_v29 = vsel %vm74_vm0, %v866_v27, 0.0 }
 0x7b9   :  { %871 = vadd.xlane.f32.xlu0 %v870_v29 }
 0x7da   :  { %v869_v30 = vpop.xlane.xlu2 %868 }
 0x7db   :  { %v873_v31 = vmul.f32 %v869_v30, %v6036_v15 }
 0x7dd   :  { %v875_v25 = vsub.f32 %v865_v2, %v873_v31 }
 0x7df   :  { %v877_v32 = vmul.f32 %v875_v25, %v875_v25 }
 0x7e1   :  { %v879_v33 = vsel %vm74_vm0, %v877_v32, 0.0 }
 0x7e2   :  { %880 = vadd.xlane.f32.xlu1 %v879_v33 }
 0x82c   :  { %v872_v34 = vpop.xlane.xlu0 %871 }
 0x82d   :  { %v874_v36 = vmul.f32 %v872_v34, %v6036_v15 }
 0x82f   :  { %v876_v37 = vsub.f32 %v866_v27, %v874_v36 }
 0x831   :  { %v878_v38 = vmul.f32 %v876_v37, %v876_v37 }
 0x833   :  { %v882_v39 = vsel %vm74_vm0, %v878_v38, 0.0 }
 0x834   :  { %883 = vadd.xlane.f32.xlu2 %v882_v39 }
 0x855   :  { %v881_v41 = vpop.xlane.xlu1 %880 }
 0x856   :  { %v885_v47 = vmul.f32 %v881_v41, %v6036_v15 }
 0x858   :  { %v887_v48 = vadd.f32 1e-05, %v885_v47 }
 0x85a   :  { %5500 = vrsqrt.f32 %v887_v48  ;;  %vm895_vm13 = vweird.f32 %v887_v48 }
 0x860   :  { %v5501_v49 = vpop.eup %5500 }
 0x861   :  { %v890_v50 = vmul.f32 %v5501_v49, %v887_v48  ;;  %vm896_vm12 = vweird.f32 %v5501_v49 }
 0x862   :  { %vm897_vm14 = vmor %vm895_vm13, %vm896_vm12 }
 0x863   :  { %v891_v51 = vmul.f32 %v5501_v49, %v890_v50 }
 0x865   :  { %v892_v53 = vmul.f32 0.5, %v891_v51 }
 0x867   :  { %v893_v54 = vsub.f32 1.5, %v892_v53 }
 0x869   :  { %v894_v55 = vmul.f32 %v5501_v49, %v893_v54 }
 0x86b   :  { %v898_v57 = vsel %vm897_vm14, %v5501_v49, %v894_v55 }
 0x86c   :  { %v909_v58 = vmul.f32 %v898_v57, %v875_v25 }
 0x86e   :  { %v912_v60 = vmul.f32 %v911_v56, %v909_v58 }
 0x870   :  { %v6125_v61 = vadd.f32 %v914_v59, %v912_v60 }
 0x872   :  { %5099 = vmatmul.msk.f32.vlgmr.msra.gmra.mxu1 %vm74_vm0, %v6125_v61 }
 0x8a7   :  { %v884_v62 = vpop.xlane.xlu2 %883 }
 0x8a8   :  { %v886_v63 = vmul.f32 %v884_v62, %v6036_v15 }
 0x8aa   :  { %v888_v9 = vadd.f32 1e-05, %v886_v63 }
 0x8ac   :  { %5502 = vrsqrt.f32 %v888_v9  ;;  %vm905_vm4 = vweird.f32 %v888_v9 }
 0x8b2   :  { %v5503_v13 = vpop.eup %5502 }
 0x8b3   :  { %v900_v10 = vmul.f32 %v5503_v13, %v888_v9  ;;  %vm906_vm15 = vweird.f32 %v5503_v13 }
 0x8b4   :  { %vm907_vm5 = vmor %vm905_vm4, %vm906_vm15 }
 0x8b5   :  { %v901_v11 = vmul.f32 %v5503_v13, %v900_v10 }
 0x8b7   :  { %v902_v12 = vmul.f32 0.5, %v901_v11 }
 0x8b9   :  { %v903_v6 = vsub.f32 1.5, %v902_v12 }
 0x8bb   :  { %v904_v16 = vmul.f32 %v5503_v13, %v903_v6 }
 0x8bd   :  { %v908_v8 = vsel %vm907_vm5, %v5503_v13, %v904_v16 }
 0x8be   :  { %v910_v18 = vmul.f32 %v908_v8, %v876_v37 }
 0x8c0   :  { %v913_v21 = vmul.f32 %v911_v56, %v910_v18 }
 0x8c2   :  { %v6130_v7 = vadd.f32 %v914_v59, %v913_v21 }
 0x8c4   :  { %5100 = vmatmul.msk.f32.gmra.mxu1 %vm74_vm0, %v6130_v7 }
 0x8ef   :  { %v961_v0 = vpop.f32.mrf.mxu1 }
 0x8f0   :  { %v6140_v2 = vadd.f32 %v961_v0, %v937_v14 }
 0x8f2   :  { %968 = vrot.lane.b32.xlu0 %v6140_v2, %s7548_s21 }
 0x8fa   :  { %1101 = vrot.lane.b32.xlu0 %v6140_v2, %s7544_s22 }
 0x941   :  { %v964_v24 = vpop.f32.mrf.mxu1 }
 0x942   :  { %v6146_v26 = vadd.f32 %v964_v24, %v937_v14 }
 0x944   :  { %1129 = vrot.lane.b32.xlu2 %v6146_v26, %s7544_s22  ;;  %995 = vrot.lane.b32.xlu1 %v6146_v26, %s7548_s21  ;;  %s7575_s22 = smov 72  }
 0x945   :  { %1127 = vrot.lane.b32.xlu0 %v6146_v26, %s7550_s0 }
 0x94c   :  { %1263 = vrot.lane.b32.xlu1 %v6146_v26, %s7542_s24  ;;  %1099 = vrot.lane.b32.xlu2 %v6140_v2, %s7550_s0 }
 0x94d   :  { %1261 = vrot.lane.b32.xlu0 %v6146_v26, %s7546_s25 }
 0x954   :  { %1233 = vrot.lane.b32.xlu1 %v6140_v2, %s7546_s25  ;;  %1235 = vrot.lane.b32.xlu2 %v6140_v2, %s7542_s24  ;;  %s7576_s24 = smov 64  }
 0x955   :  { %1397 = vrot.lane.b32.xlu0 %v6146_v26, %s7538_s26 }
 0x95c   :  { %1369 = vrot.lane.b32.xlu1 %v6140_v2, %s7538_s26  ;;  %1395 = vrot.lane.b32.xlu2 %v6146_v26, %s7540_s27  ;;  %s7573_s26 = smov 80  }
 0x95d   :  { %1367 = vrot.lane.b32.xlu0 %v6140_v2, %s7540_s27  ;;  %s7574_s27 = smov 104  }
 0x964   :  { %v969_v4 = vpop.permute.xlu0 %968 }
 0x965   :  { %5101 = vmatpush.xpose.msk.msrb.mxu2 %vm107_vm1, %v969_v4 }
 0x968   :  { %5102 = vmatmul.msk.f32.vlgmr.msrb.gmra.mxu2 %vm107_vm1, %v6140_v2 }
 0x96c   :  { %v1102_v29 = vpop.permute.xlu0 %1101 }
 0x99e   :  { %v1130_v27 = vpop.permute.xlu2 %1129 }
 0x99f   :  { %5109 = vmatpush.xpose.msk.msra.mxu3 %vm107_vm1, %v1130_v27 }
 0x9a6   :  { %v1100_v30 = vpop.permute.xlu2 %1099 }
 0x9ae   :  { %v1236_v32 = vpop.permute.xlu2 %1235 }
 0x9b6   :  { %v996_v31 = vpop.permute.xlu1 %995  ;;  %v1396_v38 = vpop.permute.xlu2 %1395 }
 0x9b7   :  { %v1128_v25 = vpop.permute.xlu0 %1127  ;;  %5103 = vmatpush.xpose.msk.msrb.mxu0 %vm107_vm1, %v996_v31 }
 0x9b8   :  { %5110 = vmatmul.msk.f32.vlgmr.msra.gmra.mxu3 %vm107_vm1, %v1128_v25 }
 0x9ba   :  { %5104 = vmatmul.msk.f32.vlgmr.msrb.gmra.mxu0 %vm107_vm1, %v6146_v26 }
 0x9bb   :  { %5107 = vmatpush.xpose.msk.msra.mxu0 %vm107_vm1, %v1102_v29 }
 0x9be   :  { %v1264_v33 = vpop.permute.xlu1 %1263 }
 0x9bf   :  { %5113 = vmatpush.xpose.msk.msrb.mxu0 %vm107_vm1, %v1236_v32  ;;  %v1262_v34 = vpop.permute.xlu0 %1261  ;;  %5115 = vmatpush.xpose.msk.msrb.mxu3 %vm107_vm1, %v1264_v33 }
 0x9c2   :  { %5108 = vmatmul.msk.f32.vlgmr.msra.gmra.mxu0 %vm107_vm1, %v1100_v30  ;;  %5116 = vmatmul.msk.f32.vlgmr.msrb.gmra.mxu3 %vm107_vm1, %v1262_v34 }
 0x9c6   :  { %v1234_v36 = vpop.permute.xlu1 %1233 }
 0x9c7   :  { %v1398_v37 = vpop.permute.xlu0 %1397 }
 0x9c8   :  { %5121 = vmatpush.xpose.msk.msra.mxu3 %vm107_vm1, %v1398_v37 }
 0x9ca   :  { %5114 = vmatmul.msk.f32.vlgmr.msrb.gmra.mxu0 %vm107_vm1, %v1234_v36 }
 0x9cb   :  { %5122 = vmatmul.msk.f32.vlgmr.msra.gmra.mxu3 %vm107_vm1, %v1396_v38 }
 0x9ce   :  { %v1370_v39 = vpop.permute.xlu1 %1369 }
 0x9cf   :  { %5119 = vmatpush.xpose.msk.msra.mxu0 %vm107_vm1, %v1370_v39  ;;  %v1368_v41 = vpop.permute.xlu0 %1367 }
 0x9d2   :  { %5120 = vmatmul.msk.f32.vlgmr.msra.gmra.mxu0 %vm107_vm1, %v1368_v41 }
 0x9eb   :  { %v991_v47 = vpop.f32.mrf.mxu2 }
 0x9ec   :  { %v1021_v48 = vmul.f32 0.35355338, %v991_v47 }
 0x9ee   :  { %v1023_v49 = vadd.f32 %v1021_v48, %v5902_v28 }
 0x9f0   :  { %v1025_v50 = vsel %vm107_vm1, %v1023_v49, -inf }
 0x9f1   :  { %1026 = vmax.xlane.f32.xlu2 %v1025_v50 }
 0xa37   :  { %v1018_v51 = vpop.f32.mrf.mxu0 }
 0xa38   :  { %v1022_v53 = vmul.f32 0.35355338, %v1018_v51 }
 0xa3a   :  { %v1024_v54 = vadd.f32 %v1022_v53, %v5909_v35 }
 0xa3b   :  { %v1152_v55 = vpop.f32.mrf.mxu3 }
 0xa3c   :  { %v1156_v56 = vmul.f32 0.35355338, %v1152_v55  ;;  %v1028_v57 = vsel %vm107_vm1, %v1024_v54, -inf }
 0xa3d   :  { %1029 = vmax.xlane.f32.xlu1 %v1028_v57 }
 0xa3e   :  { %v1158_v58 = vadd.f32 %v1156_v56, %v5909_v35 }
 0xa3f   :  { %v1124_v59 = vpop.f32.mrf.mxu0 }
 0xa40   :  { %v1155_v60 = vmul.f32 0.35355338, %v1124_v59  ;;  %v1162_v62 = vsel %vm107_vm1, %v1158_v58, -inf }
 0xa41   :  { %1163 = vmax.xlane.f32.xlu2 %v1162_v62 }
 0xa42   :  { %v1157_v63 = vadd.f32 %v1155_v60, %v5902_v28 }
 0xa44   :  { %v1159_v9 = vsel %vm107_vm1, %v1157_v63, -inf }
 0xa45   :  { %1160 = vmax.xlane.f32.xlu0 %v1159_v9  ;;  %v1286_v13 = vpop.f32.mrf.mxu3 }
 0xa46   :  { %v1290_v10 = vmul.f32 0.35355338, %v1286_v13 }
 0xa47   :  { %v1258_v11 = vpop.f32.mrf.mxu0 }
 0xa48   :  { %v1289_v12 = vmul.f32 0.35355338, %v1258_v11  ;;  %v1292_v6 = vadd.f32 %v1290_v10, %v5909_v35 }
 0xa4a   :  { %v1291_v16 = vadd.f32 %v1289_v12, %v5902_v28  ;;  %v1296_v18 = vsel %vm107_vm1, %v1292_v6, -inf }
 0xa4c   :  { %v1293_v8 = vsel %vm107_vm1, %v1291_v16, -inf }
 0xa4d   :  { %1294 = vmax.xlane.f32.xlu1 %v1293_v8  ;;  %1297 = vmax.xlane.f32.xlu0 %v1296_v18 }
 0xa4e   :  { %v1420_v21 = vpop.f32.mrf.mxu3 }
 0xa4f   :  { %v1424_v14 = vmul.f32 0.35355338, %v1420_v21  ;;  %v1392_v0 = vpop.f32.mrf.mxu0 }
 0xa50   :  { %v1423_v24 = vmul.f32 0.35355338, %v1392_v0 }
 0xa51   :  { %v1426_v4 = vadd.f32 %v1424_v14, %v5909_v35  ;;  %v5316_v35 = vpack.i.bf16 %v6146_v26, %v6140_v2 }
 0xa52   :  { %v1425_v27 = vadd.f32 %v1423_v24, %v5902_v28 }
 0xa53   :  { %v1430_v29 = vsel %vm107_vm1, %v1426_v4, -inf }
 0xa54   :  { %v1427_v30 = vsel %vm107_vm1, %v1425_v27, -inf }
 0xa55   :  { %1431 = vmax.xlane.f32.xlu1 %v1430_v29  ;;  %1428 = vmax.xlane.f32.xlu2 %v1427_v30 }
 0xa64   :  { %v1027_v31 = vpop.xlane.xlu2 %1026 }
 0xa65   :  { %v1031_v25 = vsub.f32 %v1023_v49, %v1027_v31 }
 0xa67   :  { %v1033_v32 = vmul.f32 1.442695, %v1031_v25 }
 0xa69   :  { %5504 = vpow2.f32 %v1033_v32 }
 0xa6f   :  { %v6206_v33 = vpop.eup %5504 }
 0xa70   :  { %v1037_v34 = vsel %vm107_vm1, %v6206_v33, 0.0 }
 0xa71   :  { %1038 = vadd.xlane.f32.xlu0 %v1037_v34 }
 0xa85   :  { %5317 = vrot.lane.b32.xlu0 %v5316_v35, %s7536_s19 }
 0xa8d   :  { %5327 = vrot.lane.b32.xlu0 %v5316_v35, %s7565_s18 }
 0xa95   :  { %5332 = vrot.lane.b32.xlu0 %v5316_v35, %s7566_s20 }
 0xa9d   :  { %5342 = vrot.lane.b32.xlu0 %v5341_v46, %s7567_s29 }
 0xab0   :  { %v1030_v28 = vpop.xlane.xlu1 %1029 }
 0xab1   :  { %v1032_v36 = vsub.f32 %v1024_v54, %v1030_v28 }
 0xab3   :  { %v1035_v37 = vmul.f32 1.442695, %v1032_v36 }
 0xab4   :  { %v1164_v38 = vpop.xlane.xlu2 %1163 }
 0xab5   :  { %5506 = vpow2.f32 %v1035_v37  ;;  %v1166_v39 = vsub.f32 %v1158_v58, %v1164_v38 }
 0xab7   :  { %v1169_v41 = vmul.f32 1.442695, %v1166_v39 }
 0xab8   :  { %v1161_v47 = vpop.xlane.xlu0 %1160 }
 0xab9   :  { %v1165_v2 = vsub.f32 %v1157_v63, %v1161_v47  ;;  %5508 = vpow2.f32 %v1169_v41 }
 0xabb   :  { %v5507_v26 = vpop.eup %5506  ;;  %v1167_v48 = vmul.f32 1.442695, %v1165_v2 }
 0xabc   :  { %v1040_v49 = vsel %vm107_vm1, %v5507_v26, 0.0 }
 0xabd   :  { %5510 = vpow2.f32 %v1167_v48  ;;  %1041 = vadd.xlane.f32.xlu2 %v1040_v49 }
 0xabf   :  { %v5509_v51 = vpop.eup %5508 }
 0xac0   :  { %v1298_v50 = vpop.xlane.xlu0 %1297  ;;  %v1295_v44 = vpop.xlane.xlu1 %1294  ;;  %v1174_v55 = vsel %vm107_vm1, %v5509_v51, 0.0 }
 0xac1   :  { %v1300_v45 = vsub.f32 %v1292_v6, %v1298_v50  ;;  %v1299_v54 = vsub.f32 %v1291_v16, %v1295_v44 }
 0xac3   :  { %v5511_v46 = vpop.eup %5510  ;;  %v1303_v53 = vmul.f32 1.442695, %v1300_v45  ;;  %v1301_v57 = vmul.f32 1.442695, %v1299_v54 }
 0xac4   :  { %v1171_v56 = vsel %vm107_vm1, %v5511_v46, 0.0 }
 0xac5   :  { %1175 = vadd.xlane.f32.xlu2 %v1174_v55  ;;  %1172 = vadd.xlane.f32.xlu1 %v1171_v56  ;;  %5512 = vpow2.f32 %v1303_v53 }
 0xac6   :  { %5514 = vpow2.f32 %v1301_v57 }
 0xac8   :  { %v1429_v58 = vpop.xlane.xlu2 %1428  ;;  %v1432_v9 = vpop.xlane.xlu1 %1431 }
 0xac9   :  { %v1433_v60 = vsub.f32 %v1425_v27, %v1429_v58  ;;  %v1434_v10 = vsub.f32 %v1426_v4, %v1432_v9 }
 0xacb   :  { %v6222_v59 = vpop.eup %5512  ;;  %v1435_v63 = vmul.f32 1.442695, %v1433_v60  ;;  %v1437_v12 = vmul.f32 1.442695, %v1434_v10 }
 0xacc   :  { %v1308_v62 = vsel %vm107_vm1, %v6222_v59, 0.0  ;;  %v6226_v13 = vpop.eup %5514 }
 0xacd   :  { %1309 = vadd.xlane.f32.xlu1 %v1308_v62  ;;  %5516 = vpow2.f32 %v1435_v63  ;;  %v1305_v11 = vsel %vm107_vm1, %v6226_v13, 0.0 }
 0xace   :  { %5518 = vpow2.f32 %v1437_v12 }
 0xad3   :  { %v5517_v6 = vpop.eup %5516 }
 0xad4   :  { %v1439_v16 = vsel %vm107_vm1, %v5517_v6, 0.0  ;;  %v5519_v8 = vpop.eup %5518 }
 0xad5   :  { %1306 = vadd.xlane.f32.xlu1 %v1305_v11  ;;  %v1442_v18 = vsel %vm107_vm1, %v5519_v8, 0.0 }
 0xadd   :  { %5322 = vrot.lane.b32.xlu2 %v5316_v35, %s7568_s30  ;;  %1440 = vadd.xlane.f32.xlu1 %v1439_v16 }
 0xae4   :  { %v1039_v21 = vpop.xlane.xlu0 %1038 }
 0xae5   :  { %5337 = vrot.lane.b32.xlu2 %v5336_v43, %s7567_s29  ;;  %1443 = vadd.xlane.f32.xlu1 %v1442_v18  ;;  %5520 = vrcp.f32 %v1039_v21 }
 0xaeb   :  { %v5521_v14 = vpop.eup %5520 }
 0xaec   :  { %v6238_v27 = vmul.f32 %v5521_v14, %v6206_v33 }
 0xaf7   :  { %v5318_v0 = vpop.permute.xlu0 %5317 }
 0xaf8   :  { %v5320_v24 = vunpack.i.h.bf16 %v5318_v0  ;;  %v5319_v4 = vunpack.i.l.bf16 %v5318_v0 }
 0xafa   :  { %1068 = vmatpush.msrb.mxu1 %v5319_v4  ;;  %1094 = vmatpush.msra.mxu2 %v5320_v24 }
 0xafb   :  { %5105 = vmatmul.msk.f32.vlgmr.msrb.gmra.mxu1 %vm107_vm1, %v6238_v27 }
 0xaff   :  { %v5328_v40 = vpop.permute.xlu0 %5327 }
 0xb00   :  { %v5330_v39 = vunpack.i.h.bf16 %v5328_v40  ;;  %v5329_v41 = vunpack.i.l.bf16 %v5328_v40 }
 0xb07   :  { %v5333_v34 = vpop.permute.xlu0 %5332 }
 0xb08   :  { %v5335_v47 = vunpack.i.h.bf16 %v5333_v34  ;;  %v5334_v2 = vunpack.i.l.bf16 %v5333_v34  ;;  %v6302_v34 = vld [vmem:[%s7509_s8 + $0x18] sm:$0xff] }
 0xb0f   :  { %v5343_v12 = vpop.permute.xlu0 %5342 }
 0xb10   :  { %v5344_v16 = vunpack.i.l.bf16 %v5343_v12 }
 0xb30   :  { %v1042_v29 = vpop.xlane.xlu2 %1041 }
 0xb31   :  { %5522 = vrcp.f32 %v1042_v29 }
 0xb37   :  { %v5523_v30 = vpop.eup %5522 }
 0xb38   :  { %v6242_v42 = vmul.f32 %v5523_v30, %v5507_v26  ;;  %v1176_v43 = vpop.xlane.xlu2 %1175  ;;  %v1173_v31 = vpop.xlane.xlu1 %1172 }
 0xb39   :  { %5524 = vrcp.f32 %v1176_v43 }
 0xb3a   :  { %5526 = vrcp.f32 %v1173_v31  ;;  %5106 = vmatmul.msk.f32.vlgmr.msra.gmra.mxu2 %vm107_vm1, %v6242_v42 }
 0xb3f   :  { %v5525_v25 = vpop.eup %5524 }
 0xb40   :  { %v5527_v32 = vpop.eup %5526  ;;  %v5323_v33 = vpop.permute.xlu2 %5322  ;;  %v6246_v37 = vmul.f32 %v5525_v25, %v5509_v51  ;;  %v6289_v25 = vld [vmem:[%s7509_s8 + $0x48] sm:$0xff] }
 0xb41   :  { %v5325_v35 = vunpack.i.h.bf16 %v5323_v33  ;;  %v5324_v28 = vunpack.i.l.bf16 %v5323_v33  ;;  %v1310_v36 = vpop.xlane.xlu1 %1309  ;;  %v6248_v38 = vmul.f32 %v5527_v32, %v5511_v46  ;;  %v6295_v32 = vld [vmem:[%s7509_s8 + $0x30] sm:$0xff] }
 0xb42   :  { %5528 = vrcp.f32 %v1310_v36  ;;  %v5351_v33 = vpack.i.bf16 %v6295_v32, %v6289_v25 }
 0xb43   :  { %1202 = vmatpush.msra.mxu1 %v5324_v28  ;;  %1228 = vmatpush.msrb.mxu2 %v5325_v35  ;;  %v6309_v35 = vld [vmem:[%s7509_s8] sm:$0xff] }
 0xb44   :  { %5111 = vmatmul.msk.f32.vlgmr.msra.gmra.mxu1 %vm107_vm1, %v6248_v38  ;;  %5112 = vmatmul.msk.f32.vlgmr.msrb.gmra.mxu2 %vm107_vm1, %v6246_v37  ;;  %v6314_v28 = vld [vmem:[%s7510_s1] sm:$0xff]  ;;  %v5356_v36 = vpack.i.bf16 %v6309_v35, %v6302_v34 }
 0xb45   :  { %1336 = vmatpush.msrb.mxu1 %v5329_v41  ;;  %1362 = vmatpush.msra.mxu2 %v5330_v39  ;;  %v6324_v39 = vld [vmem:[%s7510_s1 + $0x8] sm:$0xff]  ;;  %v1558_v41 = vperm.slane %v6137_v22, 1  ;;  %s7592_s1 = sld [smem:[#allocation9_spill]] }
 0xb47   :  { %1470 = vmatpush.msra.mxu1 %v5334_v2  ;;  %1496 = vmatpush.msrb.mxu2 %v5335_v47 }
 0xb48   :  { %v5529_v26 = vpop.eup %5528  ;;  %v5338_v58 = vpop.permute.xlu2 %5337 }
 0xb49   :  { %v1307_v48 = vpop.xlane.xlu1 %1306  ;;  %v6255_v49 = vmul.f32 %v5529_v26, %v6222_v59  ;;  %v5340_v59 = vunpack.i.h.bf16 %v5338_v58  ;;  %v5339_v60 = vunpack.i.l.bf16 %v5338_v58 }
 0xb4a   :  { %5530 = vrcp.f32 %v1307_v48 }
 0xb4b   :  { %1593 = vmatpush.msrb.mxu0 %v5339_v60 }
 0xb4c   :  { %5118 = vmatmul.msk.f32.vlgmr.msra.gmra.mxu2 %vm107_vm1, %v6255_v49 }
 0xb4d   :  { %1594 = vmatpush.msrb.mxu0 %v5340_v59  ;;  %1813 = vmatpush.msra.mxu2 %v6289_v25 }
 0xb4f   :  { %1595 = vmatpush.msrb.mxu0 %v5344_v16  ;;  %1814 = vmatpush.msra.mxu2 %v6295_v32 }
 0xb50   :  { %v5531_v50 = vpop.eup %5530 }
 0xb51   :  { %v6260_v51 = vmul.f32 %v5531_v50, %v6226_v13  ;;  %v1441_v44 = vpop.xlane.xlu1 %1440  ;;  %1815 = vmatpush.msra.mxu2 %v6302_v34  ;;  %v6546_v34 = vld [vmem:[%s7506_s7 + $0x8] sm:$0xff] }
 0xb52   :  { %5532 = vrcp.f32 %v1441_v44 }
 0xb53   :  { %5117 = vmatmul.msk.f32.vlgmr.msrb.gmra.mxu1 %vm107_vm1, %v6260_v51  ;;  %1816 = vmatpush.msra.mxu2 %v6309_v35  ;;  %v1688_v35 = vperm.slane %v6546_v34, 5 }
 0xb58   :  { %v5533_v45 = vpop.eup %5532 }
 0xb59   :  { %v6264_v46 = vmul.f32 %v5533_v45, %v5517_v6  ;;  %v1444_v53 = vpop.xlane.xlu1 %1443  ;;  %v5345_v6 = vunpack.i.h.bf16 %v5343_v12 }
 0xb5a   :  { %5534 = vrcp.f32 %v1444_v53 }
 0xb5b   :  { %5123 = vmatmul.msk.f32.vlgmr.msra.gmra.mxu1 %vm107_vm1, %v6264_v46  ;;  %1596 = vmatpush.msrb.mxu0 %v5345_v6 }
 0xb60   :  { %v5535_v54 = vpop.eup %5534 }
 0xb61   :  { %v6268_v55 = vmul.f32 %v5535_v54, %v5519_v8 }
 0xb63   :  { %5124 = vmatmul.msk.f32.vlgmr.msrb.gmra.mxu2 %vm107_vm1, %v6268_v55 }
 0xb6b   :  { %5133 = vmatmul.msk.f32.vlgmr.msra.gmra.mxu2 %vm74_vm0, %v6314_v28 }
 0xb73   :  { %5134 = vmatmul.msk.f32.gmra.mxu2 %vm74_vm0, %v6324_v39 }
 0xb78   :  { %v1070_v56 = vpop.f32.mrf.mxu1 }
 0xbbd   :  { %v1096_v62 = vpop.f32.mrf.mxu2 }
 0xbc1   :  { %v1204_v57 = vpop.f32.mrf.mxu1 }
 0xbc2   :  { %1503 = vrot.lane.b32.xlu1 %v1204_v57, %s7569_s5 }
 0xbc7   :  { %v1230_v9 = vpop.f32.mrf.mxu2 }
 0xbcf   :  { %v1364_v10 = vpop.f32.mrf.mxu2 }
 0xbd0   :  { %v1338_v63 = vpop.f32.mrf.mxu1 }
 0xbd1   :  { %1511 = vrot.lane.b32.xlu2 %v1338_v63, %s7570_s17 }
 0xbd8   :  { %v1472_v13 = vpop.f32.mrf.mxu1 }
 0xbd9   :  { %1505 = vrot.lane.b32.xlu2 %v1230_v9, %s7569_s5  ;;  %1519 = vrot.lane.b32.xlu0 %v1472_v13, %s7571_s28 }
 0xbe1   :  { %1513 = vrot.lane.b32.xlu0 %v1364_v10, %s7570_s17 }
 0xbe6   :  { %v1498_v11 = vpop.f32.mrf.mxu2 }
 0xbe7   :  { %1521 = vrot.lane.b32.xlu2 %v1498_v11, %s7571_s28 }
 0xbee   :  { %v1818_v54 = vpop.f32.mrf.mxu2 }
 0xbf6   :  { %v1821_v58 = vpop.f32.mrf.mxu2 }
 0xc2b   :  { %v1512_v8 = vpop.permute.xlu2 %1511 }
 0xc33   :  { %v1506_v24 = vpop.permute.xlu2 %1505 }
 0xc34   :  { %v1504_v18 = vpop.permute.xlu1 %1503  ;;  %v1526_v29 = vsel %vm107_vm1, %v1096_v62, %v1506_v24 }
 0xc35   :  { %v1525_v21 = vsel %vm107_vm1, %v1070_v56, %v1504_v18  ;;  %v6336_v56 = vld [vmem:[%s7511_s10] sm:$0xff]  ;;  %v5087_v18 = vld [vmem:[%s7563_s23 + $0x68] sm:$0xff] }
 0xc36   :  { %v1527_v14 = vsel %vm665_vm2, %v1525_v21, %v1512_v8  ;;  %v1794_v57 = vperm.slane %v6336_v56, 0  ;;  %v5089_v8 = vld [vmem:[%s7563_s23 + $0x78] sm:$0xff] }
 0xc37   :  { %1675 = vmatpush.msrb.mxu3 %v5089_v8  ;;  %v5085_v21 = vld [vmem:[%s7563_s23 + $0x58] sm:$0xff] }
 0xc38   :  { %v6346_v62 = vadd.f32 %v1818_v54, %v1794_v57 }
 0xc39   :  { %1676 = vmatpush.msrb.mxu3 %v5087_v18 }
 0xc3b   :  { %1677 = vmatpush.msrb.mxu3 %v5085_v21  ;;  %v5091_v21 = vld [vmem:[%s7508_s6 + $0x48] sm:$0xff] }
 0xc41   :  { %v1522_v40 = vpop.permute.xlu2 %1521 }
 0xc4b   :  { %v1520_v0 = vpop.permute.xlu0 %1519 }
 0xc4c   :  { %v1529_v4 = vsel %vm668_vm3, %v1527_v14, %v1520_v0  ;;  %v5083_v14 = vld [vmem:[%s7563_s23 + $0x48] sm:$0xff] }
 0xc4d   :  { %5127 = vmatmul.msk.f32.vlgmr.msrb.gmra.mxu0 %vm74_vm0, %v1529_v4  ;;  %1678 = vmatpush.msrb.mxu3 %v5083_v14  ;;  %v5090_v14 = vld [vmem:[%s7508_s6 + $0x40] sm:$0xff] }
 0xc53   :  { %v1514_v30 = vpop.permute.xlu0 %1513 }
 0xc54   :  { %v1528_v43 = vsel %vm665_vm2, %v1526_v29, %v1514_v30 }
 0xc55   :  { %v1530_v31 = vsel %vm668_vm3, %v1528_v43, %v1522_v40  ;;  %v5097_v43 = vld [vmem:[%s7508_s6 + $0x78] sm:$0xff] }
 0xc56   :  { %5128 = vmatmul.msk.f32.gmra.mxu0 %vm74_vm0, %v1530_v31  ;;  %1703 = vmatpush.msrb.mxu1 %v5097_v43 }
 0xcca   :  { %v1598_v47 = vpop.f32.mrf.mxu0 }
 0xccb   :  { %v1599_v2 = vadd.f32 %v1598_v47, %v1558_v41 }
 0xccd   :  { %v1604_v26 = vadd.f32 %v1599_v2, %v6125_v61  ;;  %v6339_v61 = vadd.f32 %v1821_v58, %v1794_v57  ;;  %v5093_v57 = vld [vmem:[%s7508_s6 + $0x58] sm:$0xff] }
 0xccf   :  { %v1606_v48 = vsel %vm74_vm0, %v1604_v26, 0.0  ;;  %v5346_v16 = vpack.i.bf16 %v6339_v61, %v6346_v62 }
 0xcd0   :  { %1607 = vadd.xlane.f32.xlu1 %v1606_v48 }
 0xcd3   :  { %v1601_v50 = vpop.f32.mrf.mxu0 }
 0xcd4   :  { %v1602_v44 = vadd.f32 %v1601_v50, %v1558_v41  ;;  %v5096_v50 = vld [vmem:[%s7508_s6 + $0x70] sm:$0xff] }
 0xcd5   :  { %1704 = vmatpush.msrb.mxu1 %v5096_v50 }
 0xcd6   :  { %v1605_v45 = vadd.f32 %v1602_v44, %v6130_v7 }
 0xcd8   :  { %v1609_v53 = vsel %vm74_vm0, %v1605_v45, 0.0 }
 0xcd9   :  { %1610 = vadd.xlane.f32.xlu0 %v1609_v53  ;;  %v5094_v53 = vld [vmem:[%s7508_s6 + $0x60] sm:$0xff] }
 0xced   :  { %1852 = vrot.lane.b32.xlu0 %v6339_v61, %s7548_s21 }
 0xcf5   :  { %1956 = vrot.lane.b32.xlu0 %v6346_v62, %s7550_s0 }
 0xcfd   :  { %2090 = vrot.lane.b32.xlu0 %v6346_v62, %s7546_s25 }
 0xd05   :  { %1986 = vrot.lane.b32.xlu0 %v6339_v61, %s7572_s2 }
 0xd0d   :  { %2118 = vrot.lane.b32.xlu0 %v6339_v61, %s7546_s25  ;;  %s7579_s25 = smov 96  }
 0xd43   :  { %v1608_v59 = vpop.xlane.xlu1 %1607 }
 0xd44   :  { %v1612_v7 = vmul.f32 %v1608_v59, %v6036_v15 }
 0xd46   :  { %v6344_v60 = vsub.f32 %v1604_v26, %v1612_v7 }
 0xd48   :  { %v1616_v63 = vmul.f32 %v6344_v60, %v6344_v60 }
 0xd4a   :  { %v1618_v9 = vsel %vm74_vm0, %v1616_v63, 0.0  ;;  %v1650_v63 = vperm.slane %v6137_v22, 2 }
 0xd4b   :  { %1619 = vadd.xlane.f32.xlu2 %v1618_v9 }
 0xd4c   :  { %v1611_v13 = vpop.xlane.xlu0 %1610 }
 0xd4d   :  { %v1613_v10 = vmul.f32 %v1611_v13, %v6036_v15 }
 0xd4f   :  { %v6354_v11 = vsub.f32 %v1605_v45, %v1613_v10  ;;  %v5095_v45 = vld [vmem:[%s7508_s6 + $0x68] sm:$0xff] }
 0xd50   :  { %1705 = vmatpush.msrb.mxu1 %v5095_v45 }
 0xd51   :  { %v1617_v12 = vmul.f32 %v6354_v11, %v6354_v11 }
 0xd52   :  { %1706 = vmatpush.msrb.mxu1 %v5094_v53 }
 0xd53   :  { %v1621_v6 = vsel %vm74_vm0, %v1617_v12, 0.0 }
 0xd54   :  { %1622 = vadd.xlane.f32.xlu1 %v1621_v6  ;;  %1707 = vmatpush.msrb.mxu1 %v5093_v57  ;;  %v1653_v6 = vperm.slane %v6137_v22, 3 }
 0xd5f   :  { %v1853_v0 = vpop.permute.xlu0 %1852 }
 0xd60   :  { %5137 = vmatpush.xpose.msk.msra.mxu3 %vm107_vm1, %v1853_v0 }
 0xd63   :  { %1825 = vrot.lane.b32.xlu2 %v6346_v62, %s7548_s21  ;;  %s7580_s21 = smov 120  }
 0xd67   :  { %v1957_v41 = vpop.permute.xlu0 %1956 }
 0xd6b   :  { %2092 = vrot.lane.b32.xlu2 %v6346_v62, %s7573_s26 }
 0xd6d   :  { %1958 = vrot.lane.b32.xlu1 %v6346_v62, %s7572_s2 }
 0xd6f   :  { %v2091_v7 = vpop.permute.xlu0 %2090 }
 0xd73   :  { %2224 = vrot.lane.b32.xlu2 %v6346_v62, %s7574_s27 }
 0xd75   :  { %2226 = vrot.lane.b32.xlu1 %v6346_v62, %s7575_s22 }
 0xd7b   :  { %2120 = vrot.lane.b32.xlu2 %v6339_v61, %s7573_s26 }
 0xd7d   :  { %1984 = vrot.lane.b32.xlu1 %v6339_v61, %s7550_s0 }
 0xd83   :  { %2252 = vrot.lane.b32.xlu2 %v6339_v61, %s7574_s27 }
 0xd85   :  { %2254 = vrot.lane.b32.xlu1 %v6339_v61, %s7575_s22 }
 0xd8d   :  { %5347 = vrot.lane.b32.xlu1 %v5346_v16, %s7576_s24  ;;  %v5092_v16 = vld [vmem:[%s7508_s6 + $0x50] sm:$0xff] }
 0xd8e   :  { %1708 = vmatpush.msrb.mxu1 %v5092_v16 }
 0xd90   :  { %1709 = vmatpush.msrb.mxu1 %v5091_v21 }
 0xd92   :  { %1710 = vmatpush.msrb.mxu1 %v5090_v14 }
 0xdbe   :  { %v1620_v24 = vpop.xlane.xlu2 %1619 }
 0xdbf   :  { %v1624_v4 = vmul.f32 %v1620_v24, %v6036_v15  ;;  %v1987_v24 = vpop.permute.xlu0 %1986 }
 0xdc0   :  { %5143 = vmatpush.xpose.msk.msra.mxu1 %vm107_vm1, %v1987_v24 }
 0xdc1   :  { %v1626_v29 = vadd.f32 1e-05, %v1624_v4 }
 0xdc3   :  { %5536 = vrsqrt.f32 %v1626_v29  ;;  %vm1634_vm7 = vweird.f32 %v1626_v29 }
 0xdc6   :  { %v1826_v30 = vpop.permute.xlu2 %1825 }
 0xdc7   :  { %5135 = vmatpush.xpose.msk.msra.mxu0 %vm107_vm1, %v1826_v30  ;;  %v1623_v40 = vpop.xlane.xlu1 %1622 }
 0xdc8   :  { %v1625_v31 = vmul.f32 %v1623_v40, %v6036_v15 }
 0xdc9   :  { %v5537_v47 = vpop.eup %5536 }
 0xdca   :  { %v1629_v2 = vmul.f32 %v5537_v47, %v1626_v29  ;;  %v1627_v26 = vadd.f32 1e-05, %v1625_v31  ;;  %5136 = vmatmul.msk.f32.vlgmr.msra.gmra.mxu0 %vm107_vm1, %v6346_v62  ;;  %vm1635_vm6 = vweird.f32 %v5537_v47 }
 0xdcb   :  { %vm1636_vm8 = vmor %vm1634_vm7, %vm1635_vm6 }
 0xdcc   :  { %v1630_v48 = vmul.f32 %v5537_v47, %v1629_v2  ;;  %5538 = vrsqrt.f32 %v1627_v26  ;;  %vm1644_vm10 = vweird.f32 %v1627_v26 }
 0xdce   :  { %v1631_v44 = vmul.f32 0.5, %v1630_v48  ;;  %v2093_v2 = vpop.permute.xlu2 %2092 }
 0xdd0   :  { %v1632_v54 = vsub.f32 1.5, %v1631_v44 }
 0xdd2   :  { %v5539_v58 = vpop.eup %5538  ;;  %v1633_v59 = vmul.f32 %v5537_v47, %v1632_v54  ;;  %v50_v54 = vld [vmem:[%s7512_s3] sm:$0xff] }
 0xdd3   :  { %v1639_v9 = vmul.f32 %v5539_v58, %v1627_v26  ;;  %vm1645_vm9 = vweird.f32 %v5539_v58 }
 0xdd4   :  { %v1637_v13 = vsel %vm1636_vm8, %v5537_v47, %v1633_v59  ;;  %vm1646_vm12 = vmor %vm1644_vm10, %vm1645_vm9  ;;  %v1656_v59 = vperm.slane %v6137_v22, 4 }
 0xdd5   :  { %v1648_v10 = vmul.f32 %v1637_v13, %v6344_v60  ;;  %v1640_v12 = vmul.f32 %v5539_v58, %v1639_v9 }
 0xdd6   :  { %v2225_v45 = vpop.permute.xlu2 %2224 }
 0xdd7   :  { %v1651_v8 = vmul.f32 %v1650_v63, %v1648_v10  ;;  %v1641_v18 = vmul.f32 0.5, %v1640_v12 }
 0xdd9   :  { %v1642_v60 = vsub.f32 1.5, %v1641_v18  ;;  %v6431_v0 = vadd.f32 %v1653_v6, %v1651_v8  ;;  %v51_v8 = vld [vmem:[%s7512_s3 + $0x8] sm:$0xff] }
 0xddb   :  { %v1643_v4 = vmul.f32 %v5539_v58, %v1642_v60  ;;  %5129 = vmatmul.msk.f32.vlgmr.msrb.gmra.mxu3 %vm74_vm0, %v6431_v0 }
 0xddd   :  { %v1647_v29 = vsel %vm1646_vm12, %v5539_v58, %v1643_v4  ;;  %v2119_v4 = vpop.permute.xlu0 %2118 }
 0xdde   :  { %v1649_v30 = vmul.f32 %v1647_v29, %v6354_v11  ;;  %v2121_v13 = vpop.permute.xlu2 %2120 }
 0xddf   :  { %v1959_v40 = vpop.permute.xlu1 %1958 }
 0xde0   :  { %5141 = vmatpush.xpose.msk.msrb.mxu3 %vm107_vm1, %v1959_v40  ;;  %v1652_v43 = vmul.f32 %v1650_v63, %v1649_v30 }
 0xde2   :  { %v6438_v31 = vadd.f32 %v1653_v6, %v1652_v43 }
 0xde4   :  { %5130 = vmatmul.msk.f32.gmra.mxu3 %vm74_vm0, %v6438_v31 }
 0xde6   :  { %v2253_v40 = vpop.permute.xlu2 %2252 }
 0xde7   :  { %v2227_v47 = vpop.permute.xlu1 %2226 }
 0xdec   :  { %5138 = vmatmul.msk.f32.vlgmr.msra.gmra.mxu3 %vm107_vm1, %v6339_v61 }
 0xded   :  { %5147 = vmatpush.xpose.msk.msra.mxu3 %vm107_vm1, %v2093_v2 }
 0xdef   :  { %v1985_v26 = vpop.permute.xlu1 %1984 }
 0xdf4   :  { %5142 = vmatmul.msk.f32.vlgmr.msrb.gmra.mxu3 %vm107_vm1, %v1957_v41 }
 0xdf5   :  { %5153 = vmatpush.xpose.msk.msrb.mxu3 %vm107_vm1, %v2227_v47 }
 0xdf7   :  { %v2255_v11 = vpop.permute.xlu1 %2254 }
 0xdfc   :  { %5148 = vmatmul.msk.f32.vlgmr.msra.gmra.mxu3 %vm107_vm1, %v2091_v7 }
 0xdff   :  { %v5348_v48 = vpop.permute.xlu1 %5347 }
 0xe00   :  { %v5350_v50 = vunpack.i.h.bf16 %v5348_v48  ;;  %v5349_v44 = vunpack.i.l.bf16 %v5348_v48 }
 0xe02   :  { %1925 = vmatpush.msrb.mxu2 %v5349_v44  ;;  %1951 = vmatpush.msrb.mxu0 %v5350_v50 }
 0xe04   :  { %5154 = vmatmul.msk.f32.vlgmr.msrb.gmra.mxu3 %vm107_vm1, %v2225_v45 }
 0xe47   :  { %v1848_v53 = vpop.f32.mrf.mxu0 }
 0xe48   :  { %v1878_v57 = vmul.f32 0.35355338, %v1848_v53 }
 0xe4a   :  { %v1880_v41 = vadd.f32 %v1878_v57, %v50_v54 }
 0xe4c   :  { %v1882_v58 = vsel %vm107_vm1, %v1880_v41, -inf }
 0xe4d   :  { %1883 = vmax.xlane.f32.xlu0 %v1882_v58 }
 0xe5e   :  { %v1680_v7 = vpop.f32.mrf.mxu3 }
 0xe5f   :  { %v1681_v63 = vadd.f32 %v1680_v7, %v1656_v59 }
 0xe61   :  { %v1686_v9 = vmax.f32 %v1681_v63, 0.0 }
 0xe63   :  { %5131 = vmatmul.msk.f32.vlgmr.msrb.gmra.mxu1 %vm835_vm11, %v1686_v9 }
 0xe64   :  { %5149 = vmatpush.xpose.msk.msrb.mxu1 %vm107_vm1, %v2121_v13 }
 0xe67   :  { %v1683_v10 = vpop.f32.mrf.mxu3 }
 0xe68   :  { %v1684_v12 = vadd.f32 %v1683_v10, %v1656_v59 }
 0xe6a   :  { %v1687_v6 = vmax.f32 %v1684_v12, 0.0 }
 0xe6c   :  { %5132 = vmatmul.msk.f32.gmra.mxu1 %vm835_vm11, %v1687_v6 }
 0xe6f   :  { %v1875_v16 = vpop.f32.mrf.mxu3 }
 0xe70   :  { %v1879_v18 = vmul.f32 0.35355338, %v1875_v16 }
 0xe72   :  { %v1881_v22 = vadd.f32 %v1879_v18, %v51_v8 }
 0xe74   :  { %5144 = vmatmul.msk.f32.vlgmr.msra.gmra.mxu1 %vm107_vm1, %v1985_v26  ;;  %v1885_v21 = vsel %vm107_vm1, %v1881_v22, -inf }
 0xe75   :  { %5155 = vmatpush.xpose.msk.msra.mxu1 %vm107_vm1, %v2255_v11  ;;  %1886 = vmax.xlane.f32.xlu1 %v1885_v21 }
 0xe77   :  { %v1981_v14 = vpop.f32.mrf.mxu3 }
 0xe78   :  { %v2012_v60 = vmul.f32 0.35355338, %v1981_v14 }
 0xe7a   :  { %v2014_v24 = vadd.f32 %v2012_v60, %v50_v54 }
 0xe7c   :  { %5150 = vmatmul.msk.f32.vlgmr.msrb.gmra.mxu1 %vm107_vm1, %v2119_v4  ;;  %v2016_v29 = vsel %vm107_vm1, %v2014_v24, -inf }
 0xe7d   :  { %2017 = vmax.xlane.f32.xlu1 %v2016_v29 }
 0xe7f   :  { %v2115_v30 = vpop.f32.mrf.mxu3 }
 0xe80   :  { %v2146_v45 = vmul.f32 0.35355338, %v2115_v30 }
 0xe82   :  { %v2148_v57 = vadd.f32 %v2146_v45, %v50_v54 }
 0xe84   :  { %5156 = vmatmul.msk.f32.vlgmr.msra.gmra.mxu1 %vm107_vm1, %v2253_v40  ;;  %v2150_v58 = vsel %vm107_vm1, %v2148_v57, -inf }
 0xe87   :  { %v2249_v43 = vpop.f32.mrf.mxu3 }
 0xe88   :  { %v2280_v47 = vmul.f32 0.35355338, %v2249_v43 }
 0xe8a   :  { %v2282_v2 = vadd.f32 %v2280_v47, %v50_v54 }
 0xe8c   :  { %v2284_v26 = vsel %vm107_vm1, %v2282_v2, -inf }
 0xe8d   :  { %2285 = vmax.xlane.f32.xlu0 %v2284_v26 }
 0xe96   :  { %2306 = vrot.lane.b32.xlu1 %v6346_v62, %s7566_s20 }
 0xec0   :  { %v1884_v11 = vpop.xlane.xlu0 %1883 }
 0xec1   :  { %v1888_v48 = vsub.f32 %v1880_v41, %v1884_v11 }
 0xec3   :  { %v1890_v50 = vmul.f32 1.442695, %v1888_v48 }
 0xec5   :  { %5540 = vpow2.f32 %v1890_v50 }
 0xecb   :  { %v5541_v44 = vpop.eup %5540 }
 0xecc   :  { %v1894_v53 = vsel %vm107_vm1, %v5541_v44, 0.0 }
 0xecd   :  { %1895 = vadd.xlane.f32.xlu2 %v1894_v53 }
 0xed5   :  { %2151 = vmax.xlane.f32.xlu2 %v2150_v58 }
 0xee0   :  { %v6471_v59 = vpop.f32.mrf.mxu1 }
 0xee8   :  { %v1887_v7 = vpop.xlane.xlu1 %1886 }
 0xee9   :  { %v6473_v63 = vpop.f32.mrf.mxu1  ;;  %v1889_v43 = vsub.f32 %v1881_v22, %v1887_v7 }
 0xeeb   :  { %v1892_v47 = vmul.f32 1.442695, %v1889_v43 }
 0xef0   :  { %v2018_v9 = vpop.xlane.xlu1 %2017 }
 0xef1   :  { %v2022_v13 = vsub.f32 %v2014_v24, %v2018_v9  ;;  %v2009_v10 = vpop.f32.mrf.mxu1 }
 0xef2   :  { %v2013_v41 = vmul.f32 0.35355338, %v2009_v10 }
 0xef3   :  { %v2024_v12 = vmul.f32 1.442695, %v2022_v13 }
 0xef4   :  { %v2015_v6 = vadd.f32 %v2013_v41, %v51_v8 }
 0xef5   :  { %5542 = vpow2.f32 %v2024_v12 }
 0xef6   :  { %v2019_v16 = vsel %vm107_vm1, %v2015_v6, -inf  ;;  %5544 = vpow2.f32 %v1892_v47 }
 0xef7   :  { %2020 = vmax.xlane.f32.xlu2 %v2019_v16 }
 0xef9   :  { %v2143_v18 = vpop.f32.mrf.mxu1 }
 0xefa   :  { %v2147_v21 = vmul.f32 0.35355338, %v2143_v18 }
 0xefb   :  { %v6476_v54 = vpop.eup %5542 }
 0xefc   :  { %v2028_v14 = vsel %vm107_vm1, %v6476_v54, 0.0  ;;  %v2149_v60 = vadd.f32 %v2147_v21, %v51_v8  ;;  %v5545_v26 = vpop.eup %5544 }
 0xefd   :  { %2029 = vadd.xlane.f32.xlu0 %v2028_v14  ;;  %v1897_v48 = vsel %vm107_vm1, %v5545_v26, 0.0 }
 0xefe   :  { %v2153_v24 = vsel %vm107_vm1, %v2149_v60, -inf }
 0xf00   :  { %v2286_v50 = vpop.xlane.xlu0 %2285 }
 0xf01   :  { %v2277_v4 = vpop.f32.mrf.mxu1  ;;  %v2290_v9 = vsub.f32 %v2282_v2, %v2286_v50 }
 0xf02   :  { %v2281_v29 = vmul.f32 0.35355338, %v2277_v4 }
 0xf03   :  { %v2292_v22 = vmul.f32 1.442695, %v2290_v9 }
 0xf04   :  { %v2283_v30 = vadd.f32 %v2281_v29, %v51_v8 }
 0xf05   :  { %2154 = vmax.xlane.f32.xlu0 %v2153_v24 }
 0xf06   :  { %v2287_v40 = vsel %vm107_vm1, %v2283_v30, -inf }
 0xf07   :  { %2288 = vmax.xlane.f32.xlu1 %v2287_v40 }
 0xf08   :  { %v2307_v16 = vpop.permute.xlu1 %2306 }
 0xf0f   :  { %2172 = vrot.lane.b32.xlu2 %v6346_v62, %s7565_s18 }
 0xf19   :  { %2038 = vrot.lane.b32.xlu0 %v6346_v62, %s7568_s30 }
 0xf40   :  { %v1896_v11 = vpop.xlane.xlu2 %1895 }
 0xf41   :  { %5546 = vrcp.f32 %v1896_v11 }
 0xf43   :  { %1898 = vadd.xlane.f32.xlu0 %v1897_v48 }
 0xf47   :  { %v5547_v8 = vpop.eup %5546 }
 0xf48   :  { %v6487_v45 = vmul.f32 %v5547_v8, %v5541_v44  ;;  %v2152_v53 = vpop.xlane.xlu2 %2151 }
 0xf49   :  { %v2156_v58 = vsub.f32 %v2148_v57, %v2152_v53 }
 0xf4a   :  { %7577 = vst [vmem:[#allocation3_spill] sm:$0xff] %v6487_v45  ;;  %5139 = vmatmul.msk.f32.vlgmr.msrb.gmra.mxu2 %vm107_vm1, %v6487_v45 }
 0xf4b   :  { %v2158_v62 = vmul.f32 1.442695, %v2156_v58 }
 0xf4d   :  { %5548 = vpow2.f32 %v2158_v62 }
 0xf4e   :  { %5550 = vpow2.f32 %v2292_v22 }
 0xf53   :  { %v5549_v7 = vpop.eup %5548 }
 0xf54   :  { %v2162_v13 = vsel %vm107_vm1, %v5549_v7, 0.0  ;;  %v5551_v10 = vpop.eup %5550 }
 0xf55   :  { %2163 = vadd.xlane.f32.xlu2 %v2162_v13  ;;  %v2296_v44 = vsel %vm107_vm1, %v5551_v10, 0.0 }
 0xf57   :  { %2064 = vrot.lane.b32.xlu0 %v6339_v61, %s7568_s30 }
 0xf5d   :  { %2297 = vadd.xlane.f32.xlu2 %v2296_v44 }
 0xf5f   :  { %5352 = vrot.lane.b32.xlu0 %v5351_v33, %s7567_s29 }
 0xf6a   :  { %v2021_v2 = vpop.xlane.xlu2 %2020 }
 0xf6b   :  { %v2023_v57 = vsub.f32 %v2015_v6, %v2021_v2 }
 0xf6d   :  { %v2026_v41 = vmul.f32 1.442695, %v2023_v57 }
 0xf6f   :  { %5552 = vpow2.f32 %v2026_v41 }
 0xf70   :  { %v2030_v12 = vpop.xlane.xlu0 %2029 }
 0xf72   :  { %v2173_v48 = vpop.permute.xlu2 %2172 }
 0xf75   :  { %v5553_v18 = vpop.eup %5552 }
 0xf76   :  { %v2031_v21 = vsel %vm107_vm1, %v5553_v18, 0.0 }
 0xf77   :  { %2032 = vadd.xlane.f32.xlu1 %v2031_v21 }
 0xf78   :  { %v2155_v14 = vpop.xlane.xlu0 %2154 }
 0xf79   :  { %v2157_v4 = vsub.f32 %v2149_v60, %v2155_v14 }
 0xf7a   :  { %v2289_v29 = vpop.xlane.xlu1 %2288 }
 0xf7b   :  { %v2160_v24 = vmul.f32 1.442695, %v2157_v4  ;;  %v2291_v40 = vsub.f32 %v2283_v30, %v2289_v29 }
 0xf7d   :  { %5554 = vpow2.f32 %v2160_v24  ;;  %v2294_v43 = vmul.f32 1.442695, %v2291_v40 }
 0xf7f   :  { %5556 = vpow2.f32 %v2294_v43 }
 0xf80   :  { %5558 = vrcp.f32 %v2030_v12 }
 0xf83   :  { %v5555_v25 = vpop.eup %5554 }
 0xf84   :  { %v2165_v32 = vsel %vm107_vm1, %v5555_v25, 0.0 }
 0xf85   :  { %v5557_v33 = vpop.eup %5556  ;;  %2166 = vadd.xlane.f32.xlu2 %v2165_v32 }
 0xf86   :  { %v2299_v6 = vsel %vm107_vm1, %v5557_v33, 0.0  ;;  %v5559_v47 = vpop.eup %5558 }
 0xf87   :  { %2300 = vadd.xlane.f32.xlu1 %v2299_v6  ;;  %v6503_v11 = vmul.f32 %v5559_v47, %v6476_v54 }
 0xf8b   :  { %v2039_v60 = vpop.permute.xlu0 %2038 }
 0xf8c   :  { %2059 = vmatpush.msra.mxu2 %v2039_v60 }
 0xf8d   :  { %5145 = vmatmul.msk.f32.vlgmr.msra.gmra.mxu2 %vm107_vm1, %v6503_v11 }
 0xf8e   :  { %2193 = vmatpush.msrb.mxu2 %v2173_v48 }
 0xf90   :  { %2327 = vmatpush.msra.mxu2 %v2307_v16 }
 0xf9d   :  { %2332 = vrot.lane.b32.xlu2 %v6339_v61, %s7566_s20 }
 0xfa0   :  { %2198 = vrot.lane.b32.xlu1 %v6339_v61, %s7565_s18 }
 0xfb6   :  { %v1899_v30 = vpop.xlane.xlu0 %1898 }
 0xfb7   :  { %5560 = vrcp.f32 %v1899_v30 }
 0xfbd   :  { %v5561_v8 = vpop.eup %5560 }
 0xfbe   :  { %v6511_v50 = vmul.f32 %v5561_v8, %v5545_v26 }
 0xfc0   :  { %5140 = vmatmul.msk.f32.vlgmr.msrb.gmra.mxu0 %vm107_vm1, %v6511_v50 }
 0xfc8   :  { %v2164_v54 = vpop.xlane.xlu2 %2163 }
 0xfc9   :  { %5562 = vrcp.f32 %v2164_v54  ;;  %v2065_v53 = vpop.permute.xlu0 %2064 }
 0xfca   :  { %2085 = vmatpush.msra.mxu0 %v2065_v53  ;;  %v1716_v53 = vadd.f32 %v6473_v63, %v1688_v35 }
 0xfcd   :  { %v1927_v2 = vpop.f32.mrf.mxu2 }
 0xfcf   :  { %v5563_v58 = vpop.eup %5562 }
 0xfd0   :  { %v6515_v9 = vmul.f32 %v5563_v58, %v5549_v7  ;;  %v2298_v62 = vpop.xlane.xlu2 %2297  ;;  %v1719_v58 = vadd.f32 %v1716_v53, %v6438_v31 }
 0xfd1   :  { %5564 = vrcp.f32 %v2298_v62  ;;  %v5353_v4 = vpop.permute.xlu0 %5352 }
 0xfd2   :  { %5151 = vmatmul.msk.f32.vlgmr.msrb.gmra.mxu2 %vm107_vm1, %v6515_v9  ;;  %v5355_v29 = vunpack.i.h.bf16 %v5353_v4  ;;  %v5354_v24 = vunpack.i.l.bf16 %v5353_v4 }
 0xfd4   :  { %2449 = vmatpush.msra.mxu3 %v5354_v24 }
 0xfd6   :  { %2450 = vmatpush.msra.mxu3 %v5355_v29 }
 0xfd7   :  { %v5565_v61 = vpop.eup %5564 }
 0xfd8   :  { %v6519_v22 = vmul.f32 %v5565_v61, %v5551_v10 }
 0xfda   :  { %7578 = vst [vmem:[#allocation4_spill] sm:$0xff] %v6519_v22  ;;  %5157 = vmatmul.msk.f32.vlgmr.msra.gmra.mxu2 %vm107_vm1, %v6519_v22 }
 0xfea   :  { %v2033_v26 = vpop.xlane.xlu1 %2032 }
 0xfeb   :  { %5566 = vrcp.f32 %v2033_v26 }
 0xff1   :  { %v5567_v13 = vpop.eup %5566 }
 0xff2   :  { %v6523_v44 = vmul.f32 %v5567_v13, %v5553_v18 }
 0xff4   :  { %5146 = vmatmul.msk.f32.vlgmr.msra.gmra.mxu0 %vm107_vm1, %v6523_v44 }
 0xff8   :  { %v2167_v7 = vpop.xlane.xlu2 %2166 }
 0xff9   :  { %5568 = vrcp.f32 %v2167_v7 }
 0xffa   :  { %v2301_v57 = vpop.xlane.xlu1 %2300 }
 0xffb   :  { %5570 = vrcp.f32 %v2301_v57 }
 0xfff   :  { %v5569_v41 = vpop.eup %5568 }
0x1000   :  { %v6528_v10 = vmul.f32 %v5569_v41, %v5555_v25  ;;  %v2333_v21 = vpop.permute.xlu2 %2332 }
0x1001   :  { %v5571_v18 = vpop.eup %5570 }
0x1002   :  { %v6536_v14 = vmul.f32 %v5571_v18, %v5557_v33  ;;  %v1713_v33 = vadd.f32 %v6471_v59, %v1688_v35  ;;  %v1723_v59 = vsel %vm74_vm0, %v1719_v58, 0.0 }
0x1004   :  { %v1718_v6 = vadd.f32 %v1713_v33, %v6431_v0 }
0x1006   :  { %v1720_v60 = vsel %vm74_vm0, %v1718_v6, 0.0 }
0x1010   :  { %v2061_v12 = vpop.f32.mrf.mxu2 }
0x1011   :  { %2360 = vrot.lane.b32.xlu0 %v2061_v12, %s7569_s5 }
0x1012   :  { %v2199_v16 = vpop.permute.xlu1 %2198 }
0x1013   :  { %2219 = vmatpush.msrb.mxu0 %v2199_v16 }
0x1014   :  { %5152 = vmatmul.msk.f32.vlgmr.msrb.gmra.mxu0 %vm107_vm1, %v6528_v10 }
0x1015   :  { %2353 = vmatpush.msra.mxu0 %v2333_v21 }
0x1019   :  { %5357 = vrot.lane.b32.xlu0 %v5356_v36, %s7567_s29 }
0x101c   :  { %5158 = vmatmul.msk.f32.vlgmr.msra.gmra.mxu0 %vm107_vm1, %v6536_v14 }
0x103d   :  { %v1953_v25 = vpop.f32.mrf.mxu0 }
0x1055   :  { %v2195_v40 = vpop.f32.mrf.mxu2 }
0x1056   :  { %2368 = vrot.lane.b32.xlu2 %v2195_v40, %s7570_s17 }
0x105d   :  { %v2329_v43 = vpop.f32.mrf.mxu2 }
0x105e   :  { %2376 = vrot.lane.b32.xlu1 %v2329_v43, %s7571_s28 }
0x1071   :  { %v2087_v32 = vpop.f32.mrf.mxu0 }
0x1072   :  { %2362 = vrot.lane.b32.xlu0 %v2087_v32, %s7569_s5 }
0x1083   :  { %v2361_v48 = vpop.permute.xlu0 %2360 }
0x1084   :  { %v2382_v62 = vsel %vm107_vm1, %v1927_v2, %v2361_v48  ;;  %v2414_v2 = vperm.slane %v6336_v56, 1 }
0x108b   :  { %v5358_v30 = vpop.permute.xlu0 %5357 }
0x108c   :  { %v5360_v8 = vunpack.i.h.bf16 %v5358_v30  ;;  %v5359_v54 = vunpack.i.l.bf16 %v5358_v30 }
0x108e   :  { %2451 = vmatpush.msra.mxu3 %v5359_v54  ;;  %v1779_v54 = vld [vmem:[%s7509_s8 + $0x38] sm:$0xff] }
0x1090   :  { %2452 = vmatpush.msra.mxu3 %v5360_v8 }
0x1091   :  { %v2221_v36 = vpop.f32.mrf.mxu0 }
0x1092   :  { %2370 = vrot.lane.b32.xlu2 %v2221_v36, %s7570_s17 }
0x1099   :  { %v2355_v47 = vpop.f32.mrf.mxu0 }
0x109a   :  { %2378 = vrot.lane.b32.xlu1 %v2355_v47, %s7571_s28 }
0x109c   :  { %1721 = vadd.xlane.f32.xlu0 %v1720_v60 }
0x10b0   :  { %v2369_v0 = vpop.permute.xlu2 %2368 }
0x10b1   :  { %v2384_v61 = vsel %vm665_vm2, %v2382_v62, %v2369_v0  ;;  %v1776_v0 = vld [vmem:[%s7509_s8 + $0x20] sm:$0xff] }
0x10c4   :  { %1724 = vadd.xlane.f32.xlu1 %v1723_v59 }
0x10d0   :  { %v2377_v26 = vpop.permute.xlu1 %2376 }
0x10d1   :  { %v2386_v13 = vsel %vm668_vm3, %v2384_v61, %v2377_v26  ;;  %v1773_v61 = vld [vmem:[%s7509_s8 + $0x8] sm:$0xff] }
0x10d2   :  { %5159 = vmatmul.msk.f32.vlgmr.msra.gmra.mxu3 %vm74_vm0, %v2386_v13  ;;  %v6604_v26 = vpack.i.bf16 %v1773_v61, %v1776_v0 }
0x10e4   :  { %v2363_v7 = vpop.permute.xlu0 %2362 }
0x10e5   :  { %v2383_v41 = vsel %vm107_vm1, %v1953_v25, %v2363_v7 }
0x10ec   :  { %v2371_v57 = vpop.permute.xlu2 %2370 }
0x10ed   :  { %v2385_v63 = vsel %vm665_vm2, %v2383_v41, %v2371_v57 }
0x110c   :  { %v2379_v31 = vpop.permute.xlu1 %2378 }
0x110d   :  { %v2387_v12 = vsel %vm668_vm3, %v2385_v63, %v2379_v31 }
0x110e   :  { %5160 = vmatmul.msk.f32.gmra.mxu3 %vm74_vm0, %v2387_v12 }
0x110f   :  { %v1722_v16 = vpop.xlane.xlu0 %1721 }
0x1110   :  { %v1726_v18 = vmul.f32 %v1722_v16, %v6036_v15 }
0x1112   :  { %v6568_v24 = vsub.f32 %v1718_v6, %v1726_v18 }
0x1114   :  { %v1730_v43 = vmul.f32 %v6568_v24, %v6568_v24 }
0x1116   :  { %v1732_v25 = vsel %vm74_vm0, %v1730_v43, 0.0 }
0x1137   :  { %v1725_v32 = vpop.xlane.xlu1 %1724 }
0x1138   :  { %v1727_v36 = vmul.f32 %v1725_v32, %v6036_v15 }
0x113a   :  { %v6576_v60 = vsub.f32 %v1719_v58, %v1727_v36 }
0x113c   :  { %v1731_v6 = vmul.f32 %v6576_v60, %v6576_v60 }
0x113e   :  { %v1735_v48 = vsel %vm74_vm0, %v1731_v6, 0.0 }
0x1155   :  { %v2454_v21 = vpop.f32.mrf.mxu3 }
0x1156   :  { %v2455_v4 = vadd.f32 %v2454_v21, %v2414_v2 }
0x1158   :  { %v2460_v29 = vadd.f32 %v2455_v4, %v6314_v28 }
0x115a   :  { %v2462_v40 = vsel %vm74_vm0, %v2460_v29, 0.0 }
0x115b   :  { %2463 = vadd.xlane.f32.xlu2 %v2462_v40 }
0x1163   :  { %1733 = vadd.xlane.f32.xlu2 %v1732_v25 }
0x1191   :  { %v2457_v35 = vpop.f32.mrf.mxu3 }
0x1192   :  { %v2458_v33 = vadd.f32 %v2457_v35, %v2414_v2 }
0x1194   :  { %v2461_v47 = vadd.f32 %v2458_v33, %v6324_v39  ;;  %v1782_v39 = vld [vmem:[%s7509_s8 + $0x50] sm:$0xff] }
0x1195   :  { %v6589_v53 = vpack.i.bf16 %v1779_v54, %v1782_v39  ;;  %2531 = vmatpush.msrb.mxu1 %v1782_v39 }
0x1196   :  { %v2465_v28 = vsel %vm74_vm0, %v2461_v47, 0.0 }
0x1197   :  { %2466 = vadd.xlane.f32.xlu0 %v2465_v28  ;;  %5362 = vrot.lane.b32.xlu2 %v6589_v53, %s7579_s25 }
0x1198   :  { %2532 = vmatpush.msrb.mxu1 %v1779_v54 }
0x119a   :  { %2533 = vmatpush.msrb.mxu1 %v1776_v0 }
0x119c   :  { %2534 = vmatpush.msrb.mxu1 %v1773_v61 }
0x119f   :  { %1736 = vadd.xlane.f32.xlu0 %v1735_v48 }
0x11ce   :  { %v2464_v30 = vpop.xlane.xlu2 %2463 }
0x11cf   :  { %v2468_v8 = vmul.f32 %v2464_v30, %v6036_v15 }
0x11d1   :  { %v6591_v58 = vsub.f32 %v2460_v29, %v2468_v8 }
0x11d3   :  { %v2472_v59 = vmul.f32 %v6591_v58, %v6591_v58 }
0x11d5   :  { %v2474_v62 = vsel %vm74_vm0, %v2472_v59, 0.0 }
0x11d6   :  { %2475 = vadd.xlane.f32.xlu1 %v2474_v62  ;;  %v1734_v31 = vpop.xlane.xlu2 %1733 }
0x11d7   :  { %v1738_v12 = vmul.f32 %v1734_v31, %v6036_v15 }
0x11d9   :  { %v1740_v2 = vadd.f32 1e-05, %v1738_v12 }
0x11db   :  { %5572 = vrsqrt.f32 %v1740_v2  ;;  %vm1748_vm14 = vweird.f32 %v1740_v2 }
0x11e1   :  { %v5573_v43 = vpop.eup %5572 }
0x11e2   :  { %v1743_v25 = vmul.f32 %v5573_v43, %v1740_v2  ;;  %vm1749_vm13 = vweird.f32 %v5573_v43 }
0x11e3   :  { %vm1750_vm15 = vmor %vm1748_vm14, %vm1749_vm13 }
0x11e4   :  { %v1744_v35 = vmul.f32 %v5573_v43, %v1743_v25 }
0x11e6   :  { %v1745_v28 = vmul.f32 0.5, %v1744_v35 }
0x11e8   :  { %v1746_v48 = vsub.f32 1.5, %v1745_v28 }
0x11ea   :  { %v1747_v39 = vmul.f32 %v5573_v43, %v1746_v48 }
0x11ec   :  { %v1751_v61 = vsel %vm1750_vm15, %v5573_v43, %v1747_v39  ;;  %v1767_v43 = vperm.slane %v6546_v34, 7 }
0x11ef   :  { %5367 = vrot.lane.b32.xlu1 %v6604_v26, %s7579_s25 }
0x11f1   :  { %v5363_v18 = vpop.permute.xlu2 %5362 }
0x11f2   :  { %v5364_v4 = vunpack.i.l.bf16 %v5363_v18  ;;  %v5365_v40 = vunpack.i.h.bf16 %v5363_v18  ;;  %v2509_v18 = vperm.slane %v6336_v56, 3 }
0x11f4   :  { %2577 = vmatpush.msrb.mxu2 %v5364_v4 }
0x11f6   :  { %2578 = vmatpush.msrb.mxu2 %v5365_v40 }
0x120a   :  { %v2467_v13 = vpop.xlane.xlu0 %2466 }
0x120b   :  { %v2469_v7 = vmul.f32 %v2467_v13, %v6036_v15 }
0x120d   :  { %v6609_v57 = vsub.f32 %v2461_v47, %v2469_v7 }
0x120f   :  { %v2473_v41 = vmul.f32 %v6609_v57, %v6609_v57 }
0x1211   :  { %v2477_v63 = vsel %vm74_vm0, %v2473_v41, 0.0  ;;  %v1764_v41 = vperm.slane %v6546_v34, 6 }
0x1212   :  { %2478 = vadd.xlane.f32.xlu0 %v2477_v63  ;;  %v1737_v16 = vpop.xlane.xlu0 %1736  ;;  %v1762_v63 = vmul.f32 %v1751_v61, %v6568_v24 }
0x1213   :  { %v1739_v21 = vmul.f32 %v1737_v16, %v6036_v15  ;;  %v2506_v16 = vperm.slane %v6336_v56, 2 }
0x1214   :  { %v1765_v4 = vmul.f32 %v1764_v41, %v1762_v63  ;;  %v2542_v63 = vperm.slane %v6336_v56, 5 }
0x1215   :  { %v1741_v29 = vadd.f32 1e-05, %v1739_v21 }
0x1217   :  { %5574 = vrsqrt.f32 %v1741_v29  ;;  %vm1758_vm8 = vweird.f32 %v1741_v29 }
0x121d   :  { %v5575_v33 = vpop.eup %5574 }
0x121e   :  { %v1753_v6 = vmul.f32 %v5575_v33, %v1741_v29  ;;  %vm1759_vm6 = vweird.f32 %v5575_v33 }
0x121f   :  { %vm1760_vm9 = vmor %vm1758_vm8, %vm1759_vm6 }
0x1220   :  { %v1754_v30 = vmul.f32 %v5575_v33, %v1753_v6 }
0x1222   :  { %v1755_v59 = vmul.f32 0.5, %v1754_v30 }
0x1224   :  { %v1756_v13 = vsub.f32 1.5, %v1755_v59 }
0x1226   :  { %v1757_v12 = vmul.f32 %v5575_v33, %v1756_v13  ;;  %v2512_v13 = vperm.slane %v6336_v56, 4 }
0x1228   :  { %v1761_v35 = vsel %vm1760_vm9, %v5575_v33, %v1757_v12 }
0x1229   :  { %v1763_v29 = vmul.f32 %v1761_v35, %v6576_v60 }
0x1249   :  { %v2476_v32 = vpop.xlane.xlu1 %2475 }
0x124a   :  { %v2480_v36 = vmul.f32 %v2476_v32, %v6036_v15 }
0x124c   :  { %v2482_v47 = vadd.f32 1e-05, %v2480_v36 }
0x124e   :  { %5576 = vrsqrt.f32 %v2482_v47  ;;  %vm2490_vm5 = vweird.f32 %v2482_v47 }
0x1254   :  { %v5577_v8 = vpop.eup %5576 }
0x1255   :  { %v2485_v54 = vmul.f32 %v5577_v8, %v2482_v47  ;;  %vm2491_vm4 = vweird.f32 %v5577_v8  ;;  %v6625_v47 = vadd.f32 %v1767_v43, %v1765_v4 }
0x1256   :  { %vm2492_vm7 = vmor %vm2490_vm5, %vm2491_vm4 }
0x1257   :  { %v2486_v0 = vmul.f32 %v5577_v8, %v2485_v54 }
0x1259   :  { %v2487_v62 = vmul.f32 0.5, %v2486_v0 }
0x125b   :  { %v2488_v7 = vsub.f32 1.5, %v2487_v62 }
0x125d   :  { %v2489_v31 = vmul.f32 %v5577_v8, %v2488_v7 }
0x125f   :  { %v2493_v21 = vsel %vm2492_vm7, %v5577_v8, %v2489_v31 }
0x1260   :  { %v2504_v2 = vmul.f32 %v2493_v21, %v6591_v58  ;;  %v1766_v58 = vmul.f32 %v1764_v41, %v1763_v29 }
0x1261   :  { %v5368_v40 = vpop.permute.xlu1 %5367 }
0x1262   :  { %v2507_v25 = vmul.f32 %v2506_v16, %v2504_v2  ;;  %v5370_v24 = vunpack.i.h.bf16 %v5368_v40  ;;  %v5369_v32 = vunpack.i.l.bf16 %v5368_v40  ;;  %v6632_v34 = vadd.f32 %v1767_v43, %v1766_v58 }
0x1264   :  { %2579 = vmatpush.msrb.mxu2 %v5369_v32  ;;  %v6623_v36 = vadd.f32 %v2509_v18, %v2507_v25 }
0x1266   :  { %5161 = vmatmul.msk.f32.vlgmr.msrb.gmra.mxu1 %vm74_vm0, %v6623_v36  ;;  %2580 = vmatpush.msrb.mxu2 %v5370_v24  ;;  %v52_v24 = vld [vmem:[%s7513_s4] sm:$0xff] }
0x1267   :  { %5163 = vmatmul.msk.f32.vlgmr.msrb.gmra.mxu2 %vm74_vm0, %v6625_v47 }
0x126f   :  { %5164 = vmatmul.msk.f32.gmra.mxu2 %vm74_vm0, %v6632_v34 }
0x1285   :  { %v2479_v33 = vpop.xlane.xlu0 %2478 }
0x1286   :  { %v2481_v28 = vmul.f32 %v2479_v33, %v6036_v15 }
0x1288   :  { %v2483_v6 = vadd.f32 1e-05, %v2481_v28 }
0x128a   :  { %5578 = vrsqrt.f32 %v2483_v6  ;;  %vm2500_vm12 = vweird.f32 %v2483_v6 }
0x1290   :  { %v5579_v48 = vpop.eup %5578 }
0x1291   :  { %v2495_v60 = vmul.f32 %v5579_v48, %v2483_v6  ;;  %vm2501_vm10 = vweird.f32 %v5579_v48 }
0x1292   :  { %vm2502_vm13 = vmor %vm2500_vm12, %vm2501_vm10 }
0x1293   :  { %v2496_v30 = vmul.f32 %v5579_v48, %v2495_v60 }
0x1295   :  { %v2497_v8 = vmul.f32 0.5, %v2496_v30 }
0x1297   :  { %v2498_v54 = vsub.f32 1.5, %v2497_v8  ;;  %v53_v8 = vld [vmem:[%s7513_s4 + $0x8] sm:$0xff] }
0x1299   :  { %v2499_v39 = vmul.f32 %v5579_v48, %v2498_v54 }
0x129b   :  { %v2503_v59 = vsel %vm2502_vm13, %v5579_v48, %v2499_v39 }
0x129c   :  { %v2505_v0 = vmul.f32 %v2503_v59, %v6609_v57 }
0x129e   :  { %v2508_v62 = vmul.f32 %v2506_v16, %v2505_v0 }
0x12a0   :  { %v6638_v61 = vadd.f32 %v2509_v18, %v2508_v62 }
0x12a2   :  { %5162 = vmatmul.msk.f32.gmra.mxu1 %vm74_vm0, %v6638_v61 }
0x12e3   :  { %v2536_v7 = vpop.f32.mrf.mxu1 }
0x12e4   :  { %v2537_v41 = vadd.f32 %v2536_v7, %v2512_v13 }
0x12e6   :  { %2718 = vrot.lane.b32.xlu2 %v2537_v41, %s7580_s21 }
0x12ea   :  { %v2582_v31 = vpop.f32.mrf.mxu2 }
0x12eb   :  { %v6645_v12 = vadd.f32 %v2582_v31, %v2542_v63 }
0x12ed   :  { %2854 = vrot.lane.b32.xlu1 %v6645_v12, %s7581_s11  ;;  %2720 = vrot.lane.b32.xlu0 %v6645_v12, %s7580_s21 }
0x12ee   :  { %5165 = vmatpush.xpose.msk.msrb.mxu0 %vm107_vm1, %v6645_v12  ;;  %2988 = vrot.lane.b32.xlu2 %v6645_v12, %s7574_s27 }
0x12f1   :  { %5166 = vmatmul.msk.f32.vlgmr.msrb.gmra.mxu0 %vm107_vm1, %v2537_v41 }
0x12f2   :  { %v2585_v57 = vpop.f32.mrf.mxu2 }
0x12f3   :  { %v6656_v16 = vadd.f32 %v2585_v57, %v2542_v63 }
0x12f5   :  { %2986 = vrot.lane.b32.xlu1 %v2537_v41, %s7574_s27  ;;  %2852 = vrot.lane.b32.xlu0 %v2537_v41, %s7581_s11 }
0x12f6   :  { %5167 = vmatpush.xpose.msk.msra.mxu0 %vm107_vm1, %v6656_v16 }
0x12fd   :  { %2882 = vrot.lane.b32.xlu1 %v6656_v16, %s7581_s11  ;;  %2748 = vrot.lane.b32.xlu0 %v6656_v16, %s7580_s21 }
0x131f   :  { %v2539_v56 = vpop.f32.mrf.mxu1 }
0x1320   :  { %v2540_v21 = vadd.f32 %v2539_v56, %v2512_v13 }
0x1322   :  { %2746 = vrot.lane.b32.xlu2 %v2540_v21, %s7580_s21  ;;  %3014 = vrot.lane.b32.xlu1 %v2540_v21, %s7574_s27 }
0x1323   :  { %2880 = vrot.lane.b32.xlu0 %v2540_v21, %s7581_s11  ;;  %5168 = vmatmul.msk.f32.vlgmr.msra.gmra.mxu0 %vm107_vm1, %v2540_v21 }
0x132a   :  { %3016 = vrot.lane.b32.xlu2 %v6656_v16, %s7574_s27 }
0x1340   :  { %v2719_v2 = vpop.permute.xlu2 %2718 }
0x1348   :  { %v2989_v40 = vpop.permute.xlu2 %2988 }
0x135f   :  { %v2855_v18 = vpop.permute.xlu1 %2854  ;;  %v2721_v4 = vpop.permute.xlu0 %2720 }
0x1360   :  { %5171 = vmatpush.xpose.msk.msra.mxu2 %vm107_vm1, %v2721_v4 }
0x1363   :  { %5172 = vmatmul.msk.f32.vlgmr.msra.gmra.mxu2 %vm107_vm1, %v2719_v2 }
0x1364   :  { %5177 = vmatpush.xpose.msk.msrb.mxu2 %vm107_vm1, %v2855_v18 }
0x1367   :  { %v2987_v43 = vpop.permute.xlu1 %2986  ;;  %v2853_v25 = vpop.permute.xlu0 %2852 }
0x1368   :  { %5183 = vmatpush.xpose.msk.msra.mxu2 %vm107_vm1, %v2989_v40 }
0x136b   :  { %5178 = vmatmul.msk.f32.vlgmr.msrb.gmra.mxu2 %vm107_vm1, %v2853_v25 }
0x136e   :  { %v2611_v32 = vpop.f32.mrf.mxu0 }
0x136f   :  { %v2640_v35 = vmul.f32 0.35355338, %v2611_v32  ;;  %v2883_v29 = vpop.permute.xlu1 %2882  ;;  %v2749_v58 = vpop.permute.xlu0 %2748 }
0x1370   :  { %5173 = vmatpush.xpose.msk.msrb.mxu0 %vm107_vm1, %v2749_v58 }
0x1371   :  { %v2642_v33 = vadd.f32 %v2640_v35, %v52_v24 }
0x1373   :  { %5184 = vmatmul.msk.f32.vlgmr.msra.gmra.mxu2 %vm107_vm1, %v2987_v43  ;;  %v2644_v28 = vsel %vm107_vm1, %v2642_v33, -inf }
0x1374   :  { %5179 = vmatpush.xpose.msk.msra.mxu0 %vm107_vm1, %v2883_v29  ;;  %2645 = vmax.xlane.f32.xlu0 %v2644_v28 }
0x137c   :  { %v2747_v6 = vpop.permute.xlu2 %2746 }
0x137d   :  { %5174 = vmatmul.msk.f32.vlgmr.msrb.gmra.mxu0 %vm107_vm1, %v2747_v6 }
0x1384   :  { %v3017_v48 = vpop.permute.xlu2 %3016 }
0x1385   :  { %5185 = vmatpush.xpose.msk.msrb.mxu0 %vm107_vm1, %v3017_v48 }
0x1394   :  { %v3015_v30 = vpop.permute.xlu1 %3014 }
0x1395   :  { %v2881_v60 = vpop.permute.xlu0 %2880 }
0x1396   :  { %5180 = vmatmul.msk.f32.vlgmr.msra.gmra.mxu0 %vm107_vm1, %v2881_v60 }
0x139e   :  { %5186 = vmatmul.msk.f32.vlgmr.msrb.gmra.mxu0 %vm107_vm1, %v3015_v30 }
0x13a0   :  { %v2637_v54 = vpop.f32.mrf.mxu0 }
0x13a1   :  { %v2641_v39 = vmul.f32 0.35355338, %v2637_v54 }
0x13a3   :  { %v2643_v59 = vadd.f32 %v2641_v39, %v53_v8 }
0x13a5   :  { %v2647_v0 = vsel %vm107_vm1, %v2643_v59, -inf }
0x13a6   :  { %2648 = vmax.xlane.f32.xlu1 %v2647_v0 }
0x13e6   :  { %v2743_v62 = vpop.f32.mrf.mxu2 }
0x13e7   :  { %v2774_v13 = vmul.f32 0.35355338, %v2743_v62  ;;  %v2646_v7 = vpop.xlane.xlu0 %2645 }
0x13e8   :  { %v2650_v41 = vsub.f32 %v2642_v33, %v2646_v7 }
0x13e9   :  { %v2776_v63 = vadd.f32 %v2774_v13, %v52_v24 }
0x13ea   :  { %v2652_v31 = vmul.f32 1.442695, %v2650_v41 }
0x13eb   :  { %v2778_v57 = vsel %vm107_vm1, %v2776_v63, -inf }
0x13ec   :  { %5580 = vpow2.f32 %v2652_v31  ;;  %2779 = vmax.xlane.f32.xlu2 %v2778_v57 }
0x13ee   :  { %v2877_v56 = vpop.f32.mrf.mxu2 }
0x13ef   :  { %v2908_v21 = vmul.f32 0.35355338, %v2877_v56 }
0x13f1   :  { %v2910_v2 = vadd.f32 %v2908_v21, %v52_v24 }
0x13f2   :  { %v6693_v18 = vpop.eup %5580 }
0x13f3   :  { %v2656_v4 = vsel %vm107_vm1, %v6693_v18, 0.0  ;;  %v2912_v40 = vsel %vm107_vm1, %v2910_v2, -inf }
0x13f4   :  { %2657 = vadd.xlane.f32.xlu1 %v2656_v4  ;;  %2913 = vmax.xlane.f32.xlu2 %v2912_v40 }
0x13f6   :  { %v3011_v43 = vpop.f32.mrf.mxu2 }
0x13f7   :  { %v3042_v25 = vmul.f32 0.35355338, %v3011_v43 }
0x13f9   :  { %v3044_v32 = vadd.f32 %v3042_v25, %v52_v24 }
0x13fa   :  { %v2771_v35 = vpop.f32.mrf.mxu0 }
0x13fb   :  { %v2775_v29 = vmul.f32 0.35355338, %v2771_v35  ;;  %v3046_v58 = vsel %vm107_vm1, %v3044_v32, -inf }
0x13fc   :  { %3047 = vmax.xlane.f32.xlu1 %v3046_v58 }
0x13fd   :  { %v2777_v33 = vadd.f32 %v2775_v29, %v53_v8 }
0x13ff   :  { %v2781_v28 = vsel %vm107_vm1, %v2777_v33, -inf }
0x1400   :  { %2782 = vmax.xlane.f32.xlu0 %v2781_v28 }
0x1413   :  { %v2905_v6 = vpop.f32.mrf.mxu0 }
0x1414   :  { %v2909_v48 = vmul.f32 0.35355338, %v2905_v6 }
0x1416   :  { %v2911_v60 = vadd.f32 %v2909_v48, %v53_v8 }
0x1418   :  { %v2915_v30 = vsel %vm107_vm1, %v2911_v60, -inf }
0x1419   :  { %2916 = vmax.xlane.f32.xlu2 %v2915_v30  ;;  %v2649_v54 = vpop.xlane.xlu1 %2648 }
0x141a   :  { %v2651_v39 = vsub.f32 %v2643_v59, %v2649_v54  ;;  %v5371_v59 = vpack.i.bf16 %v6656_v16, %v6645_v12 }
0x141b   :  { %v3039_v0 = vpop.f32.mrf.mxu0 }
0x141c   :  { %v2654_v62 = vmul.f32 1.442695, %v2651_v39  ;;  %v3043_v24 = vmul.f32 0.35355338, %v3039_v0 }
0x141e   :  { %5582 = vpow2.f32 %v2654_v62  ;;  %v6701_v13 = vadd.f32 %v3043_v24, %v53_v8 }
0x1420   :  { %v3049_v7 = vsel %vm107_vm1, %v6701_v13, -inf }
0x1421   :  { %3050 = vmax.xlane.f32.xlu0 %v3049_v7 }
0x1424   :  { %v5583_v41 = vpop.eup %5582 }
0x1425   :  { %v2659_v31 = vsel %vm107_vm1, %v5583_v41, 0.0 }
0x1426   :  { %2660 = vadd.xlane.f32.xlu1 %v2659_v31 }
0x1431   :  { %2934 = vrot.lane.b32.xlu2 %v6645_v12, %s7573_s26 }
0x1435   :  { %5372 = vrot.lane.b32.xlu0 %v5371_v59, %s7579_s25 }
0x143f   :  { %5377 = vrot.lane.b32.xlu1 %v5371_v59, %s7572_s2 }
0x145f   :  { %v2780_v8 = vpop.xlane.xlu2 %2779 }
0x1460   :  { %v2784_v57 = vsub.f32 %v2776_v63, %v2780_v8 }
0x1462   :  { %v2786_v56 = vmul.f32 1.442695, %v2784_v57 }
0x1464   :  { %5584 = vpow2.f32 %v2786_v56 }
0x1467   :  { %v2658_v21 = vpop.xlane.xlu1 %2657  ;;  %v2914_v4 = vpop.xlane.xlu2 %2913 }
0x1468   :  { %v2918_v40 = vsub.f32 %v2910_v2, %v2914_v4 }
0x146a   :  { %v6712_v43 = vpop.eup %5584  ;;  %v2920_v25 = vmul.f32 1.442695, %v2918_v40 }
0x146b   :  { %v2790_v35 = vsel %vm107_vm1, %v6712_v43, 0.0 }
0x146c   :  { %5586 = vpow2.f32 %v2920_v25  ;;  %2791 = vadd.xlane.f32.xlu2 %v2790_v35 }
0x146f   :  { %v3048_v29 = vpop.xlane.xlu1 %3047 }
0x1470   :  { %v3052_v58 = vsub.f32 %v3044_v32, %v3048_v29 }
0x1472   :  { %v5587_v28 = vpop.eup %5586  ;;  %v3054_v6 = vmul.f32 1.442695, %v3052_v58 }
0x1473   :  { %v2783_v48 = vpop.xlane.xlu0 %2782  ;;  %v2924_v63 = vsel %vm107_vm1, %v5587_v28, 0.0 }
0x1474   :  { %5588 = vpow2.f32 %v3054_v6  ;;  %v2785_v30 = vsub.f32 %v2777_v33, %v2783_v48  ;;  %2925 = vadd.xlane.f32.xlu2 %v2924_v63 }
0x1476   :  { %v2788_v54 = vmul.f32 1.442695, %v2785_v30 }
0x1478   :  { %5590 = vpow2.f32 %v2788_v54 }
0x147a   :  { %v5589_v2 = vpop.eup %5588 }
0x147b   :  { %v3058_v39 = vsel %vm107_vm1, %v5589_v2, 0.0 }
0x147c   :  { %3059 = vadd.xlane.f32.xlu0 %v3058_v39 }
0x147e   :  { %v5591_v0 = vpop.eup %5590 }
0x147f   :  { %v2793_v62 = vsel %vm107_vm1, %v5591_v0, 0.0 }
0x1480   :  { %2794 = vadd.xlane.f32.xlu2 %v2793_v62 }
0x148c   :  { %v2917_v24 = vpop.xlane.xlu2 %2916 }
0x148d   :  { %v2919_v32 = vsub.f32 %v2911_v60, %v2917_v24 }
0x148f   :  { %v2922_v7 = vmul.f32 1.442695, %v2919_v32 }
0x1490   :  { %2960 = vrot.lane.b32.xlu0 %v6656_v16, %s7573_s26 }
0x1491   :  { %5592 = vpow2.f32 %v2922_v7 }
0x1492   :  { %5594 = vrcp.f32 %v2658_v21 }
0x1494   :  { %v3051_v8 = vpop.xlane.xlu0 %3050  ;;  %v2935_v6 = vpop.permute.xlu2 %2934 }
0x1497   :  { %v5593_v31 = vpop.eup %5592 }
0x1498   :  { %3068 = vrot.lane.b32.xlu2 %v6645_v12, %s7575_s22  ;;  %v2927_v33 = vsel %vm107_vm1, %v5593_v31, 0.0  ;;  %v5595_v57 = vpop.eup %5594  ;;  %v3053_v12 = vsub.f32 %v6701_v13, %v3051_v8  ;;  %5382 = vrot.lane.b32.xlu0 %v6589_v53, %s7567_s29 }
0x1499   :  { %2928 = vadd.xlane.f32.xlu1 %v2927_v33  ;;  %v2661_v59 = vpop.xlane.xlu1 %2660  ;;  %v6725_v25 = vmul.f32 %v5595_v57, %v6693_v18 }
0x149a   :  { %5596 = vrcp.f32 %v2661_v59  ;;  %v3056_v18 = vmul.f32 1.442695, %v3053_v12 }
0x149c   :  { %5598 = vpow2.f32 %v3056_v18 }
0x14a0   :  { %v5597_v56 = vpop.eup %5596 }
0x14a1   :  { %v6727_v35 = vmul.f32 %v5597_v56, %v5583_v41 }
0x14a2   :  { %v5599_v41 = vpop.eup %5598 }
0x14a3   :  { %7582 = vst [vmem:[#allocation5_spill] sm:$0xff] %v6727_v35  ;;  %v3061_v48 = vsel %vm107_vm1, %v5599_v41, 0.0 }
0x14a7   :  { %v5373_v4 = vpop.permute.xlu0 %5372 }
0x14a8   :  { %v5375_v60 = vunpack.i.h.bf16 %v5373_v4  ;;  %v5374_v40 = vunpack.i.l.bf16 %v5373_v4 }
0x14aa   :  { %2687 = vmatpush.msrb.mxu3 %v5374_v40  ;;  %2713 = vmatpush.msra.mxu1 %v5375_v60 }
0x14ab   :  { %5169 = vmatmul.msk.f32.vlgmr.msrb.gmra.mxu3 %vm107_vm1, %v6725_v25  ;;  %5170 = vmatmul.msk.f32.vlgmr.msra.gmra.mxu1 %vm107_vm1, %v6727_v35 }
0x14b1   :  { %v5378_v21 = vpop.permute.xlu1 %5377 }
0x14b2   :  { %v5380_v29 = vunpack.i.h.bf16 %v5378_v21  ;;  %v5379_v58 = vunpack.i.l.bf16 %v5378_v21  ;;  %3094 = vrot.lane.b32.xlu1 %v6656_v16, %s7575_s22 }
0x14b4   :  { %2821 = vmatpush.msra.mxu3 %v5379_v58  ;;  %2847 = vmatpush.msrb.mxu1 %v5380_v29 }
0x14b6   :  { %2955 = vmatpush.msrb.mxu3 %v2935_v6 }
0x14c1   :  { %3062 = vadd.xlane.f32.xlu2 %v3061_v48 }
0x14d9   :  { %5387 = vrot.lane.b32.xlu2 %v6604_v26, %s7567_s29 }
0x14df   :  { %v2792_v63 = vpop.xlane.xlu2 %2791 }
0x14e0   :  { %5600 = vrcp.f32 %v2792_v63 }
0x14e6   :  { %v5601_v30 = vpop.eup %5600 }
0x14e7   :  { %v6738_v13 = vmul.f32 %v5601_v30, %v6712_v43  ;;  %v2926_v54 = vpop.xlane.xlu2 %2925 }
0x14e8   :  { %5602 = vrcp.f32 %v2926_v54 }
0x14e9   :  { %5175 = vmatmul.msk.f32.vlgmr.msra.gmra.mxu3 %vm107_vm1, %v6738_v13 }
0x14ee   :  { %v5603_v16 = vpop.eup %5602 }
0x14ef   :  { %v6742_v39 = vmul.f32 %v5603_v16, %v5587_v28  ;;  %v3060_v62 = vpop.xlane.xlu0 %3059 }
0x14f0   :  { %5604 = vrcp.f32 %v3060_v62 }
0x14f1   :  { %5181 = vmatmul.msk.f32.vlgmr.msrb.gmra.mxu3 %vm107_vm1, %v6742_v39 }
0x14f3   :  { %v2795_v24 = vpop.xlane.xlu2 %2794 }
0x14f4   :  { %5606 = vrcp.f32 %v2795_v24 }
0x14f6   :  { %v5605_v32 = vpop.eup %5604 }
0x14f7   :  { %v6746_v33 = vmul.f32 %v5605_v32, %v5589_v2 }
0x14fa   :  { %v5607_v7 = vpop.eup %5606 }
0x14fb   :  { %v6748_v43 = vmul.f32 %v5607_v7, %v5591_v0  ;;  %v3069_v59 = vpop.permute.xlu2 %3068 }
0x14fc   :  { %3089 = vmatpush.msra.mxu3 %v3069_v59 }
0x14fd   :  { %5176 = vmatmul.msk.f32.vlgmr.msrb.gmra.mxu1 %vm107_vm1, %v6748_v43  ;;  %5187 = vmatmul.msk.f32.vlgmr.msra.gmra.mxu3 %vm107_vm1, %v6746_v33 }
0x1502   :  { %v2961_v28 = vpop.permute.xlu0 %2960 }
0x1503   :  { %2981 = vmatpush.msra.mxu1 %v2961_v28 }
0x150a   :  { %v5383_v18 = vpop.permute.xlu0 %5382 }
0x150b   :  { %v5385_v6 = vunpack.i.h.bf16 %v5383_v18 }
0x150c   :  { %v2929_v8 = vpop.xlane.xlu1 %2928 }
0x150d   :  { %5608 = vrcp.f32 %v2929_v8 }
0x1513   :  { %v5609_v57 = vpop.eup %5608 }
0x1514   :  { %v6754_v56 = vmul.f32 %v5609_v57, %v5593_v31 }
0x1516   :  { %5182 = vmatmul.msk.f32.vlgmr.msra.gmra.mxu1 %vm107_vm1, %v6754_v56 }
0x1524   :  { %v3095_v2 = vpop.permute.xlu1 %3094 }
0x1525   :  { %3115 = vmatpush.msrb.mxu1 %v3095_v2 }
0x1528   :  { %v2715_v31 = vpop.f32.mrf.mxu1 }
0x152e   :  { %v2689_v40 = vpop.f32.mrf.mxu3 }
0x1534   :  { %v3063_v0 = vpop.xlane.xlu2 %3062 }
0x1535   :  { %5610 = vrcp.f32 %v3063_v0 }
0x153b   :  { %v5611_v4 = vpop.eup %5610 }
0x153c   :  { %v6760_v60 = vmul.f32 %v5611_v4, %v5599_v41  ;;  %v5384_v41 = vunpack.i.l.bf16 %v5383_v18  ;;  %v5388_v63 = vpop.permute.xlu2 %5387  ;;  %v6783_v4 = vld [vmem:[%s7511_s10] sm:$0xff] }
0x153d   :  { %v5390_v30 = vunpack.i.h.bf16 %v5388_v63  ;;  %v5389_v26 = vunpack.i.l.bf16 %v5388_v63 }
0x153e   :  { %7583 = vst [vmem:[#allocation6_spill] sm:$0xff] %v6760_v60  ;;  %5188 = vmatmul.msk.f32.vlgmr.msrb.gmra.mxu1 %vm107_vm1, %v6760_v60  ;;  %3207 = vmatpush.msrb.mxu2 %v5384_v41 }
0x1540   :  { %3208 = vmatpush.msrb.mxu2 %v5385_v6 }
0x1542   :  { %3209 = vmatpush.msrb.mxu2 %v5389_v26 }
0x1544   :  { %3210 = vmatpush.msrb.mxu2 %v5390_v30 }
0x156c   :  { %v2823_v12 = vpop.f32.mrf.mxu3 }
0x156d   :  { %3122 = vrot.lane.b32.xlu0 %v2823_v12, %s7569_s5 }
0x1574   :  { %v2957_v21 = vpop.f32.mrf.mxu3 }
0x1575   :  { %3130 = vrot.lane.b32.xlu0 %v2957_v21, %s7570_s17 }
0x157a   :  { %v2849_v53 = vpop.f32.mrf.mxu1 }
0x157d   :  { %3124 = vrot.lane.b32.xlu0 %v2849_v53, %s7569_s5 }
0x1580   :  { %v3091_v29 = vpop.f32.mrf.mxu3 }
0x1581   :  { %3138 = vrot.lane.b32.xlu1 %v3091_v29, %s7571_s28 }
0x1593   :  { %v2983_v58 = vpop.f32.mrf.mxu1 }
0x1594   :  { %3132 = vrot.lane.b32.xlu1 %v2983_v58, %s7570_s17 }
0x15bb   :  { %v3117_v48 = vpop.f32.mrf.mxu1 }
0x15bc   :  { %3140 = vrot.lane.b32.xlu0 %v3117_v48, %s7571_s28 }
0x15df   :  { %v3123_v54 = vpop.permute.xlu0 %3122 }
0x15e0   :  { %v3144_v62 = vsel %vm107_vm1, %v2689_v40, %v3123_v54  ;;  %v3176_v40 = vperm.slane %v6783_v4, 6 }
0x15e7   :  { %v3131_v16 = vpop.permute.xlu0 %3130 }
0x15e8   :  { %v3146_v24 = vsel %vm665_vm2, %v3144_v62, %v3131_v16 }
0x15ef   :  { %v3125_v59 = vpop.permute.xlu0 %3124 }
0x15f0   :  { %v3145_v8 = vsel %vm107_vm1, %v2715_v31, %v3125_v59  ;;  %v1774_v59 = vld [vmem:[%s7509_s8 + $0x10] sm:$0xff] }
0x15f3   :  { %v3139_v32 = vpop.permute.xlu1 %3138 }
0x15f4   :  { %v3148_v7 = vsel %vm668_vm3, %v3146_v24, %v3139_v32  ;;  %v1780_v32 = vld [vmem:[%s7509_s8 + $0x40] sm:$0xff] }
0x15f5   :  { %5189 = vmatmul.msk.f32.vlgmr.msrb.gmra.mxu2 %vm74_vm0, %v3148_v7  ;;  %v1777_v7 = vld [vmem:[%s7509_s8 + $0x28] sm:$0xff] }
0x1606   :  { %v3133_v28 = vpop.permute.xlu1 %3132 }
0x1607   :  { %v3147_v57 = vsel %vm665_vm2, %v3145_v8, %v3133_v28 }
0x162e   :  { %v3141_v2 = vpop.permute.xlu0 %3140 }
0x162f   :  { %v3149_v0 = vsel %vm668_vm3, %v3147_v57, %v3141_v2 }
0x1630   :  { %5190 = vmatmul.msk.f32.gmra.mxu2 %vm74_vm0, %v3149_v0 }
0x1678   :  { %v3212_v12 = vpop.f32.mrf.mxu2 }
0x1679   :  { %v3213_v21 = vadd.f32 %v3212_v12, %v3176_v40 }
0x167b   :  { %v3218_v53 = vadd.f32 %v3213_v21, %v6623_v36 }
0x167d   :  { %v3220_v31 = vsel %vm74_vm0, %v3218_v53, 0.0 }
0x167e   :  { %3221 = vadd.xlane.f32.xlu1 %v3220_v31  ;;  %v6810_v31 = vld [vmem:[%s7511_s10 + $0x8] sm:$0xff] }
0x16b3   :  { %v3215_v29 = vpop.f32.mrf.mxu2 }
0x16b4   :  { %v3216_v58 = vadd.f32 %v3215_v29, %v3176_v40  ;;  %v3264_v29 = vperm.slane %v6783_v4, 7  ;;  %v1789_v4 = vld [vmem:[%s7514_s9 + $0x28] sm:$0xff] }
0x16b6   :  { %v3219_v18 = vadd.f32 %v3216_v58, %v6638_v61  ;;  %v1783_v61 = vld [vmem:[%s7509_s8 + $0x58] sm:$0xff] }
0x16b7   :  { %3289 = vmatpush.msra.mxu0 %v1783_v61 }
0x16b8   :  { %v3223_v6 = vsel %vm74_vm0, %v3219_v18, 0.0 }
0x16b9   :  { %3224 = vadd.xlane.f32.xlu2 %v3223_v6  ;;  %3290 = vmatpush.msra.mxu0 %v1780_v32  ;;  %v3267_v6 = vperm.slane %v6810_v31, 0 }
0x16bb   :  { %3291 = vmatpush.msra.mxu0 %v1777_v7 }
0x16bd   :  { %3292 = vmatpush.msra.mxu0 %v1774_v59 }
0x16f1   :  { %v3222_v41 = vpop.xlane.xlu1 %3221 }
0x16f2   :  { %v3226_v48 = vmul.f32 %v3222_v41, %v6036_v15 }
0x16f4   :  { %v3228_v63 = vsub.f32 %v3218_v53, %v3226_v48 }
0x16f6   :  { %v3230_v30 = vmul.f32 %v3228_v63, %v3228_v63 }
0x16f8   :  { %v3232_v26 = vsel %vm74_vm0, %v3230_v30, 0.0  ;;  %v1791_v30 = vld [vmem:[%s7514_s9 + $0x38] sm:$0xff] }
0x16f9   :  { %3233 = vadd.xlane.f32.xlu0 %v3232_v26  ;;  %v1790_v26 = vld [vmem:[%s7514_s9 + $0x30] sm:$0xff]  ;;  %3317 = vmatpush.msrb.mxu3 %v1791_v30 }
0x16fb   :  { %3318 = vmatpush.msrb.mxu3 %v1790_v26  ;;  %v3302_v26 = vperm.slane %v6810_v31, 2 }
0x16fd   :  { %3319 = vmatpush.msrb.mxu3 %v1789_v4 }
0x172c   :  { %v3225_v54 = vpop.xlane.xlu2 %3224 }
0x172d   :  { %v3227_v36 = vmul.f32 %v3225_v54, %v6036_v15 }
0x172f   :  { %v3229_v16 = vsub.f32 %v3219_v18, %v3227_v36  ;;  %v1788_v36 = vld [vmem:[%s7514_s9 + $0x20] sm:$0xff] }
0x1730   :  { %3320 = vmatpush.msrb.mxu3 %v1788_v36 }
0x1731   :  { %v3231_v62 = vmul.f32 %v3229_v16, %v3229_v16 }
0x1733   :  { %v3235_v24 = vsel %vm74_vm0, %v3231_v62, 0.0 }
0x1734   :  { %3236 = vadd.xlane.f32.xlu1 %v3235_v24  ;;  %v1787_v24 = vld [vmem:[%s7514_s9 + $0x18] sm:$0xff] }
0x1735   :  { %3321 = vmatpush.msrb.mxu3 %v1787_v24 }
0x176c   :  { %v3234_v28 = vpop.xlane.xlu0 %3233 }
0x176d   :  { %v3238_v8 = vmul.f32 %v3234_v28, %v6036_v15 }
0x176f   :  { %v3240_v57 = vadd.f32 1e-05, %v3238_v8 }
0x1771   :  { %5612 = vrsqrt.f32 %v3240_v57  ;;  %vm3248_vm15 = vweird.f32 %v3240_v57 }
0x1777   :  { %v5613_v2 = vpop.eup %5612 }
0x1778   :  { %v3243_v0 = vmul.f32 %v5613_v2, %v3240_v57  ;;  %vm3249_vm14 = vweird.f32 %v5613_v2 }
0x1779   :  { %vm3250_vm4 = vmor %vm3248_vm15, %vm3249_vm14 }
0x177a   :  { %v3244_v40 = vmul.f32 %v5613_v2, %v3243_v0 }
0x177c   :  { %v3245_v12 = vmul.f32 0.5, %v3244_v40 }
0x177e   :  { %v3246_v21 = vsub.f32 1.5, %v3245_v12  ;;  %v1786_v12 = vld [vmem:[%s7514_s9 + $0x10] sm:$0xff] }
0x177f   :  { %3322 = vmatpush.msrb.mxu3 %v1786_v12 }
0x1780   :  { %v3247_v53 = vmul.f32 %v5613_v2, %v3246_v21  ;;  %v1785_v21 = vld [vmem:[%s7514_s9 + $0x8] sm:$0xff] }
0x1781   :  { %3323 = vmatpush.msrb.mxu3 %v1785_v21 }
0x1782   :  { %v3251_v58 = vsel %vm3250_vm4, %v5613_v2, %v3247_v53  ;;  %v1784_v53 = vld [vmem:[%s7514_s9] sm:$0xff] }
0x1783   :  { %v3262_v18 = vmul.f32 %v3251_v58, %v3228_v63  ;;  %3324 = vmatpush.msrb.mxu3 %v1784_v53  ;;  %v6860_v53 = vld [vmem:[%s7509_s8 + $0x90] sm:$0xff] }
0x1785   :  { %v3265_v41 = vmul.f32 %v3264_v29, %v3262_v18 }
0x1787   :  { %v3268_v48 = vadd.f32 %v3267_v6, %v3265_v41 }
0x1789   :  { %5191 = vmatmul.msk.f32.vlgmr.msra.gmra.mxu0 %vm74_vm0, %v3268_v48 }
0x17a7   :  { %v3237_v63 = vpop.xlane.xlu1 %3236 }
0x17a8   :  { %v3239_v54 = vmul.f32 %v3237_v63, %v6036_v15 }
0x17aa   :  { %v3241_v62 = vadd.f32 1e-05, %v3239_v54 }
0x17ac   :  { %5614 = vrsqrt.f32 %v3241_v62  ;;  %vm3258_vm6 = vweird.f32 %v3241_v62 }
0x17b2   :  { %v5615_v61 = vpop.eup %5614 }
0x17b3   :  { %v3253_v32 = vmul.f32 %v5615_v61, %v3241_v62  ;;  %vm3259_vm5 = vweird.f32 %v5615_v61 }
0x17b4   :  { %vm3260_vm7 = vmor %vm3258_vm6, %vm3259_vm5 }
0x17b5   :  { %v3254_v7 = vmul.f32 %v5615_v61, %v3253_v32 }
0x17b7   :  { %v3255_v59 = vmul.f32 0.5, %v3254_v7 }
0x17b9   :  { %v3256_v28 = vsub.f32 1.5, %v3255_v59 }
0x17bb   :  { %v3257_v8 = vmul.f32 %v5615_v61, %v3256_v28 }
0x17bd   :  { %v3261_v57 = vsel %vm3260_vm7, %v5615_v61, %v3257_v8 }
0x17be   :  { %v3263_v2 = vmul.f32 %v3261_v57, %v3229_v16  ;;  %v3270_v16 = vperm.slane %v6810_v31, 1 }
0x17c0   :  { %v3266_v0 = vmul.f32 %v3264_v29, %v3263_v2 }
0x17c2   :  { %v3269_v40 = vadd.f32 %v3267_v6, %v3266_v0 }
0x17c4   :  { %5192 = vmatmul.msk.f32.gmra.mxu0 %vm74_vm0, %v3269_v40 }
0x1806   :  { %v3294_v29 = vpop.f32.mrf.mxu0 }
0x1807   :  { %v3295_v58 = vadd.f32 %v3294_v29, %v3270_v16  ;;  %v6868_v29 = vld [vmem:[%s7509_s8 + $0x78] sm:$0xff] }
0x1809   :  { %v3300_v18 = vmax.f32 %v3295_v58, 0.0  ;;  %v6873_v58 = vld [vmem:[%s7509_s8 + $0x60] sm:$0xff] }
0x180b   :  { %5193 = vmatmul.msk.f32.vlgmr.msrb.gmra.mxu3 %vm835_vm11, %v3300_v18 }
0x1841   :  { %v3297_v6 = vpop.f32.mrf.mxu0 }
0x1842   :  { %v3298_v41 = vadd.f32 %v3297_v6, %v3270_v16 }
0x1844   :  { %v3301_v30 = vmax.f32 %v3298_v41, 0.0 }
0x1846   :  { %5194 = vmatmul.msk.f32.gmra.mxu3 %vm835_vm11, %v3301_v30 }
0x188e   :  { %v3326_v4 = vpop.f32.mrf.mxu3 }
0x188f   :  { %v3327_v63 = vadd.f32 %v3326_v4, %v3302_v26 }
0x1891   :  { %v3332_v54 = vadd.f32 %v3327_v63, %v3268_v48 }
0x1893   :  { %v3334_v36 = vsel %vm74_vm0, %v3332_v54, 0.0 }
0x1894   :  { %3335 = vadd.xlane.f32.xlu2 %v3334_v36 }
0x18c9   :  { %v3329_v62 = vpop.f32.mrf.mxu3 }
0x18ca   :  { %v3330_v24 = vadd.f32 %v3329_v62, %v3302_v26 }
0x18cc   :  { %v3333_v61 = vadd.f32 %v3330_v24, %v3269_v40  ;;  %v6854_v40 = vld [vmem:[%s7509_s8 + $0xa8] sm:$0xff]  ;;  %v3378_v24 = vperm.slane %v6810_v31, 3 }
0x18cd   :  { %3428 = vmatpush.msra.mxu1 %v6854_v40 }
0x18ce   :  { %v3337_v32 = vsel %vm74_vm0, %v3333_v61, 0.0 }
0x18cf   :  { %3338 = vadd.xlane.f32.xlu0 %v3337_v32  ;;  %3429 = vmatpush.msra.mxu1 %v6860_v53 }
0x18d1   :  { %3430 = vmatpush.msra.mxu1 %v6868_v29 }
0x18d3   :  { %3431 = vmatpush.msra.mxu1 %v6873_v58 }
0x1907   :  { %v3336_v7 = vpop.xlane.xlu2 %3335 }
0x1908   :  { %v3340_v59 = vmul.f32 %v3336_v7, %v6036_v15  ;;  %v3381_v7 = vperm.slane %v6810_v31, 4 }
0x190a   :  { %v3342_v28 = vsub.f32 %v3332_v54, %v3340_v59 }
0x190c   :  { %v3344_v8 = vmul.f32 %v3342_v28, %v3342_v28 }
0x190e   :  { %v3346_v57 = vsel %vm74_vm0, %v3344_v8, 0.0 }
0x190f   :  { %3347 = vadd.xlane.f32.xlu1 %v3346_v57 }
0x1942   :  { %v3339_v2 = vpop.xlane.xlu0 %3338 }
0x1943   :  { %v3341_v48 = vmul.f32 %v3339_v2, %v6036_v15 }
0x1945   :  { %v3343_v0 = vsub.f32 %v3333_v61, %v3341_v48 }
0x1947   :  { %v3345_v12 = vmul.f32 %v3343_v0, %v3343_v0 }
0x1949   :  { %v3349_v21 = vsel %vm74_vm0, %v3345_v12, 0.0 }
0x194a   :  { %3350 = vadd.xlane.f32.xlu2 %v3349_v21 }
0x1982   :  { %v3348_v6 = vpop.xlane.xlu1 %3347 }
0x1983   :  { %v3352_v41 = vmul.f32 %v3348_v6, %v6036_v15 }
0x1985   :  { %v3354_v30 = vadd.f32 1e-05, %v3352_v41 }
0x1987   :  { %5616 = vrsqrt.f32 %v3354_v30  ;;  %vm3362_vm9 = vweird.f32 %v3354_v30 }
0x198d   :  { %v5617_v26 = vpop.eup %5616 }
0x198e   :  { %v3357_v4 = vmul.f32 %v5617_v26, %v3354_v30  ;;  %vm3363_vm8 = vweird.f32 %v5617_v26 }
0x198f   :  { %vm3364_vm10 = vmor %vm3362_vm9, %vm3363_vm8 }
0x1990   :  { %v3358_v63 = vmul.f32 %v5617_v26, %v3357_v4 }
0x1992   :  { %v3359_v54 = vmul.f32 0.5, %v3358_v63 }
0x1994   :  { %v3360_v36 = vsub.f32 1.5, %v3359_v54  ;;  %v6894_v54 = vld [vmem:[%s7511_s10 + $0x10] sm:$0xff] }
0x1996   :  { %v3361_v62 = vmul.f32 %v5617_v26, %v3360_v36  ;;  %v3409_v36 = vperm.slane %v6894_v54, 0 }
0x1998   :  { %v3365_v61 = vsel %vm3364_vm10, %v5617_v26, %v3361_v62 }
0x1999   :  { %v3376_v32 = vmul.f32 %v3365_v61, %v3342_v28 }
0x199b   :  { %v3379_v59 = vmul.f32 %v3378_v24, %v3376_v32 }
0x199d   :  { %v6882_v8 = vadd.f32 %v3381_v7, %v3379_v59 }
0x199f   :  { %5217 = vmatmul.msk.f32.vlgmr.msra.gmra.mxu1 %vm74_vm0, %v6882_v8 }
0x19bd   :  { %v3351_v57 = vpop.xlane.xlu2 %3350 }
0x19be   :  { %v3353_v2 = vmul.f32 %v3351_v57, %v6036_v15 }
0x19c0   :  { %v3355_v48 = vadd.f32 1e-05, %v3353_v2 }
0x19c2   :  { %5618 = vrsqrt.f32 %v3355_v48  ;;  %vm3372_vm13 = vweird.f32 %v3355_v48 }
0x19c8   :  { %v5619_v12 = vpop.eup %5618 }
0x19c9   :  { %v3367_v21 = vmul.f32 %v5619_v12, %v3355_v48  ;;  %vm3373_vm12 = vweird.f32 %v5619_v12 }
0x19ca   :  { %vm3374_vm14 = vmor %vm3372_vm13, %vm3373_vm12 }
0x19cb   :  { %v3368_v6 = vmul.f32 %v5619_v12, %v3367_v21 }
0x19cd   :  { %v3369_v41 = vmul.f32 0.5, %v3368_v6 }
0x19cf   :  { %v3370_v30 = vsub.f32 1.5, %v3369_v41 }
0x19d1   :  { %v3371_v28 = vmul.f32 %v5619_v12, %v3370_v30 }
0x19d3   :  { %v3375_v31 = vsel %vm3374_vm14, %v5619_v12, %v3371_v28 }
0x19d4   :  { %v3377_v26 = vmul.f32 %v3375_v31, %v3343_v0 }
0x19d6   :  { %v3380_v4 = vmul.f32 %v3378_v24, %v3377_v26 }
0x19d8   :  { %v6887_v63 = vadd.f32 %v3381_v7, %v3380_v4 }
0x19da   :  { %5218 = vmatmul.msk.f32.gmra.mxu1 %vm74_vm0, %v6887_v63 }
0x1a1c   :  { %v3433_v62 = vpop.f32.mrf.mxu1 }
0x1a1d   :  { %v6897_v61 = vadd.f32 %v3433_v62, %v3409_v36  ;;  %v5698_v62 = vld [vmem:[%s7512_s3] sm:$0xff] }
0x1a1f   :  { %3440 = vrot.lane.b32.xlu0 %v6897_v61, %s7579_s25 }
0x1a27   :  { %3573 = vrot.lane.b32.xlu0 %v6897_v61, %s7572_s2 }
0x1a57   :  { %v3436_v0 = vpop.f32.mrf.mxu1 }
0x1a58   :  { %v6903_v24 = vadd.f32 %v3436_v0, %v3409_v36 }
0x1a5a   :  { %3601 = vrot.lane.b32.xlu2 %v6903_v24, %s7572_s2  ;;  %3467 = vrot.lane.b32.xlu1 %v6903_v24, %s7579_s25 }
0x1a5b   :  { %3599 = vrot.lane.b32.xlu0 %v6903_v24, %s7580_s21 }
0x1a62   :  { %3735 = vrot.lane.b32.xlu1 %v6903_v24, %s7573_s26  ;;  %3571 = vrot.lane.b32.xlu2 %v6897_v61, %s7580_s21 }
0x1a63   :  { %3733 = vrot.lane.b32.xlu0 %v6903_v24, %s7581_s11 }
0x1a6a   :  { %3705 = vrot.lane.b32.xlu1 %v6897_v61, %s7581_s11  ;;  %3707 = vrot.lane.b32.xlu2 %v6897_v61, %s7573_s26 }
0x1a6b   :  { %3869 = vrot.lane.b32.xlu0 %v6903_v24, %s7575_s22 }
0x1a72   :  { %3841 = vrot.lane.b32.xlu1 %v6897_v61, %s7575_s22  ;;  %3867 = vrot.lane.b32.xlu2 %v6903_v24, %s7574_s27 }
0x1a73   :  { %3839 = vrot.lane.b32.xlu0 %v6897_v61, %s7574_s27 }
0x1a91   :  { %v3441_v32 = vpop.permute.xlu0 %3440 }
0x1a92   :  { %5219 = vmatpush.xpose.msk.msra.mxu2 %vm107_vm1, %v3441_v32 }
0x1a95   :  { %5220 = vmatmul.msk.f32.vlgmr.msra.gmra.mxu2 %vm107_vm1, %v6897_v61 }
0x1a99   :  { %v3574_v59 = vpop.permute.xlu0 %3573 }
0x1ab4   :  { %v3602_v7 = vpop.permute.xlu2 %3601 }
0x1ab5   :  { %5227 = vmatpush.xpose.msk.msra.mxu3 %vm107_vm1, %v3602_v7 }
0x1abc   :  { %v3572_v57 = vpop.permute.xlu2 %3571 }
0x1ac4   :  { %v3708_v12 = vpop.permute.xlu2 %3707 }
0x1acc   :  { %v3468_v2 = vpop.permute.xlu1 %3467  ;;  %v3868_v28 = vpop.permute.xlu2 %3867 }
0x1acd   :  { %v3600_v48 = vpop.permute.xlu0 %3599  ;;  %5221 = vmatpush.xpose.msk.msrb.mxu0 %vm107_vm1, %v3468_v2 }
0x1ace   :  { %5228 = vmatmul.msk.f32.vlgmr.msra.gmra.mxu3 %vm107_vm1, %v3600_v48 }
0x1ad0   :  { %5222 = vmatmul.msk.f32.vlgmr.msrb.gmra.mxu0 %vm107_vm1, %v6903_v24 }
0x1ad1   :  { %5225 = vmatpush.xpose.msk.msra.mxu0 %vm107_vm1, %v3574_v59 }
0x1ad4   :  { %v3736_v21 = vpop.permute.xlu1 %3735 }
0x1ad5   :  { %5231 = vmatpush.xpose.msk.msrb.mxu0 %vm107_vm1, %v3708_v12  ;;  %v3734_v6 = vpop.permute.xlu0 %3733  ;;  %5233 = vmatpush.xpose.msk.msrb.mxu3 %vm107_vm1, %v3736_v21 }
0x1ad8   :  { %5226 = vmatmul.msk.f32.vlgmr.msra.gmra.mxu0 %vm107_vm1, %v3572_v57  ;;  %5234 = vmatmul.msk.f32.vlgmr.msrb.gmra.mxu3 %vm107_vm1, %v3734_v6  ;;  %v5699_v57 = vld [vmem:[%s7512_s3 + $0x8] sm:$0xff] }
0x1adc   :  { %v3706_v41 = vpop.permute.xlu1 %3705 }
0x1add   :  { %v3870_v30 = vpop.permute.xlu0 %3869 }
0x1ade   :  { %5239 = vmatpush.xpose.msk.msra.mxu3 %vm107_vm1, %v3870_v30 }
0x1ae0   :  { %5232 = vmatmul.msk.f32.vlgmr.msrb.gmra.mxu0 %vm107_vm1, %v3706_v41 }
0x1ae1   :  { %5240 = vmatmul.msk.f32.vlgmr.msra.gmra.mxu3 %vm107_vm1, %v3868_v28 }
0x1ae4   :  { %v3842_v31 = vpop.permute.xlu1 %3841 }
0x1ae5   :  { %5237 = vmatpush.xpose.msk.msra.mxu0 %vm107_vm1, %v3842_v31  ;;  %v3840_v26 = vpop.permute.xlu0 %3839 }
0x1ae8   :  { %5238 = vmatmul.msk.f32.vlgmr.msra.gmra.mxu0 %vm107_vm1, %v3840_v26 }
0x1b18   :  { %v3463_v4 = vpop.f32.mrf.mxu2 }
0x1b19   :  { %v3493_v36 = vmul.f32 0.35355338, %v3463_v4 }
0x1b1b   :  { %v3495_v0 = vadd.f32 %v5698_v62, %v3493_v36 }
0x1b1d   :  { %v3497_v32 = vsel %vm107_vm1, %v3495_v0, -inf }
0x1b1e   :  { %3498 = vmax.xlane.f32.xlu2 %v3497_v32 }
0x1b4d   :  { %v3490_v7 = vpop.f32.mrf.mxu0 }
0x1b4e   :  { %v3494_v59 = vmul.f32 0.35355338, %v3490_v7 }
0x1b50   :  { %v3496_v2 = vadd.f32 %v5699_v57, %v3494_v59 }
0x1b51   :  { %v3624_v48 = vpop.f32.mrf.mxu3 }
0x1b52   :  { %v3628_v12 = vmul.f32 0.35355338, %v3624_v48  ;;  %v3500_v21 = vsel %vm107_vm1, %v3496_v2, -inf }
0x1b53   :  { %3501 = vmax.xlane.f32.xlu1 %v3500_v21 }
0x1b54   :  { %v3630_v6 = vadd.f32 %v5699_v57, %v3628_v12 }
0x1b55   :  { %v3596_v41 = vpop.f32.mrf.mxu0 }
0x1b56   :  { %v3627_v30 = vmul.f32 0.35355338, %v3596_v41  ;;  %v3634_v28 = vsel %vm107_vm1, %v3630_v6, -inf }
0x1b57   :  { %3635 = vmax.xlane.f32.xlu2 %v3634_v28 }
0x1b58   :  { %v3629_v31 = vadd.f32 %v5698_v62, %v3627_v30 }
0x1b5a   :  { %v3631_v26 = vsel %vm107_vm1, %v3629_v31, -inf }
0x1b5b   :  { %3632 = vmax.xlane.f32.xlu0 %v3631_v26  ;;  %v3758_v4 = vpop.f32.mrf.mxu3 }
0x1b5c   :  { %v3762_v36 = vmul.f32 0.35355338, %v3758_v4 }
0x1b5d   :  { %v3730_v32 = vpop.f32.mrf.mxu0 }
0x1b5e   :  { %v3764_v7 = vadd.f32 %v5699_v57, %v3762_v36  ;;  %v3761_v59 = vmul.f32 0.35355338, %v3730_v32  ;;  %v5391_v36 = vpack.i.bf16 %v6903_v24, %v6897_v61  ;;  %v7584_v61 = vpack.i.bf16 %v6873_v58, %v6868_v29 }
0x1b60   :  { %v3763_v16 = vadd.f32 %v5698_v62, %v3761_v59  ;;  %v3768_v21 = vsel %vm107_vm1, %v3764_v7, -inf }
0x1b62   :  { %v3765_v48 = vsel %vm107_vm1, %v3763_v16, -inf }
0x1b63   :  { %3766 = vmax.xlane.f32.xlu1 %v3765_v48  ;;  %3769 = vmax.xlane.f32.xlu0 %v3768_v21 }
0x1b64   :  { %v3892_v12 = vpop.f32.mrf.mxu3 }
0x1b65   :  { %v3896_v41 = vmul.f32 0.35355338, %v3892_v12  ;;  %v3864_v18 = vpop.f32.mrf.mxu0 }
0x1b66   :  { %v3895_v28 = vmul.f32 0.35355338, %v3864_v18 }
0x1b67   :  { %v6959_v30 = vadd.f32 %v5699_v57, %v3896_v41 }
0x1b68   :  { %v3897_v35 = vadd.f32 %v5698_v62, %v3895_v28 }
0x1b69   :  { %v3902_v26 = vsel %vm107_vm1, %v6959_v30, -inf }
0x1b6a   :  { %v3899_v4 = vsel %vm107_vm1, %v3897_v35, -inf }
0x1b6b   :  { %3903 = vmax.xlane.f32.xlu1 %v3902_v26  ;;  %3900 = vmax.xlane.f32.xlu2 %v3899_v4 }
0x1b77   :  { %5392 = vrot.lane.b32.xlu0 %v5391_v36, %s7576_s24 }
0x1b91   :  { %v3499_v32 = vpop.xlane.xlu2 %3498 }
0x1b92   :  { %v3503_v59 = vsub.f32 %v3495_v0, %v3499_v32 }
0x1b94   :  { %v3505_v48 = vmul.f32 1.442695, %v3503_v59 }
0x1b96   :  { %5620 = vpow2.f32 %v3505_v48 }
0x1b9c   :  { %v6967_v18 = vpop.eup %5620 }
0x1b9d   :  { %v3509_v62 = vsel %vm107_vm1, %v6967_v18, 0.0 }
0x1ba1   :  { %3510 = vadd.xlane.f32.xlu0 %v3509_v62 }
0x1bb5   :  { %5402 = vrot.lane.b32.xlu0 %v5391_v36, %s7565_s18  ;;  %s7593_s18 = sld [smem:[#allocation10_spill]] }
0x1bbd   :  { %5407 = vrot.lane.b32.xlu0 %v5391_v36, %s7566_s20 }
0x1bc5   :  { %5417 = vrot.lane.b32.xlu0 %v7584_v61, %s7567_s29 }
0x1bc6   :  { %v3502_v24 = vpop.xlane.xlu1 %3501 }
0x1bc7   :  { %v3504_v57 = vsub.f32 %v3496_v2, %v3502_v24 }
0x1bc9   :  { %v3507_v0 = vmul.f32 1.442695, %v3504_v57 }
0x1bca   :  { %v3636_v21 = vpop.xlane.xlu2 %3635 }
0x1bcb   :  { %5622 = vpow2.f32 %v3507_v0  ;;  %v3638_v12 = vsub.f32 %v3630_v6, %v3636_v21 }
0x1bcd   :  { %v3641_v41 = vmul.f32 1.442695, %v3638_v12 }
0x1bce   :  { %v3633_v28 = vpop.xlane.xlu0 %3632 }
0x1bcf   :  { %v3637_v26 = vsub.f32 %v3629_v31, %v3633_v28  ;;  %5624 = vpow2.f32 %v3641_v41 }
0x1bd1   :  { %v5623_v4 = vpop.eup %5622  ;;  %v3639_v32 = vmul.f32 1.442695, %v3637_v26 }
0x1bd2   :  { %v3512_v59 = vsel %vm107_vm1, %v5623_v4, 0.0 }
0x1bd3   :  { %5626 = vpow2.f32 %v3639_v32  ;;  %3513 = vadd.xlane.f32.xlu2 %v3512_v59 }
0x1bd5   :  { %v5625_v62 = vpop.eup %5624 }
0x1bd6   :  { %v3770_v48 = vpop.xlane.xlu0 %3769  ;;  %v3767_v29 = vpop.xlane.xlu1 %3766  ;;  %v3646_v57 = vsel %vm107_vm1, %v5625_v62, 0.0 }
0x1bd7   :  { %v3772_v58 = vsub.f32 %v3764_v7, %v3770_v48  ;;  %v3771_v24 = vsub.f32 %v3763_v16, %v3767_v29 }
0x1bd9   :  { %v5627_v61 = vpop.eup %5626  ;;  %v3775_v2 = vmul.f32 1.442695, %v3772_v58  ;;  %v3773_v31 = vmul.f32 1.442695, %v3771_v24 }
0x1bda   :  { %v3643_v6 = vsel %vm107_vm1, %v5627_v61, 0.0 }
0x1bdb   :  { %3647 = vadd.xlane.f32.xlu2 %v3646_v57  ;;  %3644 = vadd.xlane.f32.xlu1 %v3643_v6  ;;  %5628 = vpow2.f32 %v3775_v2  ;;  %v7585_v57 = vpack.i.bf16 %v6860_v53, %v6854_v40 }
0x1bdc   :  { %5630 = vpow2.f32 %v3773_v31 }
0x1bde   :  { %v3901_v0 = vpop.xlane.xlu2 %3900  ;;  %v3904_v28 = vpop.xlane.xlu1 %3903 }
0x1bdf   :  { %v3905_v12 = vsub.f32 %v3897_v35, %v3901_v0  ;;  %v3906_v32 = vsub.f32 %v6959_v30, %v3904_v28 }
0x1be1   :  { %v6980_v21 = vpop.eup %5628  ;;  %v3907_v7 = vmul.f32 1.442695, %v3905_v12  ;;  %v3909_v35 = vmul.f32 1.442695, %v3906_v32 }
0x1be2   :  { %v3780_v41 = vsel %vm107_vm1, %v6980_v21, 0.0  ;;  %v6984_v16 = vpop.eup %5630 }
0x1be3   :  { %3781 = vadd.xlane.f32.xlu1 %v3780_v41  ;;  %5632 = vpow2.f32 %v3907_v7  ;;  %v3777_v29 = vsel %vm107_vm1, %v6984_v16, 0.0 }
0x1be4   :  { %5634 = vpow2.f32 %v3909_v35 }
0x1be9   :  { %v5393_v26 = vpop.permute.xlu0 %5392  ;;  %v5633_v58 = vpop.eup %5632 }
0x1bea   :  { %v5395_v59 = vunpack.i.h.bf16 %v5393_v26  ;;  %v5394_v48 = vunpack.i.l.bf16 %v5393_v26  ;;  %v3911_v2 = vsel %vm107_vm1, %v5633_v58, 0.0  ;;  %v5635_v24 = vpop.eup %5634 }
0x1beb   :  { %3778 = vadd.xlane.f32.xlu1 %v3777_v29  ;;  %v3914_v30 = vsel %vm107_vm1, %v5635_v24, 0.0 }
0x1bec   :  { %3540 = vmatpush.msrb.mxu1 %v5394_v48  ;;  %3566 = vmatpush.msrb.mxu2 %v5395_v59 }
0x1bf3   :  { %5397 = vrot.lane.b32.xlu2 %v5391_v36, %s7568_s30  ;;  %3912 = vadd.xlane.f32.xlu1 %v3911_v2 }
0x1bfb   :  { %5412 = vrot.lane.b32.xlu2 %v7585_v57, %s7567_s29  ;;  %3915 = vadd.xlane.f32.xlu1 %v3914_v30 }
0x1c14   :  { %v3511_v6 = vpop.xlane.xlu0 %3510 }
0x1c15   :  { %5636 = vrcp.f32 %v3511_v6 }
0x1c1b   :  { %v5637_v31 = vpop.eup %5636 }
0x1c1c   :  { %v6997_v0 = vmul.f32 %v5637_v31, %v6967_v18 }
0x1c1e   :  { %5223 = vmatmul.msk.f32.vlgmr.msrb.gmra.mxu1 %vm107_vm1, %v6997_v0 }
0x1c27   :  { %v5403_v41 = vpop.permute.xlu0 %5402 }
0x1c28   :  { %v5404_v30 = vunpack.i.l.bf16 %v5403_v41 }
0x1c2f   :  { %v5408_v32 = vpop.permute.xlu0 %5407 }
0x1c30   :  { %v5410_v57 = vunpack.i.h.bf16 %v5408_v32  ;;  %v5409_v6 = vunpack.i.l.bf16 %v5408_v32 }
0x1c46   :  { %v3514_v36 = vpop.xlane.xlu2 %3513 }
0x1c47   :  { %5638 = vrcp.f32 %v3514_v36 }
0x1c4d   :  { %v5639_v12 = vpop.eup %5638 }
0x1c4e   :  { %v7001_v7 = vmul.f32 %v5639_v12, %v5623_v4  ;;  %v3648_v28 = vpop.xlane.xlu2 %3647  ;;  %v3645_v26 = vpop.xlane.xlu1 %3644  ;;  %v5405_v4 = vunpack.i.h.bf16 %v5403_v41 }
0x1c4f   :  { %5640 = vrcp.f32 %v3648_v28 }
0x1c50   :  { %5642 = vrcp.f32 %v3645_v26  ;;  %5224 = vmatmul.msk.f32.vlgmr.msrb.gmra.mxu2 %vm107_vm1, %v7001_v7 }
0x1c55   :  { %v5641_v40 = vpop.eup %5640 }
0x1c56   :  { %v5643_v53 = vpop.eup %5642  ;;  %v5398_v18 = vpop.permute.xlu2 %5397  ;;  %v7005_v35 = vmul.f32 %v5641_v40, %v5625_v62 }
0x1c57   :  { %v5400_v59 = vunpack.i.h.bf16 %v5398_v18  ;;  %v5399_v48 = vunpack.i.l.bf16 %v5398_v18  ;;  %v3782_v29 = vpop.xlane.xlu1 %3781  ;;  %v7007_v2 = vmul.f32 %v5643_v53, %v5627_v61 }
0x1c58   :  { %5644 = vrcp.f32 %v3782_v29 }
0x1c59   :  { %3674 = vmatpush.msra.mxu1 %v5399_v48  ;;  %3700 = vmatpush.msra.mxu2 %v5400_v59 }
0x1c5a   :  { %5229 = vmatmul.msk.f32.vlgmr.msra.gmra.mxu1 %vm107_vm1, %v7007_v2  ;;  %5230 = vmatmul.msk.f32.vlgmr.msra.gmra.mxu2 %vm107_vm1, %v7005_v35 }
0x1c5b   :  { %3808 = vmatpush.msrb.mxu1 %v5404_v30  ;;  %3834 = vmatpush.msrb.mxu2 %v5405_v4 }
0x1c5d   :  { %3942 = vmatpush.msra.mxu1 %v5409_v6  ;;  %3968 = vmatpush.msra.mxu2 %v5410_v57  ;;  %v5418_v6 = vpop.permute.xlu0 %5417 }
0x1c5e   :  { %v5645_v62 = vpop.eup %5644  ;;  %v5413_v32 = vpop.permute.xlu2 %5412 }
0x1c5f   :  { %v3779_v61 = vpop.xlane.xlu1 %3778  ;;  %v7014_v31 = vmul.f32 %v5645_v62, %v6980_v21  ;;  %v5415_v59 = vunpack.i.h.bf16 %v5413_v32  ;;  %v5414_v48 = vunpack.i.l.bf16 %v5413_v32  ;;  %v5420_v62 = vunpack.i.h.bf16 %v5418_v6 }
0x1c60   :  { %5646 = vrcp.f32 %v3779_v61  ;;  %v5419_v61 = vunpack.i.l.bf16 %v5418_v6 }
0x1c61   :  { %4065 = vmatpush.msrb.mxu0 %v5414_v48 }
0x1c62   :  { %5236 = vmatmul.msk.f32.vlgmr.msrb.gmra.mxu2 %vm107_vm1, %v7014_v31 }
0x1c63   :  { %4066 = vmatpush.msrb.mxu0 %v5415_v59 }
0x1c65   :  { %4067 = vmatpush.msrb.mxu0 %v5419_v61 }
0x1c66   :  { %v5647_v36 = vpop.eup %5646 }
0x1c67   :  { %v7019_v12 = vmul.f32 %v5647_v36, %v6984_v16  ;;  %v3913_v41 = vpop.xlane.xlu1 %3912  ;;  %4068 = vmatpush.msrb.mxu0 %v5420_v62 }
0x1c68   :  { %5648 = vrcp.f32 %v3913_v41 }
0x1c69   :  { %5235 = vmatmul.msk.f32.vlgmr.msrb.gmra.mxu1 %vm107_vm1, %v7019_v12 }
0x1c6e   :  { %v5649_v28 = vpop.eup %5648 }
0x1c6f   :  { %v7023_v26 = vmul.f32 %v5649_v28, %v5633_v58  ;;  %v3916_v40 = vpop.xlane.xlu1 %3915 }
0x1c70   :  { %5650 = vrcp.f32 %v3916_v40 }
0x1c71   :  { %5241 = vmatmul.msk.f32.vlgmr.msra.gmra.mxu1 %vm107_vm1, %v7023_v26 }
0x1c76   :  { %v5651_v21 = vpop.eup %5650 }
0x1c77   :  { %v7027_v53 = vmul.f32 %v5651_v21, %v5635_v24 }
0x1c79   :  { %5242 = vmatmul.msk.f32.vlgmr.msra.gmra.mxu2 %vm107_vm1, %v7027_v53 }
0x1c9b   :  { %v3542_v16 = vpop.f32.mrf.mxu1 }
0x1cd3   :  { %v3568_v58 = vpop.f32.mrf.mxu2 }
0x1cd7   :  { %v3676_v18 = vpop.f32.mrf.mxu1 }
0x1cd8   :  { %3975 = vrot.lane.b32.xlu1 %v3676_v18, %s7569_s5 }
0x1cdd   :  { %v3702_v4 = vpop.f32.mrf.mxu2 }
0x1ce5   :  { %v3836_v24 = vpop.f32.mrf.mxu2 }
0x1ce6   :  { %v3810_v29 = vpop.f32.mrf.mxu1 }
0x1ce7   :  { %3983 = vrot.lane.b32.xlu2 %v3810_v29, %s7570_s17 }
0x1cee   :  { %v3944_v30 = vpop.f32.mrf.mxu1 }
0x1cef   :  { %3977 = vrot.lane.b32.xlu2 %v3702_v4, %s7569_s5  ;;  %3991 = vrot.lane.b32.xlu0 %v3944_v30, %s7571_s28 }
0x1cf7   :  { %3985 = vrot.lane.b32.xlu0 %v3836_v24, %s7570_s17 }
0x1cfc   :  { %v3970_v57 = vpop.f32.mrf.mxu2 }
0x1cfd   :  { %3993 = vrot.lane.b32.xlu2 %v3970_v57, %s7571_s28 }
0x1d41   :  { %v3984_v36 = vpop.permute.xlu2 %3983 }
0x1d49   :  { %v3978_v18 = vpop.permute.xlu2 %3977 }
0x1d4a   :  { %v3976_v41 = vpop.permute.xlu1 %3975  ;;  %v3998_v59 = vsel %vm107_vm1, %v3568_v58, %v3978_v18 }
0x1d4b   :  { %v3997_v28 = vsel %vm107_vm1, %v3542_v16, %v3976_v41  ;;  %v4030_v16 = vperm.slane %v6894_v54, 1 }
0x1d4c   :  { %v3999_v40 = vsel %vm665_vm2, %v3997_v28, %v3984_v36  ;;  %v5202_v28 = vld [vmem:[%s7509_s8 + $0x98] sm:$0xff] }
0x1d57   :  { %v3994_v29 = vpop.permute.xlu2 %3993 }
0x1d61   :  { %v3992_v21 = vpop.permute.xlu0 %3991 }
0x1d62   :  { %v4001_v32 = vsel %vm668_vm3, %v3999_v40, %v3992_v21  ;;  %v5205_v40 = vld [vmem:[%s7509_s8 + $0xb0] sm:$0xff] }
0x1d63   :  { %5245 = vmatmul.msk.f32.vlgmr.msrb.gmra.mxu0 %vm74_vm0, %v4001_v32  ;;  %v7056_v21 = vpack.i.bf16 %v5202_v28, %v5205_v40  ;;  %4147 = vmatpush.msrb.mxu3 %v5205_v40 }
0x1d65   :  { %4148 = vmatpush.msrb.mxu3 %v5202_v28 }
0x1d69   :  { %v3986_v48 = vpop.permute.xlu0 %3985 }
0x1d6a   :  { %v4000_v4 = vsel %vm665_vm2, %v3998_v59, %v3986_v48 }
0x1d6b   :  { %v4002_v30 = vsel %vm668_vm3, %v4000_v4, %v3994_v29 }
0x1d6c   :  { %5246 = vmatmul.msk.f32.gmra.mxu0 %vm74_vm0, %v4002_v30 }
0x1de0   :  { %v4070_v24 = vpop.f32.mrf.mxu0 }
0x1de1   :  { %v4071_v57 = vadd.f32 %v4070_v24, %v4030_v16 }
0x1de3   :  { %v4076_v6 = vadd.f32 %v4071_v57, %v6882_v8  ;;  %v5199_v8 = vld [vmem:[%s7509_s8 + $0x80] sm:$0xff] }
0x1de4   :  { %4149 = vmatpush.msrb.mxu3 %v5199_v8 }
0x1de5   :  { %v4078_v62 = vsel %vm74_vm0, %v4076_v6, 0.0 }
0x1de6   :  { %4079 = vadd.xlane.f32.xlu1 %v4078_v62 }
0x1de9   :  { %v4073_v61 = vpop.f32.mrf.mxu0 }
0x1dea   :  { %v4074_v36 = vadd.f32 %v4073_v61, %v4030_v16 }
0x1dec   :  { %v4077_v58 = vadd.f32 %v4074_v36, %v6887_v63  ;;  %v5196_v63 = vld [vmem:[%s7509_s8 + $0x68] sm:$0xff] }
0x1ded   :  { %4150 = vmatpush.msrb.mxu3 %v5196_v63  ;;  %v7070_v62 = vpack.i.bf16 %v5196_v63, %v5199_v8 }
0x1dee   :  { %v4081_v41 = vsel %vm74_vm0, %v4077_v58, 0.0 }
0x1def   :  { %4082 = vadd.xlane.f32.xlu0 %v4081_v41 }
0x1e03   :  { %5422 = vrot.lane.b32.xlu0 %v7056_v21, %s7579_s25 }
0x1e59   :  { %v4080_v18 = vpop.xlane.xlu1 %4079 }
0x1e5a   :  { %v4084_v32 = vmul.f32 %v4080_v18, %v6036_v15 }
0x1e5c   :  { %v4086_v59 = vsub.f32 %v4076_v6, %v4084_v32 }
0x1e5e   :  { %v4088_v48 = vmul.f32 %v4086_v59, %v4086_v59 }
0x1e60   :  { %v4090_v29 = vsel %vm74_vm0, %v4088_v48, 0.0 }
0x1e61   :  { %4091 = vadd.xlane.f32.xlu2 %v4090_v29 }
0x1e62   :  { %v4083_v4 = vpop.xlane.xlu0 %4082 }
0x1e63   :  { %v4085_v30 = vmul.f32 %v4083_v4, %v6036_v15 }
0x1e65   :  { %v4087_v16 = vsub.f32 %v4077_v58, %v4085_v30 }
0x1e67   :  { %v4089_v24 = vmul.f32 %v4087_v16, %v4087_v16 }
0x1e69   :  { %v4093_v57 = vsel %vm74_vm0, %v4089_v24, 0.0 }
0x1e6a   :  { %4094 = vadd.xlane.f32.xlu1 %v4093_v57 }
0x1e75   :  { %v5423_v61 = vpop.permute.xlu0 %5422 }
0x1e76   :  { %v5424_v36 = vunpack.i.l.bf16 %v5423_v61  ;;  %v5425_v6 = vunpack.i.h.bf16 %v5423_v61 }
0x1e78   :  { %4187 = vmatpush.msrb.mxu1 %v5424_v36 }
0x1e79   :  { %5427 = vrot.lane.b32.xlu2 %v7070_v62, %s7579_s25 }
0x1e7a   :  { %4188 = vmatpush.msrb.mxu1 %v5425_v6  ;;  %v4122_v6 = vperm.slane %v6894_v54, 2 }
0x1ed4   :  { %v4092_v41 = vpop.xlane.xlu2 %4091 }
0x1ed5   :  { %v4096_v28 = vmul.f32 %v4092_v41, %v6036_v15 }
0x1ed7   :  { %v4098_v40 = vadd.f32 1e-05, %v4096_v28 }
0x1ed9   :  { %5652 = vrsqrt.f32 %v4098_v40  ;;  %vm4106_vm4 = vweird.f32 %v4098_v40 }
0x1edc   :  { %v5428_v58 = vpop.permute.xlu2 %5427 }
0x1edd   :  { %v5430_v18 = vunpack.i.h.bf16 %v5428_v58  ;;  %v5429_v32 = vunpack.i.l.bf16 %v5428_v58  ;;  %v4095_v48 = vpop.xlane.xlu1 %4094  ;;  %v4125_v58 = vperm.slane %v6894_v54, 3 }
0x1ede   :  { %v4097_v8 = vmul.f32 %v4095_v48, %v6036_v15 }
0x1edf   :  { %v5653_v63 = vpop.eup %5652  ;;  %4189 = vmatpush.msrb.mxu1 %v5429_v32 }
0x1ee0   :  { %v4101_v29 = vmul.f32 %v5653_v63, %v4098_v40  ;;  %v4099_v4 = vadd.f32 1e-05, %v4097_v8  ;;  %vm4107_vm15 = vweird.f32 %v5653_v63 }
0x1ee1   :  { %4190 = vmatpush.msrb.mxu1 %v5430_v18  ;;  %vm4108_vm5 = vmor %vm4106_vm4, %vm4107_vm15 }
0x1ee2   :  { %v4102_v30 = vmul.f32 %v5653_v63, %v4101_v29  ;;  %5654 = vrsqrt.f32 %v4099_v4  ;;  %5249 = vmatmul.msk.f32.vlgmr.msrb.gmra.mxu1 %vm74_vm0, %v6625_v47  ;;  %vm4116_vm7 = vweird.f32 %v4099_v4 }
0x1ee4   :  { %v4103_v24 = vmul.f32 0.5, %v4102_v30 }
0x1ee6   :  { %v4104_v57 = vsub.f32 1.5, %v4103_v24 }
0x1ee8   :  { %v5655_v61 = vpop.eup %5654  ;;  %v4105_v36 = vmul.f32 %v5653_v63, %v4104_v57 }
0x1ee9   :  { %v4111_v41 = vmul.f32 %v5655_v61, %v4099_v4  ;;  %vm4117_vm6 = vweird.f32 %v5655_v61 }
0x1eea   :  { %v4109_v28 = vsel %vm4108_vm5, %v5653_v63, %v4105_v36  ;;  %5250 = vmatmul.msk.f32.gmra.mxu1 %vm74_vm0, %v6632_v34  ;;  %vm4118_vm8 = vmor %vm4116_vm7, %vm4117_vm6 }
0x1eeb   :  { %v4120_v18 = vmul.f32 %v4109_v28, %v4086_v59  ;;  %v4112_v32 = vmul.f32 %v5655_v61, %v4111_v41  ;;  %v4158_v59 = vperm.slane %v6894_v54, 5 }
0x1eed   :  { %v4123_v48 = vmul.f32 %v4122_v6, %v4120_v18  ;;  %v4113_v47 = vmul.f32 0.5, %v4112_v32 }
0x1eef   :  { %v7082_v8 = vadd.f32 %v4125_v58, %v4123_v48  ;;  %v4114_v29 = vsub.f32 1.5, %v4113_v47 }
0x1ef1   :  { %v4115_v30 = vmul.f32 %v5655_v61, %v4114_v29  ;;  %5247 = vmatmul.msk.f32.vlgmr.msrb.gmra.mxu3 %vm74_vm0, %v7082_v8 }
0x1ef3   :  { %v4119_v40 = vsel %vm4118_vm8, %v5655_v61, %v4115_v30  ;;  %v4128_v61 = vperm.slane %v6894_v54, 4 }
0x1ef4   :  { %v4121_v63 = vmul.f32 %v4119_v40, %v4087_v16 }
0x1ef6   :  { %v4124_v24 = vmul.f32 %v4122_v6, %v4121_v63 }
0x1ef8   :  { %v7086_v34 = vadd.f32 %v4125_v58, %v4124_v24 }
0x1efa   :  { %5248 = vmatmul.msk.f32.gmra.mxu3 %vm74_vm0, %v7086_v34 }
0x1f5f   :  { %v4192_v57 = vpop.f32.mrf.mxu1 }
0x1f60   :  { %v4193_v36 = vadd.f32 %v4192_v57, %v4158_v59 }
0x1f62   :  { %4330 = vrot.lane.b32.xlu2 %v4193_v36, %s7580_s21  ;;  %5251 = vmatpush.xpose.msk.msrb.mxu2 %vm107_vm1, %v4193_v36 }
0x1f67   :  { %v4195_v4 = vpop.f32.mrf.mxu1 }
0x1f68   :  { %v4196_v41 = vadd.f32 %v4195_v4, %v4158_v59  ;;  %v5700_v4 = vld [vmem:[%s7513_s4] sm:$0xff] }
0x1f6a   :  { %4358 = vrot.lane.b32.xlu1 %v4196_v41, %s7580_s21  ;;  %5253 = vmatpush.xpose.msk.msra.mxu2 %vm107_vm1, %v4196_v41  ;;  %v7095_v16 = vpack.i.bf16 %v4196_v41, %v4193_v36 }
0x1f72   :  { %4492 = vrot.lane.b32.xlu1 %v4196_v41, %s7581_s11 }
0x1f74   :  { %v4152_v6 = vpop.f32.mrf.mxu3 }
0x1f75   :  { %v4153_v28 = vadd.f32 %v4152_v6, %v4128_v61 }
0x1f77   :  { %4328 = vrot.lane.b32.xlu0 %v4153_v28, %s7580_s21  ;;  %5252 = vmatmul.msk.f32.vlgmr.msrb.gmra.mxu2 %vm107_vm1, %v4153_v28 }
0x1f7a   :  { %4462 = vrot.lane.b32.xlu1 %v4153_v28, %s7581_s11 }
0x1f7d   :  { %v4155_v58 = vpop.f32.mrf.mxu3 }
0x1f7e   :  { %v4156_v18 = vadd.f32 %v4155_v58, %v4128_v61 }
0x1f80   :  { %4356 = vrot.lane.b32.xlu0 %v4156_v18, %s7580_s21  ;;  %4490 = vrot.lane.b32.xlu2 %v4156_v18, %s7581_s11  ;;  %s7586_s21 = sld [smem:[#allocation8_spill]] }
0x1f81   :  { %5254 = vmatmul.msk.f32.vlgmr.msra.gmra.mxu2 %vm107_vm1, %v4156_v18 }
0x1f82   :  { %4598 = vrot.lane.b32.xlu1 %v4193_v36, %s7574_s27 }
0x1f88   :  { %4464 = vrot.lane.b32.xlu0 %v4193_v36, %s7581_s11  ;;  %4626 = vrot.lane.b32.xlu2 %v4196_v41, %s7574_s27 }
0x1f90   :  { %4624 = vrot.lane.b32.xlu0 %v4156_v18, %s7574_s27  ;;  %4596 = vrot.lane.b32.xlu2 %v4153_v28, %s7574_s27 }
0x1fbc   :  { %v4331_v54 = vpop.permute.xlu2 %4330 }
0x1fbd   :  { %5257 = vmatpush.xpose.msk.msra.mxu1 %vm107_vm1, %v4331_v54  ;;  %v5701_v54 = vld [vmem:[%s7513_s4 + $0x8] sm:$0xff] }
0x1fda   :  { %v4491_v47 = vpop.permute.xlu2 %4490 }
0x1fdc   :  { %v4359_v32 = vpop.permute.xlu1 %4358 }
0x1fdd   :  { %5259 = vmatpush.xpose.msk.msrb.mxu2 %vm107_vm1, %v4359_v32 }
0x1fe2   :  { %v4627_v63 = vpop.permute.xlu2 %4626 }
0x1fe4   :  { %v4493_v48 = vpop.permute.xlu1 %4492 }
0x1fe5   :  { %5265 = vmatpush.xpose.msk.msra.mxu2 %vm107_vm1, %v4493_v48 }
0x1fe9   :  { %v4329_v29 = vpop.permute.xlu0 %4328 }
0x1fea   :  { %5258 = vmatmul.msk.f32.vlgmr.msra.gmra.mxu1 %vm107_vm1, %v4329_v29  ;;  %v4597_v58 = vpop.permute.xlu2 %4596 }
0x1fec   :  { %v4463_v30 = vpop.permute.xlu1 %4462 }
0x1ff2   :  { %v4357_v40 = vpop.permute.xlu0 %4356 }
0x1ff3   :  { %5260 = vmatmul.msk.f32.vlgmr.msrb.gmra.mxu2 %vm107_vm1, %v4357_v40 }
0x1ff4   :  { %5271 = vmatpush.xpose.msk.msrb.mxu2 %vm107_vm1, %v4627_v63  ;;  %v4599_v57 = vpop.permute.xlu1 %4598 }
0x1ffa   :  { %v4465_v24 = vpop.permute.xlu0 %4464  ;;  %v4221_v59 = vpop.f32.mrf.mxu2 }
0x1ffb   :  { %v4250_v36 = vmul.f32 0.35355338, %v4221_v59  ;;  %5263 = vmatpush.xpose.msk.msrb.mxu1 %vm107_vm1, %v4465_v24  ;;  %5266 = vmatmul.msk.f32.vlgmr.msra.gmra.mxu2 %vm107_vm1, %v4491_v47 }
0x1ffd   :  { %v4252_v41 = vadd.f32 %v5700_v4, %v4250_v36 }
0x1ffe   :  { %5264 = vmatmul.msk.f32.vlgmr.msrb.gmra.mxu1 %vm107_vm1, %v4463_v30 }
0x1fff   :  { %5269 = vmatpush.xpose.msk.msra.mxu1 %vm107_vm1, %v4599_v57  ;;  %v4254_v61 = vsel %vm107_vm1, %v4252_v41, -inf }
0x2000   :  { %4255 = vmax.xlane.f32.xlu0 %v4254_v61 }
0x2002   :  { %v4625_v6 = vpop.permute.xlu0 %4624 }
0x2003   :  { %5272 = vmatmul.msk.f32.vlgmr.msrb.gmra.mxu2 %vm107_vm1, %v4625_v6 }
0x2004   :  { %v4247_v28 = vpop.f32.mrf.mxu2 }
0x2005   :  { %v4251_v18 = vmul.f32 0.35355338, %v4247_v28 }
0x2006   :  { %5270 = vmatmul.msk.f32.vlgmr.msra.gmra.mxu1 %vm107_vm1, %v4597_v58 }
0x2007   :  { %v4253_v32 = vadd.f32 %v5701_v54, %v4251_v18 }
0x2009   :  { %v4257_v48 = vsel %vm107_vm1, %v4253_v32, -inf }
0x200a   :  { %4258 = vmax.xlane.f32.xlu1 %v4257_v48 }
0x2067   :  { %v4353_v47 = vpop.f32.mrf.mxu1 }
0x2068   :  { %v4384_v29 = vmul.f32 0.35355338, %v4353_v47 }
0x206a   :  { %v4386_v30 = vadd.f32 %v5700_v4, %v4384_v29 }
0x206c   :  { %v4388_v40 = vsel %vm107_vm1, %v4386_v30, -inf }
0x206d   :  { %4389 = vmax.xlane.f32.xlu2 %v4388_v40 }
0x2073   :  { %v4256_v24 = vpop.xlane.xlu0 %4255 }
0x2074   :  { %v4260_v36 = vsub.f32 %v4252_v41, %v4256_v24 }
0x2076   :  { %v4381_v63 = vpop.f32.mrf.mxu2  ;;  %v4262_v18 = vmul.f32 1.442695, %v4260_v36 }
0x2077   :  { %v4385_v59 = vmul.f32 0.35355338, %v4381_v63 }
0x2078   :  { %5656 = vpow2.f32 %v4262_v18 }
0x2079   :  { %v4387_v57 = vadd.f32 %v5701_v54, %v4385_v59 }
0x207b   :  { %v4487_v61 = vpop.f32.mrf.mxu1  ;;  %v4391_v6 = vsel %vm107_vm1, %v4387_v57, -inf }
0x207c   :  { %v4518_v28 = vmul.f32 0.35355338, %v4487_v61  ;;  %4392 = vmax.xlane.f32.xlu0 %v4391_v6 }
0x207d   :  { %v4259_v58 = vpop.xlane.xlu1 %4258 }
0x207e   :  { %v4520_v45 = vadd.f32 %v5700_v4, %v4518_v28  ;;  %v4515_v48 = vpop.f32.mrf.mxu2  ;;  %v4261_v19 = vsub.f32 %v4253_v32, %v4259_v58  ;;  %v5657_v36 = vpop.eup %5656 }
0x207f   :  { %v4519_v47 = vmul.f32 0.35355338, %v4515_v48  ;;  %v4266_v58 = vsel %vm107_vm1, %v5657_v36, 0.0 }
0x2080   :  { %v4522_v29 = vsel %vm107_vm1, %v4520_v45, -inf  ;;  %v4264_v40 = vmul.f32 1.442695, %v4261_v19 }
0x2081   :  { %v4521_v60 = vadd.f32 %v5701_v54, %v4519_v47  ;;  %4523 = vmax.xlane.f32.xlu1 %v4522_v29 }
0x2082   :  { %5658 = vpow2.f32 %v4264_v40 }
0x2083   :  { %v4621_v63 = vpop.f32.mrf.mxu1  ;;  %v4525_v41 = vsel %vm107_vm1, %v4521_v60, -inf }
0x2084   :  { %v4652_v24 = vmul.f32 0.35355338, %v4621_v63  ;;  %4526 = vmax.xlane.f32.xlu2 %v4525_v41 }
0x2086   :  { %v4654_v59 = vadd.f32 %v5700_v4, %v4652_v24  ;;  %v4649_v61 = vpop.f32.mrf.mxu2 }
0x2087   :  { %v4653_v6 = vmul.f32 0.35355338, %v4649_v61 }
0x2088   :  { %v4656_v28 = vsel %vm107_vm1, %v4654_v59, -inf  ;;  %v5659_v18 = vpop.eup %5658 }
0x2089   :  { %v7135_v32 = vadd.f32 %v5701_v54, %v4653_v6  ;;  %4657 = vmax.xlane.f32.xlu0 %v4656_v28  ;;  %v4269_v48 = vsel %vm107_vm1, %v5659_v18, 0.0 }
0x208b   :  { %v4659_v19 = vsel %vm107_vm1, %v7135_v32, -inf }
0x208c   :  { %4267 = vadd.xlane.f32.xlu2 %v4266_v58  ;;  %4660 = vmax.xlane.f32.xlu1 %v4659_v19 }
0x2091   :  { %4270 = vadd.xlane.f32.xlu0 %v4269_v48 }
0x20a4   :  { %5432 = vrot.lane.b32.xlu2 %v7095_v16, %s7579_s25 }
0x20ac   :  { %5442 = vrot.lane.b32.xlu2 %v7095_v16, %s7573_s26 }
0x20b4   :  { %5452 = vrot.lane.b32.xlu2 %v7056_v21, %s7567_s29 }
0x20bc   :  { %5457 = vrot.lane.b32.xlu2 %v7070_v62, %s7567_s29 }
0x20e0   :  { %v4390_v4 = vpop.xlane.xlu2 %4389 }
0x20e1   :  { %v4394_v54 = vsub.f32 %v4386_v30, %v4390_v4 }
0x20e3   :  { %v4396_v47 = vmul.f32 1.442695, %v4394_v54 }
0x20e5   :  { %5660 = vpow2.f32 %v4396_v47 }
0x20eb   :  { %v7145_v29 = vpop.eup %5660 }
0x20ec   :  { %v4400_v40 = vsel %vm107_vm1, %v7145_v29, 0.0 }
0x20ed   :  { %4401 = vadd.xlane.f32.xlu1 %v4400_v40 }
0x20ef   :  { %v4393_v63 = vpop.xlane.xlu0 %4392 }
0x20f0   :  { %v4395_v41 = vsub.f32 %v4387_v57, %v4393_v63 }
0x20f2   :  { %v4398_v24 = vmul.f32 1.442695, %v4395_v41 }
0x20f4   :  { %5662 = vpow2.f32 %v4398_v24  ;;  %v4524_v61 = vpop.xlane.xlu1 %4523 }
0x20f5   :  { %v4528_v6 = vsub.f32 %v4520_v45, %v4524_v61 }
0x20f7   :  { %v4530_v28 = vmul.f32 1.442695, %v4528_v6  ;;  %v4527_v58 = vpop.xlane.xlu2 %4526 }
0x20f8   :  { %v4529_v47 = vsub.f32 %v4521_v60, %v4527_v58 }
0x20f9   :  { %5664 = vpow2.f32 %v4530_v28 }
0x20fa   :  { %v5663_v19 = vpop.eup %5662  ;;  %v4532_v45 = vmul.f32 1.442695, %v4529_v47 }
0x20fb   :  { %v4403_v30 = vsel %vm107_vm1, %v5663_v19, 0.0 }
0x20fc   :  { %v4658_v48 = vpop.xlane.xlu0 %4657  ;;  %4404 = vadd.xlane.f32.xlu0 %v4403_v30 }
0x20fd   :  { %v4662_v4 = vsub.f32 %v4654_v59, %v4658_v48 }
0x20ff   :  { %v7150_v54 = vpop.eup %5664  ;;  %v4664_v22 = vmul.f32 1.442695, %v4662_v4  ;;  %v4268_v40 = vpop.xlane.xlu2 %4267 }
0x2100   :  { %5666 = vrcp.f32 %v4268_v40  ;;  %v4534_v57 = vsel %vm107_vm1, %v7150_v54, 0.0 }
0x2101   :  { %5668 = vpow2.f32 %v4664_v22  ;;  %4535 = vadd.xlane.f32.xlu1 %v4534_v57 }
0x2104   :  { %v4271_v63 = vpop.xlane.xlu0 %4270 }
0x2105   :  { %5670 = vrcp.f32 %v4271_v63 }
0x2106   :  { %v5667_v41 = vpop.eup %5666  ;;  %5672 = vpow2.f32 %v4532_v45 }
0x2107   :  { %v7154_v24 = vpop.eup %5668  ;;  %v5433_v61 = vpop.permute.xlu2 %5432  ;;  %v7158_v28 = vmul.f32 %v5667_v41, %v5657_v36 }
0x2108   :  { %v5435_v59 = vunpack.i.h.bf16 %v5433_v61  ;;  %v5434_v6 = vunpack.i.l.bf16 %v5433_v61  ;;  %v4668_v60 = vsel %vm107_vm1, %v7154_v24, 0.0  ;;  %v4661_v36 = vpop.xlane.xlu1 %4660 }
0x2109   :  { %4669 = vadd.xlane.f32.xlu1 %v4668_v60  ;;  %v4663_v4 = vsub.f32 %v7135_v32, %v4661_v36 }
0x210a   :  { %4297 = vmatpush.msra.mxu0 %v5434_v6  ;;  %4323 = vmatpush.msra.mxu3 %v5435_v59 }
0x210b   :  { %v5671_v22 = vpop.eup %5670  ;;  %5255 = vmatmul.msk.f32.vlgmr.msra.gmra.mxu0 %vm107_vm1, %v7158_v28  ;;  %v4666_v47 = vmul.f32 1.442695, %v4663_v4 }
0x210c   :  { %v7162_v58 = vmul.f32 %v5671_v22, %v5659_v18  ;;  %v5673_v30 = vpop.eup %5672 }
0x210d   :  { %v4537_v48 = vsel %vm107_vm1, %v5673_v30, 0.0  ;;  %5674 = vpow2.f32 %v4666_v47 }
0x210e   :  { %5256 = vmatmul.msk.f32.vlgmr.msra.gmra.mxu3 %vm107_vm1, %v7162_v58 }
0x210f   :  { %v5443_v6 = vpop.permute.xlu2 %5442 }
0x2110   :  { %5437 = vrot.lane.b32.xlu0 %v7095_v16, %s7572_s2  ;;  %v5445_v4 = vunpack.i.h.bf16 %v5443_v6  ;;  %v5444_v47 = vunpack.i.l.bf16 %v5443_v6 }
0x2111   :  { %4538 = vadd.xlane.f32.xlu1 %v4537_v48 }
0x2113   :  { %v5675_v18 = vpop.eup %5674 }
0x2114   :  { %v4671_v40 = vsel %vm107_vm1, %v5675_v18, 0.0 }
0x2117   :  { %v5453_v62 = vpop.permute.xlu2 %5452 }
0x212a   :  { %5447 = vrot.lane.b32.xlu1 %v7095_v16, %s7575_s22 }
0x213a   :  { %4672 = vadd.xlane.f32.xlu0 %v4671_v40 }
0x2160   :  { %v4402_v57 = vpop.xlane.xlu1 %4401 }
0x2161   :  { %5676 = vrcp.f32 %v4402_v57 }
0x2167   :  { %v5677_v61 = vpop.eup %5676 }
0x2168   :  { %v7174_v16 = vmul.f32 %v5677_v61, %v7145_v29 }
0x216f   :  { %v4405_v63 = vpop.xlane.xlu0 %4404 }
0x2170   :  { %5678 = vrcp.f32 %v4405_v63 }
0x2174   :  { %v4536_v45 = vpop.xlane.xlu1 %4535 }
0x2175   :  { %5680 = vrcp.f32 %v4536_v45 }
0x2176   :  { %v5679_v59 = vpop.eup %5678 }
0x2177   :  { %v7176_v48 = vmul.f32 %v5679_v59, %v5663_v19 }
0x217b   :  { %v5681_v40 = vpop.eup %5680 }
0x217c   :  { %v4670_v41 = vpop.xlane.xlu1 %4669  ;;  %v7183_v29 = vmul.f32 %v5681_v40, %v7150_v54 }
0x2182   :  { %v5438_v60 = vpop.permute.xlu0 %5437 }
0x2183   :  { %v5440_v32 = vunpack.i.h.bf16 %v5438_v60  ;;  %v5439_v22 = vunpack.i.l.bf16 %v5438_v60 }
0x2184   :  { %v4539_v36 = vpop.xlane.xlu1 %4538 }
0x2185   :  { %5682 = vrcp.f32 %v4539_v36  ;;  %4431 = vmatpush.msrb.mxu0 %v5439_v22  ;;  %4457 = vmatpush.msrb.mxu3 %v5440_v32  ;;  %v5455_v36 = vunpack.i.h.bf16 %v5453_v62 }
0x2186   :  { %5261 = vmatmul.msk.f32.vlgmr.msrb.gmra.mxu0 %vm107_vm1, %v7174_v16  ;;  %5262 = vmatmul.msk.f32.vlgmr.msrb.gmra.mxu3 %vm107_vm1, %v7176_v48  ;;  %5684 = vrcp.f32 %v4670_v41 }
0x2187   :  { %4565 = vmatpush.msra.mxu0 %v5444_v47  ;;  %4591 = vmatpush.msra.mxu3 %v5445_v4  ;;  %v5454_v4 = vunpack.i.l.bf16 %v5453_v62 }
0x2188   :  { %v4299_v21 = vpop.f32.mrf.mxu0 }
0x2189   :  { %4818 = vmatpush.msrb.mxu1 %v5454_v4 }
0x218b   :  { %v5683_v57 = vpop.eup %5682  ;;  %4819 = vmatpush.msrb.mxu1 %v5455_v36 }
0x218c   :  { %v7185_v19 = vmul.f32 %v5683_v57, %v5673_v30  ;;  %v5685_v45 = vpop.eup %5684 }
0x218d   :  { %v7194_v6 = vmul.f32 %v5685_v45, %v7154_v24 }
0x218e   :  { %5267 = vmatmul.msk.f32.vlgmr.msra.gmra.mxu0 %vm107_vm1, %v7183_v29  ;;  %5268 = vmatmul.msk.f32.vlgmr.msra.gmra.mxu3 %vm107_vm1, %v7185_v19 }
0x2191   :  { %v4325_v24 = vpop.f32.mrf.mxu3 }
0x219c   :  { %v5448_v63 = vpop.permute.xlu1 %5447 }
0x219d   :  { %v5450_v61 = vunpack.i.h.bf16 %v5448_v63  ;;  %v5449_v59 = vunpack.i.l.bf16 %v5448_v63 }
0x219f   :  { %4699 = vmatpush.msrb.mxu0 %v5449_v59  ;;  %4725 = vmatpush.msrb.mxu3 %v5450_v61 }
0x21a0   :  { %5273 = vmatmul.msk.f32.vlgmr.msrb.gmra.mxu0 %vm107_vm1, %v7194_v6 }
0x21ad   :  { %v4673_v54 = vpop.xlane.xlu0 %4672 }
0x21ae   :  { %5686 = vrcp.f32 %v4673_v54 }
0x21b4   :  { %v5687_v30 = vpop.eup %5686 }
0x21b5   :  { %v7200_v41 = vmul.f32 %v5687_v30, %v5675_v18  ;;  %v5458_v18 = vpop.permute.xlu2 %5457 }
0x21b6   :  { %v5460_v40 = vunpack.i.h.bf16 %v5458_v18  ;;  %v5459_v57 = vunpack.i.l.bf16 %v5458_v18 }
0x21b7   :  { %5274 = vmatmul.msk.f32.vlgmr.msrb.gmra.mxu3 %vm107_vm1, %v7200_v41 }
0x21b8   :  { %4820 = vmatpush.msrb.mxu1 %v5459_v57 }
0x21ba   :  { %4821 = vmatpush.msrb.mxu1 %v5460_v40 }
0x2203   :  { %v4433_v60 = vpop.f32.mrf.mxu0 }
0x2204   :  { %4732 = vrot.lane.b32.xlu2 %v4433_v60, %s7569_s5 }
0x2209   :  { %v4459_v22 = vpop.f32.mrf.mxu3 }
0x220b   :  { %v4567_v32 = vpop.f32.mrf.mxu0 }
0x220c   :  { %4740 = vrot.lane.b32.xlu1 %v4567_v32, %s7570_s17 }
0x2211   :  { %v4593_v45 = vpop.f32.mrf.mxu3 }
0x2214   :  { %4734 = vrot.lane.b32.xlu1 %v4459_v22, %s7569_s5 }
0x221d   :  { %v4701_v47 = vpop.f32.mrf.mxu0 }
0x221e   :  { %4748 = vrot.lane.b32.xlu2 %v4701_v47, %s7571_s28 }
0x2226   :  { %4742 = vrot.lane.b32.xlu2 %v4593_v45, %s7570_s17 }
0x223a   :  { %v4727_v63 = vpop.f32.mrf.mxu3 }
0x223b   :  { %4750 = vrot.lane.b32.xlu1 %v4727_v63, %s7571_s28 }
0x225e   :  { %v4733_v61 = vpop.permute.xlu2 %4732 }
0x225f   :  { %v4754_v59 = vsel %vm107_vm1, %v4299_v21, %v4733_v61  ;;  %v7221_v21 = vld [vmem:[%s7511_s10 + $0x10] sm:$0xff] }
0x2260   :  { %v4787_v40 = vperm.slane %v7221_v21, 6 }
0x2278   :  { %v4749_v30 = vpop.permute.xlu2 %4748 }
0x227e   :  { %v4741_v54 = vpop.permute.xlu1 %4740 }
0x227f   :  { %v4756_v60 = vsel %vm665_vm2, %v4754_v59, %v4741_v54 }
0x2280   :  { %v4758_v32 = vsel %vm668_vm3, %v4756_v60, %v4749_v30  ;;  %v4743_v36 = vpop.permute.xlu2 %4742 }
0x2281   :  { %5277 = vmatmul.msk.f32.vlgmr.msrb.gmra.mxu1 %vm74_vm0, %v4758_v32 }
0x2286   :  { %v4735_v22 = vpop.permute.xlu1 %4734 }
0x2287   :  { %v4755_v62 = vsel %vm107_vm1, %v4325_v24, %v4735_v22 }
0x2288   :  { %v4757_v47 = vsel %vm665_vm2, %v4755_v62, %v4743_v36 }
0x22ad   :  { %v4751_v4 = vpop.permute.xlu1 %4750 }
0x22ae   :  { %v4759_v18 = vsel %vm668_vm3, %v4757_v47, %v4751_v4 }
0x22af   :  { %5278 = vmatmul.msk.f32.gmra.mxu1 %vm74_vm0, %v4759_v18 }
0x22fe   :  { %v4823_v57 = vpop.f32.mrf.mxu1 }
0x22ff   :  { %v4824_v45 = vadd.f32 %v4823_v57, %v4787_v40 }
0x2301   :  { %v4829_v63 = vadd.f32 %v4824_v45, %v7082_v8 }
0x2303   :  { %v4831_v24 = vsel %vm74_vm0, %v4829_v63, 0.0 }
0x2304   :  { %4832 = vadd.xlane.f32.xlu0 %v4831_v24  ;;  %v7319_v24 = vld [vmem:[%s7511_s10 + $0x18] sm:$0xff] }
0x232c   :  { %v4826_v61 = vpop.f32.mrf.mxu1 }
0x232d   :  { %v4827_v59 = vadd.f32 %v4826_v61, %v4787_v40 }
0x232f   :  { %v4830_v54 = vadd.f32 %v4827_v59, %v7086_v34 }
0x2331   :  { %v4834_v30 = vsel %vm74_vm0, %v4830_v54, 0.0 }
0x2332   :  { %4835 = vadd.xlane.f32.xlu2 %v4834_v30  ;;  %v4878_v30 = vperm.slane %v7319_v24, 0 }
0x234a   :  { %671 = vrot.lane.b32.xlu2 %v5990_v52, %s7569_s5 }
0x2352   :  { %1533 = vrot.lane.b32.xlu2 %v6246_v37, %s7569_s5 }
0x235a   :  { %2390 = vrot.lane.b32.xlu2 %v6523_v44, %s7569_s5 }
0x2362   :  { %4003 = vrot.lane.b32.xlu2 %v7007_v2, %s7569_s5 }
0x236a   :  { %4762 = vrot.lane.b32.xlu2 %v7176_v48, %s7569_s5 }
0x2372   :  { %1537 = vrot.lane.b32.xlu2 %v6260_v51, %s7570_s17 }
0x2377   :  { %v4833_v8 = vpop.xlane.xlu0 %4832 }
0x2378   :  { %v4837_v34 = vmul.f32 %v4833_v8, %v6036_v15 }
0x237a   :  { %v7241_v60 = vsub.f32 %v4829_v63, %v4837_v34  ;;  %2396 = vrot.lane.b32.xlu2 %v6528_v10, %s7570_s17 }
0x237c   :  { %v4841_v52 = vmul.f32 %v7241_v60, %v7241_v60 }
0x237e   :  { %v4843_v37 = vsel %vm74_vm0, %v4841_v52, 0.0 }
0x237f   :  { %4844 = vadd.xlane.f32.xlu1 %v4843_v37 }
0x2382   :  { %4009 = vrot.lane.b32.xlu2 %v7019_v12, %s7570_s17 }
0x238a   :  { %4768 = vrot.lane.b32.xlu2 %v7185_v19, %s7570_s17 }
0x2392   :  { %1543 = vrot.lane.b32.xlu2 %v6264_v46, %s7571_s28 }
0x2398   :  { %1531 = vrot.lane.b32.xlu1 %v6248_v38, %s7569_s5 }
0x239a   :  { %2402 = vrot.lane.b32.xlu2 %v6536_v14, %s7571_s28 }
0x23a0   :  { %3150 = vrot.lane.b32.xlu1 %v6738_v13, %s7569_s5 }
0x23a2   :  { %4015 = vrot.lane.b32.xlu2 %v7023_v26, %s7571_s28 }
0x23a5   :  { %v4836_v51 = vpop.xlane.xlu2 %4835 }
0x23a6   :  { %v4838_v44 = vmul.f32 %v4836_v51, %v6036_v15 }
0x23a8   :  { %v7263_v10 = vsub.f32 %v4830_v54, %v4838_v44  ;;  %4005 = vrot.lane.b32.xlu1 %v7005_v35, %s7569_s5  ;;  %v4875_v54 = vperm.slane %v7221_v21, 7 }
0x23aa   :  { %4774 = vrot.lane.b32.xlu2 %v7200_v41, %s7571_s28  ;;  %v4842_v38 = vmul.f32 %v7263_v10, %v7263_v10 }
0x23ac   :  { %v4846_v46 = vsel %vm74_vm0, %v4842_v38, 0.0 }
0x23ad   :  { %4847 = vadd.xlane.f32.xlu0 %v4846_v46  ;;  %v7272_v14 = vpop.permute.xlu2 %671 }
0x23b0   :  { %677 = vrot.lane.b32.xlu1 %v5999_v23, %s7570_s17 }
0x23b5   :  { %v7276_v13 = vpop.permute.xlu2 %1533 }
0x23b8   :  { %1539 = vrot.lane.b32.xlu1 %v6255_v49, %s7570_s17 }
0x23bd   :  { %v2391_v35 = vpop.permute.xlu2 %2390 }
0x23be   :  { %v2407_v32 = vsel %vm107_vm1, %v6511_v50, %v2391_v35 }
0x23c0   :  { %3156 = vrot.lane.b32.xlu1 %v6742_v39, %s7570_s17  ;;  %v5206_v39 = vld [vmem:[%s7509_s8 + $0xb8] sm:$0xff] }
0x23c1   :  { %4900 = vmatpush.msra.mxu2 %v5206_v39 }
0x23c5   :  { %v4004_v2 = vpop.permute.xlu2 %4003 }
0x23c6   :  { %v4021_v57 = vsel %vm107_vm1, %v6997_v0, %v4004_v2 }
0x23c8   :  { %4011 = vrot.lane.b32.xlu1 %v7014_v31, %s7570_s17 }
0x23cd   :  { %v4763_v12 = vpop.permute.xlu2 %4762 }
0x23ce   :  { %v4779_v51 = vsel %vm107_vm1, %v7162_v58, %v4763_v12 }
0x23d0   :  { %683 = vrot.lane.b32.xlu1 %v6004_v1, %s7571_s28  ;;  %v5203_v1 = vld [vmem:[%s7509_s8 + $0xa0] sm:$0xff] }
0x23d1   :  { %4901 = vmatpush.msra.mxu2 %v5203_v1 }
0x23d5   :  { %v1538_v26 = vpop.permute.xlu2 %1537 }
0x23d8   :  { %1545 = vrot.lane.b32.xlu1 %v6268_v55, %s7571_s28  ;;  %v5200_v55 = vld [vmem:[%s7509_s8 + $0x88] sm:$0xff] }
0x23d9   :  { %4902 = vmatpush.msra.mxu2 %v5200_v55 }
0x23dd   :  { %v2397_v23 = vpop.permute.xlu2 %2396 }
0x23de   :  { %v2409_v62 = vsel %vm665_vm2, %v2407_v32, %v2397_v23 }
0x23e0   :  { %3162 = vrot.lane.b32.xlu1 %v6746_v33, %s7571_s28  ;;  %v5197_v33 = vld [vmem:[%s7509_s8 + $0x70] sm:$0xff] }
0x23e1   :  { %4903 = vmatpush.msra.mxu2 %v5197_v33 }
0x23e5   :  { %v4010_v49 = vpop.permute.xlu2 %4009 }
0x23e6   :  { %v4023_v50 = vsel %vm665_vm2, %v4021_v57, %v4010_v49 }
0x23e8   :  { %4017 = vrot.lane.b32.xlu1 %v7027_v53, %s7571_s28 }
0x23ed   :  { %v4769_v31 = vpop.permute.xlu2 %4768 }
0x23ee   :  { %v4781_v44 = vsel %vm665_vm2, %v4779_v51, %v4769_v31 }
0x23f2   :  { %v4845_v53 = vpop.xlane.xlu1 %4844 }
0x23f3   :  { %v4849_v48 = vmul.f32 %v4845_v53, %v6036_v15 }
0x23f5   :  { %v4851_v19 = vadd.f32 1e-05, %v4849_v48  ;;  %v1544_v41 = vpop.permute.xlu2 %1543 }
0x23f7   :  { %5688 = vrsqrt.f32 %v4851_v19  ;;  %vm4859_vm10 = vweird.f32 %v4851_v19 }
0x23fd   :  { %v5689_v22 = vpop.eup %5688  ;;  %v2403_v36 = vpop.permute.xlu2 %2402 }
0x23fe   :  { %v4854_v4 = vmul.f32 %v5689_v22, %v4851_v19  ;;  %v2411_v47 = vsel %vm668_vm3, %v2409_v62, %v2403_v36  ;;  %vm4860_vm9 = vweird.f32 %v5689_v22  ;;  %v5214_v36 = vld [vmem:[%s7514_s9 + $0x78] sm:$0xff] }
0x23ff   :  { %2413 = vst.msk [vmem:[%s7515_s15 + $0x8] sm:$0xff] %vm74_vm0, %v2411_v47  ;;  %vm4861_vm12 = vmor %vm4859_vm10, %vm4860_vm9  ;;  %4928 = vmatpush.msra.mxu0 %v5214_v36  ;;  %v5212_v47 = vld [vmem:[%s7514_s9 + $0x68] sm:$0xff] }
0x2400   :  { %v4855_v18 = vmul.f32 %v5689_v22, %v4854_v4  ;;  %v5213_v4 = vld [vmem:[%s7514_s9 + $0x70] sm:$0xff] }
0x2401   :  { %4929 = vmatpush.msra.mxu0 %v5213_v4 }
0x2402   :  { %v4856_v40 = vmul.f32 0.5, %v4855_v18  ;;  %v689_v18 = vsel %vm107_vm1, %v5976_v17, %v7272_v14  ;;  %v1550_v17 = vsel %vm107_vm1, %v6242_v42, %v7276_v13 }
0x2403   :  { %4930 = vmatpush.msra.mxu0 %v5212_v47 }
0x2404   :  { %v4857_v45 = vsub.f32 1.5, %v4856_v40 }
0x2405   :  { %v4016_v63 = vpop.permute.xlu2 %4015 }
0x2406   :  { %v4858_v61 = vmul.f32 %v5689_v22, %v4857_v45  ;;  %v4025_v59 = vsel %vm668_vm3, %v4023_v50, %v4016_v63  ;;  %v5210_v45 = vld [vmem:[%s7514_s9 + $0x58] sm:$0xff] }
0x2407   :  { %5243 = vst.msk [vmem:[%s7515_s15 + $0x10] sm:$0xff] %vm74_vm0, %v4025_v59 }
0x2408   :  { %v4862_v0 = vsel %vm4861_vm12, %v5689_v22, %v4858_v61 }
0x2409   :  { %v4873_v8 = vmul.f32 %v4862_v0, %v7241_v60 }
0x240a   :  { %v1532_v34 = vpop.permute.xlu1 %1531 }
0x240b   :  { %v4876_v52 = vmul.f32 %v4875_v54, %v4873_v8  ;;  %v1549_v37 = vsel %vm107_vm1, %v6238_v27, %v1532_v34 }
0x240c   :  { %v1551_v21 = vsel %vm665_vm2, %v1549_v37, %v1538_v26  ;;  %v4881_v37 = vperm.slane %v7319_v24, 1 }
0x240d   :  { %v7335_v38 = vadd.f32 %v4878_v30, %v4876_v52  ;;  %v1553_v46 = vsel %vm668_vm3, %v1551_v21, %v1544_v41  ;;  %v4775_v35 = vpop.permute.xlu2 %4774  ;;  %v5208_v52 = vld [vmem:[%s7514_s9 + $0x48] sm:$0xff] }
0x240e   :  { %v4783_v2 = vsel %vm668_vm3, %v4781_v44, %v4775_v35  ;;  %5125 = vst.msk [vmem:[%s7516_s14 + $0x10] sm:$0xff] %vm74_vm0, %v1553_v46 }
0x240f   :  { %5276 = vst.msk [vmem:[%s7517_s16 + $0x18] sm:$0xff] %vm74_vm0, %v4783_v2  ;;  %5279 = vmatmul.msk.f32.vlgmr.msra.gmra.mxu2 %vm74_vm0, %v7335_v38 }
0x2412   :  { %v3151_v27 = vpop.permute.xlu1 %3150 }
0x2413   :  { %v3168_v59 = vsel %vm107_vm1, %v6725_v25, %v3151_v27  ;;  %v5209_v25 = vld [vmem:[%s7514_s9 + $0x50] sm:$0xff]  ;;  %v4913_v27 = vperm.slane %v7319_v24, 2 }
0x241a   :  { %v4006_v58 = vpop.permute.xlu1 %4005 }
0x241b   :  { %v4022_v42 = vsel %vm107_vm1, %v7001_v7, %v4006_v58  ;;  %v5207_v7 = vld [vmem:[%s7514_s9 + $0x40] sm:$0xff] }
0x2420   :  { %v4848_v60 = vpop.xlane.xlu0 %4847 }
0x2421   :  { %v4850_v12 = vmul.f32 %v4848_v60, %v6036_v15 }
0x2422   :  { %v678_v26 = vpop.permute.xlu1 %677 }
0x2423   :  { %v4852_v23 = vadd.f32 1e-05, %v4850_v12  ;;  %v691_v40 = vsel %vm665_vm2, %v689_v18, %v678_v26 }
0x2425   :  { %5690 = vrsqrt.f32 %v4852_v23  ;;  %vm4869_vm14 = vweird.f32 %v4852_v23 }
0x242a   :  { %v1540_v49 = vpop.permute.xlu1 %1539 }
0x242b   :  { %v5691_v39 = vpop.eup %5690  ;;  %v1552_v14 = vsel %vm665_vm2, %v1550_v17, %v1540_v49 }
0x242c   :  { %v4864_v1 = vmul.f32 %v5691_v39, %v4852_v23  ;;  %vm4870_vm13 = vweird.f32 %v5691_v39 }
0x242d   :  { %vm4871_vm15 = vmor %vm4869_vm14, %vm4870_vm13 }
0x242e   :  { %v4865_v55 = vmul.f32 %v5691_v39, %v4864_v1 }
0x2430   :  { %v4866_v31 = vmul.f32 0.5, %v4865_v55 }
0x2432   :  { %v4867_v33 = vsub.f32 1.5, %v4866_v31  ;;  %v3157_v53 = vpop.permute.xlu1 %3156 }
0x2434   :  { %v4868_v48 = vmul.f32 %v5691_v39, %v4867_v33 }
0x2436   :  { %v4872_v19 = vsel %vm4871_vm15, %v5691_v39, %v4868_v48 }
0x2437   :  { %v4874_v41 = vmul.f32 %v4872_v19, %v7263_v10  ;;  %v5211_v10 = vld [vmem:[%s7514_s9 + $0x60] sm:$0xff] }
0x2438   :  { %4931 = vmatpush.msra.mxu0 %v5211_v10 }
0x2439   :  { %v4877_v32 = vmul.f32 %v4875_v54, %v4874_v41  ;;  %v3170_v54 = vsel %vm665_vm2, %v3168_v59, %v3157_v53 }
0x243a   :  { %v4012_v22 = vpop.permute.xlu1 %4011  ;;  %4932 = vmatpush.msra.mxu0 %v5210_v45  ;;  %v4992_v45 = vperm.slane %v7319_v24, 4 }
0x243b   :  { %v4880_v62 = vadd.f32 %v4878_v30, %v4877_v32  ;;  %v4024_v13 = vsel %vm665_vm2, %v4022_v42, %v4012_v22 }
0x243c   :  { %4933 = vmatpush.msra.mxu0 %v5209_v25 }
0x243d   :  { %5280 = vmatmul.msk.f32.gmra.mxu2 %vm74_vm0, %v4880_v62 }
0x243e   :  { %4934 = vmatpush.msra.mxu0 %v5208_v52 }
0x2440   :  { %4935 = vmatpush.msra.mxu0 %v5207_v7 }
0x2442   :  { %v684_v57 = vpop.permute.xlu1 %683 }
0x2443   :  { %v693_v50 = vsel %vm668_vm3, %v691_v40, %v684_v57 }
0x2444   :  { %695 = vst.msk [vmem:[%s7516_s14] sm:$0xff] %vm74_vm0, %v693_v50 }
0x244a   :  { %v1546_v63 = vpop.permute.xlu1 %1545 }
0x244b   :  { %v1554_v61 = vsel %vm668_vm3, %v1552_v14, %v1546_v63 }
0x244c   :  { %5126 = vst.msk [vmem:[%s7516_s14 + $0x18] sm:$0xff] %vm74_vm0, %v1554_v61 }
0x2452   :  { %v3163_v0 = vpop.permute.xlu1 %3162 }
0x2453   :  { %v3172_v30 = vsel %vm668_vm3, %v3170_v54, %v3163_v0 }
0x2454   :  { %3174 = vst.msk [vmem:[%s7517_s16] sm:$0xff] %vm74_vm0, %v3172_v30 }
0x245a   :  { %v4018_v8 = vpop.permute.xlu1 %4017 }
0x245b   :  { %v4026_v34 = vsel %vm668_vm3, %v4024_v13, %v4018_v8 }
0x245c   :  { %5244 = vst.msk [vmem:[%s7515_s15 + $0x18] sm:$0xff] %vm74_vm0, %v4026_v34 }
0x2492   :  { %v4905_v51 = vpop.f32.mrf.mxu2 }
0x2493   :  { %v4906_v21 = vadd.f32 %v4905_v51, %v4881_v37 }
0x2495   :  { %v4911_v44 = vmax.f32 %v4906_v21, 0.0 }
0x2497   :  { %5281 = vmatmul.msk.f32.vlgmr.msra.gmra.mxu0 %vm835_vm11, %v4911_v44 }
0x24c0   :  { %v4908_v46 = vpop.f32.mrf.mxu2 }
0x24c1   :  { %v4909_v35 = vadd.f32 %v4908_v46, %v4881_v37 }
0x24c3   :  { %v4912_v2 = vmax.f32 %v4909_v35, 0.0  ;;  %v7589_v35 = vld [vmem:[#allocation2_spill] sm:$0xff] }
0x24c5   :  { %5282 = vmatmul.msk.f32.gmra.mxu0 %vm835_vm11, %v4912_v2 }
0x2514   :  { %v4937_v58 = vpop.f32.mrf.mxu0 }
0x2515   :  { %v4938_v60 = vadd.f32 %v4937_v58, %v4913_v27 }
0x2517   :  { %v4943_v12 = vadd.f32 %v4938_v60, %v7335_v38 }
0x2519   :  { %v4945_v26 = vsel %vm74_vm0, %v4943_v12, 0.0 }
0x251a   :  { %4946 = vadd.xlane.f32.xlu0 %v4945_v26 }
0x2542   :  { %v4940_v23 = vpop.f32.mrf.mxu0 }
0x2543   :  { %v4941_v49 = vadd.f32 %v4940_v23, %v4913_v27 }
0x2545   :  { %v4944_v39 = vadd.f32 %v4941_v49, %v4880_v62  ;;  %v4998_v62 = vld [vmem:[%s7586_s21 + $0x18] sm:$0xff] }
0x2546   :  { %5021 = vmatpush.msra.mxu3 %v4998_v62 }
0x2547   :  { %v4948_v1 = vsel %vm74_vm0, %v4944_v39, 0.0 }
0x2548   :  { %4949 = vadd.xlane.f32.xlu0 %v4948_v1  ;;  %v7591_v1 = vld [vmem:[#allocation5_spill] sm:$0xff] }
0x258d   :  { %v4947_v55 = vpop.xlane.xlu0 %4946 }
0x258e   :  { %v4951_v31 = vmul.f32 %v4947_v55, %v6036_v15 }
0x2590   :  { %v4953_v33 = vsub.f32 %v4943_v12, %v4951_v31  ;;  %v7590_v12 = vld [vmem:[#allocation3_spill] sm:$0xff] }
0x2592   :  { %v4955_v53 = vmul.f32 %v4953_v33, %v4953_v33 }
0x2594   :  { %v4957_v48 = vsel %vm74_vm0, %v4955_v53, 0.0 }
0x2595   :  { %4958 = vadd.xlane.f32.xlu0 %v4957_v48 }
0x25bb   :  { %v4950_v19 = vpop.xlane.xlu0 %4949 }
0x25bc   :  { %v4952_v38 = vmul.f32 %v4950_v19, %v6036_v15 }
0x25be   :  { %v4954_v41 = vsub.f32 %v4944_v39, %v4952_v38 }
0x25c0   :  { %v4956_v32 = vmul.f32 %v4954_v41, %v4954_v41 }
0x25c2   :  { %v4960_v22 = vsel %vm74_vm0, %v4956_v32, 0.0  ;;  %v5461_v32 = vld [vmem:[%s7592_s1] ss:$0 sm:$0xff] }
0x25c3   :  { %4961 = vadd.xlane.f32.xlu0 %v4960_v22 }
0x25d7   :  { %673 = vrot.lane.b32.xlu0 %v5937_v20, %s7569_s5  ;;  %v4997_v20 = vld [vmem:[%s7586_s21 + $0x10] sm:$0xff] }
0x25d8   :  { %5022 = vmatpush.msra.mxu3 %v4997_v20 }
0x25df   :  { %2388 = vrot.lane.b32.xlu0 %v6503_v11, %s7569_s5  ;;  %v4996_v11 = vld [vmem:[%s7586_s21 + $0x8] sm:$0xff] }
0x25e0   :  { %5023 = vmatpush.msra.mxu3 %v4996_v11 }
0x25e7   :  { %3152 = vrot.lane.b32.xlu0 %v6748_v43, %s7569_s5 }
0x25ef   :  { %4760 = vrot.lane.b32.xlu0 %v7174_v16, %s7569_s5 }
0x25f7   :  { %679 = vrot.lane.b32.xlu0 %v6008_v3, %s7570_s17  ;;  %v4995_v3 = vld [vmem:[%s7586_s21] sm:$0xff] }
0x25f8   :  { %5024 = vmatpush.msra.mxu3 %v4995_v3 }
0x25ff   :  { %2394 = vrot.lane.b32.xlu0 %v6515_v9, %s7570_s17 }
0x2607   :  { %3158 = vrot.lane.b32.xlu0 %v6754_v56, %s7570_s17  ;;  %v4989_v56 = vperm.slane %v7319_v24, 3 }
0x2608   :  { %v4959_v9 = vpop.xlane.xlu0 %4958 }
0x2609   :  { %v4963_v43 = vmul.f32 %v4959_v9, %v6036_v15 }
0x260b   :  { %v4965_v16 = vadd.f32 1e-05, %v4963_v43 }
0x260d   :  { %5692 = vrsqrt.f32 %v4965_v16  ;;  %vm4973_vm4 = vweird.f32 %v4965_v16 }
0x260f   :  { %4766 = vrot.lane.b32.xlu0 %v7183_v29, %s7570_s17  ;;  %v7587_v29 = vld [vmem:[#allocation4_spill] sm:$0xff] }
0x2613   :  { %v5693_v36 = vpop.eup %5692 }
0x2614   :  { %v4968_v4 = vmul.f32 %v5693_v36, %v4965_v16  ;;  %vm4974_vm11 = vweird.f32 %v5693_v36 }
0x2615   :  { %vm4975_vm5 = vmor %vm4973_vm4, %vm4974_vm11 }
0x2616   :  { %v4969_v47 = vmul.f32 %v5693_v36, %v4968_v4 }
0x2617   :  { %685 = vrot.lane.b32.xlu0 %v6012_v5, %s7571_s28  ;;  %v7588_v5 = vld [vmem:[#allocation6_spill] sm:$0xff] }
0x2618   :  { %v4970_v10 = vmul.f32 0.5, %v4969_v47 }
0x261a   :  { %v4971_v18 = vsub.f32 1.5, %v4970_v10 }
0x261c   :  { %v4972_v40 = vmul.f32 %v5693_v36, %v4971_v18 }
0x261e   :  { %v4976_v57 = vsel %vm4975_vm5, %v5693_v36, %v4972_v40 }
0x261f   :  { %v4987_v50 = vmul.f32 %v4976_v57, %v4953_v33  ;;  %2400 = vrot.lane.b32.xlu0 %v7587_v29, %s7571_s28 }
0x2621   :  { %v4990_v17 = vmul.f32 %v4989_v56, %v4987_v50 }
0x2623   :  { %v4993_v14 = vadd.f32 %v4992_v45, %v4990_v17 }
0x2625   :  { %5283 = vmatmul.msk.f32.vlgmr.msra.gmra.mxu3 %vm74_vm0, %v4993_v14 }
0x2627   :  { %3164 = vrot.lane.b32.xlu0 %v7588_v5, %s7571_s28 }
0x262f   :  { %4772 = vrot.lane.b32.xlu0 %v7194_v6, %s7571_s28 }
0x2636   :  { %v4962_v63 = vpop.xlane.xlu0 %4961 }
0x2637   :  { %v4964_v61 = vmul.f32 %v4962_v63, %v6036_v15 }
0x2639   :  { %v4966_v59 = vadd.f32 1e-05, %v4964_v61 }
0x263b   :  { %5694 = vrsqrt.f32 %v4966_v59  ;;  %vm4983_vm7 = vweird.f32 %v4966_v59 }
0x2641   :  { %v5695_v24 = vpop.eup %5694 }
0x2642   :  { %v4978_v54 = vmul.f32 %v5695_v24, %v4966_v59  ;;  %vm4984_vm6 = vweird.f32 %v5695_v24 }
0x2643   :  { %vm4985_vm8 = vmor %vm4983_vm7, %vm4984_vm6 }
0x2644   :  { %v4979_v0 = vmul.f32 %v5695_v24, %v4978_v54 }
0x2646   :  { %v4980_v30 = vmul.f32 0.5, %v4979_v0 }
0x2648   :  { %v4981_v42 = vsub.f32 1.5, %v4980_v30 }
0x2649   :  { %v674_v13 = vpop.permute.xlu0 %673 }
0x264a   :  { %v4982_v8 = vmul.f32 %v5695_v24, %v4981_v42  ;;  %v690_v2 = vsel %vm107_vm1, %v7589_v35, %v674_v13 }
0x264c   :  { %v4986_v34 = vsel %vm4985_vm8, %v5695_v24, %v4982_v8 }
0x264d   :  { %v4988_v25 = vmul.f32 %v4986_v34, %v4954_v41 }
0x264f   :  { %v4991_v52 = vmul.f32 %v4989_v56, %v4988_v25 }
0x2651   :  { %v2389_v7 = vpop.permute.xlu0 %2388  ;;  %v4994_v6 = vadd.f32 %v4992_v45, %v4991_v52 }
0x2652   :  { %v2406_v26 = vsel %vm107_vm1, %v7590_v12, %v2389_v7 }
0x2653   :  { %5284 = vmatmul.msk.f32.gmra.mxu3 %vm74_vm0, %v4994_v6 }
0x2659   :  { %v3153_v15 = vpop.permute.xlu0 %3152 }
0x265a   :  { %v3169_v55 = vsel %vm107_vm1, %v7591_v1, %v3153_v15 }
0x2661   :  { %v4761_v37 = vpop.permute.xlu0 %4760 }
0x2662   :  { %v4778_v48 = vsel %vm107_vm1, %v7158_v28, %v4761_v37 }
0x2669   :  { %v680_v51 = vpop.permute.xlu0 %679 }
0x266a   :  { %v692_v27 = vsel %vm665_vm2, %v690_v2, %v680_v51 }
0x2671   :  { %v2395_v21 = vpop.permute.xlu0 %2394 }
0x2672   :  { %v2408_v23 = vsel %vm665_vm2, %v2406_v26, %v2395_v21 }
0x2679   :  { %v3159_v44 = vpop.permute.xlu0 %3158 }
0x267a   :  { %v3171_v31 = vsel %vm665_vm2, %v3169_v55, %v3159_v44 }
0x2681   :  { %v4767_v46 = vpop.permute.xlu0 %4766 }
0x2682   :  { %v4780_v19 = vsel %vm665_vm2, %v4778_v48, %v4767_v46 }
0x2689   :  { %v686_v58 = vpop.permute.xlu0 %685 }
0x268a   :  { %v694_v60 = vsel %vm668_vm3, %v692_v27, %v686_v58 }
0x268b   :  { %696 = vst.msk [vmem:[%s7516_s14 + $0x8] sm:$0xff] %vm74_vm0, %v694_v60 }
0x2691   :  { %v2401_v49 = vpop.permute.xlu0 %2400 }
0x2692   :  { %v2410_v39 = vsel %vm668_vm3, %v2408_v23, %v2401_v49 }
0x2693   :  { %2412 = vst.msk [vmem:[%s7515_s15] sm:$0xff] %vm74_vm0, %v2410_v39 }
0x2699   :  { %v3165_v33 = vpop.permute.xlu0 %3164 }
0x269a   :  { %v3173_v53 = vsel %vm668_vm3, %v3171_v31, %v3165_v33 }
0x269b   :  { %3175 = vst.msk [vmem:[%s7517_s16 + $0x8] sm:$0xff] %vm74_vm0, %v3173_v53 }
0x26a1   :  { %v4773_v38 = vpop.permute.xlu0 %4772 }
0x26a2   :  { %v4782_v41 = vsel %vm668_vm3, %v4780_v19, %v4773_v38 }
0x26a3   :  { %5275 = vst.msk [vmem:[%s7517_s16 + $0x10] sm:$0xff] %vm74_vm0, %v4782_v41 }
0x26a8   :  { %v5026_v22 = vpop.f32.mrf.mxu3 }
0x26a9   :  { %v5027_v62 = vadd.f32 %v5461_v32, %v5026_v22 }
0x26ab   :  { %5032 = vst [vmem:[%s7593_s18] sm:$0xff] %v5027_v62 }
0x26d6   :  { %v5029_v28 = vpop.f32.mrf.mxu3 }
0x26d7   :  { %v5030_v20 = vadd.f32 %v5461_v32, %v5029_v28 }
0x26d9   :  { %5033 = vst [vmem:[%s7593_s18 + $0x8] sm:$0xff] %v5030_v20 }

</bundles_post_ra>
